<compile_context>
chip_gen: v5e
topology: v5e:2x2
jax: 0.10.0
libtpu: 0.0.40
codegen_flags: <defaults>
</compile_context>

<pallas_src>
import functools
import numpy as np

import jax
import jax.numpy as jnp
from jax.experimental import pallas as pl
from jax.experimental.pallas import tpu as pltpu

LRELU_SLOPE = 0.1
_CDT = jnp.bfloat16                 # storage/matmul-operand dtype
_VMEM_LIMIT = 32 * 1024 * 1024      # safe on v5e / v6e / v7x


def _get_padding(kernel, dilation):
    return dilation * (kernel - 1) // 2


# ----------------------------------------------------------------------------
# Core Pallas kernel: a static chain of stride-1 "folded" convolutions applied
# to one batch element.  Each op builds a deep slab of shifted slices of the
# current activation (in VMEM) and does a single MXU matmul:
#   y = W_flat (Cout, R) @ slab (R, T_out)   (+ bias, optional leaky_relu)
# ops: tuple of (pad, starts, t_out, slope, out_idx), all static Python ints.
# refs layout: (w_0, b_0, w_1, b_1, ..., out_0, out_1, ...)
# ----------------------------------------------------------------------------
def _chain_kernel(x_ref, *refs, ops):
    n_ops = len(ops)
    w_refs = refs[: 2 * n_ops]
    out_refs = refs[2 * n_ops:]

    a = x_ref[0]                                           # (Cin, T) bf16
    for i, (pad, starts, t_out, slope, out_idx) in enumerate(ops):
        w_ref, b_ref = w_refs[2 * i], w_refs[2 * i + 1]
        if pad > 0:                                        # in-kernel zero pad
            z = jnp.zeros((a.shape[0], pad), a.dtype)
            ap = jnp.concatenate([z, a, z], axis=1)
        else:
            ap = a
        rows = [ap[:, s:s + t_out] for s in starts]        # static slices
        slab = rows[0] if len(rows) == 1 else jnp.concatenate(rows, axis=0)
        y = jnp.dot(w_ref[...], slab,
                    preferred_element_type=jnp.float32)    # (Cout, T_out) f32
        y = y + b_ref[...]                                 # (Cout, 1) lane bcast
        if slope is not None:                              # fused leaky_relu
            y = jnp.where(y >= 0.0, y, slope * y)
        if out_idx is not None:
            o_ref = out_refs[out_idx]
            o_ref[0] = y.astype(o_ref.dtype)
        a = y.astype(_CDT)                                 # feeds next op


def _run_chain(x, weights, biases, ops, out_shapes, out_dtypes):
    """x: (B, Cin, T); weights[i]: (Cout_i, R_i) bf16; biases[i]: (Cout_i, 1) f32."""
    B, Cin, T = x.shape
    args = [x.astype(_CDT)]
    in_specs = [pl.BlockSpec((1, Cin, T), lambda b: (b, 0, 0))]
    bytes_acc = B * Cin * T * 2
    flops = 0
    for w, bvec in zip(weights, biases):
        args.append(w)
        args.append(bvec)
        in_specs.append(pl.BlockSpec(w.shape, lambda b: (0, 0)))
        in_specs.append(pl.BlockSpec(bvec.shape, lambda b: (0, 0)))
        bytes_acc += w.size * w.dtype.itemsize + bvec.size * 4
    for op, w in zip(ops, weights):
        flops += 2 * B * int(w.shape[0]) * int(w.shape[1]) * int(op[2])

    out_shape = tuple(jax.ShapeDtypeStruct((B,) + s, d)
                      for s, d in zip(out_shapes, out_dtypes))
    out_specs = tuple(pl.BlockSpec((1,) + s, lambda b: (b, 0, 0))
                      for s in out_shapes)
    for s, d in zip(out_shapes, out_dtypes):
        bytes_acc += B * int(np.prod(s)) * jnp.dtype(d).itemsize

    return pl.pallas_call(
        functools.partial(_chain_kernel, ops=ops),
        out_shape=out_shape,
        grid=(B,),
        in_specs=in_specs,
        out_specs=out_specs,
        compiler_params=pltpu.CompilerParams(
            dimension_semantics=("parallel",),
            vmem_limit_bytes=_VMEM_LIMIT),
        cost_estimate=pl.CostEstimate(flops=flops, transcendentals=0,
                                      bytes_accessed=bytes_acc),
    )(*args)


# ----------------------------------------------------------------------------
# SubBandDiscriminator forward: consecutive stride-1 stages are grouped into a
# single fused pallas_call; a stride>1 conv_out ends its group (computed at
# full resolution in-kernel, downsampled by an XLA strided slice in glue).
# ----------------------------------------------------------------------------
def sbd_forward(sp, x):
    mdcs = sp["mdcs"]
    n_mdc = len(mdcs)
    fmap = []
    cur = x
    i = 0
    post_done = False
    while i < n_mdc:
        t = int(cur.shape[2])
        weights, biases, ops, out_shapes, out_dtypes, strides = [], [], [], [], [], []
        j = i
        while j < n_mdc:
            mp = mdcs[j]
            K, dils, stride, C = mp["kernel"], mp["dils"], mp["stride"], mp["channels"]
            pmax = max(_get_padding(K, d) for d in dils)
            dstarts = tuple((pmax - _get_padding(K, d)) + d * k
                            for d in dils for k in range(K))
            weights += [mp["w_dil"], mp["w_out"]]
            biases += [mp["b_dil"], mp["b_out"]]
            # MDC stage 1: mean of D dilated convs (weights pre-scaled by 1/D).
            ops.append((pmax, dstarts, t, None, None))
            # MDC stage 2: conv_out at full (stride-1) resolution + leaky_relu.
            ops.append((1, (0, 1, 2), t, LRELU_SLOPE, len(out_shapes)))
            out_shapes.append((C, t))
            out_dtypes.append(jnp.float32)
            strides.append(stride)
            j += 1
            if stride > 1:          # group ends; downsample happens in glue
                break
        fuse_post = (j == n_mdc) and (strides[-1] == 1)
        if fuse_post:
            weights.append(sp["w_post"])
            biases.append(sp["b_post"])
            ops.append((1, (0, 1, 2), t, None, len(out_shapes)))
            out_shapes.append((1, t))
            out_dtypes.append(jnp.float32)

        outs = _run_chain(cur, weights, biases, tuple(ops),
                          tuple(out_shapes), tuple(out_dtypes))

        mdc_outs = []
        for k, idx in enumerate(range(i, j)):
            s = mdcs[idx]["stride"]
            y = outs[k] if s == 1 else outs[k][:, :, ::s]
            mdc_outs.append(y)
        fmap += mdc_outs
        cur = mdc_outs[-1]
        if fuse_post:
            fmap.append(outs[len(mdc_outs)])
            post_done = True
        i = j

    if not post_done:               # post conv as its own small fused call
        t = int(cur.shape[2])
        outs = _run_chain(cur, [sp["w_post"]], [sp["b_post"]],
                          ((1, (0, 1, 2), t, None, 0),),
                          ((1, t),), (jnp.float32,))
        fmap.append(outs[0])

    y_final = fmap[-1]
    return y_final.reshape(y_final.shape[0], -1), fmap     # torch.flatten(x,1,-1)


# ----------------------------------------------------------------------------
# PQMF analysis: conv1d(x, H, padding=taps//2, stride=N) lowered via polyphase
# decomposition to a stride-1 conv with Kq taps over N channels -> one deep
# matmul (contraction N*Kq = 264/272) per batch element.
# ----------------------------------------------------------------------------
def _firwin_kaiser(numtaps, cutoff, beta):
    # TODO(synk): approximation of scipy.signal.firwin (Kaiser window);
    #             validate H against the torch PQMF buffer for exact parity.
    n = np.arange(numtaps) - (numtaps - 1) / 2.0
    h = cutoff * np.sinc(cutoff * n)
    h = h * np.kaiser(numtaps, beta)
    return h / np.sum(h)


def init_pqmf(N, taps, cutoff, beta):
    qmf = _firwin_kaiser(taps + 1, cutoff, beta)
    H = np.zeros((N, taps + 1))
    for k in range(N):
        const = (2 * k + 1) * (np.pi / (2 * N)) * (np.arange(taps + 1) - (taps - 1) / 2)
        phase = (-1) ** k * np.pi / 4
        H[k] = 2 * qmf * np.cos(const + phase)
    Kq = -(-(taps + 1) // N)
    w = np.zeros((N, Kq * N), np.float32)
    w[:, :taps + 1] = H                 # row index q*N + r == original tap index
    return dict(w=jnp.asarray(w, _CDT), b=jnp.zeros((N, 1), jnp.float32),
                N=int(N), taps=int(taps), Kq=int(Kq))


def pqmf_analysis(x, pq):
    B, _, T = x.shape
    N, taps, Kq = pq["N"], pq["taps"], pq["Kq"]
    pad = taps // 2
    Tp = T + 2 * pad
    T_out = (Tp - (taps + 1)) // N + 1
    S = T_out + Kq - 1
    L = N * S
    xpad = jnp.pad(x, ((0, 0), (0, 0), (pad, pad + max(0, L - Tp))))[:, :, :L]
    xpoly = xpad.reshape(B, 1, S, N).transpose(0, 1, 3, 2).reshape(B, N, S)
    ops = ((0, tuple(range(Kq)), T_out, None, 0),)
    outs = _run_chain(xpoly, [pq["w"]], [pq["b"]], ops, ((N, T_out),), (_CDT,))
    return outs[0]                                          # (B, N, T_out) bf16


# ----------------------------------------------------------------------------
# Parameter init (weight_norm at init is identity -> plain conv weights).
# All packing / casting hoisted here, out of the forward path.
# ----------------------------------------------------------------------------
def init_mdc(key, in_ch, ch, kernel, dilations, stride):
    D = len(dilations)
    keys = jax.random.split(key, 2 * D + 2)
    ws, bs = [], []
    for i in range(D):
        ws.append(0.1 * jax.random.normal(keys[2 * i], (ch, in_ch, kernel), jnp.float32))
        bs.append(0.01 * jax.random.normal(keys[2 * i + 1], (ch,), jnp.float32))
    w_out = 0.1 * jax.random.normal(keys[-2], (ch, ch, 3), jnp.float32)
    b_out = 0.01 * jax.random.normal(keys[-1], (ch,), jnp.float32)

    # Packed dilated-sum weight: (ch, D*K*in_ch), row order (d, k, c), scaled 1/D.
    w_dil = jnp.stack(ws, 0)                                 # (D, ch, in_ch, K)
    w_dil = jnp.transpose(w_dil, (1, 0, 3, 2)).reshape(ch, D * kernel * in_ch)
    w_dil = (w_dil / D).astype(_CDT)
    b_dil = (sum(bs) / D).reshape(ch, 1).astype(jnp.float32)
    # Packed conv_out weight: (ch, 3*ch), row order (k, c).
    w_out_p = jnp.transpose(w_out, (0, 2, 1)).reshape(ch, 3 * ch).astype(_CDT)
    b_out_p = b_out.reshape(ch, 1).astype(jnp.float32)
    return dict(w_dil=w_dil, b_dil=b_dil, w_out=w_out_p, b_out=b_out_p,
                dils=tuple(int(d) for d in dilations), kernel=int(kernel),
                stride=int(stride), channels=int(ch), in_channels=int(in_ch))


def init_sbd(key, init_channel, channels, kernel, strides, dilations):
    keys = jax.random.split(key, len(channels) + 1)
    mdcs = []
    in_ch = init_channel
    for i, (c, s, d) in enumerate(zip(channels, strides, dilations)):
        mdcs.append(init_mdc(keys[i], in_ch, c, kernel, d, s))
        in_ch = c
    kw, kb = jax.random.split(keys[-1])
    w_post = 0.1 * jax.random.normal(kw, (1, in_ch, 3), jnp.float32)
    b_post = 0.01 * jax.random.normal(kb, (1,), jnp.float32)
    w_post_p = jnp.transpose(w_post, (0, 2, 1)).reshape(1, 3 * in_ch).astype(_CDT)
    b_post_p = b_post.reshape(1, 1).astype(jnp.float32)
    return dict(mdcs=mdcs, w_post=w_post_p, b_post=b_post_p)


def init_msbd(key, tkernels, fkernel, tchannels, fchannels, tstrides, fstride,
              tdilations, fdilations, tsubband, n, m, freq_init_ch):
    k1, k2, k3, k4 = jax.random.split(key, 4)
    return dict(
        fsbd=init_sbd(k1, freq_init_ch, fchannels, fkernel, fstride, fdilations),
        tsbd1=init_sbd(k2, tsubband[0], tchannels, tkernels[0], tstrides[0], tdilations[0]),
        tsbd2=init_sbd(k3, tsubband[1], tchannels, tkernels[1], tstrides[1], tdilations[1]),
        tsbd3=init_sbd(k4, tsubband[2], tchannels, tkernels[2], tstrides[2], tdilations[2]),
        tsubband=tuple(int(t) for t in tsubband),
        pqmf_n=init_pqmf(n, 256, 0.03, 10.0),
        pqmf_m=init_pqmf(m, 256, 0.10, 9.0),
    )


# ----------------------------------------------------------------------------
# MultiSubBandDiscriminator forward (real/fake concatenated along batch so
# every weight set is launched exactly once).
# ----------------------------------------------------------------------------
def msbd_forward(params, x, x_hat):
    B = x.shape[0]
    xcat = jnp.concatenate([x, x_hat], axis=0)              # (2B, 1, T)
    ts1, ts2, ts3 = params["tsubband"]

    xn = pqmf_analysis(xcat, params["pqmf_n"])               # (2B, n, T/n)
    xm = pqmf_analysis(xcat, params["pqmf_m"])               # (2B, m, T/m)
    xm = jnp.swapaxes(xm, -2, -1)                            # (2B, T/m, m)

    def split(q, f):
        return q[:B], q[B:], [t[:B] for t in f], [t[B:] for t in f]

    y, y_hat, fmap, fmap_hat = [], [], [], []
    for sbd_key, xin in (("tsbd3", xn[:, :ts3, :]),
                         ("tsbd2", xn[:, :ts2, :]),
                         ("tsbd1", xn[:, :ts1, :]),
                         ("fsbd", xm)):
        q, f = sbd_forward(params[sbd_key], xin)
        qa, qb, fa, fb = split(q, f)
        y.append(qa)
        y_hat.append(qb)
        fmap.append(fa)
        fmap_hat.append(fb)
    return y, y_hat, fmap, fmap_hat


if __name__ == "__main__":
    key = jax.random.PRNGKey(0)

    # Small synthetic config, same structure as the Avocodo MSBD (downsized).
    B, T = 2, 1024
    n, m = 8, 16
    tsubband = [2, 4, 8]
    tkernels = [3, 5, 7]
    tchannels = [8, 16, 16]
    tstrides = [[1, 1, 2], [1, 1, 2], [1, 1, 2]]
    tdilations = [[[1, 2], [1, 2], [1, 2]],
                  [[1, 2, 3], [1, 2, 3], [1, 2, 3]],
                  [[1, 2, 5], [1, 2, 5], [1, 2, 5]]]
    fkernel = 5
    fchannels = [8, 16, 16]
    fstride = [1, 1, 2]
    fdilations = [[1, 2], [1, 2], [1, 2]]
    freq_init_ch = T // m                                    # 64, matches xm.T channels

    k_params, k_x, k_xh = jax.random.split(key, 3)
    params = init_msbd(k_params, tkernels, fkernel, tchannels, fchannels,
                       tstrides, fstride, tdilations, fdilations,
                       tsubband, n, m, freq_init_ch)

    x = jax.random.normal(k_x, (B, 1, T), jnp.float32)
    x_hat = jax.random.normal(k_xh, (B, 1, T), jnp.float32)

    fwd = jax.jit(lambda a, b: msbd_forward(params, a, b))
    out = fwd(x, x_hat)
    jax.block_until_ready(out)
    print("KERNEL_OK")
</pallas_src>

<mosaic_0001>
module attributes {stable_mosaic.version = 11 : i64} {
  func.func @_chain_kernel(%arg0: i32, %arg1: memref<1x64x16xbf16, #tpu.memory_space<vmem>>, %arg2: memref<8x640xbf16, #tpu.memory_space<vmem>>, %arg3: memref<8x1xf32, #tpu.memory_space<vmem>>, %arg4: memref<8x24xbf16, #tpu.memory_space<vmem>>, %arg5: memref<8x1xf32, #tpu.memory_space<vmem>>, %arg6: memref<16x80xbf16, #tpu.memory_space<vmem>>, %arg7: memref<16x1xf32, #tpu.memory_space<vmem>>, %arg8: memref<16x48xbf16, #tpu.memory_space<vmem>>, %arg9: memref<16x1xf32, #tpu.memory_space<vmem>>, %arg10: memref<16x160xbf16, #tpu.memory_space<vmem>>, %arg11: memref<16x1xf32, #tpu.memory_space<vmem>>, %arg12: memref<16x48xbf16, #tpu.memory_space<vmem>>, %arg13: memref<16x1xf32, #tpu.memory_space<vmem>>, %arg14: memref<1x8x16xf32, #tpu.memory_space<vmem>>, %arg15: memref<1x16x16xf32, #tpu.memory_space<vmem>>, %arg16: memref<1x16x16xf32, #tpu.memory_space<vmem>>) attributes {dimension_semantics = [#tpu.dimension_semantics<parallel>], iteration_bounds = array<i64: 4>, scalar_prefetch = 0 : i64, scratch_operands = 0 : i64, tpu.core_type = #tpu.core_type<tc>, window_params = [{transform_indices = @transform_0, window_bounds = array<i64: 1, 64, 16>}, {pipeline_mode = #tpu.pipeline_mode<synchronous>, transform_indices = @transform_1, window_bounds = array<i64: 8, 640>}, {pipeline_mode = #tpu.pipeline_mode<synchronous>, transform_indices = @transform_2, window_bounds = array<i64: 8, 1>}, {pipeline_mode = #tpu.pipeline_mode<synchronous>, transform_indices = @transform_3, window_bounds = array<i64: 8, 24>}, {pipeline_mode = #tpu.pipeline_mode<synchronous>, transform_indices = @transform_4, window_bounds = array<i64: 8, 1>}, {pipeline_mode = #tpu.pipeline_mode<synchronous>, transform_indices = @transform_5, window_bounds = array<i64: 16, 80>}, {pipeline_mode = #tpu.pipeline_mode<synchronous>, transform_indices = @transform_6, window_bounds = array<i64: 16, 1>}, {pipeline_mode = #tpu.pipeline_mode<synchronous>, transform_indices = @transform_7, window_bounds = array<i64: 16, 48>}, {pipeline_mode = #tpu.pipeline_mode<synchronous>, transform_indices = @transform_8, window_bounds = array<i64: 16, 1>}, {pipeline_mode = #tpu.pipeline_mode<synchronous>, transform_indices = @transform_9, window_bounds = array<i64: 16, 160>}, {pipeline_mode = #tpu.pipeline_mode<synchronous>, transform_indices = @transform_10, window_bounds = array<i64: 16, 1>}, {pipeline_mode = #tpu.pipeline_mode<synchronous>, transform_indices = @transform_11, window_bounds = array<i64: 16, 48>}, {pipeline_mode = #tpu.pipeline_mode<synchronous>, transform_indices = @transform_12, window_bounds = array<i64: 16, 1>}, {transform_indices = @transform_13, window_bounds = array<i64: 1, 8, 16>}, {transform_indices = @transform_14, window_bounds = array<i64: 1, 16, 16>}, {transform_indices = @transform_15, window_bounds = array<i64: 1, 16, 16>}]} {
    %c0 = arith.constant 0 : index
    %c0_0 = arith.constant 0 : index
    %c0_1 = arith.constant 0 : index
    %0 = vector.load %arg1[%c0, %c0_0, %c0_1] : memref<1x64x16xbf16, #tpu.memory_space<vmem>>, vector<1x64x16xbf16>
    %1 = vector.shape_cast %0 : vector<1x64x16xbf16> to vector<64x16xbf16>
    %cst = arith.constant 0.000000e+00 : bf16
    %2 = vector.broadcast %cst : bf16 to vector<64x4xbf16>
    %3 = tpu.concatenate %2, %1, %2 in 1 : vector<64x4xbf16>, vector<64x16xbf16>, vector<64x4xbf16> -> vector<64x24xbf16>
    %4 = vector.extract_strided_slice %3 {offsets = [0, 2], sizes = [64, 16], strides = [1, 1]} : vector<64x24xbf16> to vector<64x16xbf16>
    %5 = vector.extract_strided_slice %3 {offsets = [0, 3], sizes = [64, 16], strides = [1, 1]} : vector<64x24xbf16> to vector<64x16xbf16>
    %6 = vector.extract_strided_slice %3 {offsets = [0, 4], sizes = [64, 16], strides = [1, 1]} : vector<64x24xbf16> to vector<64x16xbf16>
    %7 = vector.extract_strided_slice %3 {offsets = [0, 5], sizes = [64, 16], strides = [1, 1]} : vector<64x24xbf16> to vector<64x16xbf16>
    %8 = vector.extract_strided_slice %3 {offsets = [0, 6], sizes = [64, 16], strides = [1, 1]} : vector<64x24xbf16> to vector<64x16xbf16>
    %9 = vector.extract_strided_slice %3 {offsets = [0, 0], sizes = [64, 16], strides = [1, 1]} : vector<64x24xbf16> to vector<64x16xbf16>
    %10 = vector.extract_strided_slice %3 {offsets = [0, 2], sizes = [64, 16], strides = [1, 1]} : vector<64x24xbf16> to vector<64x16xbf16>
    %11 = vector.extract_strided_slice %3 {offsets = [0, 4], sizes = [64, 16], strides = [1, 1]} : vector<64x24xbf16> to vector<64x16xbf16>
    %12 = vector.extract_strided_slice %3 {offsets = [0, 6], sizes = [64, 16], strides = [1, 1]} : vector<64x24xbf16> to vector<64x16xbf16>
    %13 = vector.extract_strided_slice %3 {offsets = [0, 8], sizes = [64, 16], strides = [1, 1]} : vector<64x24xbf16> to vector<64x16xbf16>
    %14 = tpu.concatenate %4, %5, %6, %7, %8, %9, %10, %11, %12, %13 in 0 : vector<64x16xbf16>, vector<64x16xbf16>, vector<64x16xbf16>, vector<64x16xbf16>, vector<64x16xbf16>, vector<64x16xbf16>, vector<64x16xbf16>, vector<64x16xbf16>, vector<64x16xbf16>, vector<64x16xbf16> -> vector<640x16xbf16>
    %c0_2 = arith.constant 0 : index
    %c0_3 = arith.constant 0 : index
    %15 = vector.load %arg2[%c0_2, %c0_3] : memref<8x640xbf16, #tpu.memory_space<vmem>>, vector<8x640xbf16>
    %cst_4 = arith.constant dense<0.000000e+00> : vector<8x16xf32>
    %16 = tpu.matmul %15, %14, %cst_4 {dimension_numbers = #tpu.dot_dimension_numbers<[1], [0], [0], [1], [0, 0, 1, 1], [], []>} : vector<8x640xbf16>, vector<640x16xbf16>, vector<8x16xf32> -> vector<8x16xf32>
    %c0_5 = arith.constant 0 : index
    %c0_6 = arith.constant 0 : index
    %17 = vector.load %arg3[%c0_5, %c0_6] : memref<8x1xf32, #tpu.memory_space<vmem>>, vector<8x1xf32>
    %18 = vector.broadcast %17 : vector<8x1xf32> to vector<8x16xf32>
    %19 = arith.addf %16, %18 : vector<8x16xf32>
    %20 = arith.truncf %19 : vector<8x16xf32> to vector<8x16xbf16>
    %cst_7 = arith.constant 0.000000e+00 : bf16
    %21 = vector.broadcast %cst_7 : bf16 to vector<8x1xbf16>
    %22 = tpu.concatenate %21, %20, %21 in 1 : vector<8x1xbf16>, vector<8x16xbf16>, vector<8x1xbf16> -> vector<8x18xbf16>
    %23 = vector.extract_strided_slice %22 {offsets = [0, 0], sizes = [8, 16], strides = [1, 1]} : vector<8x18xbf16> to vector<8x16xbf16>
    %24 = vector.extract_strided_slice %22 {offsets = [0, 1], sizes = [8, 16], strides = [1, 1]} : vector<8x18xbf16> to vector<8x16xbf16>
    %25 = vector.extract_strided_slice %22 {offsets = [0, 2], sizes = [8, 16], strides = [1, 1]} : vector<8x18xbf16> to vector<8x16xbf16>
    %26 = tpu.concatenate %23, %24, %25 in 0 : vector<8x16xbf16>, vector<8x16xbf16>, vector<8x16xbf16> -> vector<24x16xbf16>
    %c0_8 = arith.constant 0 : index
    %c0_9 = arith.constant 0 : index
    %27 = vector.load %arg4[%c0_8, %c0_9] : memref<8x24xbf16, #tpu.memory_space<vmem>>, vector<8x24xbf16>
    %cst_10 = arith.constant dense<0.000000e+00> : vector<8x16xf32>
    %28 = tpu.matmul %27, %26, %cst_10 {dimension_numbers = #tpu.dot_dimension_numbers<[1], [0], [0], [1], [0, 0, 1, 1], [], []>} : vector<8x24xbf16>, vector<24x16xbf16>, vector<8x16xf32> -> vector<8x16xf32>
    %c0_11 = arith.constant 0 : index
    %c0_12 = arith.constant 0 : index
    %29 = vector.load %arg5[%c0_11, %c0_12] : memref<8x1xf32, #tpu.memory_space<vmem>>, vector<8x1xf32>
    %30 = vector.broadcast %29 : vector<8x1xf32> to vector<8x16xf32>
    %31 = arith.addf %28, %30 : vector<8x16xf32>
    %cst_13 = arith.constant 0.000000e+00 : f32
    %32 = vector.broadcast %cst_13 : f32 to vector<8x16xf32>
    %33 = arith.cmpf oge, %31, %32 : vector<8x16xf32>
    %cst_14 = arith.constant 1.000000e-01 : f32
    %34 = vector.broadcast %cst_14 : f32 to vector<8x16xf32>
    %35 = arith.mulf %34, %31 : vector<8x16xf32>
    %36 = arith.select %33, %31, %35 : vector<8x16xi1>, vector<8x16xf32>
    %c0_15 = arith.constant 0 : index
    %c0_16 = arith.constant 0 : index
    %c0_17 = arith.constant 0 : index
    %37 = vector.load %arg14[%c0_15, %c0_16, %c0_17] : memref<1x8x16xf32, #tpu.memory_space<vmem>>, vector<1x8x16xf32>
    %38 = vector.shape_cast %37 : vector<1x8x16xf32> to vector<8x16xf32>
    %39 = vector.shape_cast %36 : vector<8x16xf32> to vector<1x8x16xf32>
    tpu.vector_store %arg14[%c0_15, %c0_16, %c0_17], %39 {strides = array<i32>} : memref<1x8x16xf32, #tpu.memory_space<vmem>>, vector<1x8x16xf32>,
    %40 = arith.truncf %36 : vector<8x16xf32> to vector<8x16xbf16>
    %cst_18 = arith.constant 0.000000e+00 : bf16
    %41 = vector.broadcast %cst_18 : bf16 to vector<8x4xbf16>
    %42 = tpu.concatenate %41, %40, %41 in 1 : vector<8x4xbf16>, vector<8x16xbf16>, vector<8x4xbf16> -> vector<8x24xbf16>
    %43 = vector.extract_strided_slice %42 {offsets = [0, 2], sizes = [8, 16], strides = [1, 1]} : vector<8x24xbf16> to vector<8x16xbf16>
    %44 = vector.extract_strided_slice %42 {offsets = [0, 3], sizes = [8, 16], strides = [1, 1]} : vector<8x24xbf16> to vector<8x16xbf16>
    %45 = vector.extract_strided_slice %42 {offsets = [0, 4], sizes = [8, 16], strides = [1, 1]} : vector<8x24xbf16> to vector<8x16xbf16>
    %46 = vector.extract_strided_slice %42 {offsets = [0, 5], sizes = [8, 16], strides = [1, 1]} : vector<8x24xbf16> to vector<8x16xbf16>
    %47 = vector.extract_strided_slice %42 {offsets = [0, 6], sizes = [8, 16], strides = [1, 1]} : vector<8x24xbf16> to vector<8x16xbf16>
    %48 = vector.extract_strided_slice %42 {offsets = [0, 0], sizes = [8, 16], strides = [1, 1]} : vector<8x24xbf16> to vector<8x16xbf16>
    %49 = vector.extract_strided_slice %42 {offsets = [0, 2], sizes = [8, 16], strides = [1, 1]} : vector<8x24xbf16> to vector<8x16xbf16>
    %50 = vector.extract_strided_slice %42 {offsets = [0, 4], sizes = [8, 16], strides = [1, 1]} : vector<8x24xbf16> to vector<8x16xbf16>
    %51 = vector.extract_strided_slice %42 {offsets = [0, 6], sizes = [8, 16], strides = [1, 1]} : vector<8x24xbf16> to vector<8x16xbf16>
    %52 = vector.extract_strided_slice %42 {offsets = [0, 8], sizes = [8, 16], strides = [1, 1]} : vector<8x24xbf16> to vector<8x16xbf16>
    %53 = tpu.concatenate %43, %44, %45, %46, %47, %48, %49, %50, %51, %52 in 0 : vector<8x16xbf16>, vector<8x16xbf16>, vector<8x16xbf16>, vector<8x16xbf16>, vector<8x16xbf16>, vector<8x16xbf16>, vector<8x16xbf16>, vector<8x16xbf16>, vector<8x16xbf16>, vector<8x16xbf16> -> vector<80x16xbf16>
    %c0_19 = arith.constant 0 : index
    %c0_20 = arith.constant 0 : index
    %54 = vector.load %arg6[%c0_19, %c0_20] : memref<16x80xbf16, #tpu.memory_space<vmem>>, vector<16x80xbf16>
    %cst_21 = arith.constant dense<0.000000e+00> : vector<16x16xf32>
    %55 = tpu.matmul %54, %53, %cst_21 {dimension_numbers = #tpu.dot_dimension_numbers<[1], [0], [0], [1], [0, 0, 1, 1], [], []>} : vector<16x80xbf16>, vector<80x16xbf16>, vector<16x16xf32> -> vector<16x16xf32>
    %c0_22 = arith.constant 0 : index
    %c0_23 = arith.constant 0 : index
    %56 = vector.load %arg7[%c0_22, %c0_23] : memref<16x1xf32, #tpu.memory_space<vmem>>, vector<16x1xf32>
    %57 = vector.broadcast %56 : vector<16x1xf32> to vector<16x16xf32>
    %58 = arith.addf %55, %57 : vector<16x16xf32>
    %59 = arith.truncf %58 : vector<16x16xf32> to vector<16x16xbf16>
    %cst_24 = arith.constant 0.000000e+00 : bf16
    %60 = vector.broadcast %cst_24 : bf16 to vector<16x1xbf16>
    %61 = tpu.concatenate %60, %59, %60 in 1 : vector<16x1xbf16>, vector<16x16xbf16>, vector<16x1xbf16> -> vector<16x18xbf16>
    %62 = vector.extract_strided_slice %61 {offsets = [0, 0], sizes = [16, 16], strides = [1, 1]} : vector<16x18xbf16> to vector<16x16xbf16>
    %63 = vector.extract_strided_slice %61 {offsets = [0, 1], sizes = [16, 16], strides = [1, 1]} : vector<16x18xbf16> to vector<16x16xbf16>
    %64 = vector.extract_strided_slice %61 {offsets = [0, 2], sizes = [16, 16], strides = [1, 1]} : vector<16x18xbf16> to vector<16x16xbf16>
    %65 = tpu.concatenate %62, %63, %64 in 0 : vector<16x16xbf16>, vector<16x16xbf16>, vector<16x16xbf16> -> vector<48x16xbf16>
    %c0_25 = arith.constant 0 : index
    %c0_26 = arith.constant 0 : index
    %66 = vector.load %arg8[%c0_25, %c0_26] : memref<16x48xbf16, #tpu.memory_space<vmem>>, vector<16x48xbf16>
    %cst_27 = arith.constant dense<0.000000e+00> : vector<16x16xf32>
    %67 = tpu.matmul %66, %65, %cst_27 {dimension_numbers = #tpu.dot_dimension_numbers<[1], [0], [0], [1], [0, 0, 1, 1], [], []>} : vector<16x48xbf16>, vector<48x16xbf16>, vector<16x16xf32> -> vector<16x16xf32>
    %c0_28 = arith.constant 0 : index
    %c0_29 = arith.constant 0 : index
    %68 = vector.load %arg9[%c0_28, %c0_29] : memref<16x1xf32, #tpu.memory_space<vmem>>, vector<16x1xf32>
    %69 = vector.broadcast %68 : vector<16x1xf32> to vector<16x16xf32>
    %70 = arith.addf %67, %69 : vector<16x16xf32>
    %cst_30 = arith.constant 0.000000e+00 : f32
    %71 = vector.broadcast %cst_30 : f32 to vector<16x16xf32>
    %72 = arith.cmpf oge, %70, %71 : vector<16x16xf32>
    %cst_31 = arith.constant 1.000000e-01 : f32
    %73 = vector.broadcast %cst_31 : f32 to vector<16x16xf32>
    %74 = arith.mulf %73, %70 : vector<16x16xf32>
    %75 = arith.select %72, %70, %74 : vector<16x16xi1>, vector<16x16xf32>
    %c0_32 = arith.constant 0 : index
    %c0_33 = arith.constant 0 : index
    %c0_34 = arith.constant 0 : index
    %76 = vector.load %arg15[%c0_32, %c0_33, %c0_34] : memref<1x16x16xf32, #tpu.memory_space<vmem>>, vector<1x16x16xf32>
    %77 = vector.shape_cast %76 : vector<1x16x16xf32> to vector<16x16xf32>
    %78 = vector.shape_cast %75 : vector<16x16xf32> to vector<1x16x16xf32>
    tpu.vector_store %arg15[%c0_32, %c0_33, %c0_34], %78 {strides = array<i32>} : memref<1x16x16xf32, #tpu.memory_space<vmem>>, vector<1x16x16xf32>,
    %79 = arith.truncf %75 : vector<16x16xf32> to vector<16x16xbf16>
    %cst_35 = arith.constant 0.000000e+00 : bf16
    %80 = vector.broadcast %cst_35 : bf16 to vector<16x4xbf16>
    %81 = tpu.concatenate %80, %79, %80 in 1 : vector<16x4xbf16>, vector<16x16xbf16>, vector<16x4xbf16> -> vector<16x24xbf16>
    %82 = vector.extract_strided_slice %81 {offsets = [0, 2], sizes = [16, 16], strides = [1, 1]} : vector<16x24xbf16> to vector<16x16xbf16>
    %83 = vector.extract_strided_slice %81 {offsets = [0, 3], sizes = [16, 16], strides = [1, 1]} : vector<16x24xbf16> to vector<16x16xbf16>
    %84 = vector.extract_strided_slice %81 {offsets = [0, 4], sizes = [16, 16], strides = [1, 1]} : vector<16x24xbf16> to vector<16x16xbf16>
    %85 = vector.extract_strided_slice %81 {offsets = [0, 5], sizes = [16, 16], strides = [1, 1]} : vector<16x24xbf16> to vector<16x16xbf16>
    %86 = vector.extract_strided_slice %81 {offsets = [0, 6], sizes = [16, 16], strides = [1, 1]} : vector<16x24xbf16> to vector<16x16xbf16>
    %87 = vector.extract_strided_slice %81 {offsets = [0, 0], sizes = [16, 16], strides = [1, 1]} : vector<16x24xbf16> to vector<16x16xbf16>
    %88 = vector.extract_strided_slice %81 {offsets = [0, 2], sizes = [16, 16], strides = [1, 1]} : vector<16x24xbf16> to vector<16x16xbf16>
    %89 = vector.extract_strided_slice %81 {offsets = [0, 4], sizes = [16, 16], strides = [1, 1]} : vector<16x24xbf16> to vector<16x16xbf16>
    %90 = vector.extract_strided_slice %81 {offsets = [0, 6], sizes = [16, 16], strides = [1, 1]} : vector<16x24xbf16> to vector<16x16xbf16>
    %91 = vector.extract_strided_slice %81 {offsets = [0, 8], sizes = [16, 16], strides = [1, 1]} : vector<16x24xbf16> to vector<16x16xbf16>
    %92 = tpu.concatenate %82, %83, %84, %85, %86, %87, %88, %89, %90, %91 in 0 : vector<16x16xbf16>, vector<16x16xbf16>, vector<16x16xbf16>, vector<16x16xbf16>, vector<16x16xbf16>, vector<16x16xbf16>, vector<16x16xbf16>, vector<16x16xbf16>, vector<16x16xbf16>, vector<16x16xbf16> -> vector<160x16xbf16>
    %c0_36 = arith.constant 0 : index
    %c0_37 = arith.constant 0 : index
    %93 = vector.load %arg10[%c0_36, %c0_37] : memref<16x160xbf16, #tpu.memory_space<vmem>>, vector<16x160xbf16>
    %cst_38 = arith.constant dense<0.000000e+00> : vector<16x16xf32>
    %94 = tpu.matmul %93, %92, %cst_38 {dimension_numbers = #tpu.dot_dimension_numbers<[1], [0], [0], [1], [0, 0, 1, 1], [], []>} : vector<16x160xbf16>, vector<160x16xbf16>, vector<16x16xf32> -> vector<16x16xf32>
    %c0_39 = arith.constant 0 : index
    %c0_40 = arith.constant 0 : index
    %95 = vector.load %arg11[%c0_39, %c0_40] : memref<16x1xf32, #tpu.memory_space<vmem>>, vector<16x1xf32>
    %96 = vector.broadcast %95 : vector<16x1xf32> to vector<16x16xf32>
    %97 = arith.addf %94, %96 : vector<16x16xf32>
    %98 = arith.truncf %97 : vector<16x16xf32> to vector<16x16xbf16>
    %cst_41 = arith.constant 0.000000e+00 : bf16
    %99 = vector.broadcast %cst_41 : bf16 to vector<16x1xbf16>
    %100 = tpu.concatenate %99, %98, %99 in 1 : vector<16x1xbf16>, vector<16x16xbf16>, vector<16x1xbf16> -> vector<16x18xbf16>
    %101 = vector.extract_strided_slice %100 {offsets = [0, 0], sizes = [16, 16], strides = [1, 1]} : vector<16x18xbf16> to vector<16x16xbf16>
    %102 = vector.extract_strided_slice %100 {offsets = [0, 1], sizes = [16, 16], strides = [1, 1]} : vector<16x18xbf16> to vector<16x16xbf16>
    %103 = vector.extract_strided_slice %100 {offsets = [0, 2], sizes = [16, 16], strides = [1, 1]} : vector<16x18xbf16> to vector<16x16xbf16>
    %104 = tpu.concatenate %101, %102, %103 in 0 : vector<16x16xbf16>, vector<16x16xbf16>, vector<16x16xbf16> -> vector<48x16xbf16>
    %c0_42 = arith.constant 0 : index
    %c0_43 = arith.constant 0 : index
    %105 = vector.load %arg12[%c0_42, %c0_43] : memref<16x48xbf16, #tpu.memory_space<vmem>>, vector<16x48xbf16>
    %cst_44 = arith.constant dense<0.000000e+00> : vector<16x16xf32>
    %106 = tpu.matmul %105, %104, %cst_44 {dimension_numbers = #tpu.dot_dimension_numbers<[1], [0], [0], [1], [0, 0, 1, 1], [], []>} : vector<16x48xbf16>, vector<48x16xbf16>, vector<16x16xf32> -> vector<16x16xf32>
    %c0_45 = arith.constant 0 : index
    %c0_46 = arith.constant 0 : index
    %107 = vector.load %arg13[%c0_45, %c0_46] : memref<16x1xf32, #tpu.memory_space<vmem>>, vector<16x1xf32>
    %108 = vector.broadcast %107 : vector<16x1xf32> to vector<16x16xf32>
    %109 = arith.addf %106, %108 : vector<16x16xf32>
    %cst_47 = arith.constant 0.000000e+00 : f32
    %110 = vector.broadcast %cst_47 : f32 to vector<16x16xf32>
    %111 = arith.cmpf oge, %109, %110 : vector<16x16xf32>
    %cst_48 = arith.constant 1.000000e-01 : f32
    %112 = vector.broadcast %cst_48 : f32 to vector<16x16xf32>
    %113 = arith.mulf %112, %109 : vector<16x16xf32>
    %114 = arith.select %111, %109, %113 : vector<16x16xi1>, vector<16x16xf32>
    %c0_49 = arith.constant 0 : index
    %c0_50 = arith.constant 0 : index
    %c0_51 = arith.constant 0 : index
    %115 = vector.load %arg16[%c0_49, %c0_50, %c0_51] : memref<1x16x16xf32, #tpu.memory_space<vmem>>, vector<1x16x16xf32>
    %116 = vector.shape_cast %115 : vector<1x16x16xf32> to vector<16x16xf32>
    %117 = vector.shape_cast %114 : vector<16x16xf32> to vector<1x16x16xf32>
    tpu.vector_store %arg16[%c0_49, %c0_50, %c0_51], %117 {strides = array<i32>} : memref<1x16x16xf32, #tpu.memory_space<vmem>>, vector<1x16x16xf32>,
    return
  }
  func.func @transform_0(%arg0: i32) -> (i32, i32, i32) {
    %c0_i32 = arith.constant 0 : i32
    %c0_i32_0 = arith.constant 0 : i32
    %c0_i32_1 = arith.constant 0 : i32
    return %arg0, %c0_i32, %c0_i32_0 : i32, i32, i32
  }
  func.func @transform_1(%arg0: i32) -> (i32, i32) {
    %c0_i32 = arith.constant 0 : i32
    %c0_i32_0 = arith.constant 0 : i32
    %c0_i32_1 = arith.constant 0 : i32
    return %c0_i32, %c0_i32_0 : i32, i32
  }
  func.func @transform_2(%arg0: i32) -> (i32, i32) {
    %c0_i32 = arith.constant 0 : i32
    %c0_i32_0 = arith.constant 0 : i32
    %c0_i32_1 = arith.constant 0 : i32
    return %c0_i32, %c0_i32_0 : i32, i32
  }
  func.func @transform_3(%arg0: i32) -> (i32, i32) {
    %c0_i32 = arith.constant 0 : i32
    %c0_i32_0 = arith.constant 0 : i32
    %c0_i32_1 = arith.constant 0 : i32
    return %c0_i32, %c0_i32_0 : i32, i32
  }
  func.func @transform_4(%arg0: i32) -> (i32, i32) {
    %c0_i32 = arith.constant 0 : i32
    %c0_i32_0 = arith.constant 0 : i32
    %c0_i32_1 = arith.constant 0 : i32
    return %c0_i32, %c0_i32_0 : i32, i32
  }
  func.func @transform_5(%arg0: i32) -> (i32, i32) {
    %c0_i32 = arith.constant 0 : i32
    %c0_i32_0 = arith.constant 0 : i32
    %c0_i32_1 = arith.constant 0 : i32
    return %c0_i32, %c0_i32_0 : i32, i32
  }
  func.func @transform_6(%arg0: i32) -> (i32, i32) {
    %c0_i32 = arith.constant 0 : i32
    %c0_i32_0 = arith.constant 0 : i32
    %c0_i32_1 = arith.constant 0 : i32
    return %c0_i32, %c0_i32_0 : i32, i32
  }
  func.func @transform_7(%arg0: i32) -> (i32, i32) {
    %c0_i32 = arith.constant 0 : i32
    %c0_i32_0 = arith.constant 0 : i32
    %c0_i32_1 = arith.constant 0 : i32
    return %c0_i32, %c0_i32_0 : i32, i32
  }
  func.func @transform_8(%arg0: i32) -> (i32, i32) {
    %c0_i32 = arith.constant 0 : i32
    %c0_i32_0 = arith.constant 0 : i32
    %c0_i32_1 = arith.constant 0 : i32
    return %c0_i32, %c0_i32_0 : i32, i32
  }
  func.func @transform_9(%arg0: i32) -> (i32, i32) {
    %c0_i32 = arith.constant 0 : i32
    %c0_i32_0 = arith.constant 0 : i32
    %c0_i32_1 = arith.constant 0 : i32
    return %c0_i32, %c0_i32_0 : i32, i32
  }
  func.func @transform_10(%arg0: i32) -> (i32, i32) {
    %c0_i32 = arith.constant 0 : i32
    %c0_i32_0 = arith.constant 0 : i32
    %c0_i32_1 = arith.constant 0 : i32
    return %c0_i32, %c0_i32_0 : i32, i32
  }
  func.func @transform_11(%arg0: i32) -> (i32, i32) {
    %c0_i32 = arith.constant 0 : i32
    %c0_i32_0 = arith.constant 0 : i32
    %c0_i32_1 = arith.constant 0 : i32
    return %c0_i32, %c0_i32_0 : i32, i32
  }
  func.func @transform_12(%arg0: i32) -> (i32, i32) {
    %c0_i32 = arith.constant 0 : i32
    %c0_i32_0 = arith.constant 0 : i32
    %c0_i32_1 = arith.constant 0 : i32
    return %c0_i32, %c0_i32_0 : i32, i32
  }
  func.func @transform_13(%arg0: i32) -> (i32, i32, i32) {
    %c0_i32 = arith.constant 0 : i32
    %c0_i32_0 = arith.constant 0 : i32
    %c0_i32_1 = arith.constant 0 : i32
    return %arg0, %c0_i32, %c0_i32_0 : i32, i32, i32
  }
  func.func @transform_14(%arg0: i32) -> (i32, i32, i32) {
    %c0_i32 = arith.constant 0 : i32
    %c0_i32_0 = arith.constant 0 : i32
    %c0_i32_1 = arith.constant 0 : i32
    return %arg0, %c0_i32, %c0_i32_0 : i32, i32, i32
  }
  func.func @transform_15(%arg0: i32) -> (i32, i32, i32) {
    %c0_i32 = arith.constant 0 : i32
    %c0_i32_0 = arith.constant 0 : i32
    %c0_i32_1 = arith.constant 0 : i32
    return %arg0, %c0_i32, %c0_i32_0 : i32, i32, i32
  }
}

module attributes {stable_mosaic.version = 11 : i64} {
  func.func @_chain_kernel(%arg0: i32, %arg1: memref<1x16x80xbf16, #tpu.memory_space<vmem>>, %arg2: memref<16x272xbf16, #tpu.memory_space<vmem>>, %arg3: memref<16x1xf32, #tpu.memory_space<vmem>>, %arg4: memref<1x16x64xbf16, #tpu.memory_space<vmem>>) attributes {dimension_semantics = [#tpu.dimension_semantics<parallel>], iteration_bounds = array<i64: 4>, scalar_prefetch = 0 : i64, scratch_operands = 0 : i64, tpu.core_type = #tpu.core_type<tc>, window_params = [{transform_indices = @transform_0, window_bounds = array<i64: 1, 16, 80>}, {pipeline_mode = #tpu.pipeline_mode<synchronous>, transform_indices = @transform_1, window_bounds = array<i64: 16, 272>}, {pipeline_mode = #tpu.pipeline_mode<synchronous>, transform_indices = @transform_2, window_bounds = array<i64: 16, 1>}, {transform_indices = @transform_3, window_bounds = array<i64: 1, 16, 64>}]} {
    %c0 = arith.constant 0 : index
    %c0_0 = arith.constant 0 : index
    %c0_1 = arith.constant 0 : index
    %0 = vector.load %arg1[%c0, %c0_0, %c0_1] : memref<1x16x80xbf16, #tpu.memory_space<vmem>>, vector<1x16x80xbf16>
    %1 = vector.shape_cast %0 : vector<1x16x80xbf16> to vector<16x80xbf16>
    %2 = vector.extract_strided_slice %1 {offsets = [0, 0], sizes = [16, 64], strides = [1, 1]} : vector<16x80xbf16> to vector<16x64xbf16>
    %3 = vector.extract_strided_slice %1 {offsets = [0, 1], sizes = [16, 64], strides = [1, 1]} : vector<16x80xbf16> to vector<16x64xbf16>
    %4 = vector.extract_strided_slice %1 {offsets = [0, 2], sizes = [16, 64], strides = [1, 1]} : vector<16x80xbf16> to vector<16x64xbf16>
    %5 = vector.extract_strided_slice %1 {offsets = [0, 3], sizes = [16, 64], strides = [1, 1]} : vector<16x80xbf16> to vector<16x64xbf16>
    %6 = vector.extract_strided_slice %1 {offsets = [0, 4], sizes = [16, 64], strides = [1, 1]} : vector<16x80xbf16> to vector<16x64xbf16>
    %7 = vector.extract_strided_slice %1 {offsets = [0, 5], sizes = [16, 64], strides = [1, 1]} : vector<16x80xbf16> to vector<16x64xbf16>
    %8 = vector.extract_strided_slice %1 {offsets = [0, 6], sizes = [16, 64], strides = [1, 1]} : vector<16x80xbf16> to vector<16x64xbf16>
    %9 = vector.extract_strided_slice %1 {offsets = [0, 7], sizes = [16, 64], strides = [1, 1]} : vector<16x80xbf16> to vector<16x64xbf16>
    %10 = vector.extract_strided_slice %1 {offsets = [0, 8], sizes = [16, 64], strides = [1, 1]} : vector<16x80xbf16> to vector<16x64xbf16>
    %11 = vector.extract_strided_slice %1 {offsets = [0, 9], sizes = [16, 64], strides = [1, 1]} : vector<16x80xbf16> to vector<16x64xbf16>
    %12 = vector.extract_strided_slice %1 {offsets = [0, 10], sizes = [16, 64], strides = [1, 1]} : vector<16x80xbf16> to vector<16x64xbf16>
    %13 = vector.extract_strided_slice %1 {offsets = [0, 11], sizes = [16, 64], strides = [1, 1]} : vector<16x80xbf16> to vector<16x64xbf16>
    %14 = vector.extract_strided_slice %1 {offsets = [0, 12], sizes = [16, 64], strides = [1, 1]} : vector<16x80xbf16> to vector<16x64xbf16>
    %15 = vector.extract_strided_slice %1 {offsets = [0, 13], sizes = [16, 64], strides = [1, 1]} : vector<16x80xbf16> to vector<16x64xbf16>
    %16 = vector.extract_strided_slice %1 {offsets = [0, 14], sizes = [16, 64], strides = [1, 1]} : vector<16x80xbf16> to vector<16x64xbf16>
    %17 = vector.extract_strided_slice %1 {offsets = [0, 15], sizes = [16, 64], strides = [1, 1]} : vector<16x80xbf16> to vector<16x64xbf16>
    %18 = vector.extract_strided_slice %1 {offsets = [0, 16], sizes = [16, 64], strides = [1, 1]} : vector<16x80xbf16> to vector<16x64xbf16>
    %19 = tpu.concatenate %2, %3, %4, %5, %6, %7, %8, %9, %10, %11, %12, %13, %14, %15, %16, %17 in 0 : vector<16x64xbf16>, vector<16x64xbf16>, vector<16x64xbf16>, vector<16x64xbf16>, vector<16x64xbf16>, vector<16x64xbf16>, vector<16x64xbf16>, vector<16x64xbf16>, vector<16x64xbf16>, vector<16x64xbf16>, vector<16x64xbf16>, vector<16x64xbf16>, vector<16x64xbf16>, vector<16x64xbf16>, vector<16x64xbf16>, vector<16x64xbf16> -> vector<256x64xbf16>
    %20 = tpu.concatenate %19, %18 in 0 : vector<256x64xbf16>, vector<16x64xbf16> -> vector<272x64xbf16>
    %c0_2 = arith.constant 0 : index
    %c0_3 = arith.constant 0 : index
    %21 = vector.load %arg2[%c0_2, %c0_3] : memref<16x272xbf16, #tpu.memory_space<vmem>>, vector<16x272xbf16>
    %cst = arith.constant dense<0.000000e+00> : vector<16x64xf32>
    %22 = tpu.matmul %21, %20, %cst {dimension_numbers = #tpu.dot_dimension_numbers<[1], [0], [0], [1], [0, 0, 1, 1], [], []>} : vector<16x272xbf16>, vector<272x64xbf16>, vector<16x64xf32> -> vector<16x64xf32>
    %c0_4 = arith.constant 0 : index
    %c0_5 = arith.constant 0 : index
    %23 = vector.load %arg3[%c0_4, %c0_5] : memref<16x1xf32, #tpu.memory_space<vmem>>, vector<16x1xf32>
    %24 = vector.broadcast %23 : vector<16x1xf32> to vector<16x64xf32>
    %25 = arith.addf %22, %24 : vector<16x64xf32>
    %26 = arith.truncf %25 : vector<16x64xf32> to vector<16x64xbf16>
    %c0_6 = arith.constant 0 : index
    %c0_7 = arith.constant 0 : index
    %c0_8 = arith.constant 0 : index
    %27 = vector.load %arg4[%c0_6, %c0_7, %c0_8] : memref<1x16x64xbf16, #tpu.memory_space<vmem>>, vector<1x16x64xbf16>
    %28 = vector.shape_cast %27 : vector<1x16x64xbf16> to vector<16x64xbf16>
    %29 = vector.shape_cast %26 : vector<16x64xbf16> to vector<1x16x64xbf16>
    tpu.vector_store %arg4[%c0_6, %c0_7, %c0_8], %29 {strides = array<i32>} : memref<1x16x64xbf16, #tpu.memory_space<vmem>>, vector<1x16x64xbf16>,
    return
  }
  func.func @transform_0(%arg0: i32) -> (i32, i32, i32) {
    %c0_i32 = arith.constant 0 : i32
    %c0_i32_0 = arith.constant 0 : i32
    %c0_i32_1 = arith.constant 0 : i32
    return %arg0, %c0_i32, %c0_i32_0 : i32, i32, i32
  }
  func.func @transform_1(%arg0: i32) -> (i32, i32) {
    %c0_i32 = arith.constant 0 : i32
    %c0_i32_0 = arith.constant 0 : i32
    %c0_i32_1 = arith.constant 0 : i32
    return %c0_i32, %c0_i32_0 : i32, i32
  }
  func.func @transform_2(%arg0: i32) -> (i32, i32) {
    %c0_i32 = arith.constant 0 : i32
    %c0_i32_0 = arith.constant 0 : i32
    %c0_i32_1 = arith.constant 0 : i32
    return %c0_i32, %c0_i32_0 : i32, i32
  }
  func.func @transform_3(%arg0: i32) -> (i32, i32, i32) {
    %c0_i32 = arith.constant 0 : i32
    %c0_i32_0 = arith.constant 0 : i32
    %c0_i32_1 = arith.constant 0 : i32
    return %arg0, %c0_i32, %c0_i32_0 : i32, i32, i32
  }
}

module attributes {stable_mosaic.version = 11 : i64} {
  func.func @_chain_kernel(%arg0: i32, %arg1: memref<1x16x8xbf16, #tpu.memory_space<vmem>>, %arg2: memref<1x48xbf16, #tpu.memory_space<vmem>>, %arg3: memref<1x1xf32, #tpu.memory_space<vmem>>, %arg4: memref<1x1x8xf32, #tpu.memory_space<vmem>>) attributes {dimension_semantics = [#tpu.dimension_semantics<parallel>], iteration_bounds = array<i64: 4>, scalar_prefetch = 0 : i64, scratch_operands = 0 : i64, tpu.core_type = #tpu.core_type<tc>, window_params = [{transform_indices = @transform_0, window_bounds = array<i64: 1, 16, 8>}, {pipeline_mode = #tpu.pipeline_mode<synchronous>, transform_indices = @transform_1, window_bounds = array<i64: 1, 48>}, {pipeline_mode = #tpu.pipeline_mode<synchronous>, transform_indices = @transform_2, window_bounds = array<i64: 1, 1>}, {transform_indices = @transform_3, window_bounds = array<i64: 1, 1, 8>}]} {
    %c0 = arith.constant 0 : index
    %c0_0 = arith.constant 0 : index
    %c0_1 = arith.constant 0 : index
    %0 = vector.load %arg1[%c0, %c0_0, %c0_1] : memref<1x16x8xbf16, #tpu.memory_space<vmem>>, vector<1x16x8xbf16>
    %1 = vector.shape_cast %0 : vector<1x16x8xbf16> to vector<16x8xbf16>
    %cst = arith.constant 0.000000e+00 : bf16
    %2 = vector.broadcast %cst : bf16 to vector<16x1xbf16>
    %3 = tpu.concatenate %2, %1, %2 in 1 : vector<16x1xbf16>, vector<16x8xbf16>, vector<16x1xbf16> -> vector<16x10xbf16>
    %4 = vector.extract_strided_slice %3 {offsets = [0, 0], sizes = [16, 8], strides = [1, 1]} : vector<16x10xbf16> to vector<16x8xbf16>
    %5 = vector.extract_strided_slice %3 {offsets = [0, 1], sizes = [16, 8], strides = [1, 1]} : vector<16x10xbf16> to vector<16x8xbf16>
    %6 = vector.extract_strided_slice %3 {offsets = [0, 2], sizes = [16, 8], strides = [1, 1]} : vector<16x10xbf16> to vector<16x8xbf16>
    %7 = tpu.concatenate %4, %5, %6 in 0 : vector<16x8xbf16>, vector<16x8xbf16>, vector<16x8xbf16> -> vector<48x8xbf16>
    %c0_2 = arith.constant 0 : index
    %c0_3 = arith.constant 0 : index
    %8 = vector.load %arg2[%c0_2, %c0_3] : memref<1x48xbf16, #tpu.memory_space<vmem>>, vector<1x48xbf16>
    %cst_4 = arith.constant dense<0.000000e+00> : vector<1x8xf32>
    %9 = tpu.matmul %8, %7, %cst_4 {dimension_numbers = #tpu.dot_dimension_numbers<[1], [0], [0], [1], [0, 0, 1, 1], [], []>} : vector<1x48xbf16>, vector<48x8xbf16>, vector<1x8xf32> -> vector<1x8xf32>
    %c0_5 = arith.constant 0 : index
    %c0_6 = arith.constant 0 : index
    %10 = vector.load %arg3[%c0_5, %c0_6] : memref<1x1xf32, #tpu.memory_space<vmem>>, vector<1x1xf32>
    %11 = vector.broadcast %10 : vector<1x1xf32> to vector<1x8xf32>
    %12 = arith.addf %9, %11 : vector<1x8xf32>
    %c0_7 = arith.constant 0 : index
    %c0_8 = arith.constant 0 : index
    %c0_9 = arith.constant 0 : index
    %13 = vector.load %arg4[%c0_7, %c0_8, %c0_9] : memref<1x1x8xf32, #tpu.memory_space<vmem>>, vector<1x1x8xf32>
    %14 = vector.shape_cast %13 : vector<1x1x8xf32> to vector<1x8xf32>
    %15 = vector.shape_cast %12 : vector<1x8xf32> to vector<1x1x8xf32>
    tpu.vector_store %arg4[%c0_7, %c0_8, %c0_9], %15 {strides = array<i32>} : memref<1x1x8xf32, #tpu.memory_space<vmem>>, vector<1x1x8xf32>,
    return
  }
  func.func @transform_0(%arg0: i32) -> (i32, i32, i32) {
    %c0_i32 = arith.constant 0 : i32
    %c0_i32_0 = arith.constant 0 : i32
    %c0_i32_1 = arith.constant 0 : i32
    return %arg0, %c0_i32, %c0_i32_0 : i32, i32, i32
  }
  func.func @transform_1(%arg0: i32) -> (i32, i32) {
    %c0_i32 = arith.constant 0 : i32
    %c0_i32_0 = arith.constant 0 : i32
    %c0_i32_1 = arith.constant 0 : i32
    return %c0_i32, %c0_i32_0 : i32, i32
  }
  func.func @transform_2(%arg0: i32) -> (i32, i32) {
    %c0_i32 = arith.constant 0 : i32
    %c0_i32_0 = arith.constant 0 : i32
    %c0_i32_1 = arith.constant 0 : i32
    return %c0_i32, %c0_i32_0 : i32, i32
  }
  func.func @transform_3(%arg0: i32) -> (i32, i32, i32) {
    %c0_i32 = arith.constant 0 : i32
    %c0_i32_0 = arith.constant 0 : i32
    %c0_i32_1 = arith.constant 0 : i32
    return %arg0, %c0_i32, %c0_i32_0 : i32, i32, i32
  }
}

module attributes {stable_mosaic.version = 11 : i64} {
  func.func @_chain_kernel(%arg0: i32, %arg1: memref<1x8x160xbf16, #tpu.memory_space<vmem>>, %arg2: memref<8x264xbf16, #tpu.memory_space<vmem>>, %arg3: memref<8x1xf32, #tpu.memory_space<vmem>>, %arg4: memref<1x8x128xbf16, #tpu.memory_space<vmem>>) attributes {dimension_semantics = [#tpu.dimension_semantics<parallel>], iteration_bounds = array<i64: 4>, scalar_prefetch = 0 : i64, scratch_operands = 0 : i64, tpu.core_type = #tpu.core_type<tc>, window_params = [{transform_indices = @transform_0, window_bounds = array<i64: 1, 8, 160>}, {pipeline_mode = #tpu.pipeline_mode<synchronous>, transform_indices = @transform_1, window_bounds = array<i64: 8, 264>}, {pipeline_mode = #tpu.pipeline_mode<synchronous>, transform_indices = @transform_2, window_bounds = array<i64: 8, 1>}, {transform_indices = @transform_3, window_bounds = array<i64: 1, 8, 128>}]} {
    %c0 = arith.constant 0 : index
    %c0_0 = arith.constant 0 : index
    %c0_1 = arith.constant 0 : index
    %0 = vector.load %arg1[%c0, %c0_0, %c0_1] : memref<1x8x160xbf16, #tpu.memory_space<vmem>>, vector<1x8x160xbf16>
    %1 = vector.shape_cast %0 : vector<1x8x160xbf16> to vector<8x160xbf16>
    %2 = vector.extract_strided_slice %1 {offsets = [0, 0], sizes = [8, 128], strides = [1, 1]} : vector<8x160xbf16> to vector<8x128xbf16>
    %3 = vector.extract_strided_slice %1 {offsets = [0, 1], sizes = [8, 128], strides = [1, 1]} : vector<8x160xbf16> to vector<8x128xbf16>
    %4 = vector.extract_strided_slice %1 {offsets = [0, 2], sizes = [8, 128], strides = [1, 1]} : vector<8x160xbf16> to vector<8x128xbf16>
    %5 = vector.extract_strided_slice %1 {offsets = [0, 3], sizes = [8, 128], strides = [1, 1]} : vector<8x160xbf16> to vector<8x128xbf16>
    %6 = vector.extract_strided_slice %1 {offsets = [0, 4], sizes = [8, 128], strides = [1, 1]} : vector<8x160xbf16> to vector<8x128xbf16>
    %7 = vector.extract_strided_slice %1 {offsets = [0, 5], sizes = [8, 128], strides = [1, 1]} : vector<8x160xbf16> to vector<8x128xbf16>
    %8 = vector.extract_strided_slice %1 {offsets = [0, 6], sizes = [8, 128], strides = [1, 1]} : vector<8x160xbf16> to vector<8x128xbf16>
    %9 = vector.extract_strided_slice %1 {offsets = [0, 7], sizes = [8, 128], strides = [1, 1]} : vector<8x160xbf16> to vector<8x128xbf16>
    %10 = vector.extract_strided_slice %1 {offsets = [0, 8], sizes = [8, 128], strides = [1, 1]} : vector<8x160xbf16> to vector<8x128xbf16>
    %11 = vector.extract_strided_slice %1 {offsets = [0, 9], sizes = [8, 128], strides = [1, 1]} : vector<8x160xbf16> to vector<8x128xbf16>
    %12 = vector.extract_strided_slice %1 {offsets = [0, 10], sizes = [8, 128], strides = [1, 1]} : vector<8x160xbf16> to vector<8x128xbf16>
    %13 = vector.extract_strided_slice %1 {offsets = [0, 11], sizes = [8, 128], strides = [1, 1]} : vector<8x160xbf16> to vector<8x128xbf16>
    %14 = vector.extract_strided_slice %1 {offsets = [0, 12], sizes = [8, 128], strides = [1, 1]} : vector<8x160xbf16> to vector<8x128xbf16>
    %15 = vector.extract_strided_slice %1 {offsets = [0, 13], sizes = [8, 128], strides = [1, 1]} : vector<8x160xbf16> to vector<8x128xbf16>
    %16 = vector.extract_strided_slice %1 {offsets = [0, 14], sizes = [8, 128], strides = [1, 1]} : vector<8x160xbf16> to vector<8x128xbf16>
    %17 = vector.extract_strided_slice %1 {offsets = [0, 15], sizes = [8, 128], strides = [1, 1]} : vector<8x160xbf16> to vector<8x128xbf16>
    %18 = vector.extract_strided_slice %1 {offsets = [0, 16], sizes = [8, 128], strides = [1, 1]} : vector<8x160xbf16> to vector<8x128xbf16>
    %19 = vector.extract_strided_slice %1 {offsets = [0, 17], sizes = [8, 128], strides = [1, 1]} : vector<8x160xbf16> to vector<8x128xbf16>
    %20 = vector.extract_strided_slice %1 {offsets = [0, 18], sizes = [8, 128], strides = [1, 1]} : vector<8x160xbf16> to vector<8x128xbf16>
    %21 = vector.extract_strided_slice %1 {offsets = [0, 19], sizes = [8, 128], strides = [1, 1]} : vector<8x160xbf16> to vector<8x128xbf16>
    %22 = vector.extract_strided_slice %1 {offsets = [0, 20], sizes = [8, 128], strides = [1, 1]} : vector<8x160xbf16> to vector<8x128xbf16>
    %23 = vector.extract_strided_slice %1 {offsets = [0, 21], sizes = [8, 128], strides = [1, 1]} : vector<8x160xbf16> to vector<8x128xbf16>
    %24 = vector.extract_strided_slice %1 {offsets = [0, 22], sizes = [8, 128], strides = [1, 1]} : vector<8x160xbf16> to vector<8x128xbf16>
    %25 = vector.extract_strided_slice %1 {offsets = [0, 23], sizes = [8, 128], strides = [1, 1]} : vector<8x160xbf16> to vector<8x128xbf16>
    %26 = vector.extract_strided_slice %1 {offsets = [0, 24], sizes = [8, 128], strides = [1, 1]} : vector<8x160xbf16> to vector<8x128xbf16>
    %27 = vector.extract_strided_slice %1 {offsets = [0, 25], sizes = [8, 128], strides = [1, 1]} : vector<8x160xbf16> to vector<8x128xbf16>
    %28 = vector.extract_strided_slice %1 {offsets = [0, 26], sizes = [8, 128], strides = [1, 1]} : vector<8x160xbf16> to vector<8x128xbf16>
    %29 = vector.extract_strided_slice %1 {offsets = [0, 27], sizes = [8, 128], strides = [1, 1]} : vector<8x160xbf16> to vector<8x128xbf16>
    %30 = vector.extract_strided_slice %1 {offsets = [0, 28], sizes = [8, 128], strides = [1, 1]} : vector<8x160xbf16> to vector<8x128xbf16>
    %31 = vector.extract_strided_slice %1 {offsets = [0, 29], sizes = [8, 128], strides = [1, 1]} : vector<8x160xbf16> to vector<8x128xbf16>
    %32 = vector.extract_strided_slice %1 {offsets = [0, 30], sizes = [8, 128], strides = [1, 1]} : vector<8x160xbf16> to vector<8x128xbf16>
    %33 = vector.extract_strided_slice %1 {offsets = [0, 31], sizes = [8, 128], strides = [1, 1]} : vector<8x160xbf16> to vector<8x128xbf16>
    %34 = vector.extract_strided_slice %1 {offsets = [0, 32], sizes = [8, 128], strides = [1, 1]} : vector<8x160xbf16> to vector<8x128xbf16>
    %35 = tpu.concatenate %2, %3, %4, %5, %6, %7, %8, %9, %10, %11, %12, %13, %14, %15, %16, %17 in 0 : vector<8x128xbf16>, vector<8x128xbf16>, vector<8x128xbf16>, vector<8x128xbf16>, vector<8x128xbf16>, vector<8x128xbf16>, vector<8x128xbf16>, vector<8x128xbf16>, vector<8x128xbf16>, vector<8x128xbf16>, vector<8x128xbf16>, vector<8x128xbf16>, vector<8x128xbf16>, vector<8x128xbf16>, vector<8x128xbf16>, vector<8x128xbf16> -> vector<128x128xbf16>
    %36 = tpu.concatenate %18, %19, %20, %21, %22, %23, %24, %25, %26, %27, %28, %29, %30, %31, %32, %33 in 0 : vector<8x128xbf16>, vector<8x128xbf16>, vector<8x128xbf16>, vector<8x128xbf16>, vector<8x128xbf16>, vector<8x128xbf16>, vector<8x128xbf16>, vector<8x128xbf16>, vector<8x128xbf16>, vector<8x128xbf16>, vector<8x128xbf16>, vector<8x128xbf16>, vector<8x128xbf16>, vector<8x128xbf16>, vector<8x128xbf16>, vector<8x128xbf16> -> vector<128x128xbf16>
    %37 = tpu.concatenate %35, %36, %34 in 0 : vector<128x128xbf16>, vector<128x128xbf16>, vector<8x128xbf16> -> vector<264x128xbf16>
    %c0_2 = arith.constant 0 : index
    %c0_3 = arith.constant 0 : index
    %38 = vector.load %arg2[%c0_2, %c0_3] : memref<8x264xbf16, #tpu.memory_space<vmem>>, vector<8x264xbf16>
    %cst = arith.constant dense<0.000000e+00> : vector<8x128xf32>
    %39 = tpu.matmul %38, %37, %cst {dimension_numbers = #tpu.dot_dimension_numbers<[1], [0], [0], [1], [0, 0, 1, 1], [], []>} : vector<8x264xbf16>, vector<264x128xbf16>, vector<8x128xf32> -> vector<8x128xf32>
    %c0_4 = arith.constant 0 : index
    %c0_5 = arith.constant 0 : index
    %40 = vector.load %arg3[%c0_4, %c0_5] : memref<8x1xf32, #tpu.memory_space<vmem>>, vector<8x1xf32>
    %41 = vector.broadcast %40 : vector<8x1xf32> to vector<8x128xf32>
    %42 = arith.addf %39, %41 : vector<8x128xf32>
    %43 = arith.truncf %42 : vector<8x128xf32> to vector<8x128xbf16>
    %c0_6 = arith.constant 0 : index
    %c0_7 = arith.constant 0 : index
    %c0_8 = arith.constant 0 : index
    %44 = vector.load %arg4[%c0_6, %c0_7, %c0_8] : memref<1x8x128xbf16, #tpu.memory_space<vmem>>, vector<1x8x128xbf16>
    %45 = vector.shape_cast %44 : vector<1x8x128xbf16> to vector<8x128xbf16>
    %46 = vector.shape_cast %43 : vector<8x128xbf16> to vector<1x8x128xbf16>
    tpu.vector_store %arg4[%c0_6, %c0_7, %c0_8], %46 {strides = array<i32>} : memref<1x8x128xbf16, #tpu.memory_space<vmem>>, vector<1x8x128xbf16>,
    return
  }
  func.func @transform_0(%arg0: i32) -> (i32, i32, i32) {
    %c0_i32 = arith.constant 0 : i32
    %c0_i32_0 = arith.constant 0 : i32
    %c0_i32_1 = arith.constant 0 : i32
    return %arg0, %c0_i32, %c0_i32_0 : i32, i32, i32
  }
  func.func @transform_1(%arg0: i32) -> (i32, i32) {
    %c0_i32 = arith.constant 0 : i32
    %c0_i32_0 = arith.constant 0 : i32
    %c0_i32_1 = arith.constant 0 : i32
    return %c0_i32, %c0_i32_0 : i32, i32
  }
  func.func @transform_2(%arg0: i32) -> (i32, i32) {
    %c0_i32 = arith.constant 0 : i32
    %c0_i32_0 = arith.constant 0 : i32
    %c0_i32_1 = arith.constant 0 : i32
    return %c0_i32, %c0_i32_0 : i32, i32
  }
  func.func @transform_3(%arg0: i32) -> (i32, i32, i32) {
    %c0_i32 = arith.constant 0 : i32
    %c0_i32_0 = arith.constant 0 : i32
    %c0_i32_1 = arith.constant 0 : i32
    return %arg0, %c0_i32, %c0_i32_0 : i32, i32, i32
  }
}

module attributes {stable_mosaic.version = 11 : i64} {
  func.func @_chain_kernel(%arg0: i32, %arg1: memref<1x8x128xbf16, #tpu.memory_space<vmem>>, %arg2: memref<8x168xbf16, #tpu.memory_space<vmem>>, %arg3: memref<8x1xf32, #tpu.memory_space<vmem>>, %arg4: memref<8x24xbf16, #tpu.memory_space<vmem>>, %arg5: memref<8x1xf32, #tpu.memory_space<vmem>>, %arg6: memref<16x168xbf16, #tpu.memory_space<vmem>>, %arg7: memref<16x1xf32, #tpu.memory_space<vmem>>, %arg8: memref<16x48xbf16, #tpu.memory_space<vmem>>, %arg9: memref<16x1xf32, #tpu.memory_space<vmem>>, %arg10: memref<16x336xbf16, #tpu.memory_space<vmem>>, %arg11: memref<16x1xf32, #tpu.memory_space<vmem>>, %arg12: memref<16x48xbf16, #tpu.memory_space<vmem>>, %arg13: memref<16x1xf32, #tpu.memory_space<vmem>>, %arg14: memref<1x8x128xf32, #tpu.memory_space<vmem>>, %arg15: memref<1x16x128xf32, #tpu.memory_space<vmem>>, %arg16: memref<1x16x128xf32, #tpu.memory_space<vmem>>) attributes {dimension_semantics = [#tpu.dimension_semantics<parallel>], iteration_bounds = array<i64: 4>, scalar_prefetch = 0 : i64, scratch_operands = 0 : i64, tpu.core_type = #tpu.core_type<tc>, window_params = [{transform_indices = @transform_0, window_bounds = array<i64: 1, 8, 128>}, {pipeline_mode = #tpu.pipeline_mode<synchronous>, transform_indices = @transform_1, window_bounds = array<i64: 8, 168>}, {pipeline_mode = #tpu.pipeline_mode<synchronous>, transform_indices = @transform_2, window_bounds = array<i64: 8, 1>}, {pipeline_mode = #tpu.pipeline_mode<synchronous>, transform_indices = @transform_3, window_bounds = array<i64: 8, 24>}, {pipeline_mode = #tpu.pipeline_mode<synchronous>, transform_indices = @transform_4, window_bounds = array<i64: 8, 1>}, {pipeline_mode = #tpu.pipeline_mode<synchronous>, transform_indices = @transform_5, window_bounds = array<i64: 16, 168>}, {pipeline_mode = #tpu.pipeline_mode<synchronous>, transform_indices = @transform_6, window_bounds = array<i64: 16, 1>}, {pipeline_mode = #tpu.pipeline_mode<synchronous>, transform_indices = @transform_7, window_bounds = array<i64: 16, 48>}, {pipeline_mode = #tpu.pipeline_mode<synchronous>, transform_indices = @transform_8, window_bounds = array<i64: 16, 1>}, {pipeline_mode = #tpu.pipeline_mode<synchronous>, transform_indices = @transform_9, window_bounds = array<i64: 16, 336>}, {pipeline_mode = #tpu.pipeline_mode<synchronous>, transform_indices = @transform_10, window_bounds = array<i64: 16, 1>}, {pipeline_mode = #tpu.pipeline_mode<synchronous>, transform_indices = @transform_11, window_bounds = array<i64: 16, 48>}, {pipeline_mode = #tpu.pipeline_mode<synchronous>, transform_indices = @transform_12, window_bounds = array<i64: 16, 1>}, {transform_indices = @transform_13, window_bounds = array<i64: 1, 8, 128>}, {transform_indices = @transform_14, window_bounds = array<i64: 1, 16, 128>}, {transform_indices = @transform_15, window_bounds = array<i64: 1, 16, 128>}]} {
    %c0 = arith.constant 0 : index
    %c0_0 = arith.constant 0 : index
    %c0_1 = arith.constant 0 : index
    %0 = vector.load %arg1[%c0, %c0_0, %c0_1] : memref<1x8x128xbf16, #tpu.memory_space<vmem>>, vector<1x8x128xbf16>
    %1 = vector.shape_cast %0 : vector<1x8x128xbf16> to vector<8x128xbf16>
    %cst = arith.constant 0.000000e+00 : bf16
    %2 = vector.broadcast %cst : bf16 to vector<8x15xbf16>
    %3 = tpu.concatenate %2, %1, %2 in 1 : vector<8x15xbf16>, vector<8x128xbf16>, vector<8x15xbf16> -> vector<8x158xbf16>
    %4 = vector.extract_strided_slice %3 {offsets = [0, 12], sizes = [8, 128], strides = [1, 1]} : vector<8x158xbf16> to vector<8x128xbf16>
    %5 = vector.extract_strided_slice %3 {offsets = [0, 13], sizes = [8, 128], strides = [1, 1]} : vector<8x158xbf16> to vector<8x128xbf16>
    %6 = vector.extract_strided_slice %3 {offsets = [0, 14], sizes = [8, 128], strides = [1, 1]} : vector<8x158xbf16> to vector<8x128xbf16>
    %7 = vector.extract_strided_slice %3 {offsets = [0, 15], sizes = [8, 128], strides = [1, 1]} : vector<8x158xbf16> to vector<8x128xbf16>
    %8 = vector.extract_strided_slice %3 {offsets = [0, 16], sizes = [8, 128], strides = [1, 1]} : vector<8x158xbf16> to vector<8x128xbf16>
    %9 = vector.extract_strided_slice %3 {offsets = [0, 17], sizes = [8, 128], strides = [1, 1]} : vector<8x158xbf16> to vector<8x128xbf16>
    %10 = vector.extract_strided_slice %3 {offsets = [0, 18], sizes = [8, 128], strides = [1, 1]} : vector<8x158xbf16> to vector<8x128xbf16>
    %11 = vector.extract_strided_slice %3 {offsets = [0, 9], sizes = [8, 128], strides = [1, 1]} : vector<8x158xbf16> to vector<8x128xbf16>
    %12 = vector.extract_strided_slice %3 {offsets = [0, 11], sizes = [8, 128], strides = [1, 1]} : vector<8x158xbf16> to vector<8x128xbf16>
    %13 = vector.extract_strided_slice %3 {offsets = [0, 13], sizes = [8, 128], strides = [1, 1]} : vector<8x158xbf16> to vector<8x128xbf16>
    %14 = vector.extract_strided_slice %3 {offsets = [0, 15], sizes = [8, 128], strides = [1, 1]} : vector<8x158xbf16> to vector<8x128xbf16>
    %15 = vector.extract_strided_slice %3 {offsets = [0, 17], sizes = [8, 128], strides = [1, 1]} : vector<8x158xbf16> to vector<8x128xbf16>
    %16 = vector.extract_strided_slice %3 {offsets = [0, 19], sizes = [8, 128], strides = [1, 1]} : vector<8x158xbf16> to vector<8x128xbf16>
    %17 = vector.extract_strided_slice %3 {offsets = [0, 21], sizes = [8, 128], strides = [1, 1]} : vector<8x158xbf16> to vector<8x128xbf16>
    %18 = vector.extract_strided_slice %3 {offsets = [0, 0], sizes = [8, 128], strides = [1, 1]} : vector<8x158xbf16> to vector<8x128xbf16>
    %19 = vector.extract_strided_slice %3 {offsets = [0, 5], sizes = [8, 128], strides = [1, 1]} : vector<8x158xbf16> to vector<8x128xbf16>
    %20 = vector.extract_strided_slice %3 {offsets = [0, 10], sizes = [8, 128], strides = [1, 1]} : vector<8x158xbf16> to vector<8x128xbf16>
    %21 = vector.extract_strided_slice %3 {offsets = [0, 15], sizes = [8, 128], strides = [1, 1]} : vector<8x158xbf16> to vector<8x128xbf16>
    %22 = vector.extract_strided_slice %3 {offsets = [0, 20], sizes = [8, 128], strides = [1, 1]} : vector<8x158xbf16> to vector<8x128xbf16>
    %23 = vector.extract_strided_slice %3 {offsets = [0, 25], sizes = [8, 128], strides = [1, 1]} : vector<8x158xbf16> to vector<8x128xbf16>
    %24 = vector.extract_strided_slice %3 {offsets = [0, 30], sizes = [8, 128], strides = [1, 1]} : vector<8x158xbf16> to vector<8x128xbf16>
    %25 = tpu.concatenate %4, %5, %6, %7, %8, %9, %10, %11, %12, %13, %14, %15, %16, %17, %18, %19 in 0 : vector<8x128xbf16>, vector<8x128xbf16>, vector<8x128xbf16>, vector<8x128xbf16>, vector<8x128xbf16>, vector<8x128xbf16>, vector<8x128xbf16>, vector<8x128xbf16>, vector<8x128xbf16>, vector<8x128xbf16>, vector<8x128xbf16>, vector<8x128xbf16>, vector<8x128xbf16>, vector<8x128xbf16>, vector<8x128xbf16>, vector<8x128xbf16> -> vector<128x128xbf16>
    %26 = tpu.concatenate %20, %21, %22, %23, %24 in 0 : vector<8x128xbf16>, vector<8x128xbf16>, vector<8x128xbf16>, vector<8x128xbf16>, vector<8x128xbf16> -> vector<40x128xbf16>
    %27 = tpu.concatenate %25, %26 in 0 : vector<128x128xbf16>, vector<40x128xbf16> -> vector<168x128xbf16>
    %c0_2 = arith.constant 0 : index
    %c0_3 = arith.constant 0 : index
    %28 = vector.load %arg2[%c0_2, %c0_3] : memref<8x168xbf16, #tpu.memory_space<vmem>>, vector<8x168xbf16>
    %cst_4 = arith.constant dense<0.000000e+00> : vector<8x128xf32>
    %29 = tpu.matmul %28, %27, %cst_4 {dimension_numbers = #tpu.dot_dimension_numbers<[1], [0], [0], [1], [0, 0, 1, 1], [], []>} : vector<8x168xbf16>, vector<168x128xbf16>, vector<8x128xf32> -> vector<8x128xf32>
    %c0_5 = arith.constant 0 : index
    %c0_6 = arith.constant 0 : index
    %30 = vector.load %arg3[%c0_5, %c0_6] : memref<8x1xf32, #tpu.memory_space<vmem>>, vector<8x1xf32>
    %31 = vector.broadcast %30 : vector<8x1xf32> to vector<8x128xf32>
    %32 = arith.addf %29, %31 : vector<8x128xf32>
    %33 = arith.truncf %32 : vector<8x128xf32> to vector<8x128xbf16>
    %cst_7 = arith.constant 0.000000e+00 : bf16
    %34 = vector.broadcast %cst_7 : bf16 to vector<8x1xbf16>
    %35 = tpu.concatenate %34, %33, %34 in 1 : vector<8x1xbf16>, vector<8x128xbf16>, vector<8x1xbf16> -> vector<8x130xbf16>
    %36 = vector.extract_strided_slice %35 {offsets = [0, 0], sizes = [8, 128], strides = [1, 1]} : vector<8x130xbf16> to vector<8x128xbf16>
    %37 = vector.extract_strided_slice %35 {offsets = [0, 1], sizes = [8, 128], strides = [1, 1]} : vector<8x130xbf16> to vector<8x128xbf16>
    %38 = vector.extract_strided_slice %35 {offsets = [0, 2], sizes = [8, 128], strides = [1, 1]} : vector<8x130xbf16> to vector<8x128xbf16>
    %39 = tpu.concatenate %36, %37, %38 in 0 : vector<8x128xbf16>, vector<8x128xbf16>, vector<8x128xbf16> -> vector<24x128xbf16>
    %c0_8 = arith.constant 0 : index
    %c0_9 = arith.constant 0 : index
    %40 = vector.load %arg4[%c0_8, %c0_9] : memref<8x24xbf16, #tpu.memory_space<vmem>>, vector<8x24xbf16>
    %cst_10 = arith.constant dense<0.000000e+00> : vector<8x128xf32>
    %41 = tpu.matmul %40, %39, %cst_10 {dimension_numbers = #tpu.dot_dimension_numbers<[1], [0], [0], [1], [0, 0, 1, 1], [], []>} : vector<8x24xbf16>, vector<24x128xbf16>, vector<8x128xf32> -> vector<8x128xf32>
    %c0_11 = arith.constant 0 : index
    %c0_12 = arith.constant 0 : index
    %42 = vector.load %arg5[%c0_11, %c0_12] : memref<8x1xf32, #tpu.memory_space<vmem>>, vector<8x1xf32>
    %43 = vector.broadcast %42 : vector<8x1xf32> to vector<8x128xf32>
    %44 = arith.addf %41, %43 : vector<8x128xf32>
    %cst_13 = arith.constant 0.000000e+00 : f32
    %45 = vector.broadcast %cst_13 : f32 to vector<8x128xf32>
    %46 = arith.cmpf oge, %44, %45 : vector<8x128xf32>
    %cst_14 = arith.constant 1.000000e-01 : f32
    %47 = vector.broadcast %cst_14 : f32 to vector<8x128xf32>
    %48 = arith.mulf %47, %44 : vector<8x128xf32>
    %49 = arith.select %46, %44, %48 : vector<8x128xi1>, vector<8x128xf32>
    %c0_15 = arith.constant 0 : index
    %c0_16 = arith.constant 0 : index
    %c0_17 = arith.constant 0 : index
    %50 = vector.load %arg14[%c0_15, %c0_16, %c0_17] : memref<1x8x128xf32, #tpu.memory_space<vmem>>, vector<1x8x128xf32>
    %51 = vector.shape_cast %50 : vector<1x8x128xf32> to vector<8x128xf32>
    %52 = vector.shape_cast %49 : vector<8x128xf32> to vector<1x8x128xf32>
    tpu.vector_store %arg14[%c0_15, %c0_16, %c0_17], %52 {strides = array<i32>} : memref<1x8x128xf32, #tpu.memory_space<vmem>>, vector<1x8x128xf32>,
    %53 = arith.truncf %49 : vector<8x128xf32> to vector<8x128xbf16>
    %cst_18 = arith.constant 0.000000e+00 : bf16
    %54 = vector.broadcast %cst_18 : bf16 to vector<8x15xbf16>
    %55 = tpu.concatenate %54, %53, %54 in 1 : vector<8x15xbf16>, vector<8x128xbf16>, vector<8x15xbf16> -> vector<8x158xbf16>
    %56 = vector.extract_strided_slice %55 {offsets = [0, 12], sizes = [8, 128], strides = [1, 1]} : vector<8x158xbf16> to vector<8x128xbf16>
    %57 = vector.extract_strided_slice %55 {offsets = [0, 13], sizes = [8, 128], strides = [1, 1]} : vector<8x158xbf16> to vector<8x128xbf16>
    %58 = vector.extract_strided_slice %55 {offsets = [0, 14], sizes = [8, 128], strides = [1, 1]} : vector<8x158xbf16> to vector<8x128xbf16>
    %59 = vector.extract_strided_slice %55 {offsets = [0, 15], sizes = [8, 128], strides = [1, 1]} : vector<8x158xbf16> to vector<8x128xbf16>
    %60 = vector.extract_strided_slice %55 {offsets = [0, 16], sizes = [8, 128], strides = [1, 1]} : vector<8x158xbf16> to vector<8x128xbf16>
    %61 = vector.extract_strided_slice %55 {offsets = [0, 17], sizes = [8, 128], strides = [1, 1]} : vector<8x158xbf16> to vector<8x128xbf16>
    %62 = vector.extract_strided_slice %55 {offsets = [0, 18], sizes = [8, 128], strides = [1, 1]} : vector<8x158xbf16> to vector<8x128xbf16>
    %63 = vector.extract_strided_slice %55 {offsets = [0, 9], sizes = [8, 128], strides = [1, 1]} : vector<8x158xbf16> to vector<8x128xbf16>
    %64 = vector.extract_strided_slice %55 {offsets = [0, 11], sizes = [8, 128], strides = [1, 1]} : vector<8x158xbf16> to vector<8x128xbf16>
    %65 = vector.extract_strided_slice %55 {offsets = [0, 13], sizes = [8, 128], strides = [1, 1]} : vector<8x158xbf16> to vector<8x128xbf16>
    %66 = vector.extract_strided_slice %55 {offsets = [0, 15], sizes = [8, 128], strides = [1, 1]} : vector<8x158xbf16> to vector<8x128xbf16>
    %67 = vector.extract_strided_slice %55 {offsets = [0, 17], sizes = [8, 128], strides = [1, 1]} : vector<8x158xbf16> to vector<8x128xbf16>
    %68 = vector.extract_strided_slice %55 {offsets = [0, 19], sizes = [8, 128], strides = [1, 1]} : vector<8x158xbf16> to vector<8x128xbf16>
    %69 = vector.extract_strided_slice %55 {offsets = [0, 21], sizes = [8, 128], strides = [1, 1]} : vector<8x158xbf16> to vector<8x128xbf16>
    %70 = vector.extract_strided_slice %55 {offsets = [0, 0], sizes = [8, 128], strides = [1, 1]} : vector<8x158xbf16> to vector<8x128xbf16>
    %71 = vector.extract_strided_slice %55 {offsets = [0, 5], sizes = [8, 128], strides = [1, 1]} : vector<8x158xbf16> to vector<8x128xbf16>
    %72 = vector.extract_strided_slice %55 {offsets = [0, 10], sizes = [8, 128], strides = [1, 1]} : vector<8x158xbf16> to vector<8x128xbf16>
    %73 = vector.extract_strided_slice %55 {offsets = [0, 15], sizes = [8, 128], strides = [1, 1]} : vector<8x158xbf16> to vector<8x128xbf16>
    %74 = vector.extract_strided_slice %55 {offsets = [0, 20], sizes = [8, 128], strides = [1, 1]} : vector<8x158xbf16> to vector<8x128xbf16>
    %75 = vector.extract_strided_slice %55 {offsets = [0, 25], sizes = [8, 128], strides = [1, 1]} : vector<8x158xbf16> to vector<8x128xbf16>
    %76 = vector.extract_strided_slice %55 {offsets = [0, 30], sizes = [8, 128], strides = [1, 1]} : vector<8x158xbf16> to vector<8x128xbf16>
    %77 = tpu.concatenate %56, %57, %58, %59, %60, %61, %62, %63, %64, %65, %66, %67, %68, %69, %70, %71 in 0 : vector<8x128xbf16>, vector<8x128xbf16>, vector<8x128xbf16>, vector<8x128xbf16>, vector<8x128xbf16>, vector<8x128xbf16>, vector<8x128xbf16>, vector<8x128xbf16>, vector<8x128xbf16>, vector<8x128xbf16>, vector<8x128xbf16>, vector<8x128xbf16>, vector<8x128xbf16>, vector<8x128xbf16>, vector<8x128xbf16>, vector<8x128xbf16> -> vector<128x128xbf16>
    %78 = tpu.concatenate %72, %73, %74, %75, %76 in 0 : vector<8x128xbf16>, vector<8x128xbf16>, vector<8x128xbf16>, vector<8x128xbf16>, vector<8x128xbf16> -> vector<40x128xbf16>
    %79 = tpu.concatenate %77, %78 in 0 : vector<128x128xbf16>, vector<40x128xbf16> -> vector<168x128xbf16>
    %c0_19 = arith.constant 0 : index
    %c0_20 = arith.constant 0 : index
    %80 = vector.load %arg6[%c0_19, %c0_20] : memref<16x168xbf16, #tpu.memory_space<vmem>>, vector<16x168xbf16>
    %cst_21 = arith.constant dense<0.000000e+00> : vector<16x128xf32>
    %81 = tpu.matmul %80, %79, %cst_21 {dimension_numbers = #tpu.dot_dimension_numbers<[1], [0], [0], [1], [0, 0, 1, 1], [], []>} : vector<16x168xbf16>, vector<168x128xbf16>, vector<16x128xf32> -> vector<16x128xf32>
    %c0_22 = arith.constant 0 : index
    %c0_23 = arith.constant 0 : index
    %82 = vector.load %arg7[%c0_22, %c0_23] : memref<16x1xf32, #tpu.memory_space<vmem>>, vector<16x1xf32>
    %83 = vector.broadcast %82 : vector<16x1xf32> to vector<16x128xf32>
    %84 = arith.addf %81, %83 : vector<16x128xf32>
    %85 = arith.truncf %84 : vector<16x128xf32> to vector<16x128xbf16>
    %cst_24 = arith.constant 0.000000e+00 : bf16
    %86 = vector.broadcast %cst_24 : bf16 to vector<16x1xbf16>
    %87 = tpu.concatenate %86, %85, %86 in 1 : vector<16x1xbf16>, vector<16x128xbf16>, vector<16x1xbf16> -> vector<16x130xbf16>
    %88 = vector.extract_strided_slice %87 {offsets = [0, 0], sizes = [16, 128], strides = [1, 1]} : vector<16x130xbf16> to vector<16x128xbf16>
    %89 = vector.extract_strided_slice %87 {offsets = [0, 1], sizes = [16, 128], strides = [1, 1]} : vector<16x130xbf16> to vector<16x128xbf16>
    %90 = vector.extract_strided_slice %87 {offsets = [0, 2], sizes = [16, 128], strides = [1, 1]} : vector<16x130xbf16> to vector<16x128xbf16>
    %91 = tpu.concatenate %88, %89, %90 in 0 : vector<16x128xbf16>, vector<16x128xbf16>, vector<16x128xbf16> -> vector<48x128xbf16>
    %c0_25 = arith.constant 0 : index
    %c0_26 = arith.constant 0 : index
    %92 = vector.load %arg8[%c0_25, %c0_26] : memref<16x48xbf16, #tpu.memory_space<vmem>>, vector<16x48xbf16>
    %cst_27 = arith.constant dense<0.000000e+00> : vector<16x128xf32>
    %93 = tpu.matmul %92, %91, %cst_27 {dimension_numbers = #tpu.dot_dimension_numbers<[1], [0], [0], [1], [0, 0, 1, 1], [], []>} : vector<16x48xbf16>, vector<48x128xbf16>, vector<16x128xf32> -> vector<16x128xf32>
    %c0_28 = arith.constant 0 : index
    %c0_29 = arith.constant 0 : index
    %94 = vector.load %arg9[%c0_28, %c0_29] : memref<16x1xf32, #tpu.memory_space<vmem>>, vector<16x1xf32>
    %95 = vector.broadcast %94 : vector<16x1xf32> to vector<16x128xf32>
    %96 = arith.addf %93, %95 : vector<16x128xf32>
    %cst_30 = arith.constant 0.000000e+00 : f32
    %97 = vector.broadcast %cst_30 : f32 to vector<16x128xf32>
    %98 = arith.cmpf oge, %96, %97 : vector<16x128xf32>
    %cst_31 = arith.constant 1.000000e-01 : f32
    %99 = vector.broadcast %cst_31 : f32 to vector<16x128xf32>
    %100 = arith.mulf %99, %96 : vector<16x128xf32>
    %101 = arith.select %98, %96, %100 : vector<16x128xi1>, vector<16x128xf32>
    %c0_32 = arith.constant 0 : index
    %c0_33 = arith.constant 0 : index
    %c0_34 = arith.constant 0 : index
    %102 = vector.load %arg15[%c0_32, %c0_33, %c0_34] : memref<1x16x128xf32, #tpu.memory_space<vmem>>, vector<1x16x128xf32>
    %103 = vector.shape_cast %102 : vector<1x16x128xf32> to vector<16x128xf32>
    %104 = vector.shape_cast %101 : vector<16x128xf32> to vector<1x16x128xf32>
    tpu.vector_store %arg15[%c0_32, %c0_33, %c0_34], %104 {strides = array<i32>} : memref<1x16x128xf32, #tpu.memory_space<vmem>>, vector<1x16x128xf32>,
    %105 = arith.truncf %101 : vector<16x128xf32> to vector<16x128xbf16>
    %cst_35 = arith.constant 0.000000e+00 : bf16
    %106 = vector.broadcast %cst_35 : bf16 to vector<16x15xbf16>
    %107 = tpu.concatenate %106, %105, %106 in 1 : vector<16x15xbf16>, vector<16x128xbf16>, vector<16x15xbf16> -> vector<16x158xbf16>
    %108 = vector.extract_strided_slice %107 {offsets = [0, 12], sizes = [16, 128], strides = [1, 1]} : vector<16x158xbf16> to vector<16x128xbf16>
    %109 = vector.extract_strided_slice %107 {offsets = [0, 13], sizes = [16, 128], strides = [1, 1]} : vector<16x158xbf16> to vector<16x128xbf16>
    %110 = vector.extract_strided_slice %107 {offsets = [0, 14], sizes = [16, 128], strides = [1, 1]} : vector<16x158xbf16> to vector<16x128xbf16>
    %111 = vector.extract_strided_slice %107 {offsets = [0, 15], sizes = [16, 128], strides = [1, 1]} : vector<16x158xbf16> to vector<16x128xbf16>
    %112 = vector.extract_strided_slice %107 {offsets = [0, 16], sizes = [16, 128], strides = [1, 1]} : vector<16x158xbf16> to vector<16x128xbf16>
    %113 = vector.extract_strided_slice %107 {offsets = [0, 17], sizes = [16, 128], strides = [1, 1]} : vector<16x158xbf16> to vector<16x128xbf16>
    %114 = vector.extract_strided_slice %107 {offsets = [0, 18], sizes = [16, 128], strides = [1, 1]} : vector<16x158xbf16> to vector<16x128xbf16>
    %115 = vector.extract_strided_slice %107 {offsets = [0, 9], sizes = [16, 128], strides = [1, 1]} : vector<16x158xbf16> to vector<16x128xbf16>
    %116 = vector.extract_strided_slice %107 {offsets = [0, 11], sizes = [16, 128], strides = [1, 1]} : vector<16x158xbf16> to vector<16x128xbf16>
    %117 = vector.extract_strided_slice %107 {offsets = [0, 13], sizes = [16, 128], strides = [1, 1]} : vector<16x158xbf16> to vector<16x128xbf16>
    %118 = vector.extract_strided_slice %107 {offsets = [0, 15], sizes = [16, 128], strides = [1, 1]} : vector<16x158xbf16> to vector<16x128xbf16>
    %119 = vector.extract_strided_slice %107 {offsets = [0, 17], sizes = [16, 128], strides = [1, 1]} : vector<16x158xbf16> to vector<16x128xbf16>
    %120 = vector.extract_strided_slice %107 {offsets = [0, 19], sizes = [16, 128], strides = [1, 1]} : vector<16x158xbf16> to vector<16x128xbf16>
    %121 = vector.extract_strided_slice %107 {offsets = [0, 21], sizes = [16, 128], strides = [1, 1]} : vector<16x158xbf16> to vector<16x128xbf16>
    %122 = vector.extract_strided_slice %107 {offsets = [0, 0], sizes = [16, 128], strides = [1, 1]} : vector<16x158xbf16> to vector<16x128xbf16>
    %123 = vector.extract_strided_slice %107 {offsets = [0, 5], sizes = [16, 128], strides = [1, 1]} : vector<16x158xbf16> to vector<16x128xbf16>
    %124 = vector.extract_strided_slice %107 {offsets = [0, 10], sizes = [16, 128], strides = [1, 1]} : vector<16x158xbf16> to vector<16x128xbf16>
    %125 = vector.extract_strided_slice %107 {offsets = [0, 15], sizes = [16, 128], strides = [1, 1]} : vector<16x158xbf16> to vector<16x128xbf16>
    %126 = vector.extract_strided_slice %107 {offsets = [0, 20], sizes = [16, 128], strides = [1, 1]} : vector<16x158xbf16> to vector<16x128xbf16>
    %127 = vector.extract_strided_slice %107 {offsets = [0, 25], sizes = [16, 128], strides = [1, 1]} : vector<16x158xbf16> to vector<16x128xbf16>
    %128 = vector.extract_strided_slice %107 {offsets = [0, 30], sizes = [16, 128], strides = [1, 1]} : vector<16x158xbf16> to vector<16x128xbf16>
    %129 = tpu.concatenate %108, %109, %110, %111, %112, %113, %114, %115, %116, %117, %118, %119, %120, %121, %122, %123 in 0 : vector<16x128xbf16>, vector<16x128xbf16>, vector<16x128xbf16>, vector<16x128xbf16>, vector<16x128xbf16>, vector<16x128xbf16>, vector<16x128xbf16>, vector<16x128xbf16>, vector<16x128xbf16>, vector<16x128xbf16>, vector<16x128xbf16>, vector<16x128xbf16>, vector<16x128xbf16>, vector<16x128xbf16>, vector<16x128xbf16>, vector<16x128xbf16> -> vector<256x128xbf16>
    %130 = tpu.concatenate %124, %125, %126, %127, %128 in 0 : vector<16x128xbf16>, vector<16x128xbf16>, vector<16x128xbf16>, vector<16x128xbf16>, vector<16x128xbf16> -> vector<80x128xbf16>
    %131 = tpu.concatenate %129, %130 in 0 : vector<256x128xbf16>, vector<80x128xbf16> -> vector<336x128xbf16>
    %c0_36 = arith.constant 0 : index
    %c0_37 = arith.constant 0 : index
    %132 = vector.load %arg10[%c0_36, %c0_37] : memref<16x336xbf16, #tpu.memory_space<vmem>>, vector<16x336xbf16>
    %cst_38 = arith.constant dense<0.000000e+00> : vector<16x128xf32>
    %133 = tpu.matmul %132, %131, %cst_38 {dimension_numbers = #tpu.dot_dimension_numbers<[1], [0], [0], [1], [0, 0, 1, 1], [], []>} : vector<16x336xbf16>, vector<336x128xbf16>, vector<16x128xf32> -> vector<16x128xf32>
    %c0_39 = arith.constant 0 : index
    %c0_40 = arith.constant 0 : index
    %134 = vector.load %arg11[%c0_39, %c0_40] : memref<16x1xf32, #tpu.memory_space<vmem>>, vector<16x1xf32>
    %135 = vector.broadcast %134 : vector<16x1xf32> to vector<16x128xf32>
    %136 = arith.addf %133, %135 : vector<16x128xf32>
    %137 = arith.truncf %136 : vector<16x128xf32> to vector<16x128xbf16>
    %cst_41 = arith.constant 0.000000e+00 : bf16
    %138 = vector.broadcast %cst_41 : bf16 to vector<16x1xbf16>
    %139 = tpu.concatenate %138, %137, %138 in 1 : vector<16x1xbf16>, vector<16x128xbf16>, vector<16x1xbf16> -> vector<16x130xbf16>
    %140 = vector.extract_strided_slice %139 {offsets = [0, 0], sizes = [16, 128], strides = [1, 1]} : vector<16x130xbf16> to vector<16x128xbf16>
    %141 = vector.extract_strided_slice %139 {offsets = [0, 1], sizes = [16, 128], strides = [1, 1]} : vector<16x130xbf16> to vector<16x128xbf16>
    %142 = vector.extract_strided_slice %139 {offsets = [0, 2], sizes = [16, 128], strides = [1, 1]} : vector<16x130xbf16> to vector<16x128xbf16>
    %143 = tpu.concatenate %140, %141, %142 in 0 : vector<16x128xbf16>, vector<16x128xbf16>, vector<16x128xbf16> -> vector<48x128xbf16>
    %c0_42 = arith.constant 0 : index
    %c0_43 = arith.constant 0 : index
    %144 = vector.load %arg12[%c0_42, %c0_43] : memref<16x48xbf16, #tpu.memory_space<vmem>>, vector<16x48xbf16>
    %cst_44 = arith.constant dense<0.000000e+00> : vector<16x128xf32>
    %145 = tpu.matmul %144, %143, %cst_44 {dimension_numbers = #tpu.dot_dimension_numbers<[1], [0], [0], [1], [0, 0, 1, 1], [], []>} : vector<16x48xbf16>, vector<48x128xbf16>, vector<16x128xf32> -> vector<16x128xf32>
    %c0_45 = arith.constant 0 : index
    %c0_46 = arith.constant 0 : index
    %146 = vector.load %arg13[%c0_45, %c0_46] : memref<16x1xf32, #tpu.memory_space<vmem>>, vector<16x1xf32>
    %147 = vector.broadcast %146 : vector<16x1xf32> to vector<16x128xf32>
    %148 = arith.addf %145, %147 : vector<16x128xf32>
    %cst_47 = arith.constant 0.000000e+00 : f32
    %149 = vector.broadcast %cst_47 : f32 to vector<16x128xf32>
    %150 = arith.cmpf oge, %148, %149 : vector<16x128xf32>
    %cst_48 = arith.constant 1.000000e-01 : f32
    %151 = vector.broadcast %cst_48 : f32 to vector<16x128xf32>
    %152 = arith.mulf %151, %148 : vector<16x128xf32>
    %153 = arith.select %150, %148, %152 : vector<16x128xi1>, vector<16x128xf32>
    %c0_49 = arith.constant 0 : index
    %c0_50 = arith.constant 0 : index
    %c0_51 = arith.constant 0 : index
    %154 = vector.load %arg16[%c0_49, %c0_50, %c0_51] : memref<1x16x128xf32, #tpu.memory_space<vmem>>, vector<1x16x128xf32>
    %155 = vector.shape_cast %154 : vector<1x16x128xf32> to vector<16x128xf32>
    %156 = vector.shape_cast %153 : vector<16x128xf32> to vector<1x16x128xf32>
    tpu.vector_store %arg16[%c0_49, %c0_50, %c0_51], %156 {strides = array<i32>} : memref<1x16x128xf32, #tpu.memory_space<vmem>>, vector<1x16x128xf32>,
    return
  }
  func.func @transform_0(%arg0: i32) -> (i32, i32, i32) {
    %c0_i32 = arith.constant 0 : i32
    %c0_i32_0 = arith.constant 0 : i32
    %c0_i32_1 = arith.constant 0 : i32
    return %arg0, %c0_i32, %c0_i32_0 : i32, i32, i32
  }
  func.func @transform_1(%arg0: i32) -> (i32, i32) {
    %c0_i32 = arith.constant 0 : i32
    %c0_i32_0 = arith.constant 0 : i32
    %c0_i32_1 = arith.constant 0 : i32
    return %c0_i32, %c0_i32_0 : i32, i32
  }
  func.func @transform_2(%arg0: i32) -> (i32, i32) {
    %c0_i32 = arith.constant 0 : i32
    %c0_i32_0 = arith.constant 0 : i32
    %c0_i32_1 = arith.constant 0 : i32
    return %c0_i32, %c0_i32_0 : i32, i32
  }
  func.func @transform_3(%arg0: i32) -> (i32, i32) {
    %c0_i32 = arith.constant 0 : i32
    %c0_i32_0 = arith.constant 0 : i32
    %c0_i32_1 = arith.constant 0 : i32
    return %c0_i32, %c0_i32_0 : i32, i32
  }
  func.func @transform_4(%arg0: i32) -> (i32, i32) {
    %c0_i32 = arith.constant 0 : i32
    %c0_i32_0 = arith.constant 0 : i32
    %c0_i32_1 = arith.constant 0 : i32
    return %c0_i32, %c0_i32_0 : i32, i32
  }
  func.func @transform_5(%arg0: i32) -> (i32, i32) {
    %c0_i32 = arith.constant 0 : i32
    %c0_i32_0 = arith.constant 0 : i32
    %c0_i32_1 = arith.constant 0 : i32
    return %c0_i32, %c0_i32_0 : i32, i32
  }
  func.func @transform_6(%arg0: i32) -> (i32, i32) {
    %c0_i32 = arith.constant 0 : i32
    %c0_i32_0 = arith.constant 0 : i32
    %c0_i32_1 = arith.constant 0 : i32
    return %c0_i32, %c0_i32_0 : i32, i32
  }
  func.func @transform_7(%arg0: i32) -> (i32, i32) {
    %c0_i32 = arith.constant 0 : i32
    %c0_i32_0 = arith.constant 0 : i32
    %c0_i32_1 = arith.constant 0 : i32
    return %c0_i32, %c0_i32_0 : i32, i32
  }
  func.func @transform_8(%arg0: i32) -> (i32, i32) {
    %c0_i32 = arith.constant 0 : i32
    %c0_i32_0 = arith.constant 0 : i32
    %c0_i32_1 = arith.constant 0 : i32
    return %c0_i32, %c0_i32_0 : i32, i32
  }
  func.func @transform_9(%arg0: i32) -> (i32, i32) {
    %c0_i32 = arith.constant 0 : i32
    %c0_i32_0 = arith.constant 0 : i32
    %c0_i32_1 = arith.constant 0 : i32
    return %c0_i32, %c0_i32_0 : i32, i32
  }
  func.func @transform_10(%arg0: i32) -> (i32, i32) {
    %c0_i32 = arith.constant 0 : i32
    %c0_i32_0 = arith.constant 0 : i32
    %c0_i32_1 = arith.constant 0 : i32
    return %c0_i32, %c0_i32_0 : i32, i32
  }
  func.func @transform_11(%arg0: i32) -> (i32, i32) {
    %c0_i32 = arith.constant 0 : i32
    %c0_i32_0 = arith.constant 0 : i32
    %c0_i32_1 = arith.constant 0 : i32
    return %c0_i32, %c0_i32_0 : i32, i32
  }
  func.func @transform_12(%arg0: i32) -> (i32, i32) {
    %c0_i32 = arith.constant 0 : i32
    %c0_i32_0 = arith.constant 0 : i32
    %c0_i32_1 = arith.constant 0 : i32
    return %c0_i32, %c0_i32_0 : i32, i32
  }
  func.func @transform_13(%arg0: i32) -> (i32, i32, i32) {
    %c0_i32 = arith.constant 0 : i32
    %c0_i32_0 = arith.constant 0 : i32
    %c0_i32_1 = arith.constant 0 : i32
    return %arg0, %c0_i32, %c0_i32_0 : i32, i32, i32
  }
  func.func @transform_14(%arg0: i32) -> (i32, i32, i32) {
    %c0_i32 = arith.constant 0 : i32
    %c0_i32_0 = arith.constant 0 : i32
    %c0_i32_1 = arith.constant 0 : i32
    return %arg0, %c0_i32, %c0_i32_0 : i32, i32, i32
  }
  func.func @transform_15(%arg0: i32) -> (i32, i32, i32) {
    %c0_i32 = arith.constant 0 : i32
    %c0_i32_0 = arith.constant 0 : i32
    %c0_i32_1 = arith.constant 0 : i32
    return %arg0, %c0_i32, %c0_i32_0 : i32, i32, i32
  }
}

module attributes {stable_mosaic.version = 11 : i64} {
  func.func @_chain_kernel(%arg0: i32, %arg1: memref<1x16x64xbf16, #tpu.memory_space<vmem>>, %arg2: memref<1x48xbf16, #tpu.memory_space<vmem>>, %arg3: memref<1x1xf32, #tpu.memory_space<vmem>>, %arg4: memref<1x1x64xf32, #tpu.memory_space<vmem>>) attributes {dimension_semantics = [#tpu.dimension_semantics<parallel>], iteration_bounds = array<i64: 4>, scalar_prefetch = 0 : i64, scratch_operands = 0 : i64, tpu.core_type = #tpu.core_type<tc>, window_params = [{transform_indices = @transform_0, window_bounds = array<i64: 1, 16, 64>}, {pipeline_mode = #tpu.pipeline_mode<synchronous>, transform_indices = @transform_1, window_bounds = array<i64: 1, 48>}, {pipeline_mode = #tpu.pipeline_mode<synchronous>, transform_indices = @transform_2, window_bounds = array<i64: 1, 1>}, {transform_indices = @transform_3, window_bounds = array<i64: 1, 1, 64>}]} {
    %c0 = arith.constant 0 : index
    %c0_0 = arith.constant 0 : index
    %c0_1 = arith.constant 0 : index
    %0 = vector.load %arg1[%c0, %c0_0, %c0_1] : memref<1x16x64xbf16, #tpu.memory_space<vmem>>, vector<1x16x64xbf16>
    %1 = vector.shape_cast %0 : vector<1x16x64xbf16> to vector<16x64xbf16>
    %cst = arith.constant 0.000000e+00 : bf16
    %2 = vector.broadcast %cst : bf16 to vector<16x1xbf16>
    %3 = tpu.concatenate %2, %1, %2 in 1 : vector<16x1xbf16>, vector<16x64xbf16>, vector<16x1xbf16> -> vector<16x66xbf16>
    %4 = vector.extract_strided_slice %3 {offsets = [0, 0], sizes = [16, 64], strides = [1, 1]} : vector<16x66xbf16> to vector<16x64xbf16>
    %5 = vector.extract_strided_slice %3 {offsets = [0, 1], sizes = [16, 64], strides = [1, 1]} : vector<16x66xbf16> to vector<16x64xbf16>
    %6 = vector.extract_strided_slice %3 {offsets = [0, 2], sizes = [16, 64], strides = [1, 1]} : vector<16x66xbf16> to vector<16x64xbf16>
    %7 = tpu.concatenate %4, %5, %6 in 0 : vector<16x64xbf16>, vector<16x64xbf16>, vector<16x64xbf16> -> vector<48x64xbf16>
    %c0_2 = arith.constant 0 : index
    %c0_3 = arith.constant 0 : index
    %8 = vector.load %arg2[%c0_2, %c0_3] : memref<1x48xbf16, #tpu.memory_space<vmem>>, vector<1x48xbf16>
    %cst_4 = arith.constant dense<0.000000e+00> : vector<1x64xf32>
    %9 = tpu.matmul %8, %7, %cst_4 {dimension_numbers = #tpu.dot_dimension_numbers<[1], [0], [0], [1], [0, 0, 1, 1], [], []>} : vector<1x48xbf16>, vector<48x64xbf16>, vector<1x64xf32> -> vector<1x64xf32>
    %c0_5 = arith.constant 0 : index
    %c0_6 = arith.constant 0 : index
    %10 = vector.load %arg3[%c0_5, %c0_6] : memref<1x1xf32, #tpu.memory_space<vmem>>, vector<1x1xf32>
    %11 = vector.broadcast %10 : vector<1x1xf32> to vector<1x64xf32>
    %12 = arith.addf %9, %11 : vector<1x64xf32>
    %c0_7 = arith.constant 0 : index
    %c0_8 = arith.constant 0 : index
    %c0_9 = arith.constant 0 : index
    %13 = vector.load %arg4[%c0_7, %c0_8, %c0_9] : memref<1x1x64xf32, #tpu.memory_space<vmem>>, vector<1x1x64xf32>
    %14 = vector.shape_cast %13 : vector<1x1x64xf32> to vector<1x64xf32>
    %15 = vector.shape_cast %12 : vector<1x64xf32> to vector<1x1x64xf32>
    tpu.vector_store %arg4[%c0_7, %c0_8, %c0_9], %15 {strides = array<i32>} : memref<1x1x64xf32, #tpu.memory_space<vmem>>, vector<1x1x64xf32>,
    return
  }
  func.func @transform_0(%arg0: i32) -> (i32, i32, i32) {
    %c0_i32 = arith.constant 0 : i32
    %c0_i32_0 = arith.constant 0 : i32
    %c0_i32_1 = arith.constant 0 : i32
    return %arg0, %c0_i32, %c0_i32_0 : i32, i32, i32
  }
  func.func @transform_1(%arg0: i32) -> (i32, i32) {
    %c0_i32 = arith.constant 0 : i32
    %c0_i32_0 = arith.constant 0 : i32
    %c0_i32_1 = arith.constant 0 : i32
    return %c0_i32, %c0_i32_0 : i32, i32
  }
  func.func @transform_2(%arg0: i32) -> (i32, i32) {
    %c0_i32 = arith.constant 0 : i32
    %c0_i32_0 = arith.constant 0 : i32
    %c0_i32_1 = arith.constant 0 : i32
    return %c0_i32, %c0_i32_0 : i32, i32
  }
  func.func @transform_3(%arg0: i32) -> (i32, i32, i32) {
    %c0_i32 = arith.constant 0 : i32
    %c0_i32_0 = arith.constant 0 : i32
    %c0_i32_1 = arith.constant 0 : i32
    return %arg0, %c0_i32, %c0_i32_0 : i32, i32, i32
  }
}

module attributes {stable_mosaic.version = 11 : i64} {
  func.func @_chain_kernel(%arg0: i32, %arg1: memref<1x4x128xbf16, #tpu.memory_space<vmem>>, %arg2: memref<8x60xbf16, #tpu.memory_space<vmem>>, %arg3: memref<8x1xf32, #tpu.memory_space<vmem>>, %arg4: memref<8x24xbf16, #tpu.memory_space<vmem>>, %arg5: memref<8x1xf32, #tpu.memory_space<vmem>>, %arg6: memref<16x120xbf16, #tpu.memory_space<vmem>>, %arg7: memref<16x1xf32, #tpu.memory_space<vmem>>, %arg8: memref<16x48xbf16, #tpu.memory_space<vmem>>, %arg9: memref<16x1xf32, #tpu.memory_space<vmem>>, %arg10: memref<16x240xbf16, #tpu.memory_space<vmem>>, %arg11: memref<16x1xf32, #tpu.memory_space<vmem>>, %arg12: memref<16x48xbf16, #tpu.memory_space<vmem>>, %arg13: memref<16x1xf32, #tpu.memory_space<vmem>>, %arg14: memref<1x8x128xf32, #tpu.memory_space<vmem>>, %arg15: memref<1x16x128xf32, #tpu.memory_space<vmem>>, %arg16: memref<1x16x128xf32, #tpu.memory_space<vmem>>) attributes {dimension_semantics = [#tpu.dimension_semantics<parallel>], iteration_bounds = array<i64: 4>, scalar_prefetch = 0 : i64, scratch_operands = 0 : i64, tpu.core_type = #tpu.core_type<tc>, window_params = [{transform_indices = @transform_0, window_bounds = array<i64: 1, 4, 128>}, {pipeline_mode = #tpu.pipeline_mode<synchronous>, transform_indices = @transform_1, window_bounds = array<i64: 8, 60>}, {pipeline_mode = #tpu.pipeline_mode<synchronous>, transform_indices = @transform_2, window_bounds = array<i64: 8, 1>}, {pipeline_mode = #tpu.pipeline_mode<synchronous>, transform_indices = @transform_3, window_bounds = array<i64: 8, 24>}, {pipeline_mode = #tpu.pipeline_mode<synchronous>, transform_indices = @transform_4, window_bounds = array<i64: 8, 1>}, {pipeline_mode = #tpu.pipeline_mode<synchronous>, transform_indices = @transform_5, window_bounds = array<i64: 16, 120>}, {pipeline_mode = #tpu.pipeline_mode<synchronous>, transform_indices = @transform_6, window_bounds = array<i64: 16, 1>}, {pipeline_mode = #tpu.pipeline_mode<synchronous>, transform_indices = @transform_7, window_bounds = array<i64: 16, 48>}, {pipeline_mode = #tpu.pipeline_mode<synchronous>, transform_indices = @transform_8, window_bounds = array<i64: 16, 1>}, {pipeline_mode = #tpu.pipeline_mode<synchronous>, transform_indices = @transform_9, window_bounds = array<i64: 16, 240>}, {pipeline_mode = #tpu.pipeline_mode<synchronous>, transform_indices = @transform_10, window_bounds = array<i64: 16, 1>}, {pipeline_mode = #tpu.pipeline_mode<synchronous>, transform_indices = @transform_11, window_bounds = array<i64: 16, 48>}, {pipeline_mode = #tpu.pipeline_mode<synchronous>, transform_indices = @transform_12, window_bounds = array<i64: 16, 1>}, {transform_indices = @transform_13, window_bounds = array<i64: 1, 8, 128>}, {transform_indices = @transform_14, window_bounds = array<i64: 1, 16, 128>}, {transform_indices = @transform_15, window_bounds = array<i64: 1, 16, 128>}]} {
    %c0 = arith.constant 0 : index
    %c0_0 = arith.constant 0 : index
    %c0_1 = arith.constant 0 : index
    %0 = vector.load %arg1[%c0, %c0_0, %c0_1] : memref<1x4x128xbf16, #tpu.memory_space<vmem>>, vector<1x4x128xbf16>
    %1 = vector.shape_cast %0 : vector<1x4x128xbf16> to vector<4x128xbf16>
    %cst = arith.constant 0.000000e+00 : bf16
    %2 = vector.broadcast %cst : bf16 to vector<4x6xbf16>
    %3 = tpu.concatenate %2, %1, %2 in 1 : vector<4x6xbf16>, vector<4x128xbf16>, vector<4x6xbf16> -> vector<4x140xbf16>
    %4 = vector.extract_strided_slice %3 {offsets = [0, 4], sizes = [4, 128], strides = [1, 1]} : vector<4x140xbf16> to vector<4x128xbf16>
    %5 = vector.extract_strided_slice %3 {offsets = [0, 5], sizes = [4, 128], strides = [1, 1]} : vector<4x140xbf16> to vector<4x128xbf16>
    %6 = vector.extract_strided_slice %3 {offsets = [0, 6], sizes = [4, 128], strides = [1, 1]} : vector<4x140xbf16> to vector<4x128xbf16>
    %7 = vector.extract_strided_slice %3 {offsets = [0, 7], sizes = [4, 128], strides = [1, 1]} : vector<4x140xbf16> to vector<4x128xbf16>
    %8 = vector.extract_strided_slice %3 {offsets = [0, 8], sizes = [4, 128], strides = [1, 1]} : vector<4x140xbf16> to vector<4x128xbf16>
    %9 = vector.extract_strided_slice %3 {offsets = [0, 2], sizes = [4, 128], strides = [1, 1]} : vector<4x140xbf16> to vector<4x128xbf16>
    %10 = vector.extract_strided_slice %3 {offsets = [0, 4], sizes = [4, 128], strides = [1, 1]} : vector<4x140xbf16> to vector<4x128xbf16>
    %11 = vector.extract_strided_slice %3 {offsets = [0, 6], sizes = [4, 128], strides = [1, 1]} : vector<4x140xbf16> to vector<4x128xbf16>
    %12 = vector.extract_strided_slice %3 {offsets = [0, 8], sizes = [4, 128], strides = [1, 1]} : vector<4x140xbf16> to vector<4x128xbf16>
    %13 = vector.extract_strided_slice %3 {offsets = [0, 10], sizes = [4, 128], strides = [1, 1]} : vector<4x140xbf16> to vector<4x128xbf16>
    %14 = vector.extract_strided_slice %3 {offsets = [0, 0], sizes = [4, 128], strides = [1, 1]} : vector<4x140xbf16> to vector<4x128xbf16>
    %15 = vector.extract_strided_slice %3 {offsets = [0, 3], sizes = [4, 128], strides = [1, 1]} : vector<4x140xbf16> to vector<4x128xbf16>
    %16 = vector.extract_strided_slice %3 {offsets = [0, 6], sizes = [4, 128], strides = [1, 1]} : vector<4x140xbf16> to vector<4x128xbf16>
    %17 = vector.extract_strided_slice %3 {offsets = [0, 9], sizes = [4, 128], strides = [1, 1]} : vector<4x140xbf16> to vector<4x128xbf16>
    %18 = vector.extract_strided_slice %3 {offsets = [0, 12], sizes = [4, 128], strides = [1, 1]} : vector<4x140xbf16> to vector<4x128xbf16>
    %19 = tpu.concatenate %4, %5, %6, %7, %8, %9, %10, %11, %12, %13, %14, %15, %16, %17, %18 in 0 : vector<4x128xbf16>, vector<4x128xbf16>, vector<4x128xbf16>, vector<4x128xbf16>, vector<4x128xbf16>, vector<4x128xbf16>, vector<4x128xbf16>, vector<4x128xbf16>, vector<4x128xbf16>, vector<4x128xbf16>, vector<4x128xbf16>, vector<4x128xbf16>, vector<4x128xbf16>, vector<4x128xbf16>, vector<4x128xbf16> -> vector<60x128xbf16>
    %c0_2 = arith.constant 0 : index
    %c0_3 = arith.constant 0 : index
    %20 = vector.load %arg2[%c0_2, %c0_3] : memref<8x60xbf16, #tpu.memory_space<vmem>>, vector<8x60xbf16>
    %cst_4 = arith.constant dense<0.000000e+00> : vector<8x128xf32>
    %21 = tpu.matmul %20, %19, %cst_4 {dimension_numbers = #tpu.dot_dimension_numbers<[1], [0], [0], [1], [0, 0, 1, 1], [], []>} : vector<8x60xbf16>, vector<60x128xbf16>, vector<8x128xf32> -> vector<8x128xf32>
    %c0_5 = arith.constant 0 : index
    %c0_6 = arith.constant 0 : index
    %22 = vector.load %arg3[%c0_5, %c0_6] : memref<8x1xf32, #tpu.memory_space<vmem>>, vector<8x1xf32>
    %23 = vector.broadcast %22 : vector<8x1xf32> to vector<8x128xf32>
    %24 = arith.addf %21, %23 : vector<8x128xf32>
    %25 = arith.truncf %24 : vector<8x128xf32> to vector<8x128xbf16>
    %cst_7 = arith.constant 0.000000e+00 : bf16
    %26 = vector.broadcast %cst_7 : bf16 to vector<8x1xbf16>
    %27 = tpu.concatenate %26, %25, %26 in 1 : vector<8x1xbf16>, vector<8x128xbf16>, vector<8x1xbf16> -> vector<8x130xbf16>
    %28 = vector.extract_strided_slice %27 {offsets = [0, 0], sizes = [8, 128], strides = [1, 1]} : vector<8x130xbf16> to vector<8x128xbf16>
    %29 = vector.extract_strided_slice %27 {offsets = [0, 1], sizes = [8, 128], strides = [1, 1]} : vector<8x130xbf16> to vector<8x128xbf16>
    %30 = vector.extract_strided_slice %27 {offsets = [0, 2], sizes = [8, 128], strides = [1, 1]} : vector<8x130xbf16> to vector<8x128xbf16>
    %31 = tpu.concatenate %28, %29, %30 in 0 : vector<8x128xbf16>, vector<8x128xbf16>, vector<8x128xbf16> -> vector<24x128xbf16>
    %c0_8 = arith.constant 0 : index
    %c0_9 = arith.constant 0 : index
    %32 = vector.load %arg4[%c0_8, %c0_9] : memref<8x24xbf16, #tpu.memory_space<vmem>>, vector<8x24xbf16>
    %cst_10 = arith.constant dense<0.000000e+00> : vector<8x128xf32>
    %33 = tpu.matmul %32, %31, %cst_10 {dimension_numbers = #tpu.dot_dimension_numbers<[1], [0], [0], [1], [0, 0, 1, 1], [], []>} : vector<8x24xbf16>, vector<24x128xbf16>, vector<8x128xf32> -> vector<8x128xf32>
    %c0_11 = arith.constant 0 : index
    %c0_12 = arith.constant 0 : index
    %34 = vector.load %arg5[%c0_11, %c0_12] : memref<8x1xf32, #tpu.memory_space<vmem>>, vector<8x1xf32>
    %35 = vector.broadcast %34 : vector<8x1xf32> to vector<8x128xf32>
    %36 = arith.addf %33, %35 : vector<8x128xf32>
    %cst_13 = arith.constant 0.000000e+00 : f32
    %37 = vector.broadcast %cst_13 : f32 to vector<8x128xf32>
    %38 = arith.cmpf oge, %36, %37 : vector<8x128xf32>
    %cst_14 = arith.constant 1.000000e-01 : f32
    %39 = vector.broadcast %cst_14 : f32 to vector<8x128xf32>
    %40 = arith.mulf %39, %36 : vector<8x128xf32>
    %41 = arith.select %38, %36, %40 : vector<8x128xi1>, vector<8x128xf32>
    %c0_15 = arith.constant 0 : index
    %c0_16 = arith.constant 0 : index
    %c0_17 = arith.constant 0 : index
    %42 = vector.load %arg14[%c0_15, %c0_16, %c0_17] : memref<1x8x128xf32, #tpu.memory_space<vmem>>, vector<1x8x128xf32>
    %43 = vector.shape_cast %42 : vector<1x8x128xf32> to vector<8x128xf32>
    %44 = vector.shape_cast %41 : vector<8x128xf32> to vector<1x8x128xf32>
    tpu.vector_store %arg14[%c0_15, %c0_16, %c0_17], %44 {strides = array<i32>} : memref<1x8x128xf32, #tpu.memory_space<vmem>>, vector<1x8x128xf32>,
    %45 = arith.truncf %41 : vector<8x128xf32> to vector<8x128xbf16>
    %cst_18 = arith.constant 0.000000e+00 : bf16
    %46 = vector.broadcast %cst_18 : bf16 to vector<8x6xbf16>
    %47 = tpu.concatenate %46, %45, %46 in 1 : vector<8x6xbf16>, vector<8x128xbf16>, vector<8x6xbf16> -> vector<8x140xbf16>
    %48 = vector.extract_strided_slice %47 {offsets = [0, 4], sizes = [8, 128], strides = [1, 1]} : vector<8x140xbf16> to vector<8x128xbf16>
    %49 = vector.extract_strided_slice %47 {offsets = [0, 5], sizes = [8, 128], strides = [1, 1]} : vector<8x140xbf16> to vector<8x128xbf16>
    %50 = vector.extract_strided_slice %47 {offsets = [0, 6], sizes = [8, 128], strides = [1, 1]} : vector<8x140xbf16> to vector<8x128xbf16>
    %51 = vector.extract_strided_slice %47 {offsets = [0, 7], sizes = [8, 128], strides = [1, 1]} : vector<8x140xbf16> to vector<8x128xbf16>
    %52 = vector.extract_strided_slice %47 {offsets = [0, 8], sizes = [8, 128], strides = [1, 1]} : vector<8x140xbf16> to vector<8x128xbf16>
    %53 = vector.extract_strided_slice %47 {offsets = [0, 2], sizes = [8, 128], strides = [1, 1]} : vector<8x140xbf16> to vector<8x128xbf16>
    %54 = vector.extract_strided_slice %47 {offsets = [0, 4], sizes = [8, 128], strides = [1, 1]} : vector<8x140xbf16> to vector<8x128xbf16>
    %55 = vector.extract_strided_slice %47 {offsets = [0, 6], sizes = [8, 128], strides = [1, 1]} : vector<8x140xbf16> to vector<8x128xbf16>
    %56 = vector.extract_strided_slice %47 {offsets = [0, 8], sizes = [8, 128], strides = [1, 1]} : vector<8x140xbf16> to vector<8x128xbf16>
    %57 = vector.extract_strided_slice %47 {offsets = [0, 10], sizes = [8, 128], strides = [1, 1]} : vector<8x140xbf16> to vector<8x128xbf16>
    %58 = vector.extract_strided_slice %47 {offsets = [0, 0], sizes = [8, 128], strides = [1, 1]} : vector<8x140xbf16> to vector<8x128xbf16>
    %59 = vector.extract_strided_slice %47 {offsets = [0, 3], sizes = [8, 128], strides = [1, 1]} : vector<8x140xbf16> to vector<8x128xbf16>
    %60 = vector.extract_strided_slice %47 {offsets = [0, 6], sizes = [8, 128], strides = [1, 1]} : vector<8x140xbf16> to vector<8x128xbf16>
    %61 = vector.extract_strided_slice %47 {offsets = [0, 9], sizes = [8, 128], strides = [1, 1]} : vector<8x140xbf16> to vector<8x128xbf16>
    %62 = vector.extract_strided_slice %47 {offsets = [0, 12], sizes = [8, 128], strides = [1, 1]} : vector<8x140xbf16> to vector<8x128xbf16>
    %63 = tpu.concatenate %48, %49, %50, %51, %52, %53, %54, %55, %56, %57, %58, %59, %60, %61, %62 in 0 : vector<8x128xbf16>, vector<8x128xbf16>, vector<8x128xbf16>, vector<8x128xbf16>, vector<8x128xbf16>, vector<8x128xbf16>, vector<8x128xbf16>, vector<8x128xbf16>, vector<8x128xbf16>, vector<8x128xbf16>, vector<8x128xbf16>, vector<8x128xbf16>, vector<8x128xbf16>, vector<8x128xbf16>, vector<8x128xbf16> -> vector<120x128xbf16>
    %c0_19 = arith.constant 0 : index
    %c0_20 = arith.constant 0 : index
    %64 = vector.load %arg6[%c0_19, %c0_20] : memref<16x120xbf16, #tpu.memory_space<vmem>>, vector<16x120xbf16>
    %cst_21 = arith.constant dense<0.000000e+00> : vector<16x128xf32>
    %65 = tpu.matmul %64, %63, %cst_21 {dimension_numbers = #tpu.dot_dimension_numbers<[1], [0], [0], [1], [0, 0, 1, 1], [], []>} : vector<16x120xbf16>, vector<120x128xbf16>, vector<16x128xf32> -> vector<16x128xf32>
    %c0_22 = arith.constant 0 : index
    %c0_23 = arith.constant 0 : index
    %66 = vector.load %arg7[%c0_22, %c0_23] : memref<16x1xf32, #tpu.memory_space<vmem>>, vector<16x1xf32>
    %67 = vector.broadcast %66 : vector<16x1xf32> to vector<16x128xf32>
    %68 = arith.addf %65, %67 : vector<16x128xf32>
    %69 = arith.truncf %68 : vector<16x128xf32> to vector<16x128xbf16>
    %cst_24 = arith.constant 0.000000e+00 : bf16
    %70 = vector.broadcast %cst_24 : bf16 to vector<16x1xbf16>
    %71 = tpu.concatenate %70, %69, %70 in 1 : vector<16x1xbf16>, vector<16x128xbf16>, vector<16x1xbf16> -> vector<16x130xbf16>
    %72 = vector.extract_strided_slice %71 {offsets = [0, 0], sizes = [16, 128], strides = [1, 1]} : vector<16x130xbf16> to vector<16x128xbf16>
    %73 = vector.extract_strided_slice %71 {offsets = [0, 1], sizes = [16, 128], strides = [1, 1]} : vector<16x130xbf16> to vector<16x128xbf16>
    %74 = vector.extract_strided_slice %71 {offsets = [0, 2], sizes = [16, 128], strides = [1, 1]} : vector<16x130xbf16> to vector<16x128xbf16>
    %75 = tpu.concatenate %72, %73, %74 in 0 : vector<16x128xbf16>, vector<16x128xbf16>, vector<16x128xbf16> -> vector<48x128xbf16>
    %c0_25 = arith.constant 0 : index
    %c0_26 = arith.constant 0 : index
    %76 = vector.load %arg8[%c0_25, %c0_26] : memref<16x48xbf16, #tpu.memory_space<vmem>>, vector<16x48xbf16>
    %cst_27 = arith.constant dense<0.000000e+00> : vector<16x128xf32>
    %77 = tpu.matmul %76, %75, %cst_27 {dimension_numbers = #tpu.dot_dimension_numbers<[1], [0], [0], [1], [0, 0, 1, 1], [], []>} : vector<16x48xbf16>, vector<48x128xbf16>, vector<16x128xf32> -> vector<16x128xf32>
    %c0_28 = arith.constant 0 : index
    %c0_29 = arith.constant 0 : index
    %78 = vector.load %arg9[%c0_28, %c0_29] : memref<16x1xf32, #tpu.memory_space<vmem>>, vector<16x1xf32>
    %79 = vector.broadcast %78 : vector<16x1xf32> to vector<16x128xf32>
    %80 = arith.addf %77, %79 : vector<16x128xf32>
    %cst_30 = arith.constant 0.000000e+00 : f32
    %81 = vector.broadcast %cst_30 : f32 to vector<16x128xf32>
    %82 = arith.cmpf oge, %80, %81 : vector<16x128xf32>
    %cst_31 = arith.constant 1.000000e-01 : f32
    %83 = vector.broadcast %cst_31 : f32 to vector<16x128xf32>
    %84 = arith.mulf %83, %80 : vector<16x128xf32>
    %85 = arith.select %82, %80, %84 : vector<16x128xi1>, vector<16x128xf32>
    %c0_32 = arith.constant 0 : index
    %c0_33 = arith.constant 0 : index
    %c0_34 = arith.constant 0 : index
    %86 = vector.load %arg15[%c0_32, %c0_33, %c0_34] : memref<1x16x128xf32, #tpu.memory_space<vmem>>, vector<1x16x128xf32>
    %87 = vector.shape_cast %86 : vector<1x16x128xf32> to vector<16x128xf32>
    %88 = vector.shape_cast %85 : vector<16x128xf32> to vector<1x16x128xf32>
    tpu.vector_store %arg15[%c0_32, %c0_33, %c0_34], %88 {strides = array<i32>} : memref<1x16x128xf32, #tpu.memory_space<vmem>>, vector<1x16x128xf32>,
    %89 = arith.truncf %85 : vector<16x128xf32> to vector<16x128xbf16>
    %cst_35 = arith.constant 0.000000e+00 : bf16
    %90 = vector.broadcast %cst_35 : bf16 to vector<16x6xbf16>
    %91 = tpu.concatenate %90, %89, %90 in 1 : vector<16x6xbf16>, vector<16x128xbf16>, vector<16x6xbf16> -> vector<16x140xbf16>
    %92 = vector.extract_strided_slice %91 {offsets = [0, 4], sizes = [16, 128], strides = [1, 1]} : vector<16x140xbf16> to vector<16x128xbf16>
    %93 = vector.extract_strided_slice %91 {offsets = [0, 5], sizes = [16, 128], strides = [1, 1]} : vector<16x140xbf16> to vector<16x128xbf16>
    %94 = vector.extract_strided_slice %91 {offsets = [0, 6], sizes = [16, 128], strides = [1, 1]} : vector<16x140xbf16> to vector<16x128xbf16>
    %95 = vector.extract_strided_slice %91 {offsets = [0, 7], sizes = [16, 128], strides = [1, 1]} : vector<16x140xbf16> to vector<16x128xbf16>
    %96 = vector.extract_strided_slice %91 {offsets = [0, 8], sizes = [16, 128], strides = [1, 1]} : vector<16x140xbf16> to vector<16x128xbf16>
    %97 = vector.extract_strided_slice %91 {offsets = [0, 2], sizes = [16, 128], strides = [1, 1]} : vector<16x140xbf16> to vector<16x128xbf16>
    %98 = vector.extract_strided_slice %91 {offsets = [0, 4], sizes = [16, 128], strides = [1, 1]} : vector<16x140xbf16> to vector<16x128xbf16>
    %99 = vector.extract_strided_slice %91 {offsets = [0, 6], sizes = [16, 128], strides = [1, 1]} : vector<16x140xbf16> to vector<16x128xbf16>
    %100 = vector.extract_strided_slice %91 {offsets = [0, 8], sizes = [16, 128], strides = [1, 1]} : vector<16x140xbf16> to vector<16x128xbf16>
    %101 = vector.extract_strided_slice %91 {offsets = [0, 10], sizes = [16, 128], strides = [1, 1]} : vector<16x140xbf16> to vector<16x128xbf16>
    %102 = vector.extract_strided_slice %91 {offsets = [0, 0], sizes = [16, 128], strides = [1, 1]} : vector<16x140xbf16> to vector<16x128xbf16>
    %103 = vector.extract_strided_slice %91 {offsets = [0, 3], sizes = [16, 128], strides = [1, 1]} : vector<16x140xbf16> to vector<16x128xbf16>
    %104 = vector.extract_strided_slice %91 {offsets = [0, 6], sizes = [16, 128], strides = [1, 1]} : vector<16x140xbf16> to vector<16x128xbf16>
    %105 = vector.extract_strided_slice %91 {offsets = [0, 9], sizes = [16, 128], strides = [1, 1]} : vector<16x140xbf16> to vector<16x128xbf16>
    %106 = vector.extract_strided_slice %91 {offsets = [0, 12], sizes = [16, 128], strides = [1, 1]} : vector<16x140xbf16> to vector<16x128xbf16>
    %107 = tpu.concatenate %92, %93, %94, %95, %96, %97, %98, %99, %100, %101, %102, %103, %104, %105, %106 in 0 : vector<16x128xbf16>, vector<16x128xbf16>, vector<16x128xbf16>, vector<16x128xbf16>, vector<16x128xbf16>, vector<16x128xbf16>, vector<16x128xbf16>, vector<16x128xbf16>, vector<16x128xbf16>, vector<16x128xbf16>, vector<16x128xbf16>, vector<16x128xbf16>, vector<16x128xbf16>, vector<16x128xbf16>, vector<16x128xbf16> -> vector<240x128xbf16>
    %c0_36 = arith.constant 0 : index
    %c0_37 = arith.constant 0 : index
    %108 = vector.load %arg10[%c0_36, %c0_37] : memref<16x240xbf16, #tpu.memory_space<vmem>>, vector<16x240xbf16>
    %cst_38 = arith.constant dense<0.000000e+00> : vector<16x128xf32>
    %109 = tpu.matmul %108, %107, %cst_38 {dimension_numbers = #tpu.dot_dimension_numbers<[1], [0], [0], [1], [0, 0, 1, 1], [], []>} : vector<16x240xbf16>, vector<240x128xbf16>, vector<16x128xf32> -> vector<16x128xf32>
    %c0_39 = arith.constant 0 : index
    %c0_40 = arith.constant 0 : index
    %110 = vector.load %arg11[%c0_39, %c0_40] : memref<16x1xf32, #tpu.memory_space<vmem>>, vector<16x1xf32>
    %111 = vector.broadcast %110 : vector<16x1xf32> to vector<16x128xf32>
    %112 = arith.addf %109, %111 : vector<16x128xf32>
    %113 = arith.truncf %112 : vector<16x128xf32> to vector<16x128xbf16>
    %cst_41 = arith.constant 0.000000e+00 : bf16
    %114 = vector.broadcast %cst_41 : bf16 to vector<16x1xbf16>
    %115 = tpu.concatenate %114, %113, %114 in 1 : vector<16x1xbf16>, vector<16x128xbf16>, vector<16x1xbf16> -> vector<16x130xbf16>
    %116 = vector.extract_strided_slice %115 {offsets = [0, 0], sizes = [16, 128], strides = [1, 1]} : vector<16x130xbf16> to vector<16x128xbf16>
    %117 = vector.extract_strided_slice %115 {offsets = [0, 1], sizes = [16, 128], strides = [1, 1]} : vector<16x130xbf16> to vector<16x128xbf16>
    %118 = vector.extract_strided_slice %115 {offsets = [0, 2], sizes = [16, 128], strides = [1, 1]} : vector<16x130xbf16> to vector<16x128xbf16>
    %119 = tpu.concatenate %116, %117, %118 in 0 : vector<16x128xbf16>, vector<16x128xbf16>, vector<16x128xbf16> -> vector<48x128xbf16>
    %c0_42 = arith.constant 0 : index
    %c0_43 = arith.constant 0 : index
    %120 = vector.load %arg12[%c0_42, %c0_43] : memref<16x48xbf16, #tpu.memory_space<vmem>>, vector<16x48xbf16>
    %cst_44 = arith.constant dense<0.000000e+00> : vector<16x128xf32>
    %121 = tpu.matmul %120, %119, %cst_44 {dimension_numbers = #tpu.dot_dimension_numbers<[1], [0], [0], [1], [0, 0, 1, 1], [], []>} : vector<16x48xbf16>, vector<48x128xbf16>, vector<16x128xf32> -> vector<16x128xf32>
    %c0_45 = arith.constant 0 : index
    %c0_46 = arith.constant 0 : index
    %122 = vector.load %arg13[%c0_45, %c0_46] : memref<16x1xf32, #tpu.memory_space<vmem>>, vector<16x1xf32>
    %123 = vector.broadcast %122 : vector<16x1xf32> to vector<16x128xf32>
    %124 = arith.addf %121, %123 : vector<16x128xf32>
    %cst_47 = arith.constant 0.000000e+00 : f32
    %125 = vector.broadcast %cst_47 : f32 to vector<16x128xf32>
    %126 = arith.cmpf oge, %124, %125 : vector<16x128xf32>
    %cst_48 = arith.constant 1.000000e-01 : f32
    %127 = vector.broadcast %cst_48 : f32 to vector<16x128xf32>
    %128 = arith.mulf %127, %124 : vector<16x128xf32>
    %129 = arith.select %126, %124, %128 : vector<16x128xi1>, vector<16x128xf32>
    %c0_49 = arith.constant 0 : index
    %c0_50 = arith.constant 0 : index
    %c0_51 = arith.constant 0 : index
    %130 = vector.load %arg16[%c0_49, %c0_50, %c0_51] : memref<1x16x128xf32, #tpu.memory_space<vmem>>, vector<1x16x128xf32>
    %131 = vector.shape_cast %130 : vector<1x16x128xf32> to vector<16x128xf32>
    %132 = vector.shape_cast %129 : vector<16x128xf32> to vector<1x16x128xf32>
    tpu.vector_store %arg16[%c0_49, %c0_50, %c0_51], %132 {strides = array<i32>} : memref<1x16x128xf32, #tpu.memory_space<vmem>>, vector<1x16x128xf32>,
    return
  }
  func.func @transform_0(%arg0: i32) -> (i32, i32, i32) {
    %c0_i32 = arith.constant 0 : i32
    %c0_i32_0 = arith.constant 0 : i32
    %c0_i32_1 = arith.constant 0 : i32
    return %arg0, %c0_i32, %c0_i32_0 : i32, i32, i32
  }
  func.func @transform_1(%arg0: i32) -> (i32, i32) {
    %c0_i32 = arith.constant 0 : i32
    %c0_i32_0 = arith.constant 0 : i32
    %c0_i32_1 = arith.constant 0 : i32
    return %c0_i32, %c0_i32_0 : i32, i32
  }
  func.func @transform_2(%arg0: i32) -> (i32, i32) {
    %c0_i32 = arith.constant 0 : i32
    %c0_i32_0 = arith.constant 0 : i32
    %c0_i32_1 = arith.constant 0 : i32
    return %c0_i32, %c0_i32_0 : i32, i32
  }
  func.func @transform_3(%arg0: i32) -> (i32, i32) {
    %c0_i32 = arith.constant 0 : i32
    %c0_i32_0 = arith.constant 0 : i32
    %c0_i32_1 = arith.constant 0 : i32
    return %c0_i32, %c0_i32_0 : i32, i32
  }
  func.func @transform_4(%arg0: i32) -> (i32, i32) {
    %c0_i32 = arith.constant 0 : i32
    %c0_i32_0 = arith.constant 0 : i32
    %c0_i32_1 = arith.constant 0 : i32
    return %c0_i32, %c0_i32_0 : i32, i32
  }
  func.func @transform_5(%arg0: i32) -> (i32, i32) {
    %c0_i32 = arith.constant 0 : i32
    %c0_i32_0 = arith.constant 0 : i32
    %c0_i32_1 = arith.constant 0 : i32
    return %c0_i32, %c0_i32_0 : i32, i32
  }
  func.func @transform_6(%arg0: i32) -> (i32, i32) {
    %c0_i32 = arith.constant 0 : i32
    %c0_i32_0 = arith.constant 0 : i32
    %c0_i32_1 = arith.constant 0 : i32
    return %c0_i32, %c0_i32_0 : i32, i32
  }
  func.func @transform_7(%arg0: i32) -> (i32, i32) {
    %c0_i32 = arith.constant 0 : i32
    %c0_i32_0 = arith.constant 0 : i32
    %c0_i32_1 = arith.constant 0 : i32
    return %c0_i32, %c0_i32_0 : i32, i32
  }
  func.func @transform_8(%arg0: i32) -> (i32, i32) {
    %c0_i32 = arith.constant 0 : i32
    %c0_i32_0 = arith.constant 0 : i32
    %c0_i32_1 = arith.constant 0 : i32
    return %c0_i32, %c0_i32_0 : i32, i32
  }
  func.func @transform_9(%arg0: i32) -> (i32, i32) {
    %c0_i32 = arith.constant 0 : i32
    %c0_i32_0 = arith.constant 0 : i32
    %c0_i32_1 = arith.constant 0 : i32
    return %c0_i32, %c0_i32_0 : i32, i32
  }
  func.func @transform_10(%arg0: i32) -> (i32, i32) {
    %c0_i32 = arith.constant 0 : i32
    %c0_i32_0 = arith.constant 0 : i32
    %c0_i32_1 = arith.constant 0 : i32
    return %c0_i32, %c0_i32_0 : i32, i32
  }
  func.func @transform_11(%arg0: i32) -> (i32, i32) {
    %c0_i32 = arith.constant 0 : i32
    %c0_i32_0 = arith.constant 0 : i32
    %c0_i32_1 = arith.constant 0 : i32
    return %c0_i32, %c0_i32_0 : i32, i32
  }
  func.func @transform_12(%arg0: i32) -> (i32, i32) {
    %c0_i32 = arith.constant 0 : i32
    %c0_i32_0 = arith.constant 0 : i32
    %c0_i32_1 = arith.constant 0 : i32
    return %c0_i32, %c0_i32_0 : i32, i32
  }
  func.func @transform_13(%arg0: i32) -> (i32, i32, i32) {
    %c0_i32 = arith.constant 0 : i32
    %c0_i32_0 = arith.constant 0 : i32
    %c0_i32_1 = arith.constant 0 : i32
    return %arg0, %c0_i32, %c0_i32_0 : i32, i32, i32
  }
  func.func @transform_14(%arg0: i32) -> (i32, i32, i32) {
    %c0_i32 = arith.constant 0 : i32
    %c0_i32_0 = arith.constant 0 : i32
    %c0_i32_1 = arith.constant 0 : i32
    return %arg0, %c0_i32, %c0_i32_0 : i32, i32, i32
  }
  func.func @transform_15(%arg0: i32) -> (i32, i32, i32) {
    %c0_i32 = arith.constant 0 : i32
    %c0_i32_0 = arith.constant 0 : i32
    %c0_i32_1 = arith.constant 0 : i32
    return %arg0, %c0_i32, %c0_i32_0 : i32, i32, i32
  }
}

module attributes {stable_mosaic.version = 11 : i64} {
  func.func @_chain_kernel(%arg0: i32, %arg1: memref<1x2x128xbf16, #tpu.memory_space<vmem>>, %arg2: memref<8x12xbf16, #tpu.memory_space<vmem>>, %arg3: memref<8x1xf32, #tpu.memory_space<vmem>>, %arg4: memref<8x24xbf16, #tpu.memory_space<vmem>>, %arg5: memref<8x1xf32, #tpu.memory_space<vmem>>, %arg6: memref<16x48xbf16, #tpu.memory_space<vmem>>, %arg7: memref<16x1xf32, #tpu.memory_space<vmem>>, %arg8: memref<16x48xbf16, #tpu.memory_space<vmem>>, %arg9: memref<16x1xf32, #tpu.memory_space<vmem>>, %arg10: memref<16x96xbf16, #tpu.memory_space<vmem>>, %arg11: memref<16x1xf32, #tpu.memory_space<vmem>>, %arg12: memref<16x48xbf16, #tpu.memory_space<vmem>>, %arg13: memref<16x1xf32, #tpu.memory_space<vmem>>, %arg14: memref<1x8x128xf32, #tpu.memory_space<vmem>>, %arg15: memref<1x16x128xf32, #tpu.memory_space<vmem>>, %arg16: memref<1x16x128xf32, #tpu.memory_space<vmem>>) attributes {dimension_semantics = [#tpu.dimension_semantics<parallel>], iteration_bounds = array<i64: 4>, scalar_prefetch = 0 : i64, scratch_operands = 0 : i64, tpu.core_type = #tpu.core_type<tc>, window_params = [{transform_indices = @transform_0, window_bounds = array<i64: 1, 2, 128>}, {pipeline_mode = #tpu.pipeline_mode<synchronous>, transform_indices = @transform_1, window_bounds = array<i64: 8, 12>}, {pipeline_mode = #tpu.pipeline_mode<synchronous>, transform_indices = @transform_2, window_bounds = array<i64: 8, 1>}, {pipeline_mode = #tpu.pipeline_mode<synchronous>, transform_indices = @transform_3, window_bounds = array<i64: 8, 24>}, {pipeline_mode = #tpu.pipeline_mode<synchronous>, transform_indices = @transform_4, window_bounds = array<i64: 8, 1>}, {pipeline_mode = #tpu.pipeline_mode<synchronous>, transform_indices = @transform_5, window_bounds = array<i64: 16, 48>}, {pipeline_mode = #tpu.pipeline_mode<synchronous>, transform_indices = @transform_6, window_bounds = array<i64: 16, 1>}, {pipeline_mode = #tpu.pipeline_mode<synchronous>, transform_indices = @transform_7, window_bounds = array<i64: 16, 48>}, {pipeline_mode = #tpu.pipeline_mode<synchronous>, transform_indices = @transform_8, window_bounds = array<i64: 16, 1>}, {pipeline_mode = #tpu.pipeline_mode<synchronous>, transform_indices = @transform_9, window_bounds = array<i64: 16, 96>}, {pipeline_mode = #tpu.pipeline_mode<synchronous>, transform_indices = @transform_10, window_bounds = array<i64: 16, 1>}, {pipeline_mode = #tpu.pipeline_mode<synchronous>, transform_indices = @transform_11, window_bounds = array<i64: 16, 48>}, {pipeline_mode = #tpu.pipeline_mode<synchronous>, transform_indices = @transform_12, window_bounds = array<i64: 16, 1>}, {transform_indices = @transform_13, window_bounds = array<i64: 1, 8, 128>}, {transform_indices = @transform_14, window_bounds = array<i64: 1, 16, 128>}, {transform_indices = @transform_15, window_bounds = array<i64: 1, 16, 128>}]} {
    %c0 = arith.constant 0 : index
    %c0_0 = arith.constant 0 : index
    %c0_1 = arith.constant 0 : index
    %0 = vector.load %arg1[%c0, %c0_0, %c0_1] : memref<1x2x128xbf16, #tpu.memory_space<vmem>>, vector<1x2x128xbf16>
    %1 = vector.shape_cast %0 : vector<1x2x128xbf16> to vector<2x128xbf16>
    %cst = arith.constant 0.000000e+00 : bf16
    %2 = vector.broadcast %cst : bf16 to vector<2x2xbf16>
    %3 = tpu.concatenate %2, %1, %2 in 1 : vector<2x2xbf16>, vector<2x128xbf16>, vector<2x2xbf16> -> vector<2x132xbf16>
    %4 = vector.extract_strided_slice %3 {offsets = [0, 1], sizes = [2, 128], strides = [1, 1]} : vector<2x132xbf16> to vector<2x128xbf16>
    %5 = vector.extract_strided_slice %3 {offsets = [0, 2], sizes = [2, 128], strides = [1, 1]} : vector<2x132xbf16> to vector<2x128xbf16>
    %6 = vector.extract_strided_slice %3 {offsets = [0, 3], sizes = [2, 128], strides = [1, 1]} : vector<2x132xbf16> to vector<2x128xbf16>
    %7 = vector.extract_strided_slice %3 {offsets = [0, 0], sizes = [2, 128], strides = [1, 1]} : vector<2x132xbf16> to vector<2x128xbf16>
    %8 = vector.extract_strided_slice %3 {offsets = [0, 2], sizes = [2, 128], strides = [1, 1]} : vector<2x132xbf16> to vector<2x128xbf16>
    %9 = vector.extract_strided_slice %3 {offsets = [0, 4], sizes = [2, 128], strides = [1, 1]} : vector<2x132xbf16> to vector<2x128xbf16>
    %10 = tpu.concatenate %4, %5, %6, %7, %8, %9 in 0 : vector<2x128xbf16>, vector<2x128xbf16>, vector<2x128xbf16>, vector<2x128xbf16>, vector<2x128xbf16>, vector<2x128xbf16> -> vector<12x128xbf16>
    %c0_2 = arith.constant 0 : index
    %c0_3 = arith.constant 0 : index
    %11 = vector.load %arg2[%c0_2, %c0_3] : memref<8x12xbf16, #tpu.memory_space<vmem>>, vector<8x12xbf16>
    %cst_4 = arith.constant dense<0.000000e+00> : vector<8x128xf32>
    %12 = tpu.matmul %11, %10, %cst_4 {dimension_numbers = #tpu.dot_dimension_numbers<[1], [0], [0], [1], [0, 0, 1, 1], [], []>} : vector<8x12xbf16>, vector<12x128xbf16>, vector<8x128xf32> -> vector<8x128xf32>
    %c0_5 = arith.constant 0 : index
    %c0_6 = arith.constant 0 : index
    %13 = vector.load %arg3[%c0_5, %c0_6] : memref<8x1xf32, #tpu.memory_space<vmem>>, vector<8x1xf32>
    %14 = vector.broadcast %13 : vector<8x1xf32> to vector<8x128xf32>
    %15 = arith.addf %12, %14 : vector<8x128xf32>
    %16 = arith.truncf %15 : vector<8x128xf32> to vector<8x128xbf16>
    %cst_7 = arith.constant 0.000000e+00 : bf16
    %17 = vector.broadcast %cst_7 : bf16 to vector<8x1xbf16>
    %18 = tpu.concatenate %17, %16, %17 in 1 : vector<8x1xbf16>, vector<8x128xbf16>, vector<8x1xbf16> -> vector<8x130xbf16>
    %19 = vector.extract_strided_slice %18 {offsets = [0, 0], sizes = [8, 128], strides = [1, 1]} : vector<8x130xbf16> to vector<8x128xbf16>
    %20 = vector.extract_strided_slice %18 {offsets = [0, 1], sizes = [8, 128], strides = [1, 1]} : vector<8x130xbf16> to vector<8x128xbf16>
    %21 = vector.extract_strided_slice %18 {offsets = [0, 2], sizes = [8, 128], strides = [1, 1]} : vector<8x130xbf16> to vector<8x128xbf16>
    %22 = tpu.concatenate %19, %20, %21 in 0 : vector<8x128xbf16>, vector<8x128xbf16>, vector<8x128xbf16> -> vector<24x128xbf16>
    %c0_8 = arith.constant 0 : index
    %c0_9 = arith.constant 0 : index
    %23 = vector.load %arg4[%c0_8, %c0_9] : memref<8x24xbf16, #tpu.memory_space<vmem>>, vector<8x24xbf16>
    %cst_10 = arith.constant dense<0.000000e+00> : vector<8x128xf32>
    %24 = tpu.matmul %23, %22, %cst_10 {dimension_numbers = #tpu.dot_dimension_numbers<[1], [0], [0], [1], [0, 0, 1, 1], [], []>} : vector<8x24xbf16>, vector<24x128xbf16>, vector<8x128xf32> -> vector<8x128xf32>
    %c0_11 = arith.constant 0 : index
    %c0_12 = arith.constant 0 : index
    %25 = vector.load %arg5[%c0_11, %c0_12] : memref<8x1xf32, #tpu.memory_space<vmem>>, vector<8x1xf32>
    %26 = vector.broadcast %25 : vector<8x1xf32> to vector<8x128xf32>
    %27 = arith.addf %24, %26 : vector<8x128xf32>
    %cst_13 = arith.constant 0.000000e+00 : f32
    %28 = vector.broadcast %cst_13 : f32 to vector<8x128xf32>
    %29 = arith.cmpf oge, %27, %28 : vector<8x128xf32>
    %cst_14 = arith.constant 1.000000e-01 : f32
    %30 = vector.broadcast %cst_14 : f32 to vector<8x128xf32>
    %31 = arith.mulf %30, %27 : vector<8x128xf32>
    %32 = arith.select %29, %27, %31 : vector<8x128xi1>, vector<8x128xf32>
    %c0_15 = arith.constant 0 : index
    %c0_16 = arith.constant 0 : index
    %c0_17 = arith.constant 0 : index
    %33 = vector.load %arg14[%c0_15, %c0_16, %c0_17] : memref<1x8x128xf32, #tpu.memory_space<vmem>>, vector<1x8x128xf32>
    %34 = vector.shape_cast %33 : vector<1x8x128xf32> to vector<8x128xf32>
    %35 = vector.shape_cast %32 : vector<8x128xf32> to vector<1x8x128xf32>
    tpu.vector_store %arg14[%c0_15, %c0_16, %c0_17], %35 {strides = array<i32>} : memref<1x8x128xf32, #tpu.memory_space<vmem>>, vector<1x8x128xf32>,
    %36 = arith.truncf %32 : vector<8x128xf32> to vector<8x128xbf16>
    %cst_18 = arith.constant 0.000000e+00 : bf16
    %37 = vector.broadcast %cst_18 : bf16 to vector<8x2xbf16>
    %38 = tpu.concatenate %37, %36, %37 in 1 : vector<8x2xbf16>, vector<8x128xbf16>, vector<8x2xbf16> -> vector<8x132xbf16>
    %39 = vector.extract_strided_slice %38 {offsets = [0, 1], sizes = [8, 128], strides = [1, 1]} : vector<8x132xbf16> to vector<8x128xbf16>
    %40 = vector.extract_strided_slice %38 {offsets = [0, 2], sizes = [8, 128], strides = [1, 1]} : vector<8x132xbf16> to vector<8x128xbf16>
    %41 = vector.extract_strided_slice %38 {offsets = [0, 3], sizes = [8, 128], strides = [1, 1]} : vector<8x132xbf16> to vector<8x128xbf16>
    %42 = vector.extract_strided_slice %38 {offsets = [0, 0], sizes = [8, 128], strides = [1, 1]} : vector<8x132xbf16> to vector<8x128xbf16>
    %43 = vector.extract_strided_slice %38 {offsets = [0, 2], sizes = [8, 128], strides = [1, 1]} : vector<8x132xbf16> to vector<8x128xbf16>
    %44 = vector.extract_strided_slice %38 {offsets = [0, 4], sizes = [8, 128], strides = [1, 1]} : vector<8x132xbf16> to vector<8x128xbf16>
    %45 = tpu.concatenate %39, %40, %41, %42, %43, %44 in 0 : vector<8x128xbf16>, vector<8x128xbf16>, vector<8x128xbf16>, vector<8x128xbf16>, vector<8x128xbf16>, vector<8x128xbf16> -> vector<48x128xbf16>
    %c0_19 = arith.constant 0 : index
    %c0_20 = arith.constant 0 : index
    %46 = vector.load %arg6[%c0_19, %c0_20] : memref<16x48xbf16, #tpu.memory_space<vmem>>, vector<16x48xbf16>
    %cst_21 = arith.constant dense<0.000000e+00> : vector<16x128xf32>
    %47 = tpu.matmul %46, %45, %cst_21 {dimension_numbers = #tpu.dot_dimension_numbers<[1], [0], [0], [1], [0, 0, 1, 1], [], []>} : vector<16x48xbf16>, vector<48x128xbf16>, vector<16x128xf32> -> vector<16x128xf32>
    %c0_22 = arith.constant 0 : index
    %c0_23 = arith.constant 0 : index
    %48 = vector.load %arg7[%c0_22, %c0_23] : memref<16x1xf32, #tpu.memory_space<vmem>>, vector<16x1xf32>
    %49 = vector.broadcast %48 : vector<16x1xf32> to vector<16x128xf32>
    %50 = arith.addf %47, %49 : vector<16x128xf32>
    %51 = arith.truncf %50 : vector<16x128xf32> to vector<16x128xbf16>
    %cst_24 = arith.constant 0.000000e+00 : bf16
    %52 = vector.broadcast %cst_24 : bf16 to vector<16x1xbf16>
    %53 = tpu.concatenate %52, %51, %52 in 1 : vector<16x1xbf16>, vector<16x128xbf16>, vector<16x1xbf16> -> vector<16x130xbf16>
    %54 = vector.extract_strided_slice %53 {offsets = [0, 0], sizes = [16, 128], strides = [1, 1]} : vector<16x130xbf16> to vector<16x128xbf16>
    %55 = vector.extract_strided_slice %53 {offsets = [0, 1], sizes = [16, 128], strides = [1, 1]} : vector<16x130xbf16> to vector<16x128xbf16>
    %56 = vector.extract_strided_slice %53 {offsets = [0, 2], sizes = [16, 128], strides = [1, 1]} : vector<16x130xbf16> to vector<16x128xbf16>
    %57 = tpu.concatenate %54, %55, %56 in 0 : vector<16x128xbf16>, vector<16x128xbf16>, vector<16x128xbf16> -> vector<48x128xbf16>
    %c0_25 = arith.constant 0 : index
    %c0_26 = arith.constant 0 : index
    %58 = vector.load %arg8[%c0_25, %c0_26] : memref<16x48xbf16, #tpu.memory_space<vmem>>, vector<16x48xbf16>
    %cst_27 = arith.constant dense<0.000000e+00> : vector<16x128xf32>
    %59 = tpu.matmul %58, %57, %cst_27 {dimension_numbers = #tpu.dot_dimension_numbers<[1], [0], [0], [1], [0, 0, 1, 1], [], []>} : vector<16x48xbf16>, vector<48x128xbf16>, vector<16x128xf32> -> vector<16x128xf32>
    %c0_28 = arith.constant 0 : index
    %c0_29 = arith.constant 0 : index
    %60 = vector.load %arg9[%c0_28, %c0_29] : memref<16x1xf32, #tpu.memory_space<vmem>>, vector<16x1xf32>
    %61 = vector.broadcast %60 : vector<16x1xf32> to vector<16x128xf32>
    %62 = arith.addf %59, %61 : vector<16x128xf32>
    %cst_30 = arith.constant 0.000000e+00 : f32
    %63 = vector.broadcast %cst_30 : f32 to vector<16x128xf32>
    %64 = arith.cmpf oge, %62, %63 : vector<16x128xf32>
    %cst_31 = arith.constant 1.000000e-01 : f32
    %65 = vector.broadcast %cst_31 : f32 to vector<16x128xf32>
    %66 = arith.mulf %65, %62 : vector<16x128xf32>
    %67 = arith.select %64, %62, %66 : vector<16x128xi1>, vector<16x128xf32>
    %c0_32 = arith.constant 0 : index
    %c0_33 = arith.constant 0 : index
    %c0_34 = arith.constant 0 : index
    %68 = vector.load %arg15[%c0_32, %c0_33, %c0_34] : memref<1x16x128xf32, #tpu.memory_space<vmem>>, vector<1x16x128xf32>
    %69 = vector.shape_cast %68 : vector<1x16x128xf32> to vector<16x128xf32>
    %70 = vector.shape_cast %67 : vector<16x128xf32> to vector<1x16x128xf32>
    tpu.vector_store %arg15[%c0_32, %c0_33, %c0_34], %70 {strides = array<i32>} : memref<1x16x128xf32, #tpu.memory_space<vmem>>, vector<1x16x128xf32>,
    %71 = arith.truncf %67 : vector<16x128xf32> to vector<16x128xbf16>
    %cst_35 = arith.constant 0.000000e+00 : bf16
    %72 = vector.broadcast %cst_35 : bf16 to vector<16x2xbf16>
    %73 = tpu.concatenate %72, %71, %72 in 1 : vector<16x2xbf16>, vector<16x128xbf16>, vector<16x2xbf16> -> vector<16x132xbf16>
    %74 = vector.extract_strided_slice %73 {offsets = [0, 1], sizes = [16, 128], strides = [1, 1]} : vector<16x132xbf16> to vector<16x128xbf16>
    %75 = vector.extract_strided_slice %73 {offsets = [0, 2], sizes = [16, 128], strides = [1, 1]} : vector<16x132xbf16> to vector<16x128xbf16>
    %76 = vector.extract_strided_slice %73 {offsets = [0, 3], sizes = [16, 128], strides = [1, 1]} : vector<16x132xbf16> to vector<16x128xbf16>
    %77 = vector.extract_strided_slice %73 {offsets = [0, 0], sizes = [16, 128], strides = [1, 1]} : vector<16x132xbf16> to vector<16x128xbf16>
    %78 = vector.extract_strided_slice %73 {offsets = [0, 2], sizes = [16, 128], strides = [1, 1]} : vector<16x132xbf16> to vector<16x128xbf16>
    %79 = vector.extract_strided_slice %73 {offsets = [0, 4], sizes = [16, 128], strides = [1, 1]} : vector<16x132xbf16> to vector<16x128xbf16>
    %80 = tpu.concatenate %74, %75, %76, %77, %78, %79 in 0 : vector<16x128xbf16>, vector<16x128xbf16>, vector<16x128xbf16>, vector<16x128xbf16>, vector<16x128xbf16>, vector<16x128xbf16> -> vector<96x128xbf16>
    %c0_36 = arith.constant 0 : index
    %c0_37 = arith.constant 0 : index
    %81 = vector.load %arg10[%c0_36, %c0_37] : memref<16x96xbf16, #tpu.memory_space<vmem>>, vector<16x96xbf16>
    %cst_38 = arith.constant dense<0.000000e+00> : vector<16x128xf32>
    %82 = tpu.matmul %81, %80, %cst_38 {dimension_numbers = #tpu.dot_dimension_numbers<[1], [0], [0], [1], [0, 0, 1, 1], [], []>} : vector<16x96xbf16>, vector<96x128xbf16>, vector<16x128xf32> -> vector<16x128xf32>
    %c0_39 = arith.constant 0 : index
    %c0_40 = arith.constant 0 : index
    %83 = vector.load %arg11[%c0_39, %c0_40] : memref<16x1xf32, #tpu.memory_space<vmem>>, vector<16x1xf32>
    %84 = vector.broadcast %83 : vector<16x1xf32> to vector<16x128xf32>
    %85 = arith.addf %82, %84 : vector<16x128xf32>
    %86 = arith.truncf %85 : vector<16x128xf32> to vector<16x128xbf16>
    %cst_41 = arith.constant 0.000000e+00 : bf16
    %87 = vector.broadcast %cst_41 : bf16 to vector<16x1xbf16>
    %88 = tpu.concatenate %87, %86, %87 in 1 : vector<16x1xbf16>, vector<16x128xbf16>, vector<16x1xbf16> -> vector<16x130xbf16>
    %89 = vector.extract_strided_slice %88 {offsets = [0, 0], sizes = [16, 128], strides = [1, 1]} : vector<16x130xbf16> to vector<16x128xbf16>
    %90 = vector.extract_strided_slice %88 {offsets = [0, 1], sizes = [16, 128], strides = [1, 1]} : vector<16x130xbf16> to vector<16x128xbf16>
    %91 = vector.extract_strided_slice %88 {offsets = [0, 2], sizes = [16, 128], strides = [1, 1]} : vector<16x130xbf16> to vector<16x128xbf16>
    %92 = tpu.concatenate %89, %90, %91 in 0 : vector<16x128xbf16>, vector<16x128xbf16>, vector<16x128xbf16> -> vector<48x128xbf16>
    %c0_42 = arith.constant 0 : index
    %c0_43 = arith.constant 0 : index
    %93 = vector.load %arg12[%c0_42, %c0_43] : memref<16x48xbf16, #tpu.memory_space<vmem>>, vector<16x48xbf16>
    %cst_44 = arith.constant dense<0.000000e+00> : vector<16x128xf32>
    %94 = tpu.matmul %93, %92, %cst_44 {dimension_numbers = #tpu.dot_dimension_numbers<[1], [0], [0], [1], [0, 0, 1, 1], [], []>} : vector<16x48xbf16>, vector<48x128xbf16>, vector<16x128xf32> -> vector<16x128xf32>
    %c0_45 = arith.constant 0 : index
    %c0_46 = arith.constant 0 : index
    %95 = vector.load %arg13[%c0_45, %c0_46] : memref<16x1xf32, #tpu.memory_space<vmem>>, vector<16x1xf32>
    %96 = vector.broadcast %95 : vector<16x1xf32> to vector<16x128xf32>
    %97 = arith.addf %94, %96 : vector<16x128xf32>
    %cst_47 = arith.constant 0.000000e+00 : f32
    %98 = vector.broadcast %cst_47 : f32 to vector<16x128xf32>
    %99 = arith.cmpf oge, %97, %98 : vector<16x128xf32>
    %cst_48 = arith.constant 1.000000e-01 : f32
    %100 = vector.broadcast %cst_48 : f32 to vector<16x128xf32>
    %101 = arith.mulf %100, %97 : vector<16x128xf32>
    %102 = arith.select %99, %97, %101 : vector<16x128xi1>, vector<16x128xf32>
    %c0_49 = arith.constant 0 : index
    %c0_50 = arith.constant 0 : index
    %c0_51 = arith.constant 0 : index
    %103 = vector.load %arg16[%c0_49, %c0_50, %c0_51] : memref<1x16x128xf32, #tpu.memory_space<vmem>>, vector<1x16x128xf32>
    %104 = vector.shape_cast %103 : vector<1x16x128xf32> to vector<16x128xf32>
    %105 = vector.shape_cast %102 : vector<16x128xf32> to vector<1x16x128xf32>
    tpu.vector_store %arg16[%c0_49, %c0_50, %c0_51], %105 {strides = array<i32>} : memref<1x16x128xf32, #tpu.memory_space<vmem>>, vector<1x16x128xf32>,
    return
  }
  func.func @transform_0(%arg0: i32) -> (i32, i32, i32) {
    %c0_i32 = arith.constant 0 : i32
    %c0_i32_0 = arith.constant 0 : i32
    %c0_i32_1 = arith.constant 0 : i32
    return %arg0, %c0_i32, %c0_i32_0 : i32, i32, i32
  }
  func.func @transform_1(%arg0: i32) -> (i32, i32) {
    %c0_i32 = arith.constant 0 : i32
    %c0_i32_0 = arith.constant 0 : i32
    %c0_i32_1 = arith.constant 0 : i32
    return %c0_i32, %c0_i32_0 : i32, i32
  }
  func.func @transform_2(%arg0: i32) -> (i32, i32) {
    %c0_i32 = arith.constant 0 : i32
    %c0_i32_0 = arith.constant 0 : i32
    %c0_i32_1 = arith.constant 0 : i32
    return %c0_i32, %c0_i32_0 : i32, i32
  }
  func.func @transform_3(%arg0: i32) -> (i32, i32) {
    %c0_i32 = arith.constant 0 : i32
    %c0_i32_0 = arith.constant 0 : i32
    %c0_i32_1 = arith.constant 0 : i32
    return %c0_i32, %c0_i32_0 : i32, i32
  }
  func.func @transform_4(%arg0: i32) -> (i32, i32) {
    %c0_i32 = arith.constant 0 : i32
    %c0_i32_0 = arith.constant 0 : i32
    %c0_i32_1 = arith.constant 0 : i32
    return %c0_i32, %c0_i32_0 : i32, i32
  }
  func.func @transform_5(%arg0: i32) -> (i32, i32) {
    %c0_i32 = arith.constant 0 : i32
    %c0_i32_0 = arith.constant 0 : i32
    %c0_i32_1 = arith.constant 0 : i32
    return %c0_i32, %c0_i32_0 : i32, i32
  }
  func.func @transform_6(%arg0: i32) -> (i32, i32) {
    %c0_i32 = arith.constant 0 : i32
    %c0_i32_0 = arith.constant 0 : i32
    %c0_i32_1 = arith.constant 0 : i32
    return %c0_i32, %c0_i32_0 : i32, i32
  }
  func.func @transform_7(%arg0: i32) -> (i32, i32) {
    %c0_i32 = arith.constant 0 : i32
    %c0_i32_0 = arith.constant 0 : i32
    %c0_i32_1 = arith.constant 0 : i32
    return %c0_i32, %c0_i32_0 : i32, i32
  }
  func.func @transform_8(%arg0: i32) -> (i32, i32) {
    %c0_i32 = arith.constant 0 : i32
    %c0_i32_0 = arith.constant 0 : i32
    %c0_i32_1 = arith.constant 0 : i32
    return %c0_i32, %c0_i32_0 : i32, i32
  }
  func.func @transform_9(%arg0: i32) -> (i32, i32) {
    %c0_i32 = arith.constant 0 : i32
    %c0_i32_0 = arith.constant 0 : i32
    %c0_i32_1 = arith.constant 0 : i32
    return %c0_i32, %c0_i32_0 : i32, i32
  }
  func.func @transform_10(%arg0: i32) -> (i32, i32) {
    %c0_i32 = arith.constant 0 : i32
    %c0_i32_0 = arith.constant 0 : i32
    %c0_i32_1 = arith.constant 0 : i32
    return %c0_i32, %c0_i32_0 : i32, i32
  }
  func.func @transform_11(%arg0: i32) -> (i32, i32) {
    %c0_i32 = arith.constant 0 : i32
    %c0_i32_0 = arith.constant 0 : i32
    %c0_i32_1 = arith.constant 0 : i32
    return %c0_i32, %c0_i32_0 : i32, i32
  }
  func.func @transform_12(%arg0: i32) -> (i32, i32) {
    %c0_i32 = arith.constant 0 : i32
    %c0_i32_0 = arith.constant 0 : i32
    %c0_i32_1 = arith.constant 0 : i32
    return %c0_i32, %c0_i32_0 : i32, i32
  }
  func.func @transform_13(%arg0: i32) -> (i32, i32, i32) {
    %c0_i32 = arith.constant 0 : i32
    %c0_i32_0 = arith.constant 0 : i32
    %c0_i32_1 = arith.constant 0 : i32
    return %arg0, %c0_i32, %c0_i32_0 : i32, i32, i32
  }
  func.func @transform_14(%arg0: i32) -> (i32, i32, i32) {
    %c0_i32 = arith.constant 0 : i32
    %c0_i32_0 = arith.constant 0 : i32
    %c0_i32_1 = arith.constant 0 : i32
    return %arg0, %c0_i32, %c0_i32_0 : i32, i32, i32
  }
  func.func @transform_15(%arg0: i32) -> (i32, i32, i32) {
    %c0_i32 = arith.constant 0 : i32
    %c0_i32_0 = arith.constant 0 : i32
    %c0_i32_1 = arith.constant 0 : i32
    return %arg0, %c0_i32, %c0_i32_0 : i32, i32, i32
  }
}

</mosaic_0001>

<bundles_post_ra>
// kernel: _lambda_.11
= control target key start
LH: loop header
LB: loop body
LE: loop exit
PB: predicated region body
PF: predicated region fallthrough
CT: control target
= control target key end

     0   :  { %s472_s12 = smov 0   ;;  %s539_s0 = inlined_call_operand.vmem [shape: bf16[4,16,80], index: 0, kind: input, shape index: {}]   ;;  %s540_s1 = inlined_call_operand.vmem [shape: bf16[16,272], index: 1, kind: input, shape index: {}]   ;;  %s541_s2 = inlined_call_operand.vmem [shape: f32[16,1], index: 2, kind: input, shape index: {}]   ;;  %s542_s3 = inlined_call_operand.vmem [shape: bf16[4,16,64], index: 3, kind: output, shape index: {}]  }
   0x1 LB: > { %s365_s13 = sadd.s32 4294967295, %s433_s12   ;;  %p369_p0 = scmp.ge.s32.totalorder %s433_s12, 1  ;;  %s433_s12 = sphi %s472_s12, %s13_s12  }
   0x2   : > { %p137_p1 = scmp.lt.s32.totalorder %s433_s12, 5 }
   0x4   : > { %p138_p2 = pnand %p369_p0, %p137_p1 }
   0x5   : > { %p161_p3 = scmp.lt.s32.totalorder (!%p138_p2), %s365_s13, 3  ;;  %s435_s18 = smov (!%p138_p2), 121  }
   0x6   : > { %141 = sbr.rel (%p138_p2) target bundleno = 314 (0x13a), region = 32  ;;  %s436_s19 = smov (!%p138_p2), 122  }
   0x7   : > { %s437_s20 = smov (!%p138_p2), 123   ;;  %s438_s21 = smov (!%p138_p2), 113  }
   0x8   : > { %s439_s22 = smov (!%p138_p2), 114   ;;  %s440_s23 = smov (!%p138_p2), 115  }
   0x9   : > { %s441_s24 = smov (!%p138_p2), 124   ;;  %s442_s25 = smov (!%p138_p2), 116  }
   0xa   : > { %s443_s26 = smov (!%p138_p2), 125   ;;  %s444_s27 = smov (!%p138_p2), 117  }
   0xb   : > { %s544_s13 = smov (!%p161_p3, %s365_s13), 3  ;;  %s445_s28 = smov 126   ;;  %v388_v7 = vld [vmem:[%s540_s1 + $0x8] sm:$0xf]  ;;  %v398_v8 = vld [vmem:[%s540_s1 + $0x10] sm:$0xf0] }
   0xc   : > { %s393_s14 = sshll.u32 %s544_s13, 3  ;;  %s446_s29 = smov 118   ;;  %v389_v12 = vor.u32 %v398_v8, %v388_v7  ;;  %vm259_vm0 = vcmask 130048   ;;  %v232_v13 = vld [vmem:[%s541_s2] sm:$0xff]  ;;  %v233_v14 = vld [vmem:[%s541_s2 + $0x8] sm:$0xff]  ;;  %v451_v15 = vmov 0  }
   0xd   : > { %s165_s17 = scalar_lea.vmem %s539_s0, %s393_s14  ;;  %s447_s30 = smov 127   ;;  %424 = vset.pattern.permute.xlu1 %v451_v15  ;;  %425 = vset.pattern.permute.xlu2 %v451_v15  ;;  %v380_v22 = vld [vmem:[%s540_s1] sm:$0xf]  ;;  %v397_v23 = vld [vmem:[%s540_s1 + $0x8] sm:$0xf0]  ;;  %vm307_vm1 = vcmask 519168  }
   0xe   : > { %v488_v0 = vld [vmem:[%s165_s17] sm:$0xff]  ;;  %s448_s4 = smov 119   ;;  %s449_s5 = smov 112   ;;  %426 = vset.pattern.permute.xlu0 %v451_v15  ;;  %v381_v24 = vor.u32 %v397_v23, %v380_v22  ;;  %v382_v26 = vld [vmem:[%s540_s1 + $0xc] sm:$0xf0] }
   0xf   : > { %198 = vrot.lane.b32.xlu0 %v488_v0, %s435_s18  ;;  %195 = vrot.lane.b32.xlu1 %v488_v0, %s436_s19  ;;  %s450_s6 = smov 120   ;;  %v396_v25 = vld [vmem:[%s540_s1 + $0x4] sm:$0xf] }
  0x10   : > { %192 = vrot.lane.b32.xlu2 %v488_v0, %s437_s20  ;;  %v385_v28 = vor.u32 %v396_v25, %v382_v26 }
  0x17   : > { %222 = vrot.lane.b32.xlu0 %v488_v0, %s438_s21  ;;  %219 = vrot.lane.b32.xlu1 %v488_v0, %s439_s22 }
  0x18   : > { %216 = vrot.lane.b32.xlu2 %v488_v0, %s440_s23 }
  0x1f   : > { %189 = vrot.lane.b32.xlu0 %v488_v0, %s441_s24  ;;  %213 = vrot.lane.b32.xlu1 %v488_v0, %s442_s25 }
  0x20   : > { %186 = vrot.lane.b32.xlu2 %v488_v0, %s443_s26 }
  0x27   : > { %210 = vrot.lane.b32.xlu0 %v488_v0, %s444_s27  ;;  %183 = vrot.lane.b32.xlu1 %v488_v0, %s445_s28  ;;  %s170_s28 = scalar_lea.vmem %s542_s3, %s393_s14 }
  0x28   : > { %207 = vrot.lane.b32.xlu2 %v488_v0, %s446_s29 }
  0x2f   : > { %180 = vrot.lane.b32.xlu0 %v488_v0, %s447_s30  ;;  %204 = vrot.lane.b32.xlu1 %v488_v0, %s448_s4 }
  0x30   : > { %225 = vrot.lane.b32.xlu2 %v488_v0, %s449_s5 }
  0x37   : > { %201 = vrot.lane.b32.xlu0 %v488_v0, %s450_s6  ;;  %236 = vperm.xlu1 %424, %v232_v13  }
  0x38   : > { %241 = vperm.xlu2 %425, %v233_v14  }
  0x6a   : > { %v193_v1 = vpop.permute.xlu2 %192 }
  0x72   : > { %v217_v2 = vpop.permute.xlu2 %216 }
  0x7a   : > { %v187_v3 = vpop.permute.xlu2 %186 }
  0x81   : > { %v199_v4 = vpop.permute.xlu0 %198  ;;  %v196_v5 = vpop.permute.xlu1 %195 }
  0x82   : > { %263 = vmatpush.bf16.msra.mxu0 %v199_v4  ;;  %v208_v6 = vpop.permute.xlu2 %207 }
  0x86   : > { %264 = vmatpush.bf16.msra.mxu0 %v196_v5 }
  0x89   : > { %v223_v9 = vpop.permute.xlu0 %222  ;;  %v220_v10 = vpop.permute.xlu1 %219 }
  0x8a   : > { %265 = vmatpush.bf16.msra.mxu0 %v193_v1  ;;  %277 = vmatpush.bf16.msra.mxu1 %v223_v9  ;;  %v226_v11 = vpop.permute.xlu2 %225 }
  0x8b   : > { %298 = vmatpush.bf16.msra.mxu2 %v226_v11 }
  0x8e   : > { %278 = vmatpush.bf16.msra.mxu1 %v220_v10  ;;  %390 = vmatmul.msk.bf16.vlgmr.msra.gmra.mxu2 %vm259_vm0, %v389_v12 }
  0x91   : > { %v190_v16 = vpop.permute.xlu0 %189  ;;  %v214_v17 = vpop.permute.xlu1 %213 }
  0x92   : > { %266 = vmatpush.bf16.msra.mxu0 %v190_v16  ;;  %279 = vmatpush.bf16.msra.mxu1 %v217_v2  ;;  %v242_v36 = vpop.permute.xlu2 %241 }
  0x96   : > { %267 = vmatpush.bf16.msra.mxu0 %v187_v3  ;;  %280 = vmatpush.bf16.msra.mxu1 %v214_v17 }
  0x99   : > { %v211_v18 = vpop.permute.xlu0 %210  ;;  %v184_v19 = vpop.permute.xlu1 %183 }
  0x9a   : > { %281 = vmatpush.bf16.msra.mxu1 %v211_v18  ;;  %268 = vmatpush.bf16.msra.mxu0 %v184_v19 }
  0x9e   : > { %282 = vmatpush.bf16.msra.mxu1 %v208_v6 }
  0xa1   : > { %v181_v20 = vpop.permute.xlu0 %180  ;;  %v205_v21 = vpop.permute.xlu1 %204 }
  0xa2   : > { %269 = vmatpush.bf16.msra.mxu0 %v181_v20  ;;  %283 = vmatpush.bf16.msra.mxu1 %v205_v21 }
  0xa6   : > { %270 = vmatpush.bf16.msra.mxu0 %v488_v0 }
  0xa9   : > { %271 = vmatmul.bf16.vlgmr.msra.gmra.mxu0 %v381_v24  ;;  %v202_v27 = vpop.permute.xlu0 %201  ;;  %v237_v29 = vpop.permute.xlu1 %236 }
  0xaa   : > { %284 = vmatpush.bf16.msra.mxu1 %v202_v27 }
  0xad   : > { %285 = vmatmul.bf16.vlgmr.msra.gmra.mxu1 %v385_v28 }
 0x111   : > { %v300_v32 = vpop.f32.mrf.mxu2 }
 0x119   : > { %v302_v42 = vpop.f32.mrf.mxu2 }
 0x126   : > { %v272_v30 = vpop.f32.mrf.mxu0 }
 0x127   : > { %v273_v31 = vadd.f32 %v272_v30, %v237_v29 }
 0x12a   : > { %v286_v33 = vpop.f32.mrf.mxu1 }
 0x12b   : > { %v287_v34 = vadd.f32 %v286_v33, %v273_v31 }
 0x12d   : > { %v301_v35 = vadd.f32 %v300_v32, %v287_v34 }
 0x12e   : > { %v274_v37 = vpop.f32.mrf.mxu0 }
 0x12f   : > { %v305_v38 = vpack.c.bf16 %v301_v35, %v301_v35  ;;  %v275_v39 = vadd.f32 %v274_v37, %v242_v36 }
 0x131   : > { %308 = vst.msk [vmem:[%s170_s28] sm:$0xf] %vm307_vm1, %v305_v38 }
 0x132   : > { %v288_v40 = vpop.f32.mrf.mxu1 }
 0x133   : > { %v289_v41 = vadd.f32 %v288_v40, %v275_v39 }
 0x135   : > { %v303_v43 = vadd.f32 %v302_v42, %v289_v41 }
 0x137   : > { %v306_v44 = vpack.c.bf16 %v303_v43, %v303_v43 }
 0x139   : > { %309 = vst.msk [vmem:[%s170_s28 + $0x4] sm:$0xf] %vm307_vm1, %v306_v44 }
 0x13a PF: > { %s13_s12 = sadd.s32 1, %s433_s12  }
 0x13b   : > { %p10_p4 = scmp.ge.s32.totalorder %s13_s12, 6  }
 0x13d   :  { %12 = sbr.rel (!%p10_p4) target bundleno = 1 (0x1), region = 62 }

// kernel: _lambda_.19
= control target key start
LH: loop header
LB: loop body
LE: loop exit
PB: predicated region body
PF: predicated region fallthrough
CT: control target
= control target key end

     0   :  { %s332_s14 = smov 0   ;;  %s356_s0 = inlined_call_operand.vmem [shape: bf16[4,16,8], index: 0, kind: input, shape index: {}]   ;;  %s357_s1 = inlined_call_operand.vmem [shape: bf16[1,48], index: 1, kind: input, shape index: {}]   ;;  %s358_s2 = inlined_call_operand.<no memory space> [shape: f32[1,1], index: 2, kind: input, shape index: {}]   ;;  %s359_s3 = inlined_call_operand.vmem [shape: f32[4,1,8], index: 3, kind: output, shape index: {}]  }
   0x1   :  { %v8_v0 = vstv %s358_s2 }
   0x2   :  { %9 = vst [vmem:[#allocation2] sm:$0x1] %v8_v0 }
   0x3 LB: > { %s267_s15 = sadd.s32 4294967295, %s303_s14   ;;  %p271_p0 = scmp.ge.s32.totalorder %s303_s14, 1  ;;  %s303_s14 = sphi %s332_s14, %s15_s14  }
   0x4   : > { %p139_p1 = scmp.lt.s32.totalorder %s303_s14, 5 }
   0x6   : > { %p140_p2 = pnand %p271_p0, %p139_p1 }
   0x7   : > { %p161_p3 = scmp.lt.s32.totalorder (!%p140_p2), %s267_s15, 3  ;;  %s305_s19 = smov (!%p140_p2), 1  }
   0x8   : > { %143 = sbr.rel (%p140_p2) target bundleno = 394 (0x18a), region = 32  ;;  %s306_s20 = smov (!%p140_p2), 127  }
   0x9   : > { %s307_s21 = smov (!%p140_p2), 126  }
   0xd   : > { %s361_s15 = smov (!%p161_p3, %s267_s15), 3  ;;  %vm179_vm0 = vcmask 7168   ;;  %vm183_vm1 = vcmask 72704   ;;  %v194_v5 = vld [vmem:[#allocation2] sm:$0x1]  ;;  %v308_v6 = vmov 0  }
   0xe   : > { %s281_s2 = sshll.u32 %s361_s15, 3  ;;  %295 = vset.pattern.permute.xlu1 %v308_v6  ;;  %296 = vset.pattern.permute.xlu0 %v308_v6  ;;  %v193_v9 = vld [vmem:[%s357_s1] sm:$0x1]  ;;  %vm201_vm2 = vcmask 392192   ;;  %s168_s26 = scalar_lea.vmem %s359_s3, %s361_s15  ;;  %vm218_vm3 = vcmask 57344  }
   0xf   : > { %s165_s18 = scalar_lea.vmem %s356_s0, %s281_s2 }
  0x10   : > { %v282_v1 = vld [vmem:[%s165_s18] sm:$0xff] }
  0x11   : > { %177 = vrot.lane.b32.xlu0 %v282_v1, %s305_s19 }
  0x83   : > { %v178_v2 = vpop.permute.xlu0 %177 }
  0x84   : > { %v182_v3 = vsel %vm179_vm0, 0, %v178_v2 }
  0x85   : > { %v184_v4 = vsel %vm183_vm1, %v182_v3, 0 }
  0x86   : > { %187 = vrot.lane.b32.xlu1 %v184_v4, %s306_s20  ;;  %190 = vrot.lane.b32.xlu0 %v184_v4, %s307_s21 }
  0x8e   : > { %197 = vperm.xlu1 %295, %v194_v5  }
  0xf8   : > { %v191_v7 = vpop.permute.xlu0 %190  ;;  %v188_v8 = vpop.permute.xlu1 %187 }
  0xf9   : > { %210 = vmatpush.bf16.msra.mxu0 %v191_v7 }
  0xfd   : > { %211 = vmatpush.bf16.msra.mxu0 %v188_v8 }
 0x100   : > { %v198_v10 = vpop.permute.xlu1 %197 }
 0x101   : > { %212 = vmatpush.bf16.msra.mxu0 %v184_v4  ;;  %v200_v11 = vperm.slane %v198_v10, 0 }
 0x104   : > { %278 = vmatmul.msk.bf16.vlgmr.msra.gmra.mxu0 %vm201_vm2, %v193_v9 }
 0x181   : > { %v214_v12 = vpop.f32.mrf.mxu0 }
 0x182   : > { %v215_v13 = vadd.f32 %v214_v12, %v200_v11 }
 0x184   : > { %219 = vst.msk [vmem:[%s168_s26] sm:$0x1] %vm218_vm3, %v215_v13 }
 0x189   : > { %v216_v14 = vpop.f32.mrf.mxu0 }
 0x18a PF: > { %s15_s14 = sadd.s32 1, %s303_s14  }
 0x18b   : > { %p12_p4 = scmp.ge.s32.totalorder %s15_s14, 6  }
 0x18d   :  { %14 = sbr.rel (!%p12_p4) target bundleno = 3 (0x3), region = 62 }

// kernel: _lambda_.18
= control target key start
LH: loop header
LB: loop body
LE: loop exit
PB: predicated region body
PF: predicated region fallthrough
CT: control target
= control target key end

     0   :  { %s1468_s18 = smov 0   ;;  %s1702_s0 = inlined_call_operand.vmem [shape: bf16[4,64,16], index: 0, kind: input, shape index: {}]   ;;  %s1703_s1 = inlined_call_operand.vmem [shape: bf16[8,640], index: 1, kind: input, shape index: {}]   ;;  %s1704_s2 = inlined_call_operand.vmem [shape: f32[8,1], index: 2, kind: input, shape index: {}]   ;;  %s1705_s3 = inlined_call_operand.vmem [shape: bf16[8,24], index: 3, kind: input, shape index: {}]   ;;  %s1706_s4 = inlined_call_operand.vmem [shape: f32[8,1], index: 4, kind: input, shape index: {}]   ;;  %s1707_s5 = inlined_call_operand.vmem [shape: bf16[16,80], index: 5, kind: input, shape index: {}]   ;;  %s1708_s6 = inlined_call_operand.vmem [shape: f32[16,1], index: 6, kind: input, shape index: {}]   ;;  %s1709_s7 = inlined_call_operand.vmem [shape: bf16[16,48], index: 7, kind: input, shape index: {}]   ;;  %s1710_s8 = inlined_call_operand.vmem [shape: f32[16,1], index: 8, kind: input, shape index: {}]   ;;  %s1711_s9 = inlined_call_operand.vmem [shape: bf16[16,160], index: 9, kind: input, shape index: {}]   ;;  %s1712_s10 = inlined_call_operand.vmem [shape: f32[16,1], index: 10, kind: input, shape index: {}]   ;;  %s1713_s11 = inlined_call_operand.vmem [shape: bf16[16,48], index: 11, kind: input, shape index: {}]   ;;  %s1714_s12 = inlined_call_operand.vmem [shape: f32[16,1], index: 12, kind: input, shape index: {}]   ;;  %s1715_s13 = inlined_call_operand.vmem [shape: f32[4,8,16], index: 13, kind: output, shape index: {0}]   ;;  %s1716_s14 = inlined_call_operand.vmem [shape: f32[4,16,16], index: 14, kind: output, shape index: {1}]   ;;  %s1717_s15 = inlined_call_operand.vmem [shape: f32[4,16,16], index: 15, kind: output, shape index: {2}]  }
   0x1 LB: > { %s1284_s19 = sadd.s32 4294967295, %s1377_s18   ;;  %p1288_p0 = scmp.ge.s32.totalorder %s1377_s18, 1  ;;  %s1377_s18 = sphi %s1468_s18, %s26_s18  }
   0x2   : > { %p442_p1 = scmp.lt.s32.totalorder %s1377_s18, 5 }
   0x4   : > { %p443_p2 = pnand %p1288_p0, %p442_p1 }
   0x5   : > { %p499_p3 = scmp.lt.s32.totalorder (!%p443_p2), %s1284_s19, 3  ;;  %s1379_s24 = smov (!%p443_p2), 4  }
   0x6   : > { %446 = sbr.rel (%p443_p2) target bundleno = 2715 (0xa9b), region = 72  ;;  %s1380_s25 = smov (!%p443_p2), 127  }
   0x7   : > { %s1381_s26 = smov (!%p443_p2), 2   ;;  %s1720_s27 = smov (!%p443_p2), 125  }
   0x8   : > { %s1383_s28 = smov (!%p443_p2), 126   ;;  %s1384_s29 = smov (!%p443_p2), 122  }
   0x9   : > { %s1385_s30 = smov (!%p443_p2), 124  }
   0xb   : > { %s1724_s19 = smov (!%p499_p3, %s1284_s19), 3  ;;  %vm555_vm0 = vcmask 31744   ;;  %vm565_vm1 = vcmask 162816   ;;  %v622_v50 = vld [vmem:[%s1703_s1] sm:$0xff]  ;;  %v1386_v59 = vmov 0   ;;  %vm796_vm2 = vcmask 7168  }
   0xc   : > { %s1339_s20 = sshll.u32 %s1724_s19, 5  ;;  %v634_v53 = vunpack.c.l.b16 %v622_v50  ;;  %v625_v58 = vld [vmem:[%s1704_s2] sm:$0xff]  ;;  %1368 = vset.pattern.permute.xlu1 %v1386_v59  ;;  %1369 = vset.pattern.permute.xlu2 %v1386_v59  ;;  %vm799_vm3 = vcmask 138240   ;;  %vm807_vm4 = vcmask 1043456   ;;  %vm818_vm5 = vcmask 195584   ;;  %s1291_s17 = sshll.u32 %s1724_s19, 3 }
   0xd   : > { %s503_s23 = scalar_lea.vmem %s1702_s0, %s1339_s20  ;;  %1370 = vset.pattern.permute.xlu0 %v1386_v59  ;;  %s1718_s20 = smov 1   ;;  %vm841_vm6 = vcmask 130048   ;;  %vm919_vm8 = vcmask 654336   ;;  %vm976_vm9 = vcmask 392192   ;;  %vm1069_vm12 = vcmask 261120  }
   0xe   : > { %v1345_v0 = vld [vmem:[%s503_s23 + $0x18] sm:$0xff]  ;;  %v1343_v1 = vld [vmem:[%s503_s23 + $0x8] sm:$0xff]  ;;  %v1344_v2 = vld [vmem:[%s503_s23 + $0x10] sm:$0xff]  ;;  %v639_v54 = vpack.c.b16 %v634_v53, %v634_v53 }
   0xf   : > { %553 = vrot.lane.b32.xlu0 %v1345_v0, %s1379_s24  ;;  %549 = vrot.lane.b32.xlu1 %v1343_v1, %s1379_s24  ;;  %v1342_v3 = vld [vmem:[%s503_s23] sm:$0xff]  ;;  %v623_v1 = vld [vmem:[%s1703_s1 + $0x8] sm:$0xff]  ;;  %s1340_s23 = sshll.u32 %s1724_s19, 4 }
  0x10   : > { %s512_s21 = scalar_lea.vmem %s1716_s14, %s1340_s23 }
  0x17   : > { %551 = vrot.lane.b32.xlu0 %v1344_v2, %s1379_s24  ;;  %547 = vrot.lane.b32.xlu1 %v1342_v3, %s1379_s24  ;;  %v637_v2 = vunpack.c.h.b16 %v623_v1 }
  0x81   : > { %v554_v4 = vpop.permute.xlu0 %553  ;;  %v550_v5 = vpop.permute.xlu1 %549 }
  0x82   : > { %v564_v6 = vsel %vm555_vm0, 0, %v554_v4  ;;  %v560_v7 = vsel %vm555_vm0, 0, %v550_v5  ;;  %v642_v5 = vpack.c.b16 %v637_v2, %v637_v2 }
  0x83   : > { %v569_v8 = vsel %vm565_vm1, %v564_v6, 0  ;;  %v567_v9 = vsel %vm565_vm1, %v560_v7, 0  ;;  %v635_v7 = vunpack.c.h.b16 %v622_v50 }
  0x84   : > { %580 = vrot.lane.b32.xlu2 %v569_v8, %s1380_s25  ;;  %612 = vrot.lane.b32.xlu0 %v569_v8, %s1381_s26 }
  0x85   : > { %576 = vrot.lane.b32.xlu1 %v567_v9, %s1380_s25 }
  0x89   : > { %v552_v10 = vpop.permute.xlu0 %551  ;;  %v548_v13 = vpop.permute.xlu1 %547 }
  0x8a   : > { %v562_v11 = vsel %vm555_vm0, 0, %v552_v10  ;;  %v558_v14 = vsel %vm555_vm0, 0, %v548_v13  ;;  %v640_v10 = vpack.c.b16 %v635_v7, %v635_v7 }
  0x8b   : > { %v568_v12 = vsel %vm565_vm1, %v562_v11, 0  ;;  %v566_v15 = vsel %vm565_vm1, %v558_v14, 0 }
  0x8c   : > { %596 = vrot.lane.b32.xlu0 %v569_v8, %s1720_s27  ;;  %578 = vrot.lane.b32.xlu2 %v568_v12, %s1380_s25 }
  0x8d   : > { %610 = vrot.lane.b32.xlu1 %v568_v12, %s1381_s26 }
  0x94   : > { %586 = vrot.lane.b32.xlu0 %v568_v12, %s1383_s28  ;;  %588 = vrot.lane.b32.xlu2 %v569_v8, %s1383_s28 }
  0x95   : > { %594 = vrot.lane.b32.xlu1 %v568_v12, %s1720_s27 }
  0x9c   : > { %584 = vrot.lane.b32.xlu0 %v567_v9, %s1383_s28  ;;  %574 = vrot.lane.b32.xlu2 %v566_v15, %s1380_s25 }
  0x9d   : > { %620 = vrot.lane.b32.xlu1 %v569_v8, %s1384_s29 }
  0xa4   : > { %606 = vrot.lane.b32.xlu0 %v566_v15, %s1381_s26  ;;  %608 = vrot.lane.b32.xlu2 %v567_v9, %s1381_s26 }
  0xa5   : > { %582 = vrot.lane.b32.xlu1 %v566_v15, %s1383_s28 }
  0xac   : > { %590 = vrot.lane.b32.xlu0 %v566_v15, %s1720_s27  ;;  %592 = vrot.lane.b32.xlu2 %v567_v9, %s1720_s27 }
  0xad   : > { %604 = vrot.lane.b32.xlu1 %v569_v8, %s1385_s30  ;;  %v636_v8 = vunpack.c.l.b16 %v623_v1 }
  0xaf   : > { %v641_v11 = vpack.c.b16 %v636_v8, %v636_v8 }
  0xb4   : > { %602 = vrot.lane.b32.xlu0 %v568_v12, %s1385_s30  ;;  %618 = vrot.lane.b32.xlu2 %v568_v12, %s1384_s29  ;;  %v624_v12 = vld [vmem:[%s1703_s1 + $0x10] sm:$0xf] }
  0xb5   : > { %614 = vrot.lane.b32.xlu1 %v566_v15, %s1384_s29  ;;  %v638_v13 = vunpack.c.l.b16 %v624_v12  ;;  %v1346_v12 = vld [vmem:[%s1707_s5] sm:$0xff] }
  0xb7   : > { %v643_v14 = vpack.c.b16 %v638_v13, %v638_v13 }
  0xbc   : > { %598 = vrot.lane.b32.xlu0 %v566_v15, %s1385_s30  ;;  %616 = vrot.lane.b32.xlu2 %v567_v9, %s1384_s29 }
  0xc4   : > { %600 = vrot.lane.b32.xlu2 %v567_v9, %s1385_s30 }
  0xde   : > { %v581_v16 = vpop.permute.xlu2 %580 }
  0xdf   : > { %655 = vrot.lane.b32.xlu1 %v581_v16, %s1383_s28 }
  0xe6   : > { %v579_v17 = vpop.permute.xlu2 %578 }
  0xe7   : > { %653 = vrot.lane.b32.xlu2 %v579_v17, %s1383_s28 }
  0xee   : > { %v1520_v18 = vpop.permute.xlu2 %588 }
  0xef   : > { %663 = vrot.lane.b32.xlu2 %v1520_v18, %s1383_s28 }
  0xf6   : > { %v613_v19 = vpop.permute.xlu0 %612  ;;  %v575_v20 = vpop.permute.xlu2 %574 }
  0xf7   : > { %v577_v21 = vpop.permute.xlu1 %576  ;;  %687 = vrot.lane.b32.xlu0 %v613_v19, %s1383_s28  ;;  %649 = vrot.lane.b32.xlu2 %v575_v20, %s1383_s28 }
  0xf8   : > { %651 = vrot.lane.b32.xlu1 %v577_v21, %s1383_s28 }
  0xfe   : > { %v597_v22 = vpop.permute.xlu0 %596  ;;  %v609_v23 = vpop.permute.xlu2 %608 }
  0xff   : > { %v611_v24 = vpop.permute.xlu1 %610  ;;  %671 = vrot.lane.b32.xlu0 %v597_v22, %s1383_s28  ;;  %683 = vrot.lane.b32.xlu2 %v609_v23, %s1383_s28 }
 0x100   : > { %685 = vrot.lane.b32.xlu1 %v611_v24, %s1383_s28 }
 0x106   : > { %v1530_v25 = vpop.permute.xlu0 %586  ;;  %v593_v26 = vpop.permute.xlu2 %592 }
 0x107   : > { %v595_v27 = vpop.permute.xlu1 %594  ;;  %661 = vrot.lane.b32.xlu0 %v1530_v25, %s1383_s28  ;;  %667 = vrot.lane.b32.xlu2 %v593_v26, %s1383_s28 }
 0x108   : > { %669 = vrot.lane.b32.xlu1 %v595_v27, %s1383_s28 }
 0x10e   : > { %v1536_v28 = vpop.permute.xlu0 %584  ;;  %v619_v29 = vpop.permute.xlu2 %618 }
 0x10f   : > { %v621_v30 = vpop.permute.xlu1 %620  ;;  %659 = vrot.lane.b32.xlu0 %v1536_v28, %s1383_s28  ;;  %693 = vrot.lane.b32.xlu2 %v619_v29, %s1383_s28 }
 0x110   : > { %695 = vrot.lane.b32.xlu1 %v621_v30, %s1383_s28 }
 0x116   : > { %v607_v31 = vpop.permute.xlu0 %606  ;;  %v617_v32 = vpop.permute.xlu2 %616 }
 0x117   : > { %v1542_v33 = vpop.permute.xlu1 %582  ;;  %681 = vrot.lane.b32.xlu0 %v607_v31, %s1383_s28  ;;  %691 = vrot.lane.b32.xlu2 %v617_v32, %s1383_s28 }
 0x118   : > { %657 = vrot.lane.b32.xlu1 %v1542_v33, %s1383_s28 }
 0x11e   : > { %v591_v34 = vpop.permute.xlu0 %590  ;;  %v601_v35 = vpop.permute.xlu2 %600 }
 0x11f   : > { %v605_v36 = vpop.permute.xlu1 %604  ;;  %665 = vrot.lane.b32.xlu0 %v591_v34, %s1383_s28  ;;  %675 = vrot.lane.b32.xlu2 %v601_v35, %s1383_s28 }
 0x120   : > { %679 = vrot.lane.b32.xlu1 %v605_v36, %s1383_s28 }
 0x126   : > { %v603_v37 = vpop.permute.xlu0 %602 }
 0x127   : > { %v615_v38 = vpop.permute.xlu1 %614  ;;  %677 = vrot.lane.b32.xlu0 %v603_v37, %s1383_s28 }
 0x128   : > { %689 = vrot.lane.b32.xlu1 %v615_v38, %s1383_s28  ;;  %v812_v38 = vld [vmem:[%s1706_s4] sm:$0xff] }
 0x12e   : > { %v599_v39 = vpop.permute.xlu0 %598 }
 0x12f   : > { %673 = vrot.lane.b32.xlu0 %v599_v39, %s1383_s28 }
 0x130   : > { %628 = vperm.xlu1 %1368, %v625_v58  }
 0x141   : > { %v654_v40 = vpop.permute.xlu2 %653 }
 0x149   : > { %v664_v41 = vpop.permute.xlu2 %663 }
 0x14a   : > { %764 = vmatpush.bf16.msra.mxu3 %v664_v41 }
 0x151   : > { %v656_v42 = vpop.permute.xlu1 %655  ;;  %v650_v43 = vpop.permute.xlu2 %649 }
 0x152   : > { %725 = vmatpush.bf16.msra.mxu0 %v656_v42 }
 0x156   : > { %726 = vmatpush.bf16.msra.mxu0 %v654_v40 }
 0x159   : > { %v684_v46 = vpop.permute.xlu2 %683 }
 0x161   : > { %v668_v49 = vpop.permute.xlu2 %667 }
 0x169   : > { %v688_v44 = vpop.permute.xlu0 %687  ;;  %v694_v55 = vpop.permute.xlu2 %693 }
 0x16a   : > { %v652_v45 = vpop.permute.xlu1 %651  ;;  %751 = vmatpush.bf16.msra.mxu2 %v688_v44 }
 0x16b   : > { %727 = vmatpush.bf16.msra.mxu0 %v652_v45 }
 0x16f   : > { %728 = vmatpush.bf16.msra.mxu0 %v650_v43  ;;  %v811_v43 = vld [vmem:[%s1705_s3] sm:$0xf] }
 0x171   : > { %v672_v47 = vpop.permute.xlu0 %671  ;;  %v692_v61 = vpop.permute.xlu2 %691 }
 0x172   : > { %v686_v48 = vpop.permute.xlu1 %685  ;;  %738 = vmatpush.bf16.msra.mxu1 %v672_v47 }
 0x173   : > { %729 = vmatpush.bf16.msra.mxu0 %v1520_v18  ;;  %752 = vmatpush.bf16.msra.mxu2 %v686_v48 }
 0x177   : > { %730 = vmatpush.bf16.msra.mxu0 %v1530_v25  ;;  %753 = vmatpush.bf16.msra.mxu2 %v684_v46 }
 0x179   : > { %v662_v51 = vpop.permute.xlu0 %661  ;;  %v676_v6 = vpop.permute.xlu2 %675 }
 0x17a   : > { %v670_v52 = vpop.permute.xlu1 %669  ;;  %765 = vmatpush.bf16.msra.mxu3 %v662_v51 }
 0x17b   : > { %731 = vmatpush.bf16.msra.mxu0 %v1536_v28  ;;  %739 = vmatpush.bf16.msra.mxu1 %v670_v52 }
 0x17f   : > { %732 = vmatpush.bf16.msra.mxu0 %v1542_v33  ;;  %740 = vmatpush.bf16.msra.mxu1 %v668_v49 }
 0x181   : > { %v660_v56 = vpop.permute.xlu0 %659 }
 0x182   : > { %v696_v57 = vpop.permute.xlu1 %695  ;;  %766 = vmatpush.bf16.msra.mxu3 %v660_v56  ;;  %733 = vmatmul.bf16.vlgmr.msra.gmra.mxu0 %v639_v54 }
 0x183   : > { %777 = vmatpush.bf16.msrb.mxu0 %v696_v57 }
 0x187   : > { %778 = vmatpush.bf16.msrb.mxu0 %v694_v55 }
 0x189   : > { %v682_v60 = vpop.permute.xlu0 %681 }
 0x18a   : > { %v658_v62 = vpop.permute.xlu1 %657  ;;  %754 = vmatpush.bf16.msra.mxu2 %v682_v60 }
 0x18b   : > { %767 = vmatpush.bf16.msra.mxu3 %v658_v62  ;;  %779 = vmatpush.bf16.msrb.mxu0 %v692_v61 }
 0x18f   : > { %768 = vmatpush.bf16.msra.mxu3 %v1520_v18 }
 0x191   : > { %v666_v63 = vpop.permute.xlu0 %665 }
 0x192   : > { %v680_v0 = vpop.permute.xlu1 %679  ;;  %741 = vmatpush.bf16.msra.mxu1 %v666_v63 }
 0x193   : > { %755 = vmatpush.bf16.msra.mxu2 %v680_v0  ;;  %769 = vmatpush.bf16.msra.mxu3 %v1530_v25 }
 0x196   : > { %742 = vmatpush.bf16.msra.mxu1 %v664_v41 }
 0x197   : > { %770 = vmatpush.bf16.msra.mxu3 %v1536_v28 }
 0x199   : > { %v678_v3 = vpop.permute.xlu0 %677 }
 0x19a   : > { %v690_v4 = vpop.permute.xlu1 %689  ;;  %743 = vmatpush.bf16.msra.mxu1 %v662_v51  ;;  %756 = vmatpush.bf16.msra.mxu2 %v678_v3 }
 0x19b   : > { %771 = vmatpush.bf16.msra.mxu3 %v1542_v33  ;;  %780 = vmatpush.bf16.msrb.mxu0 %v690_v4 }
 0x19e   : > { %744 = vmatpush.bf16.msra.mxu1 %v660_v56  ;;  %757 = vmatpush.bf16.msra.mxu2 %v676_v6 }
 0x19f   : > { %781 = vmatpush.bf16.msrb.mxu0 %v680_v0  ;;  %772 = vmatmul.bf16.vlgmr.msra.gmra.mxu3 %v642_v5 }
 0x1a1   : > { %v674_v9 = vpop.permute.xlu0 %673 }
 0x1a2   : > { %745 = vmatpush.bf16.msra.mxu1 %v658_v62  ;;  %758 = vmatpush.bf16.msra.mxu2 %v674_v9  ;;  %v629_v17 = vpop.permute.xlu1 %628 }
 0x1a3   : > { %782 = vmatpush.bf16.msrb.mxu0 %v678_v3  ;;  %v882_v3 = vld [vmem:[%s1708_s6] sm:$0xff] }
 0x1a5   : > { %746 = vmatmul.bf16.vlgmr.msra.gmra.mxu1 %v640_v10  ;;  %759 = vmatmul.bf16.vlgmr.msra.gmra.mxu2 %v641_v11 }
 0x1a7   : > { %783 = vmatpush.bf16.msrb.mxu0 %v676_v6  ;;  %v883_v6 = vld [vmem:[%s1708_s6 + $0x8] sm:$0xff] }
 0x1ab   : > { %784 = vmatpush.bf16.msrb.mxu0 %v674_v9 }
 0x1ae   : > { %785 = vmatmul.bf16.vlgmr.msrb.gmra.mxu0 %v643_v14 }
 0x1ff   : > { %v734_v15 = vpop.f32.mrf.mxu0 }
 0x200   : > { %v735_v20 = vadd.f32 %v734_v15, %v629_v17 }
 0x207   : > { %v736_v16 = vpop.f32.mrf.mxu0 }
 0x222   : > { %v747_v18 = vpop.f32.mrf.mxu1  ;;  %v773_v19 = vpop.f32.mrf.mxu3 }
 0x223   : > { %v748_v21 = vadd.f32 %v747_v18, %v735_v20 }
 0x228   : > { %v760_v22 = vpop.f32.mrf.mxu2 }
 0x229   : > { %v761_v23 = vadd.f32 %v760_v22, %v748_v21 }
 0x22a   : > { %v749_v24 = vpop.f32.mrf.mxu1  ;;  %v775_v25 = vpop.f32.mrf.mxu3 }
 0x22b   : > { %v774_v26 = vadd.f32 %v773_v19, %v761_v23  ;;  %v786_v27 = vpop.f32.mrf.mxu0 }
 0x22d   : > { %v787_v28 = vadd.f32 %v786_v27, %v774_v26  ;;  %v960_v27 = vld [vmem:[%s1710_s8 + $0x8] sm:$0xff] }
 0x22f   : > { %v790_v29 = vpack.c.bf16 %v787_v28, %v787_v28  ;;  %v959_v28 = vld [vmem:[%s1710_s8] sm:$0xff] }
 0x230   : > { %v762_v30 = vpop.f32.mrf.mxu2 }
 0x231   : > { %v792_v31 = vunpack.c.l.b16 %v790_v29 }
 0x233   : > { %v793_v32 = vpack.c.b16 %v792_v31, %v792_v31  ;;  %v788_v33 = vpop.f32.mrf.mxu0  ;;  %v1347_v31 = vld [vmem:[%s1709_s7] sm:$0xff] }
 0x235   : > { %794 = vrot.lane.b32.xlu2 %v793_v32, %s1718_s20  ;;  %s507_s20 = scalar_lea.vmem %s1715_s13, %s1291_s17 }
 0x23d   : > { %815 = vperm.xlu2 %1369, %v812_v38  }
 0x28f   : > { %v795_v34 = vpop.permute.xlu2 %794 }
 0x290   : > { %v798_v35 = vsel %vm796_vm2, 0, %v795_v34 }
 0x291   : > { %v800_v36 = vsel %vm799_vm3, %v798_v35, 0 }
 0x292   : > { %v802_v37 = vrot.slane %v800_v36, 4  ;;  %805 = vrot.lane.b32.xlu0 %v800_v36, %s1383_s28 }
 0x294   : > { %803 = vrot.lane.b32.xlu1 %v802_v37, %s1380_s25 }
 0x297   : > { %v816_v44 = vpop.permute.xlu2 %815 }
 0x304   : > { %v806_v39 = vpop.permute.xlu0 %805 }
 0x305   : > { %v823_v40 = vsel %vm807_vm4, %v806_v39, 0 }
 0x306   : > { %831 = vmatpush.bf16.msrb.mxu1 %v823_v40  ;;  %v804_v41 = vpop.permute.xlu1 %803 }
 0x307   : > { %v809_v42 = vsel %vm807_vm4, %v800_v36, %v804_v41 }
 0x30a   : > { %832 = vmatpush.bf16.msrb.mxu1 %v809_v42 }
 0x30d   : > { %1312 = vmatmul.msk.bf16.vlgmr.msrb.gmra.mxu1 %vm818_vm5, %v811_v43 }
 0x38a   : > { %v834_v45 = vpop.f32.mrf.mxu1 }
 0x38b   : > { %v835_v46 = vadd.f32 %v834_v45, %v816_v44 }
 0x38d   : > { %vm838_vm7 = vcmp.ge.f32.partialorder %v835_v46, 0.0  ;;  %v839_v47 = vmul.f32 0.1, %v835_v46 }
 0x38f   : > { %v840_v48 = vsel %vm838_vm7, %v835_v46, %v839_v47 }
 0x390   : > { %842 = vst.msk [vmem:[%s507_s20] sm:$0xff] %vm841_vm6, %v840_v48  ;;  %v843_v49 = vpack.c.bf16 %v840_v48, %v840_v48  ;;  %s1721_s20 = smov 1  }
 0x392   : > { %v836_v50 = vpop.f32.mrf.mxu1  ;;  %v845_v51 = vunpack.c.l.b16 %v843_v49 }
 0x394   : > { %v846_v52 = vpack.c.b16 %v845_v51, %v845_v51 }
 0x396   : > { %847 = vrot.lane.b32.xlu0 %v846_v52, %s1379_s24  ;;  %v1030_v52 = vld [vmem:[%s1712_s10 + $0x8] sm:$0xff] }
 0x408   : > { %v848_v53 = vpop.permute.xlu0 %847 }
 0x409   : > { %v850_v54 = vsel %vm555_vm0, 0, %v848_v53 }
 0x40a   : > { %v851_v55 = vsel %vm565_vm1, %v850_v54, 0 }
 0x40b   : > { %v853_v56 = vrot.slane %v851_v55, 4  ;;  %860 = vrot.lane.b32.xlu1 %v851_v55, %s1385_s30 }
 0x40d   : > { %864 = vrot.lane.b32.xlu0 %v853_v56, %s1383_s28  ;;  %866 = vrot.lane.b32.xlu2 %v853_v56, %s1384_s29 }
 0x413   : > { %862 = vrot.lane.b32.xlu1 %v853_v56, %s1381_s26 }
 0x415   : > { %858 = vrot.lane.b32.xlu0 %v853_v56, %s1720_s27  ;;  %856 = vrot.lane.b32.xlu2 %v851_v55, %s1383_s28  ;;  %s1722_s27 = smov 125  }
 0x41b   : > { %854 = vrot.lane.b32.xlu1 %v853_v56, %s1380_s25 }
 0x467   : > { %v867_v57 = vpop.permute.xlu2 %866 }
 0x46f   : > { %v857_v0 = vpop.permute.xlu2 %856 }
 0x47d   : > { %v861_v58 = vpop.permute.xlu1 %860 }
 0x47e   : > { %v879_v59 = vsel %vm807_vm4, %v861_v58, %v867_v57  ;;  %v1029_v57 = vld [vmem:[%s1712_s10] sm:$0xff] }
 0x47f   : > { %v865_v60 = vpop.permute.xlu0 %864  ;;  %912 = vrot.lane.b32.xlu2 %v879_v59, %s1383_s28 }
 0x480   : > { %v877_v61 = vsel %vm807_vm4, %v851_v55, %v865_v60  ;;  %v1348_v60 = vld [vmem:[%s1711_s9 + $0x4] sm:$0xf] }
 0x481   : > { %910 = vrot.lane.b32.xlu0 %v877_v61, %s1383_s28  ;;  %v1327_v61 = vld [vmem:[%s1711_s9 + $0x8] sm:$0xf0] }
 0x485   : > { %v863_v62 = vpop.permute.xlu1 %862 }
 0x486   : > { %v875_v63 = vsel %vm807_vm4, %v861_v58, %v863_v62 }
 0x487   : > { %908 = vrot.lane.b32.xlu1 %v875_v63, %s1383_s28  ;;  %v859_v1 = vpop.permute.xlu0 %858  ;;  %v1330_v63 = vor.u32 %v1348_v60, %v1327_v61 }
 0x488   : > { %v872_v2 = vsel %vm807_vm4, %v857_v0, %v859_v1 }
 0x489   : > { %906 = vrot.lane.b32.xlu2 %v872_v2, %s1383_s28 }
 0x48d   : > { %v855_v4 = vpop.permute.xlu1 %854 }
 0x48e   : > { %v869_v5 = vsel %vm807_vm4, %v851_v55, %v855_v4  ;;  %v1349_v4 = vld [vmem:[%s1711_s9 + $0x4] sm:$0xf0] }
 0x48f   : > { %886 = vperm.xlu1 %1368, %v882_v3   ;;  %904 = vrot.lane.b32.xlu0 %v869_v5, %s1383_s28  ;;  %v1325_v3 = vld [vmem:[%s1711_s9] sm:$0xf] }
 0x490   : > { %v1326_v5 = vor.u32 %v1349_v4, %v1325_v3 }
 0x491   : > { %891 = vperm.xlu2 %1369, %v883_v6  }
 0x4d9   : > { %v913_v7 = vpop.permute.xlu2 %912 }
 0x4da   : > { %926 = vmatpush.bf16.msrb.mxu2 %v913_v7 }
 0x4e3   : > { %v907_v10 = vpop.permute.xlu2 %906 }
 0x4eb   : > { %v892_v16 = vpop.permute.xlu2 %891 }
 0x4f3   : > { %v911_v8 = vpop.permute.xlu0 %910 }
 0x4f4   : > { %927 = vmatpush.bf16.msrb.mxu2 %v911_v8 }
 0x4f9   : > { %v909_v9 = vpop.permute.xlu1 %908 }
 0x4fa   : > { %928 = vmatpush.bf16.msrb.mxu2 %v909_v9 }
 0x4fe   : > { %929 = vmatpush.bf16.msrb.mxu2 %v907_v10 }
 0x501   : > { %v905_v11 = vpop.permute.xlu0 %904  ;;  %v887_v14 = vpop.permute.xlu1 %886 }
 0x502   : > { %930 = vmatpush.bf16.msrb.mxu2 %v905_v11 }
 0x505   : > { %1317 = vmatmul.msk.bf16.vlgmr.msrb.gmra.mxu2 %vm919_vm8, %v1346_v12 }
 0x588   : > { %v932_v13 = vpop.f32.mrf.mxu2 }
 0x589   : > { %v933_v15 = vadd.f32 %v932_v13, %v887_v14 }
 0x58b   : > { %v937_v18 = vpack.c.bf16 %v933_v15, %v933_v15 }
 0x58d   : > { %v941_v21 = vunpack.c.l.b16 %v937_v18 }
 0x590   : > { %v934_v17 = vpop.f32.mrf.mxu2 }
 0x591   : > { %v935_v19 = vadd.f32 %v934_v17, %v892_v16 }
 0x593   : > { %v938_v20 = vpack.c.bf16 %v935_v19, %v935_v19 }
 0x595   : > { %v942_v22 = vunpack.c.l.b16 %v938_v20 }
 0x597   : > { %v943_v23 = vpack.c.b16 %v942_v22, %v941_v21  ;;  %v1123_v21 = vld [vmem:[%s1714_s12] sm:$0xff] }
 0x599   : > { %944 = vrot.lane.b32.xlu0 %v943_v23, %s1721_s20 }
 0x5a1   : > { %963 = vperm.xlu0 %1370, %v959_v28   ;;  %v1350_v28 = vld [vmem:[%s1713_s11] sm:$0xff] }
 0x60b   : > { %v945_v24 = vpop.permute.xlu0 %944 }
 0x60c   : > { %v947_v25 = vsel %vm796_vm2, 0, %v945_v24 }
 0x60d   : > { %v948_v26 = vsel %vm799_vm3, %v947_v25, 0  ;;  %v1124_v25 = vld [vmem:[%s1714_s12 + $0x8] sm:$0xff] }
 0x60e   : > { %951 = vrot.lane.b32.xlu2 %v948_v26, %s1380_s25  ;;  %954 = vrot.lane.b32.xlu1 %v948_v26, %s1383_s28 }
 0x613   : > { %v964_v32 = vpop.permute.xlu0 %963 }
 0x616   : > { %968 = vperm.xlu1 %1368, %v960_v27  }
 0x668   : > { %v952_v30 = vpop.permute.xlu2 %951 }
 0x680   : > { %v955_v29 = vpop.permute.xlu1 %954 }
 0x681   : > { %985 = vmatpush.bf16.msrb.mxu3 %v955_v29 }
 0x685   : > { %986 = vmatpush.bf16.msrb.mxu3 %v952_v30 }
 0x688   : > { %v969_v37 = vpop.permute.xlu1 %968 }
 0x689   : > { %987 = vmatpush.bf16.msrb.mxu3 %v948_v26 }
 0x68c   : > { %1322 = vmatmul.msk.bf16.vlgmr.msrb.gmra.mxu3 %vm976_vm9, %v1347_v31 }
 0x70f   : > { %v989_v33 = vpop.f32.mrf.mxu3 }
 0x710   : > { %v990_v34 = vadd.f32 %v989_v33, %v964_v32 }
 0x712   : > { %vm994_vm10 = vcmp.ge.f32.partialorder %v990_v34, 0.0  ;;  %v996_v35 = vmul.f32 0.1, %v990_v34 }
 0x714   : > { %v998_v36 = vsel %vm994_vm10, %v990_v34, %v996_v35 }
 0x715   : > { %1000 = vst.msk [vmem:[%s512_s21] sm:$0xff] %vm841_vm6, %v998_v36  ;;  %v1002_v41 = vpack.c.bf16 %v998_v36, %v998_v36 }
 0x717   : > { %v991_v38 = vpop.f32.mrf.mxu3  ;;  %v1006_v44 = vunpack.c.l.b16 %v1002_v41 }
 0x718   : > { %v992_v39 = vadd.f32 %v991_v38, %v969_v37 }
 0x71a   : > { %vm995_vm11 = vcmp.ge.f32.partialorder %v992_v39, 0.0  ;;  %v997_v40 = vmul.f32 0.1, %v992_v39 }
 0x71c   : > { %v999_v42 = vsel %vm995_vm11, %v992_v39, %v997_v40 }
 0x71d   : > { %1001 = vst.msk [vmem:[%s512_s21 + $0x8] sm:$0xff] %vm841_vm6, %v999_v42  ;;  %v1003_v43 = vpack.c.bf16 %v999_v42, %v999_v42 }
 0x71f   : > { %v1007_v45 = vunpack.c.l.b16 %v1003_v43 }
 0x721   : > { %v1008_v46 = vpack.c.b16 %v1007_v45, %v1006_v44 }
 0x723   : > { %1009 = vrot.lane.b32.xlu2 %v1008_v46, %s1379_s24 }
 0x77d   : > { %v1010_v47 = vpop.permute.xlu2 %1009 }
 0x77e   : > { %v1012_v48 = vsel %vm555_vm0, 0, %v1010_v47 }
 0x77f   : > { %v1013_v49 = vsel %vm565_vm1, %v1012_v48, 0 }
 0x780   : > { %1021 = vrot.lane.b32.xlu0 %v1013_v49, %s1385_s30  ;;  %1023 = vrot.lane.b32.xlu2 %v1013_v49, %s1381_s26 }
 0x781   : > { %1017 = vrot.lane.b32.xlu1 %v1013_v49, %s1383_s28 }
 0x788   : > { %1015 = vrot.lane.b32.xlu0 %v1013_v49, %s1380_s25  ;;  %1025 = vrot.lane.b32.xlu2 %v1013_v49, %s1384_s29 }
 0x789   : > { %1019 = vrot.lane.b32.xlu1 %v1013_v49, %s1722_s27  ;;  %s517_s27 = scalar_lea.vmem %s1717_s15, %s1340_s23 }
 0x7da   : > { %v1024_v50 = vpop.permute.xlu2 %1023 }
 0x7db   : > { %1058 = vrot.lane.b32.xlu2 %v1024_v50, %s1383_s28 }
 0x7e2   : > { %v1026_v51 = vpop.permute.xlu2 %1025 }
 0x7e3   : > { %1060 = vrot.lane.b32.xlu2 %v1026_v51, %s1383_s28 }
 0x7eb   : > { %1038 = vperm.xlu2 %1369, %v1030_v52  }
 0x7f2   : > { %v1022_v53 = vpop.permute.xlu0 %1021 }
 0x7f3   : > { %v1018_v54 = vpop.permute.xlu1 %1017  ;;  %1056 = vrot.lane.b32.xlu0 %v1022_v53, %s1383_s28 }
 0x7f4   : > { %1052 = vrot.lane.b32.xlu1 %v1018_v54, %s1383_s28 }
 0x7fa   : > { %v1016_v55 = vpop.permute.xlu0 %1015 }
 0x7fb   : > { %v1020_v56 = vpop.permute.xlu1 %1019  ;;  %1050 = vrot.lane.b32.xlu0 %v1016_v55, %s1383_s28 }
 0x7fc   : > { %1054 = vrot.lane.b32.xlu1 %v1020_v56, %s1383_s28 }
 0x804   : > { %1033 = vperm.xlu1 %1368, %v1029_v57  }
 0x835   : > { %v1059_v58 = vpop.permute.xlu2 %1058 }
 0x83d   : > { %v1061_v59 = vpop.permute.xlu2 %1060 }
 0x83e   : > { %1093 = vmatpush.bf16.msra.mxu3 %v1061_v59 }
 0x845   : > { %v1039_v11 = vpop.permute.xlu2 %1038 }
 0x865   : > { %v1057_v62 = vpop.permute.xlu0 %1056 }
 0x866   : > { %v1053_v0 = vpop.permute.xlu1 %1052  ;;  %1094 = vmatpush.bf16.msra.mxu3 %v1057_v62 }
 0x867   : > { %1073 = vmatpush.bf16.msra.mxu1 %v1053_v0 }
 0x869   : > { %1331 = vmatmul.msk.bf16.vlgmr.msra.gmra.mxu3 %vm1069_vm12, %v1330_v63 }
 0x86b   : > { %1074 = vmatpush.bf16.msra.mxu1 %v1018_v54 }
 0x86d   : > { %v1051_v2 = vpop.permute.xlu0 %1050 }
 0x86e   : > { %v1055_v1 = vpop.permute.xlu1 %1054 }
 0x86f   : > { %1075 = vmatpush.bf16.msra.mxu1 %v1059_v58 }
 0x873   : > { %1076 = vmatpush.bf16.msra.mxu1 %v1057_v62 }
 0x876   : > { %v1034_v8 = vpop.permute.xlu1 %1033 }
 0x877   : > { %1077 = vmatpush.bf16.msra.mxu1 %v1055_v1 }
 0x87b   : > { %1078 = vmatpush.bf16.msra.mxu1 %v1053_v0 }
 0x87f   : > { %1079 = vmatpush.bf16.msra.mxu1 %v1051_v2 }
 0x883   : > { %1080 = vmatpush.bf16.msra.mxu1 %v1018_v54 }
 0x886   : > { %1081 = vmatmul.bf16.vlgmr.msra.gmra.mxu1 %v1326_v5 }
 0x8ec   : > { %v1096_v6 = vpop.f32.mrf.mxu3 }
 0x8f4   : > { %v1098_v14 = vpop.f32.mrf.mxu3 }
 0x903   : > { %v1082_v7 = vpop.f32.mrf.mxu1 }
 0x904   : > { %v1083_v9 = vadd.f32 %v1082_v7, %v1034_v8 }
 0x906   : > { %v1097_v10 = vadd.f32 %v1096_v6, %v1083_v9 }
 0x908   : > { %v1101_v15 = vpack.c.bf16 %v1097_v10, %v1097_v10 }
 0x90a   : > { %v1105_v18 = vunpack.c.l.b16 %v1101_v15 }
 0x90b   : > { %v1084_v12 = vpop.f32.mrf.mxu1 }
 0x90c   : > { %v1085_v13 = vadd.f32 %v1084_v12, %v1039_v11 }
 0x90e   : > { %v1099_v16 = vadd.f32 %v1098_v14, %v1085_v13 }
 0x910   : > { %v1102_v17 = vpack.c.bf16 %v1099_v16, %v1099_v16 }
 0x912   : > { %v1106_v19 = vunpack.c.l.b16 %v1102_v17 }
 0x914   : > { %v1107_v20 = vpack.c.b16 %v1106_v19, %v1105_v18 }
 0x916   : > { %1108 = vrot.lane.b32.xlu0 %v1107_v20, %s1721_s20 }
 0x91e   : > { %1127 = vperm.xlu0 %1370, %v1123_v21  }
 0x988   : > { %v1109_v22 = vpop.permute.xlu0 %1108 }
 0x989   : > { %v1111_v23 = vsel %vm796_vm2, 0, %v1109_v22 }
 0x98a   : > { %v1112_v24 = vsel %vm799_vm3, %v1111_v23, 0 }
 0x98b   : > { %1115 = vrot.lane.b32.xlu2 %v1112_v24, %s1380_s25  ;;  %1118 = vrot.lane.b32.xlu1 %v1112_v24, %s1383_s28 }
 0x990   : > { %v1128_v29 = vpop.permute.xlu0 %1127 }
 0x993   : > { %1132 = vperm.xlu1 %1368, %v1124_v25  }
 0x9e5   : > { %v1116_v27 = vpop.permute.xlu2 %1115 }
 0x9fd   : > { %v1119_v26 = vpop.permute.xlu1 %1118 }
 0x9fe   : > { %1148 = vmatpush.bf16.msra.mxu2 %v1119_v26 }
 0xa02   : > { %1149 = vmatpush.bf16.msra.mxu2 %v1116_v27 }
 0xa05   : > { %v1133_v34 = vpop.permute.xlu1 %1132 }
 0xa06   : > { %1150 = vmatpush.bf16.msra.mxu2 %v1112_v24 }
 0xa09   : > { %1336 = vmatmul.msk.bf16.vlgmr.msra.gmra.mxu2 %vm976_vm9, %v1350_v28 }
 0xa8c   : > { %v1152_v30 = vpop.f32.mrf.mxu2 }
 0xa8d   : > { %v1153_v31 = vadd.f32 %v1152_v30, %v1128_v29 }
 0xa8f   : > { %vm1157_vm13 = vcmp.ge.f32.partialorder %v1153_v31, 0.0  ;;  %v1159_v32 = vmul.f32 0.1, %v1153_v31 }
 0xa91   : > { %v1161_v33 = vsel %vm1157_vm13, %v1153_v31, %v1159_v32 }
 0xa92   : > { %1163 = vst.msk [vmem:[%s517_s27] sm:$0xff] %vm841_vm6, %v1161_v33 }
 0xa94   : > { %v1154_v35 = vpop.f32.mrf.mxu2 }
 0xa95   : > { %v1155_v36 = vadd.f32 %v1154_v35, %v1133_v34 }
 0xa97   : > { %vm1158_vm14 = vcmp.ge.f32.partialorder %v1155_v36, 0.0  ;;  %v1160_v37 = vmul.f32 0.1, %v1155_v36 }
 0xa99   : > { %v1162_v38 = vsel %vm1158_vm14, %v1155_v36, %v1160_v37 }
 0xa9a   : > { %1164 = vst.msk [vmem:[%s517_s27 + $0x8] sm:$0xff] %vm841_vm6, %v1162_v38 }
 0xa9b PF: > { %s26_s18 = sadd.s32 1, %s1377_s18  }
 0xa9c   : > { %p23_p4 = scmp.ge.s32.totalorder %s26_s18, 6  }
 0xa9e   :  { %25 = sbr.rel (!%p23_p4) target bundleno = 1 (0x1), region = 126 }

// kernel: _lambda_.10
= control target key start
LH: loop header
LB: loop body
LE: loop exit
PB: predicated region body
PF: predicated region fallthrough
CT: control target
= control target key end

     0   :  { %s600_s12 = smov 0   ;;  %s715_s0 = inlined_call_operand.vmem [shape: bf16[4,8,160], index: 0, kind: input, shape index: {}]   ;;  %s716_s1 = inlined_call_operand.vmem [shape: bf16[8,264], index: 1, kind: input, shape index: {}]   ;;  %s717_s2 = inlined_call_operand.vmem [shape: f32[8,1], index: 2, kind: input, shape index: {}]   ;;  %s718_s3 = inlined_call_operand.vmem [shape: bf16[4,8,128], index: 3, kind: output, shape index: {}]  }
   0x1 LB: > { %s515_s13 = sadd.s32 4294967295, %s560_s12   ;;  %p519_p0 = scmp.ge.s32.totalorder %s560_s12, 1  ;;  %s560_s12 = sphi %s600_s12, %s13_s12  }
   0x2   : > { %p137_p1 = scmp.lt.s32.totalorder %s560_s12, 5 }
   0x4   : > { %p138_p2 = pnand %p519_p0, %p137_p1 }
   0x5   : > { %p160_p3 = scmp.lt.s32.totalorder (!%p138_p2), %s515_s13, 3  ;;  %s562_s18 = smov (!%p138_p2), 113  }
   0x6   : > { %141 = sbr.rel (%p138_p2) target bundleno = 472 (0x1d8), region = 32  ;;  %s563_s19 = smov (!%p138_p2), 114  }
   0x7   : > { %s564_s20 = smov (!%p138_p2), 116   ;;  %s565_s21 = smov (!%p138_p2), 115  }
   0x8   : > { %s566_s22 = smov (!%p138_p2), 118   ;;  %s567_s23 = smov (!%p138_p2), 117  }
   0x9   : > { %s568_s24 = smov (!%p138_p2), 120   ;;  %s569_s25 = smov (!%p138_p2), 119  }
   0xa   : > { %s570_s26 = smov (!%p138_p2), 122   ;;  %s571_s27 = smov (!%p138_p2), 121  }
   0xb   : > { %s720_s13 = smov (!%p160_p3, %s515_s13), 3  ;;  %s572_s28 = smov 124   ;;  %vm264_vm0 = vcmask 924672   ;;  %vm258_vm1 = vcmask 932864   ;;  %vm266_vm2 = vcmask 1043456   ;;  %vm246_vm3 = vcmask 949248  }
   0xc   : > { %s526_s14 = sshll.u32 %s720_s13, 3  ;;  %s573_s29 = smov 123   ;;  %vm252_vm4 = vcmask 941056   ;;  %vm240_vm5 = vcmask 957440   ;;  %vm234_vm6 = vcmask 965632   ;;  %vm222_vm7 = vcmask 982016  }
   0xd   : > { %s164_s17 = scalar_lea.vmem %s715_s0, %s526_s14  ;;  %s574_s30 = smov 126   ;;  %vm228_vm8 = vcmask 973824   ;;  %vm210_vm9 = vcmask 998400   ;;  %vm216_vm10 = vcmask 990208   ;;  %vm204_vm11 = vcmask 1006592  }
   0xe   : > { %v614_v0 = vld [vmem:[%s164_s17] sm:$0xff]  ;;  %s575_s4 = smov 125   ;;  %s576_s5 = smov 127   ;;  %vm198_vm12 = vcmask 1014784   ;;  %vm186_vm13 = vcmask 1031168   ;;  %vm180_vm14 = vcmask 1039360  }
   0xf   : > { %v172_v1 = vunpack.c.l.b16 %v614_v0  ;;  %v173_v3 = vunpack.c.h.b16 %v614_v0  ;;  %s577_s6 = smov 112   ;;  %s578_s7 = smov 96   ;;  %vm192_vm15 = vcmask 1022976  }
  0x10   : > { %s522_s16 = sshll.u32 %s720_s13, 2 }
  0x11   : > { %v617_v2 = vpack.c.b16 %v172_v1, %v172_v1  ;;  %v623_v4 = vpack.c.b16 %v173_v3, %v173_v3 }
  0x13   : > { %260 = vrot.lane.b32.xlu1 %v617_v2, %s562_s18  ;;  %254 = vrot.lane.b32.xlu0 %v617_v2, %s563_s19 }
  0x14   : > { %242 = vrot.lane.b32.xlu2 %v617_v2, %s564_s20 }
  0x1b   : > { %262 = vrot.lane.b32.xlu1 %v623_v4, %s562_s18  ;;  %256 = vrot.lane.b32.xlu0 %v623_v4, %s563_s19  ;;  %s168_s19 = scalar_lea.vmem %s718_s3, %s522_s16 }
  0x1c   : > { %244 = vrot.lane.b32.xlu2 %v623_v4, %s564_s20 }
  0x23   : > { %250 = vrot.lane.b32.xlu1 %v623_v4, %s565_s21  ;;  %248 = vrot.lane.b32.xlu0 %v617_v2, %s565_s21 }
  0x24   : > { %230 = vrot.lane.b32.xlu2 %v617_v2, %s566_s22 }
  0x2b   : > { %236 = vrot.lane.b32.xlu1 %v617_v2, %s567_s23  ;;  %232 = vrot.lane.b32.xlu0 %v623_v4, %s566_s22 }
  0x2c   : > { %238 = vrot.lane.b32.xlu2 %v623_v4, %s567_s23 }
  0x33   : > { %220 = vrot.lane.b32.xlu1 %v623_v4, %s568_s24  ;;  %218 = vrot.lane.b32.xlu0 %v617_v2, %s568_s24 }
  0x34   : > { %224 = vrot.lane.b32.xlu2 %v617_v2, %s569_s25 }
  0x3b   : > { %206 = vrot.lane.b32.xlu1 %v617_v2, %s570_s26  ;;  %226 = vrot.lane.b32.xlu0 %v623_v4, %s569_s25 }
  0x3c   : > { %208 = vrot.lane.b32.xlu2 %v623_v4, %s570_s26 }
  0x43   : > { %214 = vrot.lane.b32.xlu1 %v623_v4, %s571_s27  ;;  %212 = vrot.lane.b32.xlu0 %v617_v2, %s571_s27 }
  0x44   : > { %194 = vrot.lane.b32.xlu2 %v617_v2, %s572_s28 }
  0x4b   : > { %200 = vrot.lane.b32.xlu1 %v617_v2, %s573_s29  ;;  %196 = vrot.lane.b32.xlu0 %v623_v4, %s572_s28 }
  0x4c   : > { %202 = vrot.lane.b32.xlu2 %v623_v4, %s573_s29 }
  0x53   : > { %184 = vrot.lane.b32.xlu1 %v623_v4, %s574_s30  ;;  %182 = vrot.lane.b32.xlu0 %v617_v2, %s574_s30 }
  0x54   : > { %188 = vrot.lane.b32.xlu2 %v617_v2, %s575_s4 }
  0x5b   : > { %176 = vrot.lane.b32.xlu1 %v617_v2, %s576_s5  ;;  %190 = vrot.lane.b32.xlu0 %v623_v4, %s575_s4 }
  0x5c   : > { %178 = vrot.lane.b32.xlu2 %v623_v4, %s576_s5 }
  0x6e   : > { %v243_v5 = vpop.permute.xlu2 %242 }
  0x76   : > { %v245_v6 = vpop.permute.xlu2 %244 }
  0x77   : > { %v247_v19 = vsel %vm246_vm3, %v243_v5, %v245_v6  ;;  %vm414_vm3 = vcmask 64512  }
  0x7e   : > { %v231_v7 = vpop.permute.xlu2 %230 }
  0x85   : > { %v261_v8 = vpop.permute.xlu1 %260  ;;  %v255_v9 = vpop.permute.xlu0 %254 }
  0x86   : > { %v239_v15 = vpop.permute.xlu2 %238 }
  0x8d   : > { %v263_v10 = vpop.permute.xlu1 %262  ;;  %v257_v11 = vpop.permute.xlu0 %256 }
  0x8e   : > { %v265_v12 = vsel %vm264_vm0, %v261_v8, %v263_v10  ;;  %v259_v13 = vsel %vm258_vm1, %v255_v9, %v257_v11  ;;  %v324_v14 = vsel %vm266_vm2, %v257_v11, %v263_v10  ;;  %v225_v23 = vpop.permute.xlu2 %224  ;;  %vm373_vm0 = vcmask 916480  }
  0x8f   : > { %371 = vrot.lane.b32.xlu1 %v324_v14, %s577_s6  ;;  %v297_v16 = vsel %vm266_vm2, %v259_v13, %v265_v12  ;;  %vm394_vm1 = vcmask 785408  }
  0x90   : > { %421 = vmatpush.bf16.msra.mxu0 %v297_v16 }
  0x95   : > { %v251_v17 = vpop.permute.xlu1 %250  ;;  %v249_v18 = vpop.permute.xlu0 %248 }
  0x96   : > { %v253_v20 = vsel %vm252_vm4, %v249_v18, %v251_v17  ;;  %v321_v21 = vsel %vm266_vm2, %v245_v6, %v251_v17  ;;  %v209_v30 = vpop.permute.xlu2 %208  ;;  %v579_v17 = vmov 0  }
  0x97   : > { %367 = vrot.lane.b32.xlu0 %v321_v21, %s577_s6  ;;  %v293_v22 = vsel %vm266_vm2, %v247_v19, %v253_v20 }
  0x98   : > { %422 = vmatpush.bf16.msra.mxu0 %v293_v22  ;;  %553 = vset.pattern.permute.xlu0 %v579_v17 }
  0x9d   : > { %v237_v24 = vpop.permute.xlu1 %236  ;;  %v233_v25 = vpop.permute.xlu0 %232 }
  0x9e   : > { %v241_v26 = vsel %vm240_vm5, %v237_v24, %v239_v15  ;;  %v235_v27 = vsel %vm234_vm6, %v231_v7, %v233_v25  ;;  %v318_v28 = vsel %vm266_vm2, %v233_v25, %v239_v15  ;;  %v195_v33 = vpop.permute.xlu2 %194 }
  0x9f   : > { %v289_v29 = vsel %vm266_vm2, %v235_v27, %v241_v26  ;;  %363 = vrot.lane.b32.xlu2 %v318_v28, %s577_s6 }
  0xa0   : > { %423 = vmatpush.bf16.msra.mxu0 %v289_v29 }
  0xa5   : > { %v221_v31 = vpop.permute.xlu1 %220  ;;  %v219_v32 = vpop.permute.xlu0 %218 }
  0xa6   : > { %v223_v36 = vsel %vm222_vm7, %v219_v32, %v221_v31  ;;  %v203_v46 = vpop.permute.xlu2 %202 }
  0xad   : > { %v207_v34 = vpop.permute.xlu1 %206  ;;  %v227_v35 = vpop.permute.xlu0 %226 }
  0xae   : > { %v229_v37 = vsel %vm228_vm8, %v225_v23, %v227_v35  ;;  %v315_v38 = vsel %vm266_vm2, %v221_v31, %v227_v35  ;;  %v211_v42 = vsel %vm210_vm9, %v207_v34, %v209_v30  ;;  %v189_v53 = vpop.permute.xlu2 %188  ;;  %v397_v23 = vld [vmem:[%s716_s1 + $0x8] sm:$0xf] }
  0xaf   : > { %359 = vrot.lane.b32.xlu1 %v315_v38, %s577_s6  ;;  %v285_v39 = vsel %vm266_vm2, %v223_v36, %v229_v37  ;;  %v408_v25 = vunpack.c.l.b16 %v397_v23 }
  0xb0   : > { %424 = vmatpush.bf16.msra.mxu0 %v285_v39 }
  0xb1   : > { %v411_v32 = vpack.c.b16 %v408_v25, %v408_v25 }
  0xb5   : > { %v215_v40 = vpop.permute.xlu1 %214  ;;  %v213_v41 = vpop.permute.xlu0 %212 }
  0xb6   : > { %v217_v43 = vsel %vm216_vm10, %v213_v41, %v215_v40  ;;  %v312_v44 = vsel %vm266_vm2, %v209_v30, %v215_v40  ;;  %v179_v56 = vpop.permute.xlu2 %178 }
  0xb7   : > { %355 = vrot.lane.b32.xlu0 %v312_v44, %s577_s6  ;;  %361 = vrot.lane.b32.xlu1 %v289_v29, %s577_s6  ;;  %v281_v45 = vsel %vm266_vm2, %v211_v42, %v217_v43 }
  0xb8   : > { %425 = vmatpush.bf16.msra.mxu0 %v281_v45 }
  0xbd   : > { %v201_v47 = vpop.permute.xlu1 %200  ;;  %v197_v48 = vpop.permute.xlu0 %196 }
  0xbe   : > { %v205_v49 = vsel %vm204_vm11, %v201_v47, %v203_v46  ;;  %v199_v50 = vsel %vm198_vm12, %v195_v33, %v197_v48  ;;  %v309_v51 = vsel %vm266_vm2, %v197_v48, %v203_v46 }
  0xbf   : > { %369 = vrot.lane.b32.xlu0 %v297_v16, %s577_s6  ;;  %392 = vrot.lane.b32.xlu1 %v623_v4, %s578_s7  ;;  %v277_v52 = vsel %vm266_vm2, %v199_v50, %v205_v49  ;;  %v398_v16 = vld [vmem:[%s717_s2] sm:$0xff] }
  0xc0   : > { %351 = vrot.lane.b32.xlu2 %v309_v51, %s577_s6  ;;  %426 = vmatpush.bf16.msra.mxu0 %v277_v52 }
  0xc5   : > { %v185_v54 = vpop.permute.xlu1 %184  ;;  %v183_v55 = vpop.permute.xlu0 %182 }
  0xc6   : > { %v187_v57 = vsel %vm186_vm13, %v183_v55, %v185_v54 }
  0xc7   : > { %357 = vrot.lane.b32.xlu0 %v285_v39, %s577_s6  ;;  %349 = vrot.lane.b32.xlu1 %v277_v52, %s577_s6 }
  0xc8   : > { %365 = vrot.lane.b32.xlu2 %v293_v22, %s577_s6 }
  0xcd   : > { %v177_v58 = vpop.permute.xlu1 %176  ;;  %v191_v59 = vpop.permute.xlu0 %190 }
  0xce   : > { %v181_v60 = vsel %vm180_vm14, %v177_v58, %v179_v56  ;;  %v193_v61 = vsel %vm192_vm15, %v189_v53, %v191_v59  ;;  %v306_v3 = vsel %vm266_vm2, %v185_v54, %v191_v59 }
  0xcf   : > { %390 = vrot.lane.b32.xlu0 %v617_v2, %s578_s7  ;;  %v300_v62 = vsel %vm266_vm2, %v617_v2, %v181_v60  ;;  %v273_v63 = vsel %vm266_vm2, %v187_v57, %v193_v61  ;;  %v269_v1 = vsel %vm266_vm2, %v614_v0, %v181_v60  ;;  %v303_v2 = vsel %vm266_vm2, %v623_v4, %v179_v56  ;;  %v396_v0 = vld [vmem:[%s716_s1] sm:$0xff] }
  0xd0   : > { %353 = vrot.lane.b32.xlu2 %v281_v45, %s577_s6  ;;  %341 = vrot.lane.b32.xlu1 %v300_v62, %s577_s6  ;;  %v406_v10 = vunpack.c.l.b16 %v396_v0  ;;  %v407_v36 = vunpack.c.h.b16 %v396_v0 }
  0xd1   : > { %427 = vmatpush.bf16.msra.mxu0 %v273_v63 }
  0xd2   : > { %v409_v11 = vpack.c.b16 %v406_v10, %v406_v10  ;;  %v410_v40 = vpack.c.b16 %v407_v36, %v407_v36 }
  0xd5   : > { %428 = vmatpush.bf16.msra.mxu0 %v269_v1 }
  0xd7   : > { %347 = vrot.lane.b32.xlu0 %v306_v3, %s577_s6 }
  0xd8   : > { %345 = vrot.lane.b32.xlu2 %v273_v63, %s577_s6  ;;  %429 = vmatmul.bf16.vlgmr.msra.gmra.mxu0 %v409_v11 }
  0xdf   : > { %401 = vperm.xlu0 %553, %v398_v16  }
  0xe0   : > { %343 = vrot.lane.b32.xlu2 %v303_v2, %s577_s6 }
  0xf9   : > { %v364_v6 = vpop.permute.xlu2 %363 }
 0x101   : > { %v372_v5 = vpop.permute.xlu1 %371 }
 0x109   : > { %v368_v7 = vpop.permute.xlu0 %367 }
 0x11a   : > { %v352_v9 = vpop.permute.xlu2 %351 }
 0x121   : > { %v360_v8 = vpop.permute.xlu1 %359 }
 0x122   : > { %v366_v14 = vpop.permute.xlu2 %365 }
 0x123   : > { %v380_v18 = vsel %vm373_vm0, %v366_v14, %v368_v7 }
 0x129   : > { %v356_v12 = vpop.permute.xlu0 %355  ;;  %v362_v13 = vpop.permute.xlu1 %361 }
 0x12a   : > { %v354_v20 = vpop.permute.xlu2 %353  ;;  %v379_v22 = vsel %vm373_vm0, %v362_v13, %v364_v6 }
 0x12b   : > { %v377_v28 = vsel %vm373_vm0, %v354_v20, %v356_v12 }
 0x131   : > { %v370_v15 = vpop.permute.xlu0 %369  ;;  %v393_v19 = vpop.permute.xlu1 %392 }
 0x132   : > { %v381_v4 = vsel %vm373_vm0, %v370_v15, %v372_v5  ;;  %v346_v30 = vpop.permute.xlu2 %345 }
 0x133   : > { %434 = vmatpush.bf16.msra.mxu1 %v381_v4 }
 0x137   : > { %435 = vmatpush.bf16.msra.mxu1 %v380_v18 }
 0x139   : > { %v358_v21 = vpop.permute.xlu0 %357  ;;  %v350_v26 = vpop.permute.xlu1 %349 }
 0x13a   : > { %v378_v24 = vsel %vm373_vm0, %v358_v21, %v360_v8  ;;  %v376_v33 = vsel %vm373_vm0, %v350_v26, %v352_v9  ;;  %v344_v38 = vpop.permute.xlu2 %343 }
 0x13b   : > { %436 = vmatpush.bf16.msra.mxu1 %v379_v22 }
 0x13f   : > { %437 = vmatpush.bf16.msra.mxu1 %v378_v24 }
 0x141   : > { %v391_v27 = vpop.permute.xlu0 %390 }
 0x142   : > { %v395_v29 = vsel %vm394_vm1, %v391_v27, %v393_v19  ;;  %v342_v37 = vpop.permute.xlu1 %341 }
 0x143   : > { %438 = vmatpush.bf16.msra.mxu1 %v377_v28  ;;  %v419_v31 = vsel %vm266_vm2, %v395_v29, 0  ;;  %v374_v39 = vsel %vm373_vm0, %v342_v37, %v344_v38 }
 0x144   : > { %454 = vmatpush.bf16.msra.mxu2 %v419_v31 }
 0x147   : > { %439 = vmatpush.bf16.msra.mxu1 %v376_v33  ;;  %523 = vmatmul.msk.bf16.vlgmr.msra.gmra.mxu2 %vm414_vm3, %v411_v32 }
 0x149   : > { %v348_v34 = vpop.permute.xlu0 %347 }
 0x14a   : > { %v375_v35 = vsel %vm373_vm0, %v346_v30, %v348_v34 }
 0x14b   : > { %440 = vmatpush.bf16.msra.mxu1 %v375_v35 }
 0x14f   : > { %441 = vmatpush.bf16.msra.mxu1 %v374_v39 }
 0x151   : > { %v402_v43 = vpop.permute.xlu0 %401 }
 0x152   : > { %442 = vmatmul.bf16.vlgmr.msra.gmra.mxu1 %v410_v40 }
 0x155   : > { %v430_v41 = vpop.f32.mrf.mxu0 }
 0x156   : > { %v431_v45 = vadd.f32 %v430_v41, %v402_v43 }
 0x15d   : > { %v432_v42 = vpop.f32.mrf.mxu0 }
 0x1ca   : > { %v456_v44 = vpop.f32.mrf.mxu2 }
 0x1cf   : > { %v443_v46 = vpop.f32.mrf.mxu1 }
 0x1d0   : > { %v444_v47 = vadd.f32 %v443_v46, %v431_v45 }
 0x1d2   : > { %v457_v48 = vadd.f32 %v456_v44, %v444_v47  ;;  %v458_v49 = vpop.f32.mrf.mxu2 }
 0x1d4   : > { %v460_v50 = vpack.c.bf16 %v457_v48, %v457_v48 }
 0x1d6   : > { %461 = vst [vmem:[%s168_s19] sm:$0xf] %v460_v50 }
 0x1d7   : > { %v445_v51 = vpop.f32.mrf.mxu1 }
 0x1d8 PF: > { %s13_s12 = sadd.s32 1, %s560_s12  }
 0x1d9   : > { %p10_p4 = scmp.ge.s32.totalorder %s13_s12, 6  }
 0x1db   :  { %12 = sbr.rel (!%p10_p4) target bundleno = 1 (0x1), region = 62 }

// kernel: _lambda_.13
= control target key start
LH: loop header
LB: loop body
LE: loop exit
PB: predicated region body
PF: predicated region fallthrough
CT: control target
= control target key end

     0   :  { %s332_s14 = smov 0   ;;  %s356_s0 = inlined_call_operand.vmem [shape: bf16[4,16,64], index: 0, kind: input, shape index: {}]   ;;  %s357_s1 = inlined_call_operand.vmem [shape: bf16[1,48], index: 1, kind: input, shape index: {}]   ;;  %s358_s2 = inlined_call_operand.<no memory space> [shape: f32[1,1], index: 2, kind: input, shape index: {}]   ;;  %s359_s3 = inlined_call_operand.vmem [shape: f32[4,1,64], index: 3, kind: output, shape index: {}]  }
   0x1   :  { %v8_v0 = vstv %s358_s2 }
   0x2   :  { %9 = vst [vmem:[#allocation2] sm:$0x1] %v8_v0 }
   0x3 LB: > { %s267_s15 = sadd.s32 4294967295, %s303_s14   ;;  %p271_p0 = scmp.ge.s32.totalorder %s303_s14, 1  ;;  %s303_s14 = sphi %s332_s14, %s15_s14  }
   0x4   : > { %p139_p1 = scmp.lt.s32.totalorder %s303_s14, 5 }
   0x6   : > { %p140_p2 = pnand %p271_p0, %p139_p1 }
   0x7   : > { %p161_p3 = scmp.lt.s32.totalorder (!%p140_p2), %s267_s15, 3  ;;  %s305_s19 = smov (!%p140_p2), 1  }
   0x8   : > { %143 = sbr.rel (%p140_p2) target bundleno = 394 (0x18a), region = 32  ;;  %s306_s20 = smov (!%p140_p2), 127  }
   0x9   : > { %s307_s21 = smov (!%p140_p2), 126  }
   0xd   : > { %s361_s15 = smov (!%p161_p3, %s267_s15), 3  ;;  %vm179_vm0 = vcmask 7168   ;;  %vm183_vm1 = vcmask 531456   ;;  %v194_v5 = vld [vmem:[#allocation2] sm:$0x1]  ;;  %v308_v6 = vmov 0  }
   0xe   : > { %s281_s2 = sshll.u32 %s361_s15, 3  ;;  %295 = vset.pattern.permute.xlu1 %v308_v6  ;;  %296 = vset.pattern.permute.xlu0 %v308_v6  ;;  %v193_v9 = vld [vmem:[%s357_s1] sm:$0x1]  ;;  %vm201_vm2 = vcmask 392192   ;;  %s168_s26 = scalar_lea.vmem %s359_s3, %s361_s15  ;;  %vm218_vm3 = vcmask 516096  }
   0xf   : > { %s165_s18 = scalar_lea.vmem %s356_s0, %s281_s2 }
  0x10   : > { %v282_v1 = vld [vmem:[%s165_s18] sm:$0xff] }
  0x11   : > { %177 = vrot.lane.b32.xlu0 %v282_v1, %s305_s19 }
  0x83   : > { %v178_v2 = vpop.permute.xlu0 %177 }
  0x84   : > { %v182_v3 = vsel %vm179_vm0, 0, %v178_v2 }
  0x85   : > { %v184_v4 = vsel %vm183_vm1, %v182_v3, 0 }
  0x86   : > { %187 = vrot.lane.b32.xlu1 %v184_v4, %s306_s20  ;;  %190 = vrot.lane.b32.xlu0 %v184_v4, %s307_s21 }
  0x8e   : > { %197 = vperm.xlu1 %295, %v194_v5  }
  0xf8   : > { %v191_v7 = vpop.permute.xlu0 %190  ;;  %v188_v8 = vpop.permute.xlu1 %187 }
  0xf9   : > { %210 = vmatpush.bf16.msra.mxu0 %v191_v7 }
  0xfd   : > { %211 = vmatpush.bf16.msra.mxu0 %v188_v8 }
 0x100   : > { %v198_v10 = vpop.permute.xlu1 %197 }
 0x101   : > { %212 = vmatpush.bf16.msra.mxu0 %v184_v4  ;;  %v200_v11 = vperm.slane %v198_v10, 0 }
 0x104   : > { %278 = vmatmul.msk.bf16.vlgmr.msra.gmra.mxu0 %vm201_vm2, %v193_v9 }
 0x181   : > { %v214_v12 = vpop.f32.mrf.mxu0 }
 0x182   : > { %v215_v13 = vadd.f32 %v214_v12, %v200_v11 }
 0x184   : > { %219 = vst.msk [vmem:[%s168_s26] sm:$0x1] %vm218_vm3, %v215_v13 }
 0x189   : > { %v216_v14 = vpop.f32.mrf.mxu0 }
 0x18a PF: > { %s15_s14 = sadd.s32 1, %s303_s14  }
 0x18b   : > { %p12_p4 = scmp.ge.s32.totalorder %s15_s14, 6  }
 0x18d   :  { %14 = sbr.rel (!%p12_p4) target bundleno = 3 (0x3), region = 62 }

// kernel: _lambda_.12
= control target key start
LH: loop header
LB: loop body
LE: loop exit
PB: predicated region body
PF: predicated region fallthrough
CT: control target
= control target key end

     0   :  { %s1926_s18 = smov 0   ;;  %s2527_s0 = inlined_call_operand.vmem [shape: bf16[4,8,128], index: 0, kind: input, shape index: {}]   ;;  %s2528_s1 = inlined_call_operand.vmem [shape: bf16[8,168], index: 1, kind: input, shape index: {}]   ;;  %s2529_s2 = inlined_call_operand.vmem [shape: f32[8,1], index: 2, kind: input, shape index: {}]   ;;  %s2530_s3 = inlined_call_operand.vmem [shape: bf16[8,24], index: 3, kind: input, shape index: {}]   ;;  %s2531_s4 = inlined_call_operand.vmem [shape: f32[8,1], index: 4, kind: input, shape index: {}]   ;;  %s2532_s5 = inlined_call_operand.vmem [shape: bf16[16,168], index: 5, kind: input, shape index: {}]   ;;  %s2533_s6 = inlined_call_operand.vmem [shape: f32[16,1], index: 6, kind: input, shape index: {}]   ;;  %s2534_s7 = inlined_call_operand.vmem [shape: bf16[16,48], index: 7, kind: input, shape index: {}]   ;;  %s2535_s8 = inlined_call_operand.vmem [shape: f32[16,1], index: 8, kind: input, shape index: {}]   ;;  %s2536_s9 = inlined_call_operand.vmem [shape: bf16[16,336], index: 9, kind: input, shape index: {}]   ;;  %s2537_s10 = inlined_call_operand.vmem [shape: f32[16,1], index: 10, kind: input, shape index: {}]   ;;  %s2538_s11 = inlined_call_operand.vmem [shape: bf16[16,48], index: 11, kind: input, shape index: {}]   ;;  %s2539_s12 = inlined_call_operand.vmem [shape: f32[16,1], index: 12, kind: input, shape index: {}]   ;;  %s2540_s13 = inlined_call_operand.vmem [shape: f32[4,8,128], index: 13, kind: output, shape index: {0}]   ;;  %s2541_s14 = inlined_call_operand.vmem [shape: f32[4,16,128], index: 14, kind: output, shape index: {1}]   ;;  %s2542_s15 = inlined_call_operand.vmem [shape: f32[4,16,128], index: 15, kind: output, shape index: {2}]  }
   0x1   :  { %2585 = sst [smem:[#allocation2_spill]] %s2527_s0 }
   0x2   :  { %2586 = sst [smem:[#allocation3_spill]] %s2528_s1 }
   0x3   :  { %2587 = sst [smem:[#allocation4_spill]] %s2529_s2 }
   0x4   :  { %2588 = sst [smem:[#allocation5_spill]] %s2530_s3 }
   0x5   :  { %2589 = sst [smem:[#allocation6_spill]] %s2531_s4 }
   0x6   :  { %2590 = sst [smem:[#allocation7_spill]] %s2532_s5 }
   0x7 LB: > { %s1729_s19 = sadd.s32 4294967295, %s1825_s18   ;;  %p1733_p0 = scmp.ge.s32.totalorder %s1825_s18, 1  ;;  %s1825_s18 = sphi %s1926_s18, %s26_s18  }
   0x8   : > { %p441_p1 = scmp.lt.s32.totalorder %s1825_s18, 5 }
   0xa   : > { %p442_p2 = pnand %p1733_p0, %p441_p1 }
   0xb   : > { %p497_p3 = scmp.lt.s32.totalorder (!%p442_p2), %s1729_s19, 3  ;;  %s2591_s0 = sld [smem:[#allocation2_spill]] (!%p442_p2) }
   0xc   : > { %445 = sbr.rel (%p442_p2) target bundleno = 3215 (0xc8f), region = 72  ;;  %s2575_s24 = smov (!%p442_p2), 15  }
   0xd   : > { %s2571_s25 = smov (!%p442_p2), 118   ;;  %s2573_s26 = smov (!%p442_p2), 108  }
   0xe   : > { %s2570_s27 = smov (!%p442_p2), 12   ;;  %s2547_s28 = smov (!%p442_p2), 121  }
   0xf   : > { %s2576_s29 = smov (!%p442_p2), 125   ;;  %s2581_s30 = smov (!%p442_p2), 1  }
  0x10   : > { %s2545_s16 = smov (!%p442_p2), 124   ;;  %s2543_s17 = smov (!%p442_p2), 122  }
  0x11   : > { %s2659_s19 = smov (!%p497_p3, %s1729_s19), 3  ;;  %vm522_vm0 = vcmask 121856   ;;  %s2567_s21 = smov 113   ;;  %vm662_vm1 = vcmask 883712   ;;  %vm604_vm2 = vcmask 1043456   ;;  %vm656_vm3 = vcmask 924672  }
  0x12   : > { %s1734_s20 = sshll.u32 %s2659_s19, 2  ;;  %s2559_s22 = smov 123   ;;  %vm650_vm4 = vcmask 965632   ;;  %vm577_vm5 = vcmask 7168   ;;  %vm2584_vm6 = vcmask 1006592   ;;  %vm565_vm7 = vcmask 998400  }
  0x13   : > { %s500_s23 = scalar_lea.vmem %s2591_s0, %s1734_s20  ;;  %s2579_s20 = smov 126   ;;  %vm602_vm8 = vcmask 56320   ;;  %vm2578_vm9 = vcmask 973824   ;;  %vm588_vm10 = vcmask 990208   ;;  %vm535_vm11 = vcmask 1039360  }
  0x14   : > { %v516_v0 = vld [vmem:[%s500_s23] sm:$0xf]  ;;  %s2561_s23 = smov 7   ;;  %vm2553_vm12 = vcmask 1022976   ;;  %vm2583_vm13 = vcmask 23552   ;;  %vm2554_vm14 = vcmask 1014784  }
  0x15   : > { %v518_v1 = vunpack.c.l.b16 %v516_v0  ;;  %vm541_vm15 = vcmask 1031168   ;;  %s2592_s2 = sld [smem:[#allocation4_spill]]  ;;  %s1780_s0 = sshll.u32 %s2659_s19, 4 }
  0x16   : > { %s2593_s1 = sld [smem:[#allocation3_spill]] }
  0x17   : > { %v519_v2 = vpack.c.b16 %v518_v1, %v518_v1  ;;  %s2594_s4 = sld [smem:[#allocation6_spill]] }
  0x18   : > { %s2595_s3 = sld [smem:[#allocation5_spill]] }
  0x19   : > { %520 = vrot.lane.b32.xlu0 %v519_v2, %s2575_s24  ;;  %s2619_s5 = sld [smem:[#allocation7_spill]] }
  0x8b   : > { %v521_v3 = vpop.permute.xlu0 %520 }
  0x8c   : > { %v1942_v4 = vsel %vm522_vm0, 0, %v521_v3  ;;  %v1945_v5 = vsel %vm522_vm0, %v521_v3, 0 }
  0x8d   : > { %648 = vrot.lane.b32.xlu2 %v1945_v5, %s2571_s25  ;;  %660 = vrot.lane.b32.xlu1 %v1945_v5, %s2573_s26  ;;  %v530_v6 = vrot.slane %v1945_v5, 4  ;;  %v529_v7 = vrot.slane %v1942_v4, 4 }
  0x8e   : > { %658 = vrot.lane.b32.xlu0 %v1942_v4, %s2573_s26 }
  0x95   : > { %596 = vrot.lane.b32.xlu2 %v1942_v4, %s2570_s27  ;;  %646 = vrot.lane.b32.xlu1 %v1942_v4, %s2571_s25 }
  0x96   : > { %584 = vrot.lane.b32.xlu0 %v1942_v4, %s2547_s28 }
  0x9d   : > { %581 = vrot.lane.b32.xlu2 %v1945_v5, %s2576_s29  ;;  %586 = vrot.lane.b32.xlu1 %v1945_v5, %s2547_s28  ;;  %s2551_s28 = smov 3  }
  0x9e   : > { %575 = vrot.lane.b32.xlu0 %v1945_v5, %s2581_s30 }
  0xa5   : > { %573 = vrot.lane.b32.xlu2 %v1942_v4, %s2581_s30  ;;  %579 = vrot.lane.b32.xlu1 %v1942_v4, %s2576_s29 }
  0xa6   : > { %551 = vrot.lane.b32.xlu0 %v1945_v5, %s2545_s16 }
  0xad   : > { %563 = vrot.lane.b32.xlu2 %v1945_v5, %s2543_s17  ;;  %561 = vrot.lane.b32.xlu1 %v1942_v4, %s2543_s17  ;;  %s2549_s17 = smov 119  }
  0xae   : > { %537 = vrot.lane.b32.xlu0 %v1942_v4, %s2579_s20 }
  0xb5   : > { %549 = vrot.lane.b32.xlu2 %v1942_v4, %s2545_s16  ;;  %539 = vrot.lane.b32.xlu1 %v1945_v5, %s2579_s20  ;;  %s2565_s16 = smov 127  }
  0xb6   : > { %654 = vrot.lane.b32.xlu0 %v530_v6, %s2567_s21 }
  0xbd   : > { %555 = vrot.lane.b32.xlu1 %v529_v7, %s2559_s22  ;;  %652 = vrot.lane.b32.xlu2 %v529_v7, %s2567_s21 }
  0xbe   : > { %598 = vrot.lane.b32.xlu0 %v529_v7, %s2561_s23 }
  0xc5   : > { %600 = vrot.lane.b32.xlu1 %v530_v6, %s2561_s23  ;;  %557 = vrot.lane.b32.xlu2 %v530_v6, %s2559_s22  ;;  %s2598_s22 = smov 122   ;;  %s2599_s23 = smov 113  }
  0xc6   : > { %592 = vrot.lane.b32.xlu0 %v530_v6, %s2549_s17 }
  0xcd   : > { %533 = vrot.lane.b32.xlu1 %v530_v6, %s2565_s16  ;;  %590 = vrot.lane.b32.xlu2 %v529_v7, %s2549_s17  ;;  %s2557_s17 = smov 2  }
  0xce   : > { %531 = vrot.lane.b32.xlu0 %v529_v7, %s2565_s16 }
  0xd5   : > { %569 = vrot.lane.b32.xlu1 %v530_v6, %s2551_s28  ;;  %543 = vrot.lane.b32.xlu2 %v529_v7, %s2576_s29 }
  0xd6   : > { %567 = vrot.lane.b32.xlu0 %v529_v7, %s2551_s28  ;;  %s2555_s28 = smov 116  }
  0xde   : > { %545 = vrot.lane.b32.xlu0 %v530_v6, %s2576_s29 }
  0xe7   : > { %v649_v8 = vpop.permute.xlu2 %648 }
  0xef   : > { %v1997_v9 = vpop.permute.xlu2 %596 }
  0xf7   : > { %v1999_v10 = vpop.permute.xlu2 %581 }
  0xff   : > { %v661_v11 = vpop.permute.xlu1 %660  ;;  %v2001_v12 = vpop.permute.xlu2 %573 }
 0x100   : > { %v659_v13 = vpop.permute.xlu0 %658  ;;  %686 = vrot.lane.b32.xlu2 %v661_v11, %s2557_s17 }
 0x101   : > { %v663_v14 = vsel %vm662_vm1, %v659_v13, %v661_v11 }
 0x102   : > { %684 = vrot.lane.b32.xlu1 %v663_v14, %s2557_s17 }
 0x107   : > { %v2006_v15 = vpop.permute.xlu2 %563  ;;  %v647_v16 = vpop.permute.xlu1 %646 }
 0x108   : > { %v585_v17 = vpop.permute.xlu0 %584  ;;  %v651_v33 = vsel %vm650_vm4, %v647_v16, %v649_v8 }
 0x10f   : > { %v2008_v18 = vpop.permute.xlu2 %549  ;;  %v587_v19 = vpop.permute.xlu1 %586 }
 0x110   : > { %v576_v20 = vpop.permute.xlu0 %575  ;;  %v589_v53 = vsel %vm588_vm10, %v585_v17, %v587_v19 }
 0x111   : > { %v578_v41 = vsel %vm577_vm5, %v2001_v12, %v576_v20 }
 0x117   : > { %v2010_v21 = vpop.permute.xlu1 %579  ;;  %v653_v22 = vpop.permute.xlu2 %652 }
 0x118   : > { %v2012_v23 = vpop.permute.xlu0 %551  ;;  %v583_v59 = vsel %vm2553_vm12, %v2010_v21, %v1999_v10 }
 0x119   : > { %v554_v3 = vsel %vm2554_vm14, %v2008_v18, %v2012_v23  ;;  %vm2569_vm14 = vcmask 949248  }
 0x11f   : > { %v562_v24 = vpop.permute.xlu1 %561  ;;  %v558_v25 = vpop.permute.xlu2 %557 }
 0x120   : > { %v2014_v26 = vpop.permute.xlu0 %537  ;;  %v665_v27 = vsel %vm604_vm2, %v1945_v5, %v558_v25  ;;  %v634_v30 = vsel %vm604_vm2, %v1999_v10, %v558_v25  ;;  %v566_v46 = vsel %vm565_vm7, %v562_v24, %v2006_v15  ;;  %v620_v62 = vsel %vm604_vm2, %v2012_v23, %v558_v25 }
 0x121   : > { %678 = vrot.lane.b32.xlu1 %v665_v27, %s2557_s17 }
 0x127   : > { %v2019_v28 = vpop.permute.xlu1 %539  ;;  %v591_v50 = vpop.permute.xlu2 %590 }
 0x128   : > { %v655_v29 = vpop.permute.xlu0 %654  ;;  %v542_v6 = vsel %vm541_vm15, %v2014_v26, %v2019_v28 }
 0x129   : > { %v671_v31 = vsel %vm604_vm2, %v649_v8, %v655_v29  ;;  %743 = vrot.lane.b32.xlu1 %v634_v30, %s2555_s28  ;;  %v657_v32 = vsel %vm656_vm3, %v653_v22, %v655_v29 }
 0x12a   : > { %682 = vrot.lane.b32.xlu2 %v671_v31, %s2557_s17  ;;  %v668_v36 = vsel %vm604_vm2, %v651_v33, %v657_v32 }
 0x12f   : > { %v556_v34 = vpop.permute.xlu1 %555  ;;  %v544_v0 = vpop.permute.xlu2 %543 }
 0x130   : > { %v599_v35 = vpop.permute.xlu0 %598  ;;  %v560_v45 = vsel %vm2584_vm6, %v556_v34, %v558_v25 }
 0x131   : > { %v643_v37 = vsel %vm604_vm2, %v1997_v9, %v599_v35  ;;  %680 = vrot.lane.b32.xlu1 %v668_v36, %s2557_s17  ;;  %v664_v48 = vsel %vm604_vm2, %v1942_v4, %v560_v45  ;;  %v632_v60 = vsel %vm604_vm2, %v583_v59, %v560_v45  ;;  %v617_v7 = vsel %vm604_vm2, %v554_v3, %v560_v45 }
 0x132   : > { %749 = vrot.lane.b32.xlu2 %v643_v37, %s2555_s28  ;;  %v1845_v45 = vmov 0  }
 0x133   : > { %1816 = vset.pattern.permute.xlu0 %v1845_v45  ;;  %1817 = vset.pattern.permute.xlu1 %v1845_v45 }
 0x134   : > { %1818 = vset.pattern.permute.xlu2 %v1845_v45 }
 0x137   : > { %v601_v38 = vpop.permute.xlu1 %600 }
 0x138   : > { %v593_v39 = vpop.permute.xlu0 %592  ;;  %v603_v51 = vsel %vm602_vm8, %v599_v35, %v601_v38 }
 0x139   : > { %v640_v40 = vsel %vm604_vm2, %v587_v19, %v593_v39  ;;  %v595_v52 = vsel %vm2578_vm9, %v591_v50, %v593_v39  ;;  %v645_v55 = vsel %vm604_vm2, %v1997_v9, %v603_v51 }
 0x13a   : > { %747 = vrot.lane.b32.xlu2 %v640_v40, %s2555_s28  ;;  %v637_v57 = vsel %vm604_vm2, %v589_v53, %v595_v52 }
 0x13f   : > { %v2037_v42 = vpop.permute.xlu1 %533 }
 0x140   : > { %v532_v43 = vpop.permute.xlu0 %531  ;;  %v630_v44 = vsel %vm604_vm2, %v578_v41, %v2037_v42  ;;  %v608_v20 = vsel %vm604_vm2, %v1945_v5, %v2037_v42 }
 0x141   : > { %739 = vrot.lane.b32.xlu0 %v630_v44, %s2555_s28  ;;  %v536_v58 = vsel %vm535_vm11, %v532_v43, %v2037_v42  ;;  %v693_v44 = vld [vmem:[%s2592_s2] sm:$0xff]  ;;  %s2623_s2 = smov 1  }
 0x142   : > { %v628_v61 = vsel %vm604_vm2, %v2001_v12, %v536_v58  ;;  %v606_v13 = vsel %vm604_vm2, %v1942_v4, %v536_v58 }
 0x147   : > { %v570_v63 = vpop.permute.xlu1 %569 }
 0x148   : > { %v568_v47 = vpop.permute.xlu0 %567 }
 0x149   : > { %v623_v49 = vsel %vm604_vm2, %v566_v46, %v568_v47  ;;  %676 = vrot.lane.b32.xlu0 %v664_v48, %s2557_s17  ;;  %v572_v1 = vsel %vm2583_vm13, %v568_v47, %v570_v63  ;;  %s2601_s17 = smov 123  }
 0x14a   : > { %733 = vrot.lane.b32.xlu1 %v623_v49, %s2555_s28  ;;  %v626_v8 = vsel %vm604_vm2, %v2006_v15, %v572_v1  ;;  %v692_v49 = vld [vmem:[%s2593_s1] sm:$0xff] }
 0x14b   : > { %v700_v50 = vunpack.c.l.b16 %v692_v49 }
 0x150   : > { %v546_v54 = vpop.permute.xlu0 %545 }
 0x151   : > { %v614_v56 = vsel %vm604_vm2, %v2019_v28, %v546_v54  ;;  %751 = vrot.lane.b32.xlu0 %v645_v55, %s2555_s28  ;;  %v548_v2 = vsel %vm2553_vm12, %v544_v0, %v546_v54  ;;  %vm2563_vm12 = vcmask 15360   ;;  %v702_v54 = vpack.c.b16 %v700_v50, %v700_v50 }
 0x152   : > { %727 = vrot.lane.b32.xlu2 %v614_v56, %s2555_s28  ;;  %745 = vrot.lane.b32.xlu1 %v637_v57, %s2555_s28  ;;  %v611_v9 = vsel %vm604_vm2, %v542_v6, %v548_v2  ;;  %v701_v55 = vunpack.c.h.b16 %v692_v49 }
 0x154   : > { %v703_v59 = vpack.c.b16 %v701_v55, %v701_v55 }
 0x159   : > { %741 = vrot.lane.b32.xlu0 %v632_v60, %s2555_s28 }
 0x15a   : > { %737 = vrot.lane.b32.xlu2 %v628_v61, %s2555_s28  ;;  %731 = vrot.lane.b32.xlu1 %v620_v62, %s2555_s28  ;;  %v687_v10 = vpop.permute.xlu2 %686 }
 0x161   : > { %729 = vrot.lane.b32.xlu0 %v617_v7, %s2555_s28 }
 0x162   : > { %735 = vrot.lane.b32.xlu2 %v626_v8, %s2555_s28  ;;  %725 = vrot.lane.b32.xlu1 %v611_v9, %s2555_s28 }
 0x174   : > { %v685_v11 = vpop.permute.xlu1 %684 }
 0x175   : > { %761 = vrot.lane.b32.xlu2 %v685_v11, %s2555_s28  ;;  %v691_v12 = vsel %vm2563_vm12, %v685_v11, %v687_v10 }
 0x176   : > { %763 = vrot.lane.b32.xlu0 %v691_v12, %s2555_s28 }
 0x17d   : > { %721 = vrot.lane.b32.xlu2 %v606_v13, %s2555_s28  ;;  %v848_v13 = vld [vmem:[%s2594_s4] sm:$0xff]  ;;  %s2628_s4 = smov 108  }
 0x184   : > { %v683_v16 = vpop.permute.xlu2 %682 }
 0x18c   : > { %v750_v19 = vpop.permute.xlu2 %749 }
 0x193   : > { %v679_v14 = vpop.permute.xlu1 %678 }
 0x194   : > { %v748_v21 = vpop.permute.xlu2 %747 }
 0x19b   : > { %v744_v15 = vpop.permute.xlu1 %743 }
 0x1a3   : > { %v681_v17 = vpop.permute.xlu1 %680 }
 0x1a4   : > { %757 = vrot.lane.b32.xlu0 %v681_v17, %s2555_s28  ;;  %v690_v18 = vsel %vm2563_vm12, %v681_v17, %v683_v16 }
 0x1a5   : > { %759 = vrot.lane.b32.xlu1 %v690_v18, %s2555_s28 }
 0x1ac   : > { %723 = vrot.lane.b32.xlu0 %v608_v20, %s2555_s28  ;;  %v728_v25 = vpop.permute.xlu2 %727 }
 0x1b3   : > { %v740_v4 = vpop.permute.xlu0 %739 }
 0x1b4   : > { %v738_v5 = vpop.permute.xlu2 %737  ;;  %696 = vperm.xlu0 %1816, %v693_v44  }
 0x1b5   : > { %v770_v33 = vsel %vm2569_vm14, %v738_v5, %v740_v4 }
 0x1bb   : > { %v677_v22 = vpop.permute.xlu0 %676 }
 0x1bc   : > { %v734_v23 = vpop.permute.xlu1 %733  ;;  %753 = vrot.lane.b32.xlu1 %v677_v22, %s2555_s28  ;;  %v689_v24 = vsel %vm2563_vm12, %v677_v22, %v679_v14  ;;  %v736_v34 = vpop.permute.xlu2 %735  ;;  %vm2564_vm12 = vcmask 326656  }
 0x1bd   : > { %755 = vrot.lane.b32.xlu2 %v689_v24, %s2555_s28  ;;  %v769_v35 = vsel %vm2569_vm14, %v734_v23, %v736_v34  ;;  %s1735_s28 = sshll.u32 %s2659_s19, 3 }
 0x1be   : > { %s504_s21 = scalar_lea.vmem %s2540_s13, %s1735_s28  ;;  %s2600_s28 = smov 7  }
 0x1c3   : > { %v752_v26 = vpop.permute.xlu0 %751 }
 0x1c4   : > { %v773_v27 = vsel %vm2569_vm14, %v750_v19, %v752_v26  ;;  %v746_v28 = vpop.permute.xlu1 %745 }
 0x1c5   : > { %794 = vmatpush.bf16.msra.mxu0 %v773_v27  ;;  %v772_v29 = vsel %vm2569_vm14, %v746_v28, %v748_v21  ;;  %v847_v21 = vld [vmem:[%s2595_s3] sm:$0xf]  ;;  %s2624_s3 = smov 126  }
 0x1c9   : > { %795 = vmatpush.bf16.msra.mxu0 %v772_v29 }
 0x1cb   : > { %v742_v30 = vpop.permute.xlu0 %741 }
 0x1cc   : > { %v771_v31 = vsel %vm2569_vm14, %v742_v30, %v744_v15  ;;  %v732_v32 = vpop.permute.xlu1 %731 }
 0x1cd   : > { %796 = vmatpush.bf16.msra.mxu0 %v771_v31 }
 0x1cf   : > { %v762_v40 = vpop.permute.xlu2 %761 }
 0x1d1   : > { %797 = vmatpush.bf16.msra.mxu0 %v770_v33 }
 0x1d3   : > { %v730_v36 = vpop.permute.xlu0 %729 }
 0x1d4   : > { %v768_v37 = vsel %vm2569_vm14, %v730_v36, %v732_v32  ;;  %v726_v38 = vpop.permute.xlu1 %725 }
 0x1d5   : > { %798 = vmatpush.bf16.msra.mxu0 %v769_v35  ;;  %v767_v39 = vsel %vm2569_vm14, %v726_v38, %v728_v25 }
 0x1d7   : > { %v722_v51 = vpop.permute.xlu2 %721 }
 0x1d9   : > { %799 = vmatpush.bf16.msra.mxu0 %v768_v37 }
 0x1dd   : > { %800 = vmatpush.bf16.msra.mxu0 %v767_v39 }
 0x1e8   : > { %v764_v41 = vpop.permute.xlu0 %763 }
 0x1e9   : > { %v776_v42 = vsel %vm2569_vm14, %v762_v40, %v764_v41 }
 0x1ea   : > { %v792_v43 = vsel %vm604_vm2, %v776_v42, 0 }
 0x1eb   : > { %812 = vmatpush.bf16.msra.mxu1 %v792_v43 }
 0x216   : > { %v758_v46 = vpop.permute.xlu0 %757 }
 0x217   : > { %v760_v47 = vpop.permute.xlu1 %759  ;;  %v756_v56 = vpop.permute.xlu2 %755 }
 0x218   : > { %v775_v48 = vsel %vm2569_vm14, %v758_v46, %v760_v47 }
 0x219   : > { %813 = vmatpush.bf16.msra.mxu1 %v775_v48 }
 0x21e   : > { %v724_v52 = vpop.permute.xlu0 %723 }
 0x21f   : > { %v766_v53 = vsel %vm2569_vm14, %v722_v51, %v724_v52 }
 0x220   : > { %801 = vmatpush.bf16.msra.mxu0 %v766_v53 }
 0x223   : > { %802 = vmatmul.bf16.vlgmr.msra.gmra.mxu0 %v702_v54 }
 0x226   : > { %v697_v62 = vpop.permute.xlu0 %696 }
 0x22e   : > { %v754_v57 = vpop.permute.xlu1 %753 }
 0x22f   : > { %v774_v58 = vsel %vm2569_vm14, %v754_v57, %v756_v56 }
 0x230   : > { %814 = vmatpush.bf16.msra.mxu1 %v774_v58 }
 0x233   : > { %1740 = vmatmul.msk.bf16.vlgmr.msra.gmra.mxu1 %vm2564_vm12, %v703_v59  ;;  %vm854_vm12 = vcmask 195584  }
 0x2a0   : > { %v803_v60 = vpop.f32.mrf.mxu0 }
 0x2a1   : > { %v804_v63 = vadd.f32 %v803_v60, %v697_v62 }
 0x2a8   : > { %v805_v61 = vpop.f32.mrf.mxu0 }
 0x2b0   : > { %v816_v0 = vpop.f32.mrf.mxu1 }
 0x2b1   : > { %v817_v1 = vadd.f32 %v816_v0, %v804_v63 }
 0x2b3   : > { %v820_v2 = vpack.c.bf16 %v817_v1, %v817_v1 }
 0x2b5   : > { %v822_v3 = vunpack.c.l.b16 %v820_v2 }
 0x2b7   : > { %v823_v6 = vpack.c.b16 %v822_v3, %v822_v3 }
 0x2b8   : > { %v818_v7 = vpop.f32.mrf.mxu1 }
 0x2b9   : > { %824 = vrot.lane.b32.xlu1 %v823_v6, %s2581_s30 }
 0x32b   : > { %v825_v8 = vpop.permute.xlu1 %824 }
 0x32c   : > { %v829_v9 = vsel %vm577_vm5, %v825_v8, 0  ;;  %v828_v10 = vsel %vm577_vm5, 0, %v825_v8 }
 0x32d   : > { %841 = vrot.lane.b32.xlu1 %v829_v9, %s2579_s20  ;;  %v833_v11 = vrot.slane %v829_v9, 4  ;;  %839 = vrot.lane.b32.xlu2 %v828_v10, %s2579_s20  ;;  %v832_v12 = vrot.slane %v828_v10, 4 }
 0x32f   : > { %836 = vrot.lane.b32.xlu0 %v833_v11, %s2565_s16 }
 0x335   : > { %834 = vrot.lane.b32.xlu2 %v832_v12, %s2565_s16  ;;  %851 = vperm.xlu1 %1817, %v848_v13   ;;  %s2596_s16 = smov 121  }
 0x387   : > { %v840_v14 = vpop.permute.xlu2 %839 }
 0x38f   : > { %v835_v17 = vpop.permute.xlu2 %834 }
 0x39f   : > { %v842_v15 = vpop.permute.xlu1 %841 }
 0x3a0   : > { %v843_v16 = vsel %vm541_vm15, %v840_v14, %v842_v15 }
 0x3a1   : > { %v837_v18 = vpop.permute.xlu0 %836  ;;  %v859_v19 = vsel %vm604_vm2, %v843_v16, 0 }
 0x3a2   : > { %v838_v20 = vsel %vm535_vm11, %v835_v17, %v837_v18  ;;  %867 = vmatpush.bf16.msra.mxu2 %v859_v19 }
 0x3a3   : > { %v845_v4 = vsel %vm604_vm2, %v828_v10, %v838_v20 }
 0x3a6   : > { %868 = vmatpush.bf16.msra.mxu2 %v845_v4 }
 0x3a7   : > { %v852_v22 = vpop.permute.xlu1 %851 }
 0x3a9   : > { %1741 = vmatmul.msk.bf16.vlgmr.msra.gmra.mxu2 %vm854_vm12, %v847_v21  ;;  %vm2607_vm12 = vcmask 1022976  }
 0x42c   : > { %v870_v23 = vpop.f32.mrf.mxu2 }
 0x42d   : > { %v871_v24 = vadd.f32 %v870_v23, %v852_v22 }
 0x42f   : > { %vm874_vm14 = vcmp.ge.f32.partialorder %v871_v24, 0.0  ;;  %v875_v25 = vmul.f32 0.1, %v871_v24 }
 0x431   : > { %v876_v26 = vsel %vm874_vm14, %v871_v24, %v875_v25  ;;  %vm2608_vm14 = vcmask 1014784  }
 0x432   : > { %877 = vst [vmem:[%s504_s21] sm:$0xff] %v876_v26  ;;  %v878_v27 = vpack.c.bf16 %v876_v26, %v876_v26  ;;  %s2597_s21 = smov 124  }
 0x434   : > { %v872_v28 = vpop.f32.mrf.mxu2  ;;  %v880_v5 = vunpack.c.l.b16 %v878_v27 }
 0x436   : > { %v881_v29 = vpack.c.b16 %v880_v5, %v880_v5 }
 0x438   : > { %882 = vrot.lane.b32.xlu2 %v881_v29, %s2575_s24  ;;  %s2605_s24 = smov 2  }
 0x492   : > { %v883_v30 = vpop.permute.xlu2 %882 }
 0x493   : > { %v2147_v31 = vsel %vm522_vm0, 0, %v883_v30  ;;  %v2150_v32 = vsel %vm522_vm0, %v883_v30, 0 }
 0x494   : > { %1006 = vrot.lane.b32.xlu1 %v2150_v32, %s2573_s26  ;;  %994 = vrot.lane.b32.xlu2 %v2147_v31, %s2571_s25  ;;  %v890_v33 = vrot.slane %v2150_v32, 4  ;;  %v889_v34 = vrot.slane %v2147_v31, 4 }
 0x495   : > { %1004 = vrot.lane.b32.xlu0 %v2147_v31, %s2573_s26  ;;  %s2604_s26 = smov 3  }
 0x49c   : > { %946 = vrot.lane.b32.xlu1 %v2147_v31, %s2570_s27  ;;  %936 = vrot.lane.b32.xlu2 %v2147_v31, %s2596_s16  ;;  %s2602_s27 = smov 119  }
 0x49d   : > { %996 = vrot.lane.b32.xlu0 %v2150_v32, %s2571_s25  ;;  %s2603_s25 = smov 127  }
 0x4a4   : > { %933 = vrot.lane.b32.xlu1 %v2150_v32, %s2576_s29  ;;  %928 = vrot.lane.b32.xlu2 %v2150_v32, %s2581_s30 }
 0x4a5   : > { %938 = vrot.lane.b32.xlu0 %v2150_v32, %s2596_s16 }
 0x4ac   : > { %926 = vrot.lane.b32.xlu1 %v2147_v31, %s2581_s30  ;;  %908 = vrot.lane.b32.xlu2 %v2150_v32, %s2597_s21  ;;  %s2627_s30 = smov 15  }
 0x4ad   : > { %931 = vrot.lane.b32.xlu0 %v2147_v31, %s2576_s29 }
 0x4b4   : > { %918 = vrot.lane.b32.xlu1 %v2150_v32, %s2598_s22  ;;  %896 = vrot.lane.b32.xlu2 %v2147_v31, %s2579_s20 }
 0x4b5   : > { %916 = vrot.lane.b32.xlu0 %v2147_v31, %s2598_s22 }
 0x4bc   : > { %906 = vrot.lane.b32.xlu1 %v2147_v31, %s2597_s21  ;;  %1001 = vrot.lane.b32.xlu2 %v890_v33, %s2599_s23 }
 0x4bd   : > { %898 = vrot.lane.b32.xlu0 %v2150_v32, %s2579_s20  ;;  %s2629_s20 = smov 118  }
 0x4c4   : > { %948 = vrot.lane.b32.xlu2 %v889_v34, %s2600_s28  ;;  %999 = vrot.lane.b32.xlu1 %v889_v34, %s2599_s23 }
 0x4c5   : > { %911 = vrot.lane.b32.xlu0 %v889_v34, %s2601_s17 }
 0x4cc   : > { %943 = vrot.lane.b32.xlu2 %v890_v33, %s2602_s27  ;;  %913 = vrot.lane.b32.xlu1 %v890_v33, %s2601_s17 }
 0x4cd   : > { %950 = vrot.lane.b32.xlu0 %v890_v33, %s2600_s28 }
 0x4d4   : > { %891 = vrot.lane.b32.xlu2 %v889_v34, %s2603_s25  ;;  %941 = vrot.lane.b32.xlu1 %v889_v34, %s2602_s27 }
 0x4d5   : > { %893 = vrot.lane.b32.xlu0 %v890_v33, %s2603_s25 }
 0x4dc   : > { %921 = vrot.lane.b32.xlu2 %v889_v34, %s2604_s26  ;;  %901 = vrot.lane.b32.xlu1 %v889_v34, %s2576_s29 }
 0x4dd   : > { %923 = vrot.lane.b32.xlu0 %v890_v33, %s2604_s26 }
 0x4e4   : > { %903 = vrot.lane.b32.xlu2 %v890_v33, %s2576_s29  ;;  %s2606_s29 = smov 116  }
 0x4ee   : > { %v995_v35 = vpop.permute.xlu2 %994 }
 0x4f6   : > { %v937_v36 = vpop.permute.xlu2 %936 }
 0x4fe   : > { %v929_v37 = vpop.permute.xlu2 %928 }
 0x506   : > { %v1007_v38 = vpop.permute.xlu1 %1006  ;;  %v2202_v39 = vpop.permute.xlu2 %908 }
 0x507   : > { %v1005_v40 = vpop.permute.xlu0 %1004  ;;  %1031 = vrot.lane.b32.xlu1 %v1007_v38, %s2605_s24 }
 0x508   : > { %v1008_v41 = vsel %vm662_vm1, %v1005_v40, %v1007_v38 }
 0x509   : > { %1029 = vrot.lane.b32.xlu0 %v1008_v41, %s2605_s24 }
 0x50e   : > { %v947_v42 = vpop.permute.xlu1 %946  ;;  %v2207_v43 = vpop.permute.xlu2 %896 }
 0x50f   : > { %v997_v44 = vpop.permute.xlu0 %996 }
 0x510   : > { %v998_v15 = vsel %vm650_vm4, %v995_v35, %v997_v44 }
 0x516   : > { %v934_v45 = vpop.permute.xlu1 %933  ;;  %v1002_v46 = vpop.permute.xlu2 %1001 }
 0x517   : > { %v939_v47 = vpop.permute.xlu0 %938  ;;  %v1016_v48 = vsel %vm604_vm2, %v997_v44, %v1002_v46 }
 0x518   : > { %v940_v49 = vsel %vm588_vm10, %v937_v36, %v939_v47  ;;  %1027 = vrot.lane.b32.xlu1 %v1016_v48, %s2605_s24 }
 0x51e   : > { %v927_v50 = vpop.permute.xlu1 %926  ;;  %v949_v51 = vpop.permute.xlu2 %948 }
 0x51f   : > { %v932_v52 = vpop.permute.xlu0 %931  ;;  %v991_v53 = vsel %vm604_vm2, %v947_v42, %v949_v51  ;;  %v930_v7 = vsel %vm577_vm5, %v927_v50, %v929_v37 }
 0x520   : > { %1103 = vrot.lane.b32.xlu1 %v991_v53, %s2606_s29  ;;  %v935_v26 = vsel %vm2607_vm12, %v932_v52, %v934_v45 }
 0x526   : > { %v919_v54 = vpop.permute.xlu1 %918  ;;  %v944_v55 = vpop.permute.xlu2 %943 }
 0x527   : > { %v917_v56 = vpop.permute.xlu0 %916  ;;  %v988_v57 = vsel %vm604_vm2, %v939_v47, %v944_v55 }
 0x528   : > { %1101 = vrot.lane.b32.xlu1 %v988_v57, %s2606_s29  ;;  %v920_v21 = vsel %vm565_vm7, %v917_v56, %v919_v54 }
 0x52e   : > { %v907_v58 = vpop.permute.xlu1 %906  ;;  %v892_v59 = vpop.permute.xlu2 %891 }
 0x52f   : > { %v899_v60 = vpop.permute.xlu0 %898  ;;  %v910_v5 = vsel %vm2608_vm14, %v907_v58, %v2202_v39  ;;  %vm2609_vm14 = vcmask 15360  }
 0x530   : > { %v900_v35 = vsel %vm541_vm15, %v2207_v43, %v899_v60 }
 0x536   : > { %v922_v61 = vpop.permute.xlu2 %921  ;;  %v1000_v62 = vpop.permute.xlu1 %999 }
 0x537   : > { %v912_v63 = vpop.permute.xlu0 %911  ;;  %v1003_v13 = vsel %vm656_vm3, %v1000_v62, %v1002_v46  ;;  %v971_v22 = vsel %vm604_vm2, %v920_v21, %v922_v61 }
 0x538   : > { %v1013_v17 = vsel %vm604_vm2, %v998_v15, %v1003_v13 }
 0x53e   : > { %v904_v0 = vpop.permute.xlu2 %903  ;;  %v914_v1 = vpop.permute.xlu1 %913 }
 0x53f   : > { %v951_v2 = vpop.permute.xlu0 %950  ;;  %v962_v3 = vsel %vm604_vm2, %v899_v60, %v904_v0  ;;  %v1010_v6 = vsel %vm604_vm2, %v2150_v32, %v914_v1  ;;  %v982_v9 = vsel %vm604_vm2, %v934_v45, %v914_v1  ;;  %v915_v14 = vsel %vm2584_vm6, %v912_v63, %v914_v1 }
 0x540   : > { %1081 = vrot.lane.b32.xlu1 %v962_v3, %s2606_s29  ;;  %1023 = vrot.lane.b32.xlu0 %v1010_v6, %s2605_s24  ;;  %v1009_v19 = vsel %vm604_vm2, %v2147_v31, %v915_v14  ;;  %v952_v4 = vsel %vm602_vm8, %v949_v51, %v951_v2  ;;  %v980_v28 = vsel %vm604_vm2, %v935_v26, %v915_v14 }
 0x541   : > { %v993_v23 = vsel %vm604_vm2, %v947_v42, %v952_v4  ;;  %v968_v29 = vsel %vm604_vm2, %v2202_v39, %v914_v1  ;;  %v965_v30 = vsel %vm604_vm2, %v910_v5, %v915_v14  ;;  %v1746_v4 = vld [vmem:[%s2619_s5 + $0x8] sm:$0xf0] }
 0x546   : > { %v942_v24 = vpop.permute.xlu1 %941 }
 0x547   : > { %v2222_v8 = vpop.permute.xlu0 %893  ;;  %v945_v25 = vsel %vm2578_vm9, %v942_v24, %v944_v55  ;;  %vm2611_vm9 = vcmask 949248   ;;  %v1039_v55 = vld [vmem:[%s2533_s6 + $0x8] sm:$0xff] }
 0x548   : > { %v895_v10 = vsel %vm535_vm11, %v892_v59, %v2222_v8  ;;  %v978_v11 = vsel %vm604_vm2, %v930_v7, %v2222_v8  ;;  %1097 = vrot.lane.b32.xlu0 %v982_v9, %s2606_s29  ;;  %v985_v27 = vsel %vm604_vm2, %v940_v49, %v945_v25  ;;  %vm2616_vm6 = vmmov %vm2611_vm9 }
 0x549   : > { %1093 = vrot.lane.b32.xlu2 %v978_v11, %s2606_s29  ;;  %v976_v12 = vsel %vm604_vm2, %v927_v50, %v895_v10  ;;  %v954_v40 = vsel %vm604_vm2, %v2147_v31, %v895_v10  ;;  %v1744_v11 = vld [vmem:[%s2619_s5] sm:$0xf] }
 0x54a   : > { %1091 = vrot.lane.b32.xlu1 %v976_v12, %s2606_s29  ;;  %v1783_v12 = vld [vmem:[%s2619_s5 + $0x4] sm:$0xf0] }
 0x54e   : > { %v902_v33 = vpop.permute.xlu1 %901 }
 0x54f   : > { %v924_v16 = vpop.permute.xlu0 %923  ;;  %v905_v34 = vsel %vm2607_vm12, %v902_v33, %v904_v0  ;;  %vm2610_vm12 = vmmov %vm2609_vm14 }
 0x550   : > { %v925_v18 = vsel %vm2583_vm13, %v922_v61, %v924_v16  ;;  %1025 = vrot.lane.b32.xlu0 %v1013_v17, %s2605_s24  ;;  %v959_v36 = vsel %vm604_vm2, %v900_v35, %v905_v34  ;;  %vm2615_vm13 = vmmov %vm2611_vm9  ;;  %v1745_v16 = vor.u32 %v1783_v12, %v1744_v11  ;;  %v1038_v17 = vld [vmem:[%s2533_s6] sm:$0xff] }
 0x551   : > { %1021 = vrot.lane.b32.xlu2 %v1009_v19, %s2605_s24  ;;  %v974_v20 = vsel %vm604_vm2, %v919_v54, %v925_v18  ;;  %v956_v54 = vsel %vm604_vm2, %v2150_v32, %v2222_v8 }
 0x552   : > { %1089 = vrot.lane.b32.xlu1 %v974_v20, %s2606_s29  ;;  %v1782_v20 = vld [vmem:[%s2619_s5 + $0x4] sm:$0xf]  ;;  %s509_s5 = scalar_lea.vmem %s2541_s14, %s1780_s0 }
 0x553   : > { %v1749_v24 = vor.u32 %v1782_v20, %v1746_v4 }
 0x558   : > { %1087 = vrot.lane.b32.xlu0 %v971_v22, %s2606_s29 }
 0x559   : > { %1105 = vrot.lane.b32.xlu2 %v993_v23, %s2606_s29 }
 0x560   : > { %1099 = vrot.lane.b32.xlu0 %v985_v27, %s2606_s29 }
 0x561   : > { %1095 = vrot.lane.b32.xlu2 %v980_v28, %s2606_s29 }
 0x568   : > { %1085 = vrot.lane.b32.xlu0 %v968_v29, %s2606_s29 }
 0x569   : > { %1083 = vrot.lane.b32.xlu2 %v965_v30, %s2606_s29 }
 0x570   : > { %1079 = vrot.lane.b32.xlu0 %v959_v36, %s2606_s29 }
 0x579   : > { %v1032_v37 = vpop.permute.xlu1 %1031 }
 0x57b   : > { %v1030_v38 = vpop.permute.xlu0 %1029 }
 0x57c   : > { %1115 = vrot.lane.b32.xlu1 %v1030_v38, %s2606_s29  ;;  %v1035_v39 = vsel %vm2609_vm14, %v1030_v38, %v1032_v37  ;;  %vm2612_vm14 = vmmov %vm2610_vm12 }
 0x57d   : > { %1117 = vrot.lane.b32.xlu2 %v1035_v39, %s2606_s29 }
 0x584   : > { %1075 = vrot.lane.b32.xlu1 %v954_v40, %s2606_s29 }
 0x58a   : > { %v1028_v42 = vpop.permute.xlu1 %1027 }
 0x592   : > { %v1104_v45 = vpop.permute.xlu1 %1103 }
 0x59a   : > { %v1102_v50 = vpop.permute.xlu1 %1101 }
 0x5a3   : > { %v1094_v41 = vpop.permute.xlu2 %1093 }
 0x5ab   : > { %v1022_v43 = vpop.permute.xlu2 %1021 }
 0x5b2   : > { %v1024_v44 = vpop.permute.xlu0 %1023  ;;  %v1082_v52 = vpop.permute.xlu1 %1081 }
 0x5b3   : > { %v1106_v46 = vpop.permute.xlu2 %1105  ;;  %v1033_v47 = vsel %vm2610_vm12, %v1022_v43, %v1024_v44  ;;  %vm2613_vm12 = vmmov %vm2611_vm9  ;;  %v1203_v44 = vld [vmem:[%s2535_s8] sm:$0xff] }
 0x5b4   : > { %1109 = vrot.lane.b32.xlu1 %v1033_v47, %s2606_s29  ;;  %v1126_v48 = vsel %vm2611_vm9, %v1104_v45, %v1106_v46  ;;  %v1204_v45 = vld [vmem:[%s2535_s8 + $0x8] sm:$0xff] }
 0x5b5   : > { %1146 = vmatpush.bf16.msra.mxu3 %v1126_v48 }
 0x5ba   : > { %v1098_v49 = vpop.permute.xlu0 %1097 }
 0x5bb   : > { %v1096_v58 = vpop.permute.xlu2 %1095 }
 0x5bc   : > { %v1092_v59 = vpop.permute.xlu1 %1091  ;;  %v1124_v60 = vsel %vm2613_vm12, %v1096_v58, %v1098_v49  ;;  %vm2618_vm12 = vmmov %vm2616_vm6 }
 0x5c2   : > { %v1026_v51 = vpop.permute.xlu0 %1025 }
 0x5c3   : > { %1111 = vrot.lane.b32.xlu2 %v1026_v51, %s2606_s29  ;;  %v1034_v31 = vsel %vm2612_vm14, %v1026_v51, %v1028_v42  ;;  %vm2614_vm14 = vmmov %vm2611_vm9  ;;  %v1084_v0 = vpop.permute.xlu2 %1083 }
 0x5c4   : > { %1113 = vrot.lane.b32.xlu0 %v1034_v31, %s2606_s29  ;;  %v1123_v32 = vsel %vm2614_vm14, %v1092_v59, %v1094_v41  ;;  %v1090_v62 = vpop.permute.xlu1 %1089  ;;  %vm2622_vm14 = vcmask 326656  }
 0x5ca   : > { %v1088_v53 = vpop.permute.xlu0 %1087 }
 0x5cb   : > { %1077 = vrot.lane.b32.xlu2 %v956_v54, %s2606_s29  ;;  %v1122_v63 = vsel %vm2615_vm13, %v1088_v53, %v1090_v62 }
 0x5cc   : > { %1107 = vrot.lane.b32.xlu0 %v1022_v43, %s2606_s29 }
 0x5d2   : > { %v1100_v56 = vpop.permute.xlu0 %1099 }
 0x5d3   : > { %v1125_v57 = vsel %vm2611_vm9, %v1100_v56, %v1102_v50  ;;  %vm2617_vm9 = vmmov %vm2616_vm6  ;;  %1042 = vperm.xlu2 %1818, %v1038_v17  }
 0x5d4   : > { %1047 = vperm.xlu0 %1816, %v1039_v55   ;;  %1147 = vmatpush.bf16.msra.mxu3 %v1125_v57 }
 0x5d7   : > { %v1118_v6 = vpop.permute.xlu2 %1117 }
 0x5d8   : > { %1148 = vmatpush.bf16.msra.mxu3 %v1124_v60 }
 0x5da   : > { %v1086_v61 = vpop.permute.xlu0 %1085 }
 0x5db   : > { %v1121_v1 = vsel %vm2616_vm6, %v1084_v0, %v1086_v61 }
 0x5dc   : > { %1149 = vmatpush.bf16.msra.mxu3 %v1123_v32 }
 0x5e0   : > { %1150 = vmatpush.bf16.msra.mxu3 %v1122_v63 }
 0x5e2   : > { %v1080_v2 = vpop.permute.xlu0 %1079 }
 0x5e3   : > { %v1120_v3 = vsel %vm2617_vm9, %v1080_v2, %v1082_v52  ;;  %vm2331_vm9 = vmneg %vm577_vm5  ;;  %v1784_v52 = vld [vmem:[%s2534_s7] sm:$0xff] }
 0x5e4   : > { %1151 = vmatpush.bf16.msra.mxu3 %v1121_v1 }
 0x5e8   : > { %1152 = vmatpush.bf16.msra.mxu3 %v1120_v3 }
 0x5ee   : > { %v1116_v7 = vpop.permute.xlu1 %1115 }
 0x5ef   : > { %v1129_v8 = vsel %vm2618_vm12, %v1116_v7, %v1118_v6  ;;  %vm1220_vm12 = vcmask 392192  }
 0x5f0   : > { %v1144_v9 = vsel %vm604_vm2, %v1129_v8, 0  ;;  %vm2620_vm2 = vmmov %vm2616_vm6 }
 0x5f1   : > { %1165 = vmatpush.bf16.msrb.mxu2 %v1144_v9  ;;  %vm2621_vm13 = vmmov %vm2620_vm2 }
 0x5f6   : > { %v1076_v13 = vpop.permute.xlu1 %1075 }
 0x61d   : > { %v1112_v10 = vpop.permute.xlu2 %1111 }
 0x625   : > { %v1078_v14 = vpop.permute.xlu2 %1077 }
 0x626   : > { %v1119_v15 = vsel %vm2616_vm6, %v1076_v13, %v1078_v14  ;;  %v1110_v21 = vpop.permute.xlu1 %1109 }
 0x627   : > { %1153 = vmatpush.bf16.msra.mxu3 %v1119_v15 }
 0x62a   : > { %1154 = vmatmul.bf16.vlgmr.msra.gmra.mxu3 %v1745_v16 }
 0x62d   : > { %v1043_v26 = vpop.permute.xlu2 %1042 }
 0x636   : > { %v1114_v18 = vpop.permute.xlu0 %1113 }
 0x637   : > { %v1128_v19 = vsel %vm2620_vm2, %v1112_v10, %v1114_v18 }
 0x638   : > { %1166 = vmatpush.bf16.msrb.mxu2 %v1128_v19 }
 0x63e   : > { %v1108_v22 = vpop.permute.xlu0 %1107 }
 0x63f   : > { %v1127_v23 = vsel %vm2621_vm13, %v1108_v22, %v1110_v21 }
 0x640   : > { %1167 = vmatpush.bf16.msrb.mxu2 %v1127_v23 }
 0x643   : > { %1750 = vmatmul.msk.bf16.vlgmr.msrb.gmra.mxu2 %vm2622_vm14, %v1749_v24 }
 0x646   : > { %v1048_v30 = vpop.permute.xlu0 %1047 }
 0x6ad   : > { %v1155_v25 = vpop.f32.mrf.mxu3 }
 0x6ae   : > { %v1156_v28 = vadd.f32 %v1155_v25, %v1043_v26 }
 0x6b5   : > { %v1157_v5 = vpop.f32.mrf.mxu3 }
 0x6b6   : > { %v1158_v33 = vadd.f32 %v1157_v5, %v1048_v30 }
 0x6c6   : > { %v1169_v27 = vpop.f32.mrf.mxu2 }
 0x6c7   : > { %v1170_v29 = vadd.f32 %v1169_v27, %v1156_v28 }
 0x6c9   : > { %v1174_v35 = vpack.c.bf16 %v1170_v29, %v1170_v29 }
 0x6cb   : > { %v1178_v38 = vunpack.c.l.b16 %v1174_v35 }
 0x6ce   : > { %v1171_v34 = vpop.f32.mrf.mxu2 }
 0x6cf   : > { %v1172_v36 = vadd.f32 %v1171_v34, %v1158_v33 }
 0x6d1   : > { %v1175_v37 = vpack.c.bf16 %v1172_v36, %v1172_v36 }
 0x6d3   : > { %v1179_v39 = vunpack.c.l.b16 %v1175_v37 }
 0x6d5   : > { %v1180_v40 = vpack.c.b16 %v1179_v39, %v1178_v38 }
 0x6d7   : > { %1181 = vrot.lane.b32.xlu1 %v1180_v40, %s2623_s2 }
 0x749   : > { %v1182_v41 = vpop.permute.xlu1 %1181 }
 0x74a   : > { %v1186_v42 = vsel %vm577_vm5, %v1182_v41, 0  ;;  %v1184_v43 = vsel %vm577_vm5, 0, %v1182_v41 }
 0x74b   : > { %1197 = vrot.lane.b32.xlu0 %v1186_v42, %s2624_s3  ;;  %1189 = vrot.lane.b32.xlu1 %v1184_v43, %s2603_s25 }
 0x74c   : > { %1195 = vrot.lane.b32.xlu2 %v1184_v43, %s2624_s3 }
 0x753   : > { %1207 = vperm.xlu0 %1816, %v1203_v44   ;;  %1212 = vperm.xlu1 %1817, %v1204_v45  }
 0x754   : > { %1191 = vrot.lane.b32.xlu2 %v1186_v42, %s2603_s25 }
 0x7a6   : > { %v1196_v46 = vpop.permute.xlu2 %1195 }
 0x7ae   : > { %v1192_v50 = vpop.permute.xlu2 %1191 }
 0x7bd   : > { %v1198_v47 = vpop.permute.xlu0 %1197  ;;  %v1190_v49 = vpop.permute.xlu1 %1189 }
 0x7be   : > { %v1199_v48 = vsel %vm541_vm15, %v1196_v46, %v1198_v47  ;;  %v1193_v51 = vsel %vm535_vm11, %v1190_v49, %v1192_v50 }
 0x7bf   : > { %1229 = vmatpush.bf16.msrb.mxu1 %v1199_v48 }
 0x7c3   : > { %1230 = vmatpush.bf16.msrb.mxu1 %v1193_v51 }
 0x7c5   : > { %v1208_v53 = vpop.permute.xlu0 %1207  ;;  %v1213_v58 = vpop.permute.xlu1 %1212 }
 0x7c7   : > { %1756 = vmatpush.bf16.msk.msrb.mxu1 %vm2331_vm9, %v1182_v41 }
 0x7ca   : > { %1757 = vmatmul.msk.bf16.vlgmr.msrb.gmra.mxu1 %vm1220_vm12, %v1784_v52 }
 0x847   : > { %v1233_v54 = vpop.f32.mrf.mxu1 }
 0x848   : > { %v1234_v55 = vadd.f32 %v1233_v54, %v1208_v53 }
 0x84a   : > { %vm1238_vm6 = vcmp.ge.f32.partialorder %v1234_v55, 0.0  ;;  %v1240_v56 = vmul.f32 0.1, %v1234_v55 }
 0x84c   : > { %v1242_v57 = vsel %vm1238_vm6, %v1234_v55, %v1240_v56 }
 0x84d   : > { %1244 = vst [vmem:[%s509_s5] sm:$0xff] %v1242_v57  ;;  %v1246_v32 = vpack.c.bf16 %v1242_v57, %v1242_v57 }
 0x84f   : > { %v1235_v59 = vpop.f32.mrf.mxu1  ;;  %v1250_v0 = vunpack.c.l.b16 %v1246_v32 }
 0x850   : > { %v1236_v60 = vadd.f32 %v1235_v59, %v1213_v58 }
 0x852   : > { %vm1239_vm2 = vcmp.ge.f32.partialorder %v1236_v60, 0.0  ;;  %v1241_v61 = vmul.f32 0.1, %v1236_v60 }
 0x854   : > { %v1243_v62 = vsel %vm1239_vm2, %v1236_v60, %v1241_v61 }
 0x855   : > { %1245 = vst [vmem:[%s509_s5 + $0x8] sm:$0xff] %v1243_v62  ;;  %v1247_v63 = vpack.c.bf16 %v1243_v62, %v1243_v62  ;;  %s2630_s5 = smov 12  }
 0x857   : > { %v1251_v1 = vunpack.c.l.b16 %v1247_v63 }
 0x859   : > { %v1252_v2 = vpack.c.b16 %v1251_v1, %v1250_v0 }
 0x85b   : > { %1253 = vrot.lane.b32.xlu2 %v1252_v2, %s2627_s30 }
 0x8b5   : > { %v1254_v3 = vpop.permute.xlu2 %1253 }
 0x8b6   : > { %v1256_v6 = vsel %vm522_vm0, 0, %v1254_v3  ;;  %v1257_v7 = vsel %vm522_vm0, %v1254_v3, 0  ;;  %vm2632_vm0 = vcmask 1014784  }
 0x8b7   : > { %1329 = vrot.lane.b32.xlu1 %v1257_v7, %s2628_s4  ;;  %1322 = vrot.lane.b32.xlu2 %v1256_v6, %s2599_s23 }
 0x8b8   : > { %1327 = vrot.lane.b32.xlu0 %v1256_v6, %s2628_s4 }
 0x8bf   : > { %1317 = vrot.lane.b32.xlu1 %v1256_v6, %s2629_s20  ;;  %1319 = vrot.lane.b32.xlu2 %v1257_v7, %s2629_s20 }
 0x8c0   : > { %1324 = vrot.lane.b32.xlu0 %v1257_v7, %s2599_s23  ;;  %s2631_s23 = smov 125  }
 0x8c7   : > { %1282 = vrot.lane.b32.xlu1 %v1257_v7, %s2601_s17  ;;  %1290 = vrot.lane.b32.xlu2 %v1256_v6, %s2604_s26 }
 0x8c8   : > { %1280 = vrot.lane.b32.xlu0 %v1256_v6, %s2601_s17 }
 0x8cf   : > { %1285 = vrot.lane.b32.xlu1 %v1256_v6, %s2598_s22  ;;  %1287 = vrot.lane.b32.xlu2 %v1257_v7, %s2598_s22  ;;  %s514_s22 = scalar_lea.vmem %s2542_s15, %s1780_s0 }
 0x8d0   : > { %1292 = vrot.lane.b32.xlu0 %v1257_v7, %s2604_s26 }
 0x8d7   : > { %1314 = vrot.lane.b32.xlu1 %v1257_v7, %s2600_s28  ;;  %1275 = vrot.lane.b32.xlu2 %v1256_v6, %s2597_s21 }
 0x8d8   : > { %1312 = vrot.lane.b32.xlu0 %v1256_v6, %s2600_s28 }
 0x8df   : > { %1310 = vrot.lane.b32.xlu1 %v1256_v6, %s2630_s5  ;;  %1270 = vrot.lane.b32.xlu2 %v1256_v6, %s2631_s23 }
 0x8e0   : > { %1277 = vrot.lane.b32.xlu0 %v1257_v7, %s2597_s21 }
 0x8e7   : > { %1305 = vrot.lane.b32.xlu1 %v1256_v6, %s2602_s27  ;;  %1307 = vrot.lane.b32.xlu2 %v1257_v7, %s2602_s27 }
 0x8e8   : > { %1272 = vrot.lane.b32.xlu0 %v1257_v7, %s2631_s23 }
 0x8ef   : > { %1267 = vrot.lane.b32.xlu1 %v1257_v7, %s2624_s3  ;;  %1300 = vrot.lane.b32.xlu2 %v1256_v6, %s2596_s16 }
 0x8f0   : > { %1265 = vrot.lane.b32.xlu0 %v1256_v6, %s2624_s3 }
 0x8f7   : > { %1262 = vrot.lane.b32.xlu1 %v1257_v7, %s2603_s25  ;;  %1295 = vrot.lane.b32.xlu2 %v1256_v6, %s2623_s2 }
 0x8f8   : > { %1302 = vrot.lane.b32.xlu0 %v1257_v7, %s2596_s16 }
 0x8ff   : > { %1332 = vrot.lane.b32.xlu1 %v1256_v6, %s2605_s24  ;;  %1334 = vrot.lane.b32.xlu2 %v1257_v7, %s2605_s24 }
 0x900   : > { %1260 = vrot.lane.b32.xlu0 %v1256_v6, %s2603_s25 }
 0x907   : > { %1388 = vrot.lane.b32.xlu1 %v1256_v6, %s2606_s29  ;;  %1390 = vrot.lane.b32.xlu2 %v1257_v7, %s2606_s29 }
 0x908   : > { %1297 = vrot.lane.b32.xlu0 %v1257_v7, %s2623_s2 }
 0x911   : > { %v1323_v8 = vpop.permute.xlu2 %1322 }
 0x919   : > { %v1320_v9 = vpop.permute.xlu2 %1319 }
 0x921   : > { %v2383_v10 = vpop.permute.xlu2 %1290 }
 0x929   : > { %v1330_v11 = vpop.permute.xlu1 %1329  ;;  %v1288_v12 = vpop.permute.xlu2 %1287 }
 0x92a   : > { %v1328_v13 = vpop.permute.xlu0 %1327  ;;  %1350 = vrot.lane.b32.xlu2 %v1330_v11, %s2605_s24 }
 0x92b   : > { %v1331_v14 = vsel %vm662_vm1, %v1328_v13, %v1330_v11  ;;  %vm2633_vm1 = vcmask 1022976  }
 0x931   : > { %v1318_v15 = vpop.permute.xlu1 %1317  ;;  %v1276_v16 = vpop.permute.xlu2 %1275 }
 0x932   : > { %v1321_v17 = vsel %vm650_vm4, %v1318_v15, %v1320_v9  ;;  %v1325_v18 = vpop.permute.xlu0 %1324  ;;  %1342 = vrot.lane.b32.xlu2 %v1320_v9, %s2605_s24  ;;  %vm2635_vm4 = vmmov %vm2621_vm13 }
 0x933   : > { %1346 = vrot.lane.b32.xlu0 %v1325_v18, %s2605_s24  ;;  %v1326_v24 = vsel %vm656_vm3, %v1323_v8, %v1325_v18  ;;  %vm2634_vm3 = vcmask 1006592   ;;  %vm2641_vm6 = vmmov %vm2635_vm4 }
 0x934   : > { %vm2642_vm2 = vmmov %vm2635_vm4 }
 0x939   : > { %v1283_v19 = vpop.permute.xlu1 %1282  ;;  %v1271_v20 = vpop.permute.xlu2 %1270 }
 0x93a   : > { %v1281_v4 = vpop.permute.xlu0 %1280  ;;  %1338 = vrot.lane.b32.xlu1 %v1283_v19, %s2605_s24  ;;  %1410 = vrot.lane.b32.xlu2 %v1283_v19, %s2606_s29 }
 0x93b   : > { %1416 = vrot.lane.b32.xlu0 %v2383_v10, %s2606_s29  ;;  %v1284_v45 = vsel %vm2634_vm3, %v1281_v4, %v1283_v19  ;;  %vm2645_vm3 = vmmov %vm2642_vm2 }
 0x941   : > { %v1286_v21 = vpop.permute.xlu1 %1285  ;;  %v1308_v22 = vpop.permute.xlu2 %1307 }
 0x942   : > { %v1293_v23 = vpop.permute.xlu0 %1292  ;;  %1430 = vrot.lane.b32.xlu2 %v1308_v22, %s2606_s29  ;;  %v1289_v28 = vsel %vm565_vm7, %v1286_v21, %v1288_v12  ;;  %vm2636_vm7 = vcmask 23552  }
 0x943   : > { %1414 = vrot.lane.b32.xlu0 %v1288_v12, %s2606_s29  ;;  %v1294_v51 = vsel %vm2636_vm7, %v2383_v10, %v1293_v23  ;;  %vm2647_vm7 = vmmov %vm2642_vm2 }
 0x949   : > { %v1315_v25 = vpop.permute.xlu1 %1314  ;;  %v1301_v35 = vpop.permute.xlu2 %1300 }
 0x94a   : > { %v1313_v26 = vpop.permute.xlu0 %1312  ;;  %1344 = vrot.lane.b32.xlu2 %v1326_v24, %s2605_s24 }
 0x94b   : > { %v1316_v27 = vsel %vm602_vm8, %v1313_v26, %v1315_v25  ;;  %1434 = vrot.lane.b32.xlu0 %v1313_v26, %s2606_s29  ;;  %vm2637_vm8 = vcmask 973824  }
 0x951   : > { %v1311_v5 = vpop.permute.xlu1 %1310  ;;  %v1296_v39 = vpop.permute.xlu2 %1295 }
 0x952   : > { %v1278_v29 = vpop.permute.xlu0 %1277  ;;  %1432 = vrot.lane.b32.xlu1 %v1311_v5, %s2606_s29  ;;  %1412 = vrot.lane.b32.xlu2 %v1289_v28, %s2606_s29 }
 0x953   : > { %1406 = vrot.lane.b32.xlu0 %v1278_v29, %s2606_s29  ;;  %v1279_v30 = vsel %vm2632_vm0, %v1276_v16, %v1278_v29 }
 0x959   : > { %v1306_v33 = vpop.permute.xlu1 %1305  ;;  %v1335_v43 = vpop.permute.xlu2 %1334 }
 0x95a   : > { %v1273_v34 = vpop.permute.xlu0 %1272  ;;  %1404 = vrot.lane.b32.xlu2 %v1279_v30, %s2606_s29  ;;  %v1309_v56 = vsel %vm2637_vm8, %v1306_v33, %v1308_v22  ;;  %vm2648_vm8 = vmmov %vm2642_vm2  ;;  %v1362_v33 = vld [vmem:[%s2537_s10 + $0x8] sm:$0xff] }
 0x95b   : > { %1402 = vrot.lane.b32.xlu0 %v1273_v34, %s2606_s29  ;;  %v1274_v36 = vsel %vm2633_vm1, %v1271_v20, %v1273_v34  ;;  %v1361_v20 = vld [vmem:[%s2537_s10] sm:$0xff] }
 0x961   : > { %v1268_v37 = vpop.permute.xlu1 %1267  ;;  %v1391_v46 = vpop.permute.xlu2 %1390 }
 0x962   : > { %v1266_v38 = vpop.permute.xlu0 %1265  ;;  %1398 = vrot.lane.b32.xlu1 %v1268_v37, %s2606_s29  ;;  %1400 = vrot.lane.b32.xlu2 %v1274_v36, %s2606_s29 }
 0x963   : > { %v1269_v48 = vsel %vm541_vm15, %v1266_v38, %v1268_v37  ;;  %v1760_v37 = vld [vmem:[%s2536_s9] sm:$0xf]  ;;  %v1786_v38 = vld [vmem:[%s2536_s9 + $0x8] sm:$0xf0] }
 0x969   : > { %v1263_v40 = vpop.permute.xlu1 %1262 }
 0x96a   : > { %v1303_v41 = vpop.permute.xlu0 %1302  ;;  %1394 = vrot.lane.b32.xlu1 %v1263_v40, %s2606_s29 }
 0x96b   : > { %v1304_v42 = vsel %vm588_vm10, %v1301_v35, %v1303_v41  ;;  %1426 = vrot.lane.b32.xlu0 %v1303_v41, %s2606_s29  ;;  %vm2638_vm10 = vcmask 15360   ;;  %v1761_v41 = vor.u32 %v1786_v38, %v1760_v37 }
 0x96c   : > { %1424 = vrot.lane.b32.xlu2 %v1304_v42, %s2606_s29  ;;  %vm2639_vm13 = vmmov %vm2638_vm10 }
 0x96d   : > { %vm2640_vm14 = vmmov %vm2638_vm10 }
 0x96e   : > { %vm2643_vm0 = vmmov %vm2638_vm10 }
 0x96f   : > { %vm2644_vm1 = vmmov %vm2643_vm0 }
 0x971   : > { %v2414_v44 = vpop.permute.xlu1 %1332 }
 0x972   : > { %1348 = vrot.lane.b32.xlu1 %v1331_v14, %s2605_s24  ;;  %v1261_v50 = vpop.permute.xlu0 %1260  ;;  %v1352_v4 = vsel %vm2643_vm0, %v2414_v44, %v1335_v43  ;;  %vm2653_vm0 = vmmov %vm2642_vm2 }
 0x973   : > { %1336 = vrot.lane.b32.xlu0 %v1284_v45, %s2605_s24  ;;  %v1264_v52 = vsel %vm535_vm11, %v1261_v50, %v1263_v40 }
 0x979   : > { %v1389_v47 = vpop.permute.xlu1 %1388 }
 0x97a   : > { %1340 = vrot.lane.b32.xlu1 %v1321_v17, %s2605_s24  ;;  %v2422_v49 = vsel %vm2635_vm4, %v1389_v47, %v1391_v46  ;;  %v1298_v58 = vpop.permute.xlu0 %1297  ;;  %vm2646_vm4 = vmmov %vm2642_vm2  ;;  %v1785_v47 = vld [vmem:[%s2536_s9 + $0x4] sm:$0xf] }
 0x97b   : > { %1396 = vrot.lane.b32.xlu0 %v1269_v48, %s2606_s29  ;;  %v1299_v16 = vsel %vm577_vm5, %v1296_v39, %v1298_v58  ;;  %v1762_v48 = vld [vmem:[%s2536_s9 + $0xc] sm:$0xf0] }
 0x982   : > { %1418 = vrot.lane.b32.xlu1 %v1294_v51, %s2606_s29 }
 0x983   : > { %1392 = vrot.lane.b32.xlu0 %v1264_v52, %s2606_s29 }
 0x984   : > { %v1351_v53 = vpop.permute.xlu2 %1350 }
 0x98a   : > { %1408 = vrot.lane.b32.xlu1 %v1284_v45, %s2606_s29 }
 0x98c   : > { %v1343_v54 = vpop.permute.xlu2 %1342 }
 0x992   : > { %1436 = vrot.lane.b32.xlu1 %v1316_v27, %s2606_s29 }
 0x994   : > { %v1411_v55 = vpop.permute.xlu2 %1410 }
 0x99a   : > { %1428 = vrot.lane.b32.xlu1 %v1309_v56, %s2606_s29 }
 0x99c   : > { %v2434_v57 = vpop.permute.xlu2 %1430 }
 0x9a4   : > { %v1345_v59 = vpop.permute.xlu2 %1344 }
 0x9a5   : > { %1450 = vrot.lane.b32.xlu2 %v1345_v59, %s2606_s29  ;;  %v1347_v60 = vpop.permute.xlu0 %1346 }
 0x9a6   : > { %v1355_v13 = vsel %vm2639_vm13, %v1345_v59, %v1347_v60  ;;  %vm2650_vm13 = vmmov %vm2642_vm2  ;;  %v1768_v60 = vld [vmem:[%s2536_s9 + $0x8] sm:$0xf] }
 0x9ac   : > { %v1339_v62 = vpop.permute.xlu1 %1338  ;;  %v1413_v12 = vpop.permute.xlu2 %1412 }
 0x9ad   : > { %v1417_v61 = vpop.permute.xlu0 %1416 }
 0x9b4   : > { %v1405_v19 = vpop.permute.xlu2 %1404 }
 0x9b5   : > { %v1415_v32 = vpop.permute.xlu0 %1414 }
 0x9b6   : > { %v1464_v18 = vsel %vm2642_vm2, %v1413_v12, %v1415_v32 }
 0x9bc   : > { %v1401_v26 = vpop.permute.xlu2 %1400 }
 0x9bd   : > { %v1435_v63 = vpop.permute.xlu0 %1434 }
 0x9c4   : > { %v1433_v0 = vpop.permute.xlu1 %1432 }
 0x9c5   : > { %v1407_v1 = vpop.permute.xlu0 %1406 }
 0x9c6   : > { %v1462_v25 = vsel %vm2646_vm4, %v1405_v19, %v1407_v1  ;;  %vm2656_vm4 = vmmov %vm2653_vm0 }
 0x9cd   : > { %v1403_v3 = vpop.permute.xlu0 %1402 }
 0x9ce   : > { %v1461_v5 = vsel %vm2648_vm8, %v1401_v26, %v1403_v3  ;;  %vm1493_vm8 = vcmask 654336  }
 0x9d4   : > { %v1399_v2 = vpop.permute.xlu1 %1398 }
 0x9dc   : > { %v1395_v6 = vpop.permute.xlu1 %1394 }
 0x9dd   : > { %v1427_v7 = vpop.permute.xlu0 %1426 }
 0x9e4   : > { %v1349_v8 = vpop.permute.xlu1 %1348 }
 0x9e5   : > { %v1356_v9 = vsel %vm2638_vm10, %v1349_v8, %v1351_v53  ;;  %1454 = vrot.lane.b32.xlu1 %v1349_v8, %s2606_s29  ;;  %v1337_v11 = vpop.permute.xlu0 %1336  ;;  %vm2649_vm10 = vmmov %vm2642_vm2  ;;  %v1765_v53 = vor.u32 %v1785_v47, %v1762_v48 }
 0x9e6   : > { %1456 = vrot.lane.b32.xlu2 %v1356_v9, %s2606_s29  ;;  %v1353_v21 = vsel %vm2644_vm1, %v1337_v11, %v1339_v62  ;;  %vm2654_vm1 = vmmov %vm2653_vm0 }
 0x9ec   : > { %v1341_v10 = vpop.permute.xlu1 %1340 }
 0x9ed   : > { %1420 = vrot.lane.b32.xlu1 %v1296_v39, %s2606_s29  ;;  %1446 = vrot.lane.b32.xlu0 %v1341_v10, %s2606_s29  ;;  %v1354_v14 = vsel %vm2640_vm14, %v1341_v10, %v1343_v54  ;;  %v1397_v24 = vpop.permute.xlu0 %1396  ;;  %vm2651_vm14 = vmmov %vm2642_vm2  ;;  %v1425_v39 = vpop.permute.xlu2 %1424 }
 0x9ee   : > { %1442 = vrot.lane.b32.xlu2 %v1337_v11, %s2606_s29  ;;  %v1460_v29 = vsel %vm2649_vm10, %v1397_v24, %v1399_v2  ;;  %v1568_v24 = vld [vmem:[%s2539_s12] sm:$0xff] }
 0x9f4   : > { %v1419_v15 = vpop.permute.xlu1 %1418 }
 0x9f5   : > { %v1465_v17 = vsel %vm2641_vm6, %v1417_v61, %v1419_v15  ;;  %1448 = vrot.lane.b32.xlu1 %v1354_v14, %s2606_s29  ;;  %1452 = vrot.lane.b32.xlu0 %v1355_v13, %s2606_s29  ;;  %v1393_v30 = vpop.permute.xlu0 %1392  ;;  %vm2652_vm6 = vmmov %vm2642_vm2  ;;  %v1787_v61 = vld [vmem:[%s2536_s9 + $0x10] sm:$0xf0] }
 0x9f6   : > { %1497 = vmatpush.bf16.msra.mxu2 %v1465_v17  ;;  %1422 = vrot.lane.b32.xlu2 %v1299_v16, %s2606_s29  ;;  %v1459_v35 = vsel %vm2650_vm13, %v1393_v30, %v1395_v6  ;;  %v1467_v40 = vsel %vm2652_vm6, %v1425_v39, %v1427_v7 }
 0x9fa   : > { %1498 = vmatpush.bf16.msra.mxu2 %v1464_v18 }
 0x9fc   : > { %v1409_v22 = vpop.permute.xlu1 %1408 }
 0x9fd   : > { %1440 = vrot.lane.b32.xlu1 %v1352_v4, %s2606_s29  ;;  %1444 = vrot.lane.b32.xlu0 %v1353_v21, %s2606_s29  ;;  %v1463_v23 = vsel %vm2645_vm3, %v1409_v22, %v1411_v55  ;;  %vm2655_vm3 = vmmov %vm2653_vm0 }
 0x9fe   : > { %1499 = vmatpush.bf16.msra.mxu2 %v1463_v23  ;;  %1365 = vperm.xlu2 %1818, %v1361_v20  }
 0x9ff   : > { %v1451_v42 = vpop.permute.xlu2 %1450 }
 0xa02   : > { %1500 = vmatpush.bf16.msra.mxu2 %v1462_v25  ;;  %v1569_v25 = vld [vmem:[%s2539_s12 + $0x8] sm:$0xff] }
 0xa04   : > { %v1437_v27 = vpop.permute.xlu1 %1436 }
 0xa05   : > { %v1469_v28 = vsel %vm2647_vm7, %v1435_v63, %v1437_v27  ;;  %1438 = vrot.lane.b32.xlu0 %v2414_v44, %s2606_s29  ;;  %vm2657_vm7 = vmmov %vm2653_vm0 }
 0xa06   : > { %1501 = vmatpush.bf16.msra.mxu2 %v1461_v5  ;;  %1511 = vmatpush.bf16.msra.mxu1 %v1469_v28 }
 0xa0a   : > { %1502 = vmatpush.bf16.msra.mxu2 %v1460_v29  ;;  %1512 = vmatpush.bf16.msra.mxu1 %v1433_v0  ;;  %v1769_v0 = vor.u32 %v1787_v61, %v1768_v60 }
 0xa0c   : > { %v1429_v34 = vpop.permute.xlu1 %1428 }
 0xa0d   : > { %1370 = vperm.xlu0 %1816, %v1362_v33   ;;  %v1468_v36 = vsel %vm2651_vm14, %v1429_v34, %v2434_v57  ;;  %v1788_v33 = vld [vmem:[%s2538_s11] sm:$0xff] }
 0xa0e   : > { %1503 = vmatpush.bf16.msra.mxu2 %v1459_v35  ;;  %1513 = vmatpush.bf16.msra.mxu1 %v1468_v36 }
 0xa12   : > { %1504 = vmatpush.bf16.msra.mxu2 %v2422_v49  ;;  %1514 = vmatpush.bf16.msra.mxu1 %v1467_v40 }
 0xa15   : > { %1505 = vmatmul.bf16.vlgmr.msra.gmra.mxu2 %v1761_v41 }
 0xa16   : > { %1515 = vmatpush.bf16.msra.mxu1 %v1463_v23 }
 0xa1a   : > { %1516 = vmatpush.bf16.msra.mxu1 %v1461_v5 }
 0xa1e   : > { %1517 = vmatpush.bf16.msra.mxu1 %v1459_v35 }
 0xa40   : > { %v1457_v43 = vpop.permute.xlu2 %1456 }
 0xa48   : > { %v1443_v44 = vpop.permute.xlu2 %1442 }
 0xa50   : > { %v1423_v49 = vpop.permute.xlu2 %1422 }
 0xa57   : > { %v1455_v45 = vpop.permute.xlu1 %1454 }
 0xa58   : > { %v1474_v46 = vsel %vm2642_vm2, %v1455_v45, %v1457_v43  ;;  %v1366_v3 = vpop.permute.xlu2 %1365 }
 0xa59   : > { %1528 = vmatpush.bf16.msrb.mxu0 %v1474_v46 }
 0xa5f   : > { %v1421_v50 = vpop.permute.xlu1 %1420  ;;  %v1447_v51 = vpop.permute.xlu0 %1446 }
 0xa60   : > { %v1466_v52 = vsel %vm2653_vm0, %v1421_v50, %v1423_v49 }
 0xa61   : > { %1518 = vmatpush.bf16.msra.mxu1 %v1466_v52 }
 0xa64   : > { %1519 = vmatmul.bf16.vlgmr.msra.gmra.mxu1 %v1765_v53 }
 0xa67   : > { %v1453_v54 = vpop.permute.xlu0 %1452  ;;  %v1449_v56 = vpop.permute.xlu1 %1448 }
 0xa68   : > { %v1473_v55 = vsel %vm2654_vm1, %v1451_v42, %v1453_v54  ;;  %v1472_v57 = vsel %vm2655_vm3, %v1447_v51, %v1449_v56 }
 0xa69   : > { %1529 = vmatpush.bf16.msrb.mxu0 %v1473_v55 }
 0xa6d   : > { %1530 = vmatpush.bf16.msrb.mxu0 %v1472_v57 }
 0xa6f   : > { %v1445_v58 = vpop.permute.xlu0 %1444  ;;  %v1441_v32 = vpop.permute.xlu1 %1440 }
 0xa70   : > { %v1471_v59 = vsel %vm2656_vm4, %v1443_v44, %v1445_v58 }
 0xa71   : > { %1531 = vmatpush.bf16.msrb.mxu0 %v1471_v59 }
 0xa77   : > { %v1439_v62 = vpop.permute.xlu0 %1438 }
 0xa78   : > { %v1470_v63 = vsel %vm2657_vm7, %v1439_v62, %v1441_v32 }
 0xa79   : > { %1532 = vmatpush.bf16.msrb.mxu0 %v1470_v63 }
 0xa7c   : > { %1770 = vmatmul.msk.bf16.vlgmr.msrb.gmra.mxu0 %vm1493_vm8, %v1769_v0 }
 0xa7f   : > { %v1371_v10 = vpop.permute.xlu0 %1370 }
 0xa98   : > { %v1506_v1 = vpop.f32.mrf.mxu2 }
 0xa99   : > { %v1507_v7 = vadd.f32 %v1506_v1, %v1366_v3 }
 0xaa0   : > { %v1508_v8 = vpop.f32.mrf.mxu2 }
 0xaa1   : > { %v1509_v12 = vadd.f32 %v1508_v8, %v1371_v10 }
 0xae1   : > { %v1520_v2 = vpop.f32.mrf.mxu1 }
 0xae2   : > { %v1521_v9 = vadd.f32 %v1520_v2, %v1507_v7 }
 0xae9   : > { %v1522_v11 = vpop.f32.mrf.mxu1 }
 0xaea   : > { %v1523_v14 = vadd.f32 %v1522_v11, %v1509_v12 }
 0xaf9   : > { %v1534_v6 = vpop.f32.mrf.mxu0 }
 0xafa   : > { %v1535_v13 = vadd.f32 %v1534_v6, %v1521_v9 }
 0xafc   : > { %v1539_v16 = vpack.c.bf16 %v1535_v13, %v1535_v13 }
 0xafe   : > { %v1543_v19 = vunpack.c.l.b16 %v1539_v16 }
 0xb01   : > { %v1536_v15 = vpop.f32.mrf.mxu0 }
 0xb02   : > { %v1537_v17 = vadd.f32 %v1536_v15, %v1523_v14 }
 0xb04   : > { %v1540_v18 = vpack.c.bf16 %v1537_v17, %v1537_v17 }
 0xb06   : > { %v1544_v20 = vunpack.c.l.b16 %v1540_v18 }
 0xb08   : > { %v1545_v4 = vpack.c.b16 %v1544_v20, %v1543_v19 }
 0xb0a   : > { %1546 = vrot.lane.b32.xlu1 %v1545_v4, %s2623_s2 }
 0xb7c   : > { %v1547_v21 = vpop.permute.xlu1 %1546 }
 0xb7d   : > { %v1551_v22 = vsel %vm577_vm5, %v1547_v21, 0  ;;  %v1549_v23 = vsel %vm577_vm5, 0, %v1547_v21 }
 0xb7e   : > { %1562 = vrot.lane.b32.xlu0 %v1551_v22, %s2624_s3  ;;  %1554 = vrot.lane.b32.xlu1 %v1549_v23, %s2603_s25 }
 0xb7f   : > { %1560 = vrot.lane.b32.xlu2 %v1549_v23, %s2624_s3 }
 0xb86   : > { %1572 = vperm.xlu0 %1816, %v1568_v24   ;;  %1577 = vperm.xlu1 %1817, %v1569_v25  }
 0xb87   : > { %1556 = vrot.lane.b32.xlu2 %v1551_v22, %s2603_s25 }
 0xbd9   : > { %v1561_v26 = vpop.permute.xlu2 %1560 }
 0xbe1   : > { %v1557_v29 = vpop.permute.xlu2 %1556 }
 0xbf0   : > { %v1563_v27 = vpop.permute.xlu0 %1562  ;;  %v1555_v5 = vpop.permute.xlu1 %1554 }
 0xbf1   : > { %v1564_v28 = vsel %vm541_vm15, %v1561_v26, %v1563_v27  ;;  %v1558_v30 = vsel %vm535_vm11, %v1555_v5, %v1557_v29 }
 0xbf2   : > { %1593 = vmatpush.bf16.msrb.mxu3 %v1564_v28 }
 0xbf6   : > { %1594 = vmatpush.bf16.msrb.mxu3 %v1558_v30 }
 0xbf8   : > { %v1573_v34 = vpop.permute.xlu0 %1572  ;;  %v1578_v39 = vpop.permute.xlu1 %1577 }
 0xbfa   : > { %1776 = vmatpush.bf16.msk.msrb.mxu3 %vm2331_vm9, %v1547_v21 }
 0xbfd   : > { %1777 = vmatmul.msk.bf16.vlgmr.msrb.gmra.mxu3 %vm1220_vm12, %v1788_v33 }
 0xc80   : > { %v1597_v35 = vpop.f32.mrf.mxu3 }
 0xc81   : > { %v1598_v36 = vadd.f32 %v1597_v35, %v1573_v34 }
 0xc83   : > { %vm1602_vm5 = vcmp.ge.f32.partialorder %v1598_v36, 0.0  ;;  %v1604_v37 = vmul.f32 0.1, %v1598_v36 }
 0xc85   : > { %v1606_v38 = vsel %vm1602_vm5, %v1598_v36, %v1604_v37 }
 0xc86   : > { %1608 = vst [vmem:[%s514_s22] sm:$0xff] %v1606_v38 }
 0xc88   : > { %v1599_v40 = vpop.f32.mrf.mxu3 }
 0xc89   : > { %v1600_v41 = vadd.f32 %v1599_v40, %v1578_v39 }
 0xc8b   : > { %vm1603_vm11 = vcmp.ge.f32.partialorder %v1600_v41, 0.0  ;;  %v1605_v31 = vmul.f32 0.1, %v1600_v41 }
 0xc8d   : > { %v1607_v42 = vsel %vm1603_vm11, %v1600_v41, %v1605_v31 }
 0xc8e   : > { %1609 = vst [vmem:[%s514_s22 + $0x8] sm:$0xff] %v1607_v42 }
 0xc8f PF: > { %s26_s18 = sadd.s32 1, %s1825_s18  }
 0xc90   : > { %p23_p4 = scmp.ge.s32.totalorder %s26_s18, 6  }
 0xc92   :  { %25 = sbr.rel (!%p23_p4) target bundleno = 7 (0x7), region = 126 }

// kernel: _lambda_.14
= control target key start
LH: loop header
LB: loop body
LE: loop exit
PB: predicated region body
PF: predicated region fallthrough
CT: control target
= control target key end

     0   :  { %s1576_s18 = smov 0   ;;  %s1959_s0 = inlined_call_operand.vmem [shape: bf16[4,4,128], index: 0, kind: input, shape index: {}]   ;;  %s1960_s1 = inlined_call_operand.vmem [shape: bf16[8,60], index: 1, kind: input, shape index: {}]   ;;  %s1961_s2 = inlined_call_operand.vmem [shape: f32[8,1], index: 2, kind: input, shape index: {}]   ;;  %s1962_s3 = inlined_call_operand.vmem [shape: bf16[8,24], index: 3, kind: input, shape index: {}]   ;;  %s1963_s4 = inlined_call_operand.vmem [shape: f32[8,1], index: 4, kind: input, shape index: {}]   ;;  %s1964_s5 = inlined_call_operand.vmem [shape: bf16[16,120], index: 5, kind: input, shape index: {}]   ;;  %s1965_s6 = inlined_call_operand.vmem [shape: f32[16,1], index: 6, kind: input, shape index: {}]   ;;  %s1966_s7 = inlined_call_operand.vmem [shape: bf16[16,48], index: 7, kind: input, shape index: {}]   ;;  %s1967_s8 = inlined_call_operand.vmem [shape: f32[16,1], index: 8, kind: input, shape index: {}]   ;;  %s1968_s9 = inlined_call_operand.vmem [shape: bf16[16,240], index: 9, kind: input, shape index: {}]   ;;  %s1969_s10 = inlined_call_operand.vmem [shape: f32[16,1], index: 10, kind: input, shape index: {}]   ;;  %s1970_s11 = inlined_call_operand.vmem [shape: bf16[16,48], index: 11, kind: input, shape index: {}]   ;;  %s1971_s12 = inlined_call_operand.vmem [shape: f32[16,1], index: 12, kind: input, shape index: {}]   ;;  %s1972_s13 = inlined_call_operand.vmem [shape: f32[4,8,128], index: 13, kind: output, shape index: {0}]   ;;  %s1973_s14 = inlined_call_operand.vmem [shape: f32[4,16,128], index: 14, kind: output, shape index: {1}]   ;;  %s1974_s15 = inlined_call_operand.vmem [shape: f32[4,16,128], index: 15, kind: output, shape index: {2}]  }
   0x1 LB: > { %s1403_s19 = sadd.s32 4294967295, %s1482_s18   ;;  %p1407_p0 = scmp.ge.s32.totalorder %s1482_s18, 1  ;;  %s1482_s18 = sphi %s1576_s18, %s26_s18  }
   0x2   : > { %p441_p1 = scmp.lt.s32.totalorder %s1482_s18, 5 }
   0x4   : > { %p442_p2 = pnand %p1407_p0, %p441_p1 }
   0x5   : > { %p497_p3 = scmp.lt.s32.totalorder (!%p442_p2), %s1403_s19, 3  ;;  %s1484_s24 = smov (!%p442_p2), 6  }
   0x6   : > { %445 = sbr.rel (%p442_p2) target bundleno = 2809 (0xaf9), region = 72  ;;  %s1986_s25 = smov (!%p442_p2), 124  }
   0x7   : > { %s1486_s26 = smov (!%p442_p2), 126   ;;  %s1988_s27 = smov (!%p442_p2), 123  }
   0x8   : > { %s1488_s28 = smov (!%p442_p2), 120   ;;  %s1983_s29 = smov (!%p442_p2), 122  }
   0x9   : > { %s1985_s30 = smov (!%p442_p2), 4   ;;  %s1981_s16 = smov (!%p442_p2), 1  }
   0xa   : > { %s1977_s17 = smov (!%p442_p2), 2   ;;  %s1979_s21 = smov (!%p442_p2), 125  }
   0xb   : > { %s2001_s19 = smov (!%p497_p3, %s1403_s19), 3  ;;  %vm523_vm0 = vcmask 48128   ;;  %vm602_vm1 = vcmask 1041408   ;;  %vm607_vm2 = vcmask 1043456   ;;  %vm544_vm3 = vcmask 1031168  }
   0xc   : > { %s1408_s20 = sshll.u32 %s2001_s19, 1  ;;  %vm594_vm4 = vcmask 1006592   ;;  %vm600_vm5 = vcmask 982016   ;;  %vm558_vm6 = vcmask 1014784   ;;  %vm575_vm7 = vcmask 998400   ;;  %s1446_s22 = sshll.u32 %s2001_s19, 4 }
   0xd   : > { %s500_s23 = scalar_lea.vmem %s1959_s0, %s1408_s20  ;;  %s1975_s20 = smov 127   ;;  %vm612_vm8 = vcmask 1045504   ;;  %vm583_vm9 = vcmask 7168   ;;  %vm564_vm10 = vcmask 15360   ;;  %vm536_vm11 = vcmask 1039360  }
   0xe   : > { %v516_v0 = vld [vmem:[%s500_s23] sm:$0x3]  ;;  %vm552_vm12 = vcmask 1022976   ;;  %vm690_vm13 = vcmask 490496   ;;  %vm744_vm14 = vcmask 195584  }
   0xf   : > { %518 = vst [vmem:[#allocation1] ss:$4 sm:$0xff] %v516_v0 }
  0x16   : > { %v519_v1 = vld.sshfl [vmem:[#allocation1] sm:$0xff pattern:$0x73625140] }
  0x17   : > { %521 = vrot.lane.b32.xlu0 %v519_v1, %s1484_s24 }
  0x89   : > { %v522_v2 = vpop.permute.xlu0 %521 }
  0x8a   : > { %v1592_v3 = vsel %vm523_vm0, 0, %v522_v2  ;;  %v1595_v4 = vsel %vm523_vm0, %v522_v2, 0 }
  0x8b   : > { %556 = vrot.lane.b32.xlu2 %v1595_v4, %s1986_s25  ;;  %587 = vrot.lane.b32.xlu1 %v1595_v4, %s1486_s26  ;;  %v531_v5 = vrot.slane %v1595_v4, 6  ;;  %v1605_v6 = vrot.slane %v1595_v4, 4  ;;  %v1613_v7 = vrot.slane %v1592_v3, 4  ;;  %v530_v8 = vrot.slane %v1592_v3, 6 }
  0x8c   : > { %585 = vrot.lane.b32.xlu0 %v1592_v3, %s1486_s26  ;;  %v546_v9 = vrot.slane %v1592_v3, 2  ;;  %v547_v10 = vrot.slane %v1595_v4, 2 }
  0x93   : > { %592 = vrot.lane.b32.xlu2 %v531_v5, %s1988_s27  ;;  %554 = vrot.lane.b32.xlu1 %v1592_v3, %s1986_s25 }
  0x94   : > { %598 = vrot.lane.b32.xlu0 %v1605_v6, %s1488_s28 }
  0x9b   : > { %596 = vrot.lane.b32.xlu2 %v1613_v7, %s1488_s28  ;;  %590 = vrot.lane.b32.xlu1 %v530_v8, %s1988_s27 }
  0x9c   : > { %571 = vrot.lane.b32.xlu0 %v530_v8, %s1983_s29 }
  0xa3   : > { %577 = vrot.lane.b32.xlu2 %v1613_v7, %s1985_s30  ;;  %573 = vrot.lane.b32.xlu1 %v531_v5, %s1983_s29 }
  0xa4   : > { %579 = vrot.lane.b32.xlu0 %v546_v9, %s1981_s16 }
  0xab   : > { %560 = vrot.lane.b32.xlu2 %v530_v8, %s1977_s17  ;;  %581 = vrot.lane.b32.xlu1 %v547_v10, %s1981_s16 }
  0xac   : > { %562 = vrot.lane.b32.xlu0 %v531_v5, %s1977_s17  ;;  %s1991_s17 = smov 125  }
  0xb3   : > { %568 = vrot.lane.b32.xlu2 %v547_v10, %s1486_s26  ;;  %566 = vrot.lane.b32.xlu1 %v546_v9, %s1486_s26 }
  0xb4   : > { %532 = vrot.lane.b32.xlu0 %v530_v8, %s1975_s20 }
  0xbb   : > { %540 = vrot.lane.b32.xlu2 %v1613_v7, %s1486_s26  ;;  %534 = vrot.lane.b32.xlu1 %v531_v5, %s1975_s20 }
  0xbc   : > { %542 = vrot.lane.b32.xlu0 %v1605_v6, %s1486_s26 }
  0xc3   : > { %550 = vrot.lane.b32.xlu2 %v547_v10, %s1979_s21  ;;  %548 = vrot.lane.b32.xlu1 %v546_v9, %s1979_s21  ;;  %v1495_v9 = vmov 0   ;;  %s1993_s21 = smov 127  }
  0xc4   : > { %1473 = vset.pattern.permute.xlu2 %v1495_v9  ;;  %1474 = vset.pattern.permute.xlu0 %v1495_v9 }
  0xc5   : > { %1475 = vset.pattern.permute.xlu1 %v1495_v9 }
  0xe5   : > { %v557_v11 = vpop.permute.xlu2 %556 }
  0xed   : > { %v593_v12 = vpop.permute.xlu2 %592 }
  0xf5   : > { %v597_v13 = vpop.permute.xlu2 %596 }
  0xfd   : > { %v588_v14 = vpop.permute.xlu1 %587  ;;  %v578_v19 = vpop.permute.xlu2 %577 }
  0xfe   : > { %v586_v15 = vpop.permute.xlu0 %585  ;;  %v647_v17 = vsel %vm602_vm1, %v588_v14, %v593_v12 }
  0xff   : > { %v589_v22 = vsel %vm544_vm3, %v586_v15, %v588_v14 }
 0x105   : > { %v555_v16 = vpop.permute.xlu1 %554  ;;  %v561_v28 = vpop.permute.xlu2 %560 }
 0x106   : > { %v599_v18 = vpop.permute.xlu0 %598  ;;  %v559_v30 = vsel %vm558_vm6, %v555_v16, %v557_v11 }
 0x107   : > { %v651_v20 = vsel %vm607_vm2, %v647_v17, %v599_v18  ;;  %v601_v25 = vsel %vm600_vm5, %v597_v13, %v599_v18  ;;  %v619_v47 = vsel %vm602_vm1, %v559_v30, %v561_v28  ;;  %v652_v18 = vld [vmem:[%s1960_s1] sm:$0xf] }
 0x108   : > { %681 = vrot.lane.b32.xlu1 %v651_v20, %s1986_s25  ;;  %v624_v52 = vsel %vm607_vm2, %v619_v47, %v1613_v7 }
 0x10d   : > { %v591_v21 = vpop.permute.xlu1 %590  ;;  %v569_v36 = vpop.permute.xlu2 %568 }
 0x10e   : > { %v572_v23 = vpop.permute.xlu0 %571  ;;  %v595_v24 = vsel %vm594_vm4, %v591_v21, %v593_v12 }
 0x10f   : > { %v644_v26 = vsel %vm602_vm1, %v589_v22, %v595_v24 }
 0x110   : > { %v649_v27 = vsel %vm607_vm2, %v644_v26, %v601_v25 }
 0x111   : > { %679 = vrot.lane.b32.xlu0 %v649_v27, %s1986_s25 }
 0x115   : > { %v574_v29 = vpop.permute.xlu1 %573  ;;  %v541_v48 = vpop.permute.xlu2 %540 }
 0x116   : > { %v580_v31 = vpop.permute.xlu0 %579  ;;  %v576_v32 = vsel %vm575_vm7, %v572_v23, %v574_v29  ;;  %v634_v37 = vsel %vm602_vm1, %v557_v11, %v574_v29 }
 0x117   : > { %v632_v33 = vsel %vm602_vm1, %v559_v30, %v576_v32  ;;  %v637_v41 = vsel %vm607_vm2, %v634_v37, %v578_v19  ;;  %v738_v30 = vld [vmem:[%s1963_s4] sm:$0xff] }
 0x118   : > { %v636_v34 = vsel %vm607_vm2, %v632_v33, %v578_v19 }
 0x119   : > { %v639_v35 = vsel %vm612_vm8, %v636_v34, %v580_v31 }
 0x11a   : > { %675 = vrot.lane.b32.xlu2 %v639_v35, %s1986_s25 }
 0x11d   : > { %v582_v38 = vpop.permute.xlu1 %581  ;;  %v551_v57 = vpop.permute.xlu2 %550 }
 0x11e   : > { %v563_v39 = vpop.permute.xlu0 %562  ;;  %v584_v40 = vsel %vm583_vm9, %v580_v31, %v582_v38 }
 0x11f   : > { %v565_v42 = vsel %vm564_vm10, %v561_v28, %v563_v39  ;;  %v641_v43 = vsel %vm612_vm8, %v637_v41, %v584_v40  ;;  %v737_v40 = vld [vmem:[%s1962_s3] sm:$0xf] }
 0x120   : > { %v622_v44 = vsel %vm602_vm1, %v557_v11, %v565_v42  ;;  %677 = vrot.lane.b32.xlu0 %v641_v43, %s1986_s25 }
 0x121   : > { %v626_v45 = vsel %vm607_vm2, %v622_v44, %v1605_v6 }
 0x122   : > { %v630_v46 = vsel %vm612_vm8, %v626_v45, %v569_v36 }
 0x123   : > { %673 = vrot.lane.b32.xlu2 %v630_v46, %s1986_s25 }
 0x125   : > { %v567_v49 = vpop.permute.xlu1 %566 }
 0x126   : > { %v533_v50 = vpop.permute.xlu0 %532  ;;  %v570_v51 = vsel %vm544_vm3, %v567_v49, %v569_v36 }
 0x127   : > { %v628_v53 = vsel %vm612_vm8, %v624_v52, %v570_v51 }
 0x128   : > { %671 = vrot.lane.b32.xlu1 %v628_v53, %s1986_s25 }
 0x12d   : > { %v535_v54 = vpop.permute.xlu1 %534 }
 0x12e   : > { %v543_v55 = vpop.permute.xlu0 %542  ;;  %v606_v56 = vsel %vm602_vm1, %v1595_v4, %v535_v54  ;;  %v537_v59 = vsel %vm536_vm11, %v533_v50, %v535_v54 }
 0x12f   : > { %v611_v58 = vsel %vm607_vm2, %v606_v56, %v543_v55  ;;  %v545_v61 = vsel %vm544_vm3, %v541_v48, %v543_v55  ;;  %v604_v62 = vsel %vm602_vm1, %v1592_v3, %v537_v59  ;;  %v653_v3 = vld [vmem:[%s1961_s2] sm:$0xff]  ;;  %vm1832_vm1 = vmneg %vm583_vm9 }
 0x130   : > { %v616_v60 = vsel %vm612_vm8, %v611_v58, %v551_v57  ;;  %v609_v1 = vsel %vm607_vm2, %v604_v62, %v545_v61  ;;  %656 = vperm.xlu2 %1473, %v653_v3  }
 0x131   : > { %669 = vrot.lane.b32.xlu1 %v616_v60, %s1986_s25 }
 0x135   : > { %v549_v63 = vpop.permute.xlu1 %548 }
 0x136   : > { %v553_v0 = vsel %vm552_vm12, %v549_v63, %v551_v57 }
 0x137   : > { %v614_v2 = vsel %vm612_vm8, %v609_v1, %v553_v0 }
 0x138   : > { %667 = vrot.lane.b32.xlu0 %v614_v2, %s1986_s25 }
 0x174   : > { %v676_v8 = vpop.permute.xlu2 %675 }
 0x17a   : > { %v682_v4 = vpop.permute.xlu1 %681 }
 0x17d   : > { %v674_v12 = vpop.permute.xlu2 %673 }
 0x183   : > { %v680_v5 = vpop.permute.xlu0 %679 }
 0x184   : > { %v686_v6 = vsel %vm558_vm6, %v680_v5, %v682_v4 }
 0x185   : > { %v695_v7 = vsel %vm612_vm8, %v686_v6, 0 }
 0x186   : > { %701 = vmatpush.bf16.msra.mxu0 %v695_v7 }
 0x18a   : > { %v657_v19 = vpop.permute.xlu2 %656 }
 0x192   : > { %v678_v10 = vpop.permute.xlu0 %677 }
 0x193   : > { %v685_v11 = vsel %vm558_vm6, %v676_v8, %v678_v10 }
 0x194   : > { %702 = vmatpush.bf16.msra.mxu0 %v685_v11 }
 0x19a   : > { %v672_v13 = vpop.permute.xlu1 %671 }
 0x19b   : > { %v684_v14 = vsel %vm558_vm6, %v672_v13, %v674_v12 }
 0x19c   : > { %703 = vmatpush.bf16.msra.mxu0 %v684_v14 }
 0x1a3   : > { %v670_v15 = vpop.permute.xlu1 %669 }
 0x1aa   : > { %v668_v16 = vpop.permute.xlu0 %667 }
 0x1ab   : > { %v683_v17 = vsel %vm558_vm6, %v668_v16, %v670_v15 }
 0x1ac   : > { %704 = vmatpush.bf16.msra.mxu0 %v683_v17 }
 0x1af   : > { %1414 = vmatmul.msk.bf16.vlgmr.msra.gmra.mxu0 %vm690_vm13, %v652_v18 }
 0x22c   : > { %v706_v20 = vpop.f32.mrf.mxu0 }
 0x22d   : > { %v707_v21 = vadd.f32 %v706_v20, %v657_v19 }
 0x22f   : > { %v710_v22 = vpack.c.bf16 %v707_v21, %v707_v21 }
 0x231   : > { %v712_v23 = vunpack.c.l.b16 %v710_v22 }
 0x233   : > { %v713_v24 = vpack.c.b16 %v712_v23, %v712_v23 }
 0x234   : > { %v708_v25 = vpop.f32.mrf.mxu0 }
 0x235   : > { %714 = vrot.lane.b32.xlu0 %v713_v24, %s1981_s16 }
 0x2a7   : > { %v715_v26 = vpop.permute.xlu0 %714 }
 0x2a8   : > { %v719_v27 = vsel %vm583_vm9, %v715_v26, 0  ;;  %v718_v28 = vsel %vm583_vm9, 0, %v715_v26 }
 0x2a9   : > { %731 = vrot.lane.b32.xlu2 %v719_v27, %s1486_s26  ;;  %729 = vrot.lane.b32.xlu1 %v718_v28, %s1486_s26  ;;  %v722_v29 = vrot.slane %v718_v28, 4  ;;  %v723_v31 = vrot.slane %v719_v27, 4 }
 0x2ab   : > { %724 = vrot.lane.b32.xlu0 %v722_v29, %s1975_s20 }
 0x2b1   : > { %741 = vperm.xlu2 %1473, %v738_v30   ;;  %726 = vrot.lane.b32.xlu1 %v723_v31, %s1975_s20  ;;  %s1409_s20 = sshll.u32 %s2001_s19, 3 }
 0x2b2   : > { %s504_s16 = scalar_lea.vmem %s1972_s13, %s1409_s20  ;;  %s1992_s20 = smov 2  }
 0x303   : > { %v732_v32 = vpop.permute.xlu2 %731 }
 0x30b   : > { %v742_v41 = vpop.permute.xlu2 %741 }
 0x31b   : > { %v730_v33 = vpop.permute.xlu1 %729 }
 0x31c   : > { %v733_v34 = vsel %vm544_vm3, %v730_v33, %v732_v32 }
 0x31d   : > { %v749_v35 = vsel %vm607_vm2, %v733_v34, 0  ;;  %v725_v36 = vpop.permute.xlu0 %724 }
 0x31e   : > { %757 = vmatpush.bf16.msra.mxu1 %v749_v35  ;;  %v868_v35 = vld [vmem:[%s1965_s6] sm:$0xff] }
 0x323   : > { %v727_v37 = vpop.permute.xlu1 %726 }
 0x324   : > { %v728_v38 = vsel %vm536_vm11, %v725_v36, %v727_v37 }
 0x325   : > { %v735_v39 = vsel %vm607_vm2, %v718_v28, %v728_v38 }
 0x326   : > { %758 = vmatpush.bf16.msra.mxu1 %v735_v39 }
 0x329   : > { %1415 = vmatmul.msk.bf16.vlgmr.msra.gmra.mxu1 %vm744_vm14, %v737_v40 }
 0x3a6   : > { %v760_v42 = vpop.f32.mrf.mxu1 }
 0x3a7   : > { %v761_v43 = vadd.f32 %v760_v42, %v742_v41 }
 0x3a9   : > { %vm764_vm15 = vcmp.ge.f32.partialorder %v761_v43, 0.0  ;;  %v765_v44 = vmul.f32 0.1, %v761_v43 }
 0x3ab   : > { %v766_v45 = vsel %vm764_vm15, %v761_v43, %v765_v44 }
 0x3ac   : > { %767 = vst [vmem:[%s504_s16] sm:$0xff] %v766_v45  ;;  %v768_v46 = vpack.c.bf16 %v766_v45, %v766_v45  ;;  %s1990_s16 = smov 1  }
 0x3ae   : > { %v762_v47 = vpop.f32.mrf.mxu1  ;;  %v770_v48 = vunpack.c.l.b16 %v768_v46 }
 0x3af   : > { %v869_v47 = vld [vmem:[%s1965_s6 + $0x8] sm:$0xff] }
 0x3b0   : > { %v771_v49 = vpack.c.b16 %v770_v48, %v770_v48 }
 0x3b2   : > { %772 = vrot.lane.b32.xlu0 %v771_v49, %s1484_s24 }
 0x424   : > { %v773_v50 = vpop.permute.xlu0 %772 }
 0x425   : > { %v1718_v51 = vsel %vm523_vm0, 0, %v773_v50  ;;  %v1721_v52 = vsel %vm523_vm0, %v773_v50, 0 }
 0x426   : > { %830 = vrot.lane.b32.xlu2 %v1721_v52, %s1488_s28  ;;  %786 = vrot.lane.b32.xlu0 %v1718_v51, %s1486_s26  ;;  %v779_v53 = vrot.slane %v1718_v51, 4  ;;  %v780_v54 = vrot.slane %v1721_v52, 4 }
 0x427   : > { %828 = vrot.lane.b32.xlu1 %v1718_v51, %s1488_s28 }
 0x42e   : > { %798 = vrot.lane.b32.xlu2 %v1721_v52, %s1986_s25  ;;  %816 = vrot.lane.b32.xlu0 %v1718_v51, %s1985_s30 }
 0x42f   : > { %788 = vrot.lane.b32.xlu1 %v1721_v52, %s1486_s26 }
 0x436   : > { %825 = vrot.lane.b32.xlu0 %v780_v54, %s1988_s27  ;;  %823 = vrot.lane.b32.xlu2 %v779_v53, %s1988_s27  ;;  %s509_s27 = scalar_lea.vmem %s1973_s14, %s1446_s22 }
 0x437   : > { %796 = vrot.lane.b32.xlu1 %v1718_v51, %s1986_s25 }
 0x43e   : > { %811 = vrot.lane.b32.xlu0 %v779_v53, %s1983_s29  ;;  %820 = vrot.lane.b32.xlu2 %v780_v54, %s1990_s16 }
 0x43f   : > { %818 = vrot.lane.b32.xlu1 %v779_v53, %s1990_s16 }
 0x446   : > { %808 = vrot.lane.b32.xlu0 %v780_v54, %s1486_s26  ;;  %806 = vrot.lane.b32.xlu2 %v779_v53, %s1486_s26 }
 0x447   : > { %813 = vrot.lane.b32.xlu1 %v780_v54, %s1983_s29  ;;  %s1999_s29 = smov 122  }
 0x44e   : > { %791 = vrot.lane.b32.xlu0 %v779_v53, %s1991_s17  ;;  %803 = vrot.lane.b32.xlu2 %v780_v54, %s1992_s20 }
 0x44f   : > { %801 = vrot.lane.b32.xlu1 %v779_v53, %s1992_s20 }
 0x456   : > { %783 = vrot.lane.b32.xlu0 %v780_v54, %s1993_s21  ;;  %781 = vrot.lane.b32.xlu2 %v779_v53, %s1993_s21 }
 0x457   : > { %793 = vrot.lane.b32.xlu1 %v780_v54, %s1991_s17 }
 0x480   : > { %v831_v55 = vpop.permute.xlu2 %830 }
 0x481   : > { %929 = vrot.lane.b32.xlu2 %v831_v55, %s1986_s25 }
 0x488   : > { %v799_v56 = vpop.permute.xlu2 %798 }
 0x490   : > { %v824_v60 = vpop.permute.xlu2 %823 }
 0x498   : > { %v787_v57 = vpop.permute.xlu0 %786  ;;  %v821_v5 = vpop.permute.xlu2 %820 }
 0x499   : > { %v829_v58 = vpop.permute.xlu1 %828 }
 0x49a   : > { %v832_v59 = vsel %vm600_vm5, %v829_v58, %v831_v55 }
 0x49b   : > { %927 = vrot.lane.b32.xlu1 %v832_v59, %s1986_s25 }
 0x4a0   : > { %v817_v61 = vpop.permute.xlu0 %816  ;;  %v807_v11 = vpop.permute.xlu2 %806 }
 0x4a1   : > { %v789_v62 = vpop.permute.xlu1 %788 }
 0x4a2   : > { %v790_v0 = vsel %vm544_vm3, %v787_v57, %v789_v62 }
 0x4a8   : > { %v826_v63 = vpop.permute.xlu0 %825  ;;  %v804_v18 = vpop.permute.xlu2 %803 }
 0x4a9   : > { %v827_v1 = vsel %vm594_vm4, %v824_v60, %v826_v63  ;;  %v797_v2 = vpop.permute.xlu1 %796  ;;  %v865_v4 = vsel %vm607_vm2, %v789_v62, %v826_v63  ;;  %v1448_v63 = vld [vmem:[%s1964_s5] sm:$0xff] }
 0x4aa   : > { %925 = vrot.lane.b32.xlu1 %v865_v4, %s1986_s25  ;;  %v863_v6 = vsel %vm607_vm2, %v790_v0, %v827_v1  ;;  %v800_v20 = vsel %vm558_vm6, %v797_v2, %v799_v56 }
 0x4ab   : > { %923 = vrot.lane.b32.xlu0 %v863_v6, %s1986_s25 }
 0x4b0   : > { %v812_v7 = vpop.permute.xlu0 %811  ;;  %v782_v27 = vpop.permute.xlu2 %781 }
 0x4b1   : > { %v819_v3 = vpop.permute.xlu1 %818 }
 0x4b2   : > { %v822_v8 = vsel %vm583_vm9, %v819_v3, %v821_v5  ;;  %v859_v9 = vsel %vm607_vm2, %v817_v61, %v819_v3 }
 0x4b3   : > { %919 = vrot.lane.b32.xlu2 %v859_v9, %s1986_s25  ;;  %v861_v10 = vsel %vm607_vm2, %v817_v61, %v822_v8 }
 0x4b4   : > { %921 = vrot.lane.b32.xlu0 %v861_v10, %s1986_s25 }
 0x4b8   : > { %v809_v12 = vpop.permute.xlu0 %808 }
 0x4b9   : > { %v810_v13 = vsel %vm544_vm3, %v807_v11, %v809_v12  ;;  %v814_v14 = vpop.permute.xlu1 %813  ;;  %v852_v15 = vsel %vm607_vm2, %v1721_v52, %v809_v12 }
 0x4ba   : > { %913 = vrot.lane.b32.xlu1 %v852_v15, %s1986_s25  ;;  %v856_v16 = vsel %vm607_vm2, %v799_v56, %v814_v14  ;;  %v850_v17 = vsel %vm607_vm2, %v1718_v51, %v810_v13  ;;  %v815_v19 = vsel %vm575_vm7, %v812_v7, %v814_v14  ;;  %v997_v14 = vld [vmem:[%s1967_s8 + $0x8] sm:$0xff]  ;;  %v996_v15 = vld [vmem:[%s1967_s8] sm:$0xff] }
 0x4bb   : > { %917 = vrot.lane.b32.xlu2 %v856_v16, %s1986_s25  ;;  %v854_v23 = vsel %vm607_vm2, %v800_v20, %v815_v19 }
 0x4bc   : > { %911 = vrot.lane.b32.xlu0 %v850_v17, %s1986_s25 }
 0x4c0   : > { %v792_v21 = vpop.permute.xlu0 %791 }
 0x4c1   : > { %v802_v22 = vpop.permute.xlu1 %801 }
 0x4c2   : > { %v805_v24 = vsel %vm564_vm10, %v802_v22, %v804_v18  ;;  %915 = vrot.lane.b32.xlu1 %v854_v23, %s1986_s25  ;;  %v845_v25 = vsel %vm607_vm2, %v800_v20, %v802_v22  ;;  %v1449_v23 = vld [vmem:[%s1966_s7] sm:$0xff] }
 0x4c3   : > { %907 = vrot.lane.b32.xlu2 %v845_v25, %s1986_s25  ;;  %v848_v26 = vsel %vm607_vm2, %v799_v56, %v805_v24 }
 0x4c4   : > { %909 = vrot.lane.b32.xlu0 %v848_v26, %s1986_s25 }
 0x4c8   : > { %v784_v28 = vpop.permute.xlu0 %783 }
 0x4c9   : > { %v785_v29 = vsel %vm536_vm11, %v782_v27, %v784_v28  ;;  %v794_v30 = vpop.permute.xlu1 %793  ;;  %v836_v36 = vsel %vm607_vm2, %v1721_v52, %v784_v28 }
 0x4ca   : > { %v795_v31 = vsel %vm552_vm12, %v792_v21, %v794_v30  ;;  %v842_v32 = vsel %vm607_vm2, %v789_v62, %v794_v30  ;;  %v834_v33 = vsel %vm607_vm2, %v1718_v51, %v785_v29 }
 0x4cb   : > { %905 = vrot.lane.b32.xlu2 %v842_v32, %s1986_s25  ;;  %v839_v34 = vsel %vm607_vm2, %v790_v0, %v795_v31 }
 0x4cc   : > { %903 = vrot.lane.b32.xlu1 %v839_v34, %s1986_s25  ;;  %899 = vrot.lane.b32.xlu0 %v834_v33, %s1986_s25 }
 0x4d3   : > { %872 = vperm.xlu2 %1473, %v868_v35  }
 0x4d4   : > { %901 = vrot.lane.b32.xlu1 %v836_v36, %s1986_s25  ;;  %877 = vperm.xlu0 %1474, %v869_v47   ;;  %s1996_s25 = smov 123  }
 0x4db   : > { %v930_v37 = vpop.permute.xlu2 %929 }
 0x50d   : > { %v928_v38 = vpop.permute.xlu1 %927  ;;  %v920_v44 = vpop.permute.xlu2 %919 }
 0x50e   : > { %v938_v39 = vsel %vm558_vm6, %v928_v38, %v930_v37 }
 0x50f   : > { %v951_v40 = vsel %vm607_vm2, %v938_v39, 0  ;;  %vm1013_vm2 = vcmask 392192  }
 0x510   : > { %953 = vmatpush.bf16.msra.mxu2 %v951_v40 }
 0x515   : > { %v918_v48 = vpop.permute.xlu2 %917 }
 0x51c   : > { %v926_v41 = vpop.permute.xlu1 %925 }
 0x51d   : > { %v924_v42 = vpop.permute.xlu0 %923  ;;  %v908_v53 = vpop.permute.xlu2 %907 }
 0x51e   : > { %v937_v43 = vsel %vm558_vm6, %v924_v42, %v926_v41 }
 0x51f   : > { %954 = vmatpush.bf16.msra.mxu2 %v937_v43 }
 0x525   : > { %v906_v58 = vpop.permute.xlu2 %905 }
 0x526   : > { %v922_v45 = vpop.permute.xlu0 %921 }
 0x527   : > { %v936_v46 = vsel %vm558_vm6, %v920_v44, %v922_v45 }
 0x528   : > { %955 = vmatpush.bf16.msra.mxu2 %v936_v46 }
 0x52c   : > { %v914_v49 = vpop.permute.xlu1 %913 }
 0x52d   : > { %v873_v1 = vpop.permute.xlu2 %872 }
 0x52e   : > { %v912_v50 = vpop.permute.xlu0 %911 }
 0x52f   : > { %v934_v54 = vsel %vm558_vm6, %v912_v50, %v914_v49 }
 0x534   : > { %v916_v51 = vpop.permute.xlu1 %915 }
 0x535   : > { %v935_v52 = vsel %vm558_vm6, %v916_v51, %v918_v48 }
 0x536   : > { %956 = vmatpush.bf16.msra.mxu2 %v935_v52  ;;  %v910_v55 = vpop.permute.xlu0 %909 }
 0x537   : > { %v933_v56 = vsel %vm558_vm6, %v908_v53, %v910_v55 }
 0x53a   : > { %957 = vmatpush.bf16.msra.mxu2 %v934_v54 }
 0x53e   : > { %v904_v57 = vpop.permute.xlu1 %903  ;;  %958 = vmatpush.bf16.msra.mxu2 %v933_v56  ;;  %v900_v60 = vpop.permute.xlu0 %899 }
 0x53f   : > { %v932_v59 = vsel %vm558_vm6, %v904_v57, %v906_v58 }
 0x542   : > { %959 = vmatpush.bf16.msra.mxu2 %v932_v59 }
 0x546   : > { %v902_v61 = vpop.permute.xlu1 %901  ;;  %v878_v4 = vpop.permute.xlu0 %877 }
 0x547   : > { %v931_v62 = vsel %vm558_vm6, %v900_v60, %v902_v61 }
 0x548   : > { %960 = vmatpush.bf16.msra.mxu2 %v931_v62 }
 0x54b   : > { %1420 = vmatmul.msk.bf16.vlgmr.msra.gmra.mxu2 %vm600_vm5, %v1448_v63 }
 0x5ce   : > { %v962_v0 = vpop.f32.mrf.mxu2 }
 0x5cf   : > { %v963_v2 = vadd.f32 %v962_v0, %v873_v1  ;;  %v1102_v0 = vld [vmem:[%s1969_s10] sm:$0xff] }
 0x5d1   : > { %v967_v6 = vpack.c.bf16 %v963_v2, %v963_v2 }
 0x5d3   : > { %v971_v8 = vunpack.c.l.b16 %v967_v6 }
 0x5d6   : > { %v964_v5 = vpop.f32.mrf.mxu2 }
 0x5d7   : > { %v965_v7 = vadd.f32 %v964_v5, %v878_v4 }
 0x5d9   : > { %v968_v3 = vpack.c.bf16 %v965_v7, %v965_v7 }
 0x5db   : > { %v972_v9 = vunpack.c.l.b16 %v968_v3  ;;  %v1103_v3 = vld [vmem:[%s1969_s10 + $0x8] sm:$0xff] }
 0x5dd   : > { %v973_v10 = vpack.c.b16 %v972_v9, %v971_v8 }
 0x5df   : > { %974 = vrot.lane.b32.xlu1 %v973_v10, %s1990_s16 }
 0x651   : > { %v975_v11 = vpop.permute.xlu1 %974 }
 0x652   : > { %v979_v12 = vsel %vm583_vm9, %v975_v11, 0  ;;  %v977_v13 = vsel %vm583_vm9, 0, %v975_v11 }
 0x653   : > { %984 = vrot.lane.b32.xlu0 %v979_v12, %s1993_s21  ;;  %990 = vrot.lane.b32.xlu1 %v979_v12, %s1486_s26 }
 0x654   : > { %988 = vrot.lane.b32.xlu2 %v977_v13, %s1486_s26 }
 0x65b   : > { %1000 = vperm.xlu1 %1475, %v996_v15  }
 0x65c   : > { %982 = vrot.lane.b32.xlu2 %v977_v13, %s1993_s21 }
 0x664   : > { %1005 = vperm.xlu2 %1473, %v997_v14  }
 0x6ae   : > { %v989_v16 = vpop.permute.xlu2 %988 }
 0x6b6   : > { %v983_v20 = vpop.permute.xlu2 %982 }
 0x6be   : > { %v1006_v29 = vpop.permute.xlu2 %1005 }
 0x6c5   : > { %v991_v17 = vpop.permute.xlu1 %990  ;;  %v985_v19 = vpop.permute.xlu0 %984 }
 0x6c6   : > { %v992_v18 = vsel %vm544_vm3, %v989_v16, %v991_v17  ;;  %v986_v21 = vsel %vm536_vm11, %v983_v20, %v985_v19 }
 0x6c7   : > { %1022 = vmatpush.bf16.msra.mxu3 %v992_v18 }
 0x6cb   : > { %1023 = vmatpush.bf16.msra.mxu3 %v986_v21 }
 0x6cd   : > { %v1001_v24 = vpop.permute.xlu1 %1000 }
 0x6cf   : > { %1426 = vmatpush.bf16.msk.msra.mxu3 %vm1832_vm1, %v975_v11 }
 0x6d2   : > { %1427 = vmatmul.msk.bf16.vlgmr.msra.gmra.mxu3 %vm1013_vm2, %v1449_v23 }
 0x755   : > { %v1026_v25 = vpop.f32.mrf.mxu3 }
 0x756   : > { %v1027_v26 = vadd.f32 %v1026_v25, %v1001_v24 }
 0x758   : > { %vm1031_vm8 = vcmp.ge.f32.partialorder %v1027_v26, 0.0  ;;  %v1033_v27 = vmul.f32 0.1, %v1027_v26 }
 0x75a   : > { %v1035_v28 = vsel %vm1031_vm8, %v1027_v26, %v1033_v27 }
 0x75b   : > { %1037 = vst [vmem:[%s509_s27] sm:$0xff] %v1035_v28  ;;  %v1039_v33 = vpack.c.bf16 %v1035_v28, %v1035_v28 }
 0x75d   : > { %v1028_v30 = vpop.f32.mrf.mxu3  ;;  %v1043_v36 = vunpack.c.l.b16 %v1039_v33 }
 0x75e   : > { %v1029_v31 = vadd.f32 %v1028_v30, %v1006_v29 }
 0x760   : > { %vm1032_vm13 = vcmp.ge.f32.partialorder %v1029_v31, 0.0  ;;  %v1034_v32 = vmul.f32 0.1, %v1029_v31 }
 0x762   : > { %v1036_v34 = vsel %vm1032_vm13, %v1029_v31, %v1034_v32 }
 0x763   : > { %1038 = vst [vmem:[%s509_s27 + $0x8] sm:$0xff] %v1036_v34  ;;  %v1040_v35 = vpack.c.bf16 %v1036_v34, %v1036_v34  ;;  %s1998_s27 = smov 4   ;;  %v1450_v34 = vld [vmem:[%s1968_s9 + $0x4] sm:$0xf] }
 0x765   : > { %v1044_v37 = vunpack.c.l.b16 %v1040_v35  ;;  %v1432_v35 = vld [vmem:[%s1968_s9 + $0x8] sm:$0xf0] }
 0x767   : > { %v1045_v38 = vpack.c.b16 %v1044_v37, %v1043_v36 }
 0x769   : > { %1046 = vrot.lane.b32.xlu0 %v1045_v38, %s1484_s24  ;;  %s1997_s24 = smov 124   ;;  %v1435_v38 = vor.u32 %v1450_v34, %v1432_v35 }
 0x7db   : > { %v1047_v39 = vpop.permute.xlu0 %1046 }
 0x7dc   : > { %v1049_v40 = vsel %vm523_vm0, 0, %v1047_v39  ;;  %v1050_v41 = vsel %vm523_vm0, %v1047_v39, 0  ;;  %vm1181_vm0 = vcmask 916480  }
 0x7dd   : > { %1060 = vrot.lane.b32.xlu2 %v1050_v41, %s1486_s26  ;;  %1095 = vrot.lane.b32.xlu0 %v1049_v40, %s1488_s28 }
 0x7de   : > { %1058 = vrot.lane.b32.xlu1 %v1049_v40, %s1486_s26 }
 0x7e5   : > { %1090 = vrot.lane.b32.xlu2 %v1049_v40, %s1996_s25  ;;  %1092 = vrot.lane.b32.xlu0 %v1050_v41, %s1996_s25 }
 0x7e6   : > { %1097 = vrot.lane.b32.xlu1 %v1050_v41, %s1488_s28 }
 0x7ed   : > { %1075 = vrot.lane.b32.xlu2 %v1050_v41, %s1992_s20  ;;  %1068 = vrot.lane.b32.xlu0 %v1049_v40, %s1997_s24 }
 0x7ee   : > { %1073 = vrot.lane.b32.xlu1 %v1049_v40, %s1992_s20 }
 0x7f5   : > { %1085 = vrot.lane.b32.xlu2 %v1049_v40, %s1990_s16  ;;  %1087 = vrot.lane.b32.xlu0 %v1050_v41, %s1990_s16 }
 0x7f6   : > { %1070 = vrot.lane.b32.xlu1 %v1050_v41, %s1997_s24 }
 0x7fd   : > { %1065 = vrot.lane.b32.xlu2 %v1050_v41, %s1991_s17  ;;  %1083 = vrot.lane.b32.xlu0 %v1049_v40, %s1998_s27 }
 0x7fe   : > { %1063 = vrot.lane.b32.xlu1 %v1049_v40, %s1991_s17 }
 0x805   : > { %1080 = vrot.lane.b32.xlu2 %v1050_v41, %s1999_s29  ;;  %1053 = vrot.lane.b32.xlu0 %v1049_v40, %s1993_s21 }
 0x806   : > { %1078 = vrot.lane.b32.xlu1 %v1049_v40, %s1999_s29  ;;  %v1430_v40 = vld [vmem:[%s1968_s9] sm:$0xf]  ;;  %s514_s29 = scalar_lea.vmem %s1974_s15, %s1446_s22 }
 0x80e   : > { %1055 = vrot.lane.b32.xlu1 %v1050_v41, %s1993_s21  ;;  %v1451_v41 = vld [vmem:[%s1968_s9 + $0x4] sm:$0xf0] }
 0x837   : > { %v1061_v42 = vpop.permute.xlu2 %1060 }
 0x838   : > { %1129 = vrot.lane.b32.xlu0 %v1061_v42, %s1997_s24 }
 0x83f   : > { %v1091_v43 = vpop.permute.xlu2 %1090 }
 0x847   : > { %v1076_v44 = vpop.permute.xlu2 %1075 }
 0x84f   : > { %v1086_v45 = vpop.permute.xlu2 %1085  ;;  %v1096_v46 = vpop.permute.xlu0 %1095 }
 0x850   : > { %v1059_v47 = vpop.permute.xlu1 %1058  ;;  %1149 = vrot.lane.b32.xlu0 %v1086_v45, %s1997_s24 }
 0x851   : > { %v1062_v60 = vsel %vm544_vm3, %v1059_v47, %v1061_v42  ;;  %v1431_v42 = vor.u32 %v1451_v41, %v1430_v40 }
 0x857   : > { %v1093_v48 = vpop.permute.xlu0 %1092  ;;  %v1066_v55 = vpop.permute.xlu2 %1065 }
 0x858   : > { %v1098_v49 = vpop.permute.xlu1 %1097  ;;  %1155 = vrot.lane.b32.xlu1 %v1093_v48, %s1997_s24  ;;  %v1094_v50 = vsel %vm594_vm4, %v1091_v43, %v1093_v48 }
 0x859   : > { %1159 = vrot.lane.b32.xlu2 %v1098_v49, %s1997_s24  ;;  %1153 = vrot.lane.b32.xlu0 %v1094_v50, %s1997_s24  ;;  %v1099_v51 = vsel %vm600_vm5, %v1096_v46, %v1098_v49 }
 0x85f   : > { %v1069_v54 = vpop.permute.xlu0 %1068  ;;  %v1081_v61 = vpop.permute.xlu2 %1080 }
 0x860   : > { %v1074_v52 = vpop.permute.xlu1 %1073  ;;  %1157 = vrot.lane.b32.xlu1 %v1099_v51, %s1997_s24 }
 0x861   : > { %1139 = vrot.lane.b32.xlu2 %v1074_v52, %s1997_s24  ;;  %v1077_v53 = vsel %vm564_vm10, %v1074_v52, %v1076_v44 }
 0x862   : > { %1141 = vrot.lane.b32.xlu0 %v1077_v53, %s1997_s24 }
 0x867   : > { %v1088_v58 = vpop.permute.xlu0 %1087 }
 0x868   : > { %v1071_v56 = vpop.permute.xlu1 %1070  ;;  %v1089_v62 = vsel %vm583_vm9, %v1086_v45, %v1088_v58 }
 0x869   : > { %1137 = vrot.lane.b32.xlu2 %v1071_v56, %s1997_s24  ;;  %v1883_v57 = vsel %vm558_vm6, %v1069_v54, %v1071_v56 }
 0x86a   : > { %1133 = vrot.lane.b32.xlu0 %v1066_v55, %s1997_s24  ;;  %1135 = vrot.lane.b32.xlu1 %v1883_v57, %s1997_s24 }
 0x86f   : > { %v1084_v63 = vpop.permute.xlu0 %1083 }
 0x870   : > { %v1064_v59 = vpop.permute.xlu1 %1063 }
 0x871   : > { %1127 = vrot.lane.b32.xlu2 %v1062_v60, %s1997_s24  ;;  %v1067_v2 = vsel %vm552_vm12, %v1064_v59, %v1066_v55 }
 0x872   : > { %1145 = vrot.lane.b32.xlu0 %v1081_v61, %s1997_s24  ;;  %1151 = vrot.lane.b32.xlu1 %v1089_v62, %s1997_s24  ;;  %v1243_v62 = vld [vmem:[%s1971_s12 + $0x8] sm:$0xff] }
 0x877   : > { %v1054_v4 = vpop.permute.xlu0 %1053 }
 0x878   : > { %v1079_v1 = vpop.permute.xlu1 %1078 }
 0x879   : > { %1131 = vrot.lane.b32.xlu2 %v1067_v2, %s1997_s24  ;;  %v1082_v6 = vsel %vm575_vm7, %v1079_v1, %v1081_v61  ;;  %v1242_v61 = vld [vmem:[%s1971_s12] sm:$0xff] }
 0x87a   : > { %1106 = vperm.xlu0 %1474, %v1102_v0   ;;  %1147 = vrot.lane.b32.xlu1 %v1084_v63, %s1997_s24 }
 0x880   : > { %v1056_v5 = vpop.permute.xlu1 %1055 }
 0x881   : > { %1143 = vrot.lane.b32.xlu2 %v1082_v6, %s1997_s24  ;;  %v1057_v7 = vsel %vm536_vm11, %v1054_v4, %v1056_v5  ;;  %v1452_v6 = vld [vmem:[%s1970_s11] sm:$0xff] }
 0x882   : > { %1123 = vrot.lane.b32.xlu1 %v1057_v7, %s1997_s24 }
 0x889   : > { %1125 = vrot.lane.b32.xlu2 %v1056_v5, %s1997_s24 }
 0x88a   : > { %1111 = vperm.xlu1 %1475, %v1103_v3  }
 0x8aa   : > { %v1130_v9 = vpop.permute.xlu0 %1129 }
 0x8b3   : > { %v1160_v8 = vpop.permute.xlu2 %1159 }
 0x8bb   : > { %v1140_v10 = vpop.permute.xlu2 %1139 }
 0x8c2   : > { %v1150_v11 = vpop.permute.xlu0 %1149 }
 0x8c3   : > { %v1138_v12 = vpop.permute.xlu2 %1137 }
 0x8ca   : > { %v1156_v13 = vpop.permute.xlu1 %1155 }
 0x8cb   : > { %v1128_v14 = vpop.permute.xlu2 %1127  ;;  %v1154_v15 = vpop.permute.xlu0 %1153 }
 0x8cc   : > { %v1162_v16 = vsel %vm558_vm6, %v1128_v14, %v1130_v9  ;;  %v1168_v21 = vsel %vm558_vm6, %v1154_v15, %v1156_v13 }
 0x8cd   : > { %1185 = vmatpush.bf16.msrb.mxu1 %v1162_v16 }
 0x8d1   : > { %1186 = vmatpush.bf16.msrb.mxu1 %v1883_v57 }
 0x8d2   : > { %v1158_v17 = vpop.permute.xlu1 %1157 }
 0x8d3   : > { %v1169_v18 = vsel %vm558_vm6, %v1158_v17, %v1160_v8  ;;  %v1132_v26 = vpop.permute.xlu2 %1131 }
 0x8d4   : > { %v1142_v19 = vpop.permute.xlu0 %1141  ;;  %1200 = vmatpush.bf16.msrb.mxu3 %v1169_v18 }
 0x8d5   : > { %v1165_v20 = vsel %vm558_vm6, %v1140_v10, %v1142_v19 }
 0x8d6   : > { %1187 = vmatpush.bf16.msrb.mxu1 %v1165_v20 }
 0x8d8   : > { %1201 = vmatpush.bf16.msrb.mxu3 %v1168_v21 }
 0x8db   : > { %v1144_v30 = vpop.permute.xlu2 %1143 }
 0x8dc   : > { %v1136_v23 = vpop.permute.xlu1 %1135  ;;  %1202 = vmatpush.bf16.msrb.mxu3 %v1162_v16  ;;  %v1134_v25 = vpop.permute.xlu0 %1133 }
 0x8dd   : > { %v1164_v24 = vsel %vm558_vm6, %v1136_v23, %v1138_v12  ;;  %v1163_v27 = vsel %vm558_vm6, %v1132_v26, %v1134_v25 }
 0x8de   : > { %1188 = vmatpush.bf16.msrb.mxu1 %v1164_v24 }
 0x8e2   : > { %1189 = vmatpush.bf16.msrb.mxu1 %v1163_v27 }
 0x8e3   : > { %v1126_v36 = vpop.permute.xlu2 %1125 }
 0x8e4   : > { %v1152_v28 = vpop.permute.xlu1 %1151  ;;  %v1146_v32 = vpop.permute.xlu0 %1145 }
 0x8e5   : > { %v1167_v29 = vsel %vm558_vm6, %v1150_v11, %v1152_v28  ;;  %v1166_v33 = vsel %vm558_vm6, %v1144_v30, %v1146_v32 }
 0x8e6   : > { %1190 = vmatpush.bf16.msrb.mxu1 %v1162_v16  ;;  %1203 = vmatpush.bf16.msrb.mxu3 %v1167_v29 }
 0x8ec   : > { %v1148_v31 = vpop.permute.xlu1 %1147  ;;  %v1107_v45 = vpop.permute.xlu0 %1106 }
 0x8ed   : > { %1204 = vmatpush.bf16.msrb.mxu3 %v1148_v31 }
 0x8f1   : > { %1205 = vmatpush.bf16.msrb.mxu3 %v1166_v33 }
 0x8f4   : > { %v1124_v37 = vpop.permute.xlu1 %1123 }
 0x8f5   : > { %1206 = vmatpush.bf16.msrb.mxu3 %v1164_v24  ;;  %v1161_v39 = vsel %vm558_vm6, %v1124_v37, %v1126_v36 }
 0x8f6   : > { %1191 = vmatpush.bf16.msrb.mxu1 %v1161_v39 }
 0x8f8   : > { %1436 = vmatmul.msk.bf16.vlgmr.msrb.gmra.mxu3 %vm1181_vm0, %v1435_v38 }
 0x8fa   : > { %1192 = vmatpush.bf16.msrb.mxu1 %v1883_v57 }
 0x8fc   : > { %v1112_v48 = vpop.permute.xlu1 %1111 }
 0x8fd   : > { %1193 = vmatmul.bf16.vlgmr.msrb.gmra.mxu1 %v1431_v42 }
 0x97a   : > { %v1194_v43 = vpop.f32.mrf.mxu1 }
 0x97b   : > { %v1208_v44 = vpop.f32.mrf.mxu3  ;;  %v1195_v46 = vadd.f32 %v1194_v43, %v1107_v45 }
 0x97d   : > { %v1209_v47 = vadd.f32 %v1208_v44, %v1195_v46 }
 0x97f   : > { %v1213_v52 = vpack.c.bf16 %v1209_v47, %v1209_v47 }
 0x981   : > { %v1217_v55 = vunpack.c.l.b16 %v1213_v52 }
 0x982   : > { %v1196_v49 = vpop.f32.mrf.mxu1 }
 0x983   : > { %v1197_v50 = vadd.f32 %v1196_v49, %v1112_v48  ;;  %v1210_v51 = vpop.f32.mrf.mxu3 }
 0x985   : > { %v1211_v53 = vadd.f32 %v1210_v51, %v1197_v50 }
 0x987   : > { %v1214_v54 = vpack.c.bf16 %v1211_v53, %v1211_v53 }
 0x989   : > { %v1218_v56 = vunpack.c.l.b16 %v1214_v54 }
 0x98b   : > { %v1219_v58 = vpack.c.b16 %v1218_v56, %v1217_v55 }
 0x98d   : > { %1220 = vrot.lane.b32.xlu2 %v1219_v58, %s1990_s16 }
 0x9e7   : > { %v1221_v59 = vpop.permute.xlu2 %1220 }
 0x9e8   : > { %v1225_v57 = vsel %vm583_vm9, %v1221_v59, 0  ;;  %v1223_v60 = vsel %vm583_vm9, 0, %v1221_v59 }
 0x9e9   : > { %1236 = vrot.lane.b32.xlu1 %v1225_v57, %s1486_s26  ;;  %1228 = vrot.lane.b32.xlu2 %v1223_v60, %s1993_s21 }
 0x9ea   : > { %1234 = vrot.lane.b32.xlu0 %v1223_v60, %s1486_s26 }
 0x9f1   : > { %1246 = vperm.xlu1 %1475, %v1242_v61   ;;  %1251 = vperm.xlu2 %1473, %v1243_v62  }
 0x9f2   : > { %1230 = vrot.lane.b32.xlu0 %v1225_v57, %s1993_s21 }
 0xa43   : > { %v1229_v2 = vpop.permute.xlu2 %1228 }
 0xa4b   : > { %v1252_v11 = vpop.permute.xlu2 %1251 }
 0xa5b   : > { %v1237_v63 = vpop.permute.xlu1 %1236 }
 0xa5c   : > { %v1235_v0 = vpop.permute.xlu0 %1234 }
 0xa5d   : > { %v1238_v1 = vsel %vm544_vm3, %v1235_v0, %v1237_v63 }
 0xa5e   : > { %1267 = vmatpush.bf16.msrb.mxu0 %v1238_v1 }
 0xa63   : > { %v1247_v7 = vpop.permute.xlu1 %1246 }
 0xa64   : > { %v1231_v4 = vpop.permute.xlu0 %1230 }
 0xa65   : > { %v1232_v5 = vsel %vm536_vm11, %v1229_v2, %v1231_v4 }
 0xa66   : > { %1268 = vmatpush.bf16.msrb.mxu0 %v1232_v5 }
 0xa6a   : > { %1442 = vmatpush.bf16.msk.msrb.mxu0 %vm1832_vm1, %v1221_v59 }
 0xa6d   : > { %1443 = vmatmul.msk.bf16.vlgmr.msrb.gmra.mxu0 %vm1013_vm2, %v1452_v6 }
 0xaea   : > { %v1271_v3 = vpop.f32.mrf.mxu0 }
 0xaeb   : > { %v1272_v8 = vadd.f32 %v1271_v3, %v1247_v7 }
 0xaed   : > { %vm1276_vm3 = vcmp.ge.f32.partialorder %v1272_v8, 0.0  ;;  %v1278_v9 = vmul.f32 0.1, %v1272_v8 }
 0xaef   : > { %v1280_v10 = vsel %vm1276_vm3, %v1272_v8, %v1278_v9 }
 0xaf0   : > { %1282 = vst [vmem:[%s514_s29] sm:$0xff] %v1280_v10 }
 0xaf2   : > { %v1273_v12 = vpop.f32.mrf.mxu0 }
 0xaf3   : > { %v1274_v13 = vadd.f32 %v1273_v12, %v1252_v11 }
 0xaf5   : > { %vm1277_vm4 = vcmp.ge.f32.partialorder %v1274_v13, 0.0  ;;  %v1279_v22 = vmul.f32 0.1, %v1274_v13 }
 0xaf7   : > { %v1281_v14 = vsel %vm1277_vm4, %v1274_v13, %v1279_v22 }
 0xaf8   : > { %1283 = vst [vmem:[%s514_s29 + $0x8] sm:$0xff] %v1281_v14 }
 0xaf9 PF: > { %s26_s18 = sadd.s32 1, %s1482_s18  }
 0xafa   : > { %p23_p4 = scmp.ge.s32.totalorder %s26_s18, 6  }
 0xafc   :  { %25 = sbr.rel (!%p23_p4) target bundleno = 1 (0x1), region = 126 }

// kernel: _lambda_.16
= control target key start
LH: loop header
LB: loop body
LE: loop exit
PB: predicated region body
PF: predicated region fallthrough
CT: control target
= control target key end

     0   :  { %s1292_s18 = smov 0   ;;  %s1488_s0 = inlined_call_operand.vmem [shape: bf16[4,2,128], index: 0, kind: input, shape index: {}]   ;;  %s1489_s1 = inlined_call_operand.vmem [shape: bf16[8,12], index: 1, kind: input, shape index: {}]   ;;  %s1490_s2 = inlined_call_operand.vmem [shape: f32[8,1], index: 2, kind: input, shape index: {}]   ;;  %s1491_s3 = inlined_call_operand.vmem [shape: bf16[8,24], index: 3, kind: input, shape index: {}]   ;;  %s1492_s4 = inlined_call_operand.vmem [shape: f32[8,1], index: 4, kind: input, shape index: {}]   ;;  %s1493_s5 = inlined_call_operand.vmem [shape: bf16[16,48], index: 5, kind: input, shape index: {}]   ;;  %s1494_s6 = inlined_call_operand.vmem [shape: f32[16,1], index: 6, kind: input, shape index: {}]   ;;  %s1495_s7 = inlined_call_operand.vmem [shape: bf16[16,48], index: 7, kind: input, shape index: {}]   ;;  %s1496_s8 = inlined_call_operand.vmem [shape: f32[16,1], index: 8, kind: input, shape index: {}]   ;;  %s1497_s9 = inlined_call_operand.vmem [shape: bf16[16,96], index: 9, kind: input, shape index: {}]   ;;  %s1498_s10 = inlined_call_operand.vmem [shape: f32[16,1], index: 10, kind: input, shape index: {}]   ;;  %s1499_s11 = inlined_call_operand.vmem [shape: bf16[16,48], index: 11, kind: input, shape index: {}]   ;;  %s1500_s12 = inlined_call_operand.vmem [shape: f32[16,1], index: 12, kind: input, shape index: {}]   ;;  %s1501_s13 = inlined_call_operand.vmem [shape: f32[4,8,128], index: 13, kind: output, shape index: {0}]   ;;  %s1502_s14 = inlined_call_operand.vmem [shape: f32[4,16,128], index: 14, kind: output, shape index: {1}]   ;;  %s1503_s15 = inlined_call_operand.vmem [shape: f32[4,16,128], index: 15, kind: output, shape index: {2}]  }
   0x1 LB: > { %s1137_s19 = sadd.s32 4294967295, %s1204_s18   ;;  %p1141_p0 = scmp.ge.s32.totalorder %s1204_s18, 1  ;;  %s1204_s18 = sphi %s1292_s18, %s26_s18  }
   0x2   : > { %p440_p1 = scmp.lt.s32.totalorder %s1204_s18, 5 }
   0x4   : > { %p441_p2 = pnand %p1141_p0, %p440_p1 }
   0x5   : > { %p495_p3 = scmp.lt.s32.totalorder (!%p441_p2), %s1137_s19, 3  ;;  %s1206_s23 = smov (!%p441_p2), 2  }
   0x6   : > { %444 = sbr.rel (%p441_p2) target bundleno = 2665 (0xa69), region = 72  ;;  %s1207_s24 = smov (!%p441_p2), 126  }
   0x7   : > { %s1208_s25 = smov (!%p441_p2), 127   ;;  %s1209_s26 = smov (!%p441_p2), 1  }
   0x8   : > { %s1210_s27 = smov (!%p441_p2), 125  }
   0xb   : > { %s1507_s19 = smov (!%p495_p3, %s1137_s19), 3  ;;  %vm520_vm0 = vcmask 15360   ;;  %vm561_vm1 = vcmask 1040384   ;;  %vm533_vm2 = vcmask 1039360   ;;  %vm541_vm3 = vcmask 1031168   ;;  %v586_v37 = vld [vmem:[%s1490_s2] sm:$0xff] }
   0xc   : > { %s497_s22 = scalar_lea.vmem %s1488_s0, %s1507_s19  ;;  %vm566_vm4 = vcmask 1041408   ;;  %vm571_vm5 = vcmask 1042432   ;;  %vm575_vm6 = vcmask 1043456   ;;  %vm559_vm7 = vcmask 1022976   ;;  %v585_v43 = vld [vmem:[%s1489_s1] sm:$0xf] }
   0xd   : > { %v513_v0 = vld [vmem:[%s497_s22] sm:$0x1]  ;;  %vm580_vm8 = vcmask 1044480   ;;  %v1211_v38 = vmov 0   ;;  %vm603_vm9 = vcmask 1045504   ;;  %vm599_vm10 = vcmask 97280  }
   0xe   : > { %515 = vst [vmem:[#allocation1] ss:$9 sm:$0xff] %v513_v0  ;;  %1195 = vset.pattern.permute.xlu0 %v1211_v38  ;;  %1196 = vset.pattern.permute.xlu1 %v1211_v38  ;;  %vm626_vm11 = vcmask 7168   ;;  %v648_v56 = vld [vmem:[%s1492_s4] sm:$0xff]  ;;  %vm654_vm12 = vcmask 195584   ;;  %s1142_s28 = sshll.u32 %s1507_s19, 3 }
   0xf   : > { %1197 = vset.pattern.permute.xlu2 %v1211_v38  ;;  %s501_s16 = scalar_lea.vmem %s1501_s13, %s1142_s28  ;;  %vm771_vm14 = vcmask 392192   ;;  %vm1411_vm15 = vmneg %vm626_vm11  ;;  %s1175_s28 = sshll.u32 %s1507_s19, 4 }
  0x15   : > { %v516_v1 = vld [vmem:[#allocation1] sm:$0xff] }
  0x16   : > { %518 = vrot.lane.b32.xlu0 %v516_v1, %s1206_s23  ;;  %v647_v1 = vld [vmem:[%s1491_s3] sm:$0xf] }
  0x88   : > { %v519_v2 = vpop.permute.xlu0 %518 }
  0x89   : > { %v523_v3 = vsel %vm520_vm0, 0, %v519_v2  ;;  %v524_v4 = vsel %vm520_vm0, %v519_v2, 0 }
  0x8a   : > { %v536_v5 = vrot.slane %v524_v4, 6  ;;  %v528_v6 = vrot.slane %v524_v4, 7  ;;  %v527_v7 = vrot.slane %v523_v3, 7  ;;  %v543_v8 = vrot.slane %v523_v3, 5 }
  0x8b   : > { %v535_v9 = vrot.slane %v523_v3, 6  ;;  %v546_v10 = vrot.slane %v523_v3, 4  ;;  %v553_v11 = vrot.slane %v523_v3, 3  ;;  %v547_v12 = vrot.slane %v524_v4, 4 }
  0x8c   : > { %539 = vrot.lane.b32.xlu2 %v536_v5, %s1207_s24  ;;  %531 = vrot.lane.b32.xlu1 %v528_v6, %s1208_s25  ;;  %v554_v13 = vrot.slane %v524_v4, 3 }
  0x8d   : > { %529 = vrot.lane.b32.xlu0 %v527_v7, %s1208_s25 }
  0x94   : > { %544 = vrot.lane.b32.xlu2 %v543_v8, %s1209_s26  ;;  %537 = vrot.lane.b32.xlu1 %v535_v9, %s1207_s24 }
  0x95   : > { %548 = vrot.lane.b32.xlu0 %v546_v10, %s1208_s25 }
  0x9c   : > { %555 = vrot.lane.b32.xlu2 %v553_v11, %s1210_s27  ;;  %550 = vrot.lane.b32.xlu1 %v547_v12, %s1208_s25 }
  0x9d   : > { %557 = vrot.lane.b32.xlu0 %v554_v13, %s1210_s27 }
  0xa5   : > { %589 = vperm.xlu0 %1195, %v586_v37  }
  0xe6   : > { %v540_v14 = vpop.permute.xlu2 %539 }
  0xee   : > { %v545_v17 = vpop.permute.xlu2 %544 }
  0xf6   : > { %v556_v28 = vpop.permute.xlu2 %555 }
  0xfe   : > { %v532_v15 = vpop.permute.xlu1 %531 }
  0xff   : > { %v530_v16 = vpop.permute.xlu0 %529  ;;  %v565_v20 = vsel %vm561_vm1, %v524_v4, %v532_v15 }
 0x100   : > { %v534_v21 = vsel %vm533_vm2, %v530_v16, %v532_v15  ;;  %v570_v23 = vsel %vm566_vm4, %v565_v20, %v540_v14 }
 0x101   : > { %v563_v24 = vsel %vm561_vm1, %v523_v3, %v534_v21  ;;  %v574_v26 = vsel %vm571_vm5, %v570_v23, %v545_v17 }
 0x106   : > { %v538_v18 = vpop.permute.xlu1 %537 }
 0x107   : > { %v549_v19 = vpop.permute.xlu0 %548  ;;  %v542_v22 = vsel %vm541_vm3, %v538_v18, %v540_v14 }
 0x108   : > { %v568_v25 = vsel %vm566_vm4, %v563_v24, %v542_v22 }
 0x109   : > { %v573_v32 = vsel %vm571_vm5, %v568_v25, %v545_v17 }
 0x10e   : > { %v551_v27 = vpop.permute.xlu1 %550 }
 0x10f   : > { %v552_v29 = vsel %vm533_vm2, %v549_v19, %v551_v27  ;;  %v579_v30 = vsel %vm575_vm6, %v574_v26, %v551_v27  ;;  %v558_v31 = vpop.permute.xlu0 %557 }
 0x110   : > { %v560_v33 = vsel %vm559_vm7, %v556_v28, %v558_v31  ;;  %v584_v34 = vsel %vm580_vm8, %v579_v30, %v558_v31  ;;  %v577_v35 = vsel %vm575_vm6, %v573_v32, %v552_v29 }
 0x111   : > { %596 = vrot.lane.b32.xlu2 %v584_v34, %s1208_s25  ;;  %v582_v36 = vsel %vm580_vm8, %v577_v35, %v560_v33  ;;  %v731_v34 = vld [vmem:[%s1494_s6 + $0x8] sm:$0xff]  ;;  %v730_v35 = vld [vmem:[%s1494_s6] sm:$0xff] }
 0x112   : > { %594 = vrot.lane.b32.xlu1 %v582_v36, %s1208_s25 }
 0x117   : > { %v590_v44 = vpop.permute.xlu0 %589 }
 0x16b   : > { %v597_v39 = vpop.permute.xlu2 %596 }
 0x184   : > { %v595_v40 = vpop.permute.xlu1 %594 }
 0x185   : > { %v598_v41 = vsel %vm533_vm2, %v595_v40, %v597_v39 }
 0x186   : > { %v605_v42 = vsel %vm603_vm9, %v598_v41, 0 }
 0x187   : > { %614 = vmatpush.bf16.msra.mxu2 %v605_v42 }
 0x18a   : > { %1147 = vmatmul.msk.bf16.vlgmr.msra.gmra.mxu2 %vm599_vm10, %v585_v43 }
 0x20d   : > { %v616_v45 = vpop.f32.mrf.mxu2 }
 0x20e   : > { %v617_v46 = vadd.f32 %v616_v45, %v590_v44 }
 0x210   : > { %v620_v47 = vpack.c.bf16 %v617_v46, %v617_v46  ;;  %v1177_v46 = vld [vmem:[%s1493_s5] sm:$0xff] }
 0x212   : > { %v622_v48 = vunpack.c.l.b16 %v620_v47 }
 0x214   : > { %v623_v49 = vpack.c.b16 %v622_v48, %v622_v48 }
 0x215   : > { %v618_v50 = vpop.f32.mrf.mxu2 }
 0x216   : > { %624 = vrot.lane.b32.xlu1 %v623_v49, %s1209_s26 }
 0x288   : > { %v625_v51 = vpop.permute.xlu1 %624 }
 0x289   : > { %v629_v52 = vsel %vm626_vm11, %v625_v51, 0  ;;  %v628_v53 = vsel %vm626_vm11, 0, %v625_v51 }
 0x28a   : > { %641 = vrot.lane.b32.xlu1 %v629_v52, %s1207_s24  ;;  %v633_v54 = vrot.slane %v629_v52, 4  ;;  %639 = vrot.lane.b32.xlu2 %v628_v53, %s1207_s24  ;;  %v632_v55 = vrot.slane %v628_v53, 4 }
 0x28c   : > { %636 = vrot.lane.b32.xlu0 %v633_v54, %s1208_s25 }
 0x292   : > { %634 = vrot.lane.b32.xlu2 %v632_v55, %s1208_s25  ;;  %651 = vperm.xlu1 %1196, %v648_v56  }
 0x2e4   : > { %v640_v57 = vpop.permute.xlu2 %639 }
 0x2ec   : > { %v635_v60 = vpop.permute.xlu2 %634 }
 0x2fc   : > { %v642_v58 = vpop.permute.xlu1 %641 }
 0x2fd   : > { %v643_v59 = vsel %vm541_vm3, %v640_v57, %v642_v58 }
 0x2fe   : > { %v637_v61 = vpop.permute.xlu0 %636  ;;  %v659_v62 = vsel %vm575_vm6, %v643_v59, 0 }
 0x2ff   : > { %v638_v63 = vsel %vm533_vm2, %v635_v60, %v637_v61  ;;  %667 = vmatpush.bf16.msra.mxu1 %v659_v62  ;;  %v818_v61 = vld [vmem:[%s1496_s8] sm:$0xff]  ;;  %v819_v62 = vld [vmem:[%s1496_s8 + $0x8] sm:$0xff] }
 0x300   : > { %v645_v0 = vsel %vm575_vm6, %v628_v53, %v638_v63 }
 0x303   : > { %668 = vmatpush.bf16.msra.mxu1 %v645_v0 }
 0x304   : > { %v652_v2 = vpop.permute.xlu1 %651 }
 0x306   : > { %1148 = vmatmul.msk.bf16.vlgmr.msra.gmra.mxu1 %vm654_vm12, %v647_v1 }
 0x383   : > { %v670_v3 = vpop.f32.mrf.mxu1 }
 0x384   : > { %v671_v4 = vadd.f32 %v670_v3, %v652_v2 }
 0x386   : > { %vm674_vm13 = vcmp.ge.f32.partialorder %v671_v4, 0.0  ;;  %v675_v5 = vmul.f32 0.1, %v671_v4 }
 0x388   : > { %v676_v6 = vsel %vm674_vm13, %v671_v4, %v675_v5 }
 0x389   : > { %677 = vst [vmem:[%s501_s16] sm:$0xff] %v676_v6  ;;  %v678_v7 = vpack.c.bf16 %v676_v6, %v676_v6  ;;  %v1178_v6 = vld [vmem:[%s1495_s7] sm:$0xff]  ;;  %s506_s16 = scalar_lea.vmem %s1502_s14, %s1175_s28 }
 0x38b   : > { %v672_v8 = vpop.f32.mrf.mxu1  ;;  %v680_v9 = vunpack.c.l.b16 %v678_v7 }
 0x38d   : > { %v681_v10 = vpack.c.b16 %v680_v9, %v680_v9 }
 0x38f   : > { %682 = vrot.lane.b32.xlu2 %v681_v10, %s1206_s23 }
 0x3e9   : > { %v683_v11 = vpop.permute.xlu2 %682 }
 0x3ea   : > { %v685_v12 = vsel %vm520_vm0, 0, %v683_v11  ;;  %v686_v13 = vsel %vm520_vm0, %v683_v11, 0 }
 0x3eb   : > { %698 = vrot.lane.b32.xlu2 %v686_v13, %s1207_s24  ;;  %705 = vrot.lane.b32.xlu1 %v686_v13, %s1208_s25  ;;  %v689_v14 = vrot.slane %v685_v12, 4  ;;  %v690_v15 = vrot.slane %v686_v13, 4 }
 0x3ec   : > { %703 = vrot.lane.b32.xlu0 %v685_v12, %s1208_s25 }
 0x3f3   : > { %696 = vrot.lane.b32.xlu1 %v685_v12, %s1207_s24  ;;  %708 = vrot.lane.b32.xlu2 %v689_v14, %s1210_s27 }
 0x3f4   : > { %710 = vrot.lane.b32.xlu0 %v690_v15, %s1210_s27 }
 0x3fb   : > { %691 = vrot.lane.b32.xlu1 %v689_v14, %s1208_s25  ;;  %693 = vrot.lane.b32.xlu2 %v690_v15, %s1208_s25 }
 0x3fc   : > { %701 = vrot.lane.b32.xlu0 %v689_v14, %s1209_s26 }
 0x445   : > { %v699_v16 = vpop.permute.xlu2 %698 }
 0x44d   : > { %v709_v19 = vpop.permute.xlu2 %708 }
 0x455   : > { %v694_v26 = vpop.permute.xlu2 %693 }
 0x456   : > { %v716_v36 = vsel %vm575_vm6, %v686_v13, %v694_v26 }
 0x45d   : > { %v706_v17 = vpop.permute.xlu1 %705 }
 0x45e   : > { %v704_v18 = vpop.permute.xlu0 %703 }
 0x45f   : > { %v707_v22 = vsel %vm533_vm2, %v704_v18, %v706_v17 }
 0x465   : > { %v697_v20 = vpop.permute.xlu1 %696 }
 0x466   : > { %v711_v21 = vpop.permute.xlu0 %710  ;;  %v700_v28 = vsel %vm541_vm3, %v697_v20, %v699_v16 }
 0x467   : > { %v712_v23 = vsel %vm559_vm7, %v709_v19, %v711_v21  ;;  %v727_v24 = vsel %vm575_vm6, %v706_v17, %v711_v21 }
 0x468   : > { %763 = vrot.lane.b32.xlu1 %v727_v24, %s1208_s25  ;;  %v724_v25 = vsel %vm575_vm6, %v707_v22, %v712_v23 }
 0x469   : > { %761 = vrot.lane.b32.xlu0 %v724_v25, %s1208_s25 }
 0x46d   : > { %v692_v27 = vpop.permute.xlu1 %691 }
 0x46e   : > { %v695_v29 = vsel %vm533_vm2, %v692_v27, %v694_v26  ;;  %v702_v30 = vpop.permute.xlu0 %701  ;;  %v893_v27 = vld [vmem:[%s1498_s10] sm:$0xff] }
 0x46f   : > { %v719_v31 = vsel %vm575_vm6, %v700_v28, %v702_v30  ;;  %v721_v32 = vsel %vm575_vm6, %v699_v16, %v702_v30  ;;  %v714_v33 = vsel %vm575_vm6, %v685_v12, %v695_v29 }
 0x470   : > { %757 = vrot.lane.b32.xlu2 %v719_v31, %s1208_s25  ;;  %753 = vrot.lane.b32.xlu1 %v714_v33, %s1208_s25 }
 0x471   : > { %759 = vrot.lane.b32.xlu0 %v721_v32, %s1208_s25 }
 0x478   : > { %755 = vrot.lane.b32.xlu2 %v716_v36, %s1208_s25  ;;  %739 = vperm.xlu1 %1196, %v731_v34   ;;  %v894_v36 = vld [vmem:[%s1498_s10 + $0x8] sm:$0xff] }
 0x479   : > { %734 = vperm.xlu0 %1195, %v730_v35  }
 0x4ca   : > { %v758_v40 = vpop.permute.xlu2 %757 }
 0x4d2   : > { %v756_v44 = vpop.permute.xlu2 %755 }
 0x4da   : > { %v764_v37 = vpop.permute.xlu1 %763 }
 0x4db   : > { %v762_v38 = vpop.permute.xlu0 %761 }
 0x4dc   : > { %v767_v39 = vsel %vm533_vm2, %v762_v38, %v764_v37 }
 0x4dd   : > { %780 = vmatpush.bf16.msrb.mxu2 %v767_v39 }
 0x4e2   : > { %v754_v43 = vpop.permute.xlu1 %753 }
 0x4e3   : > { %v760_v41 = vpop.permute.xlu0 %759  ;;  %v765_v45 = vsel %vm533_vm2, %v754_v43, %v756_v44 }
 0x4e4   : > { %v766_v42 = vsel %vm533_vm2, %v758_v40, %v760_v41 }
 0x4e5   : > { %781 = vmatpush.bf16.msrb.mxu2 %v766_v42 }
 0x4e9   : > { %782 = vmatpush.bf16.msrb.mxu2 %v765_v45 }
 0x4ea   : > { %v740_v50 = vpop.permute.xlu1 %739 }
 0x4eb   : > { %v735_v48 = vpop.permute.xlu0 %734 }
 0x4ec   : > { %1153 = vmatmul.msk.bf16.vlgmr.msrb.gmra.mxu2 %vm771_vm14, %v1177_v46 }
 0x56f   : > { %v784_v47 = vpop.f32.mrf.mxu2 }
 0x570   : > { %v785_v49 = vadd.f32 %v784_v47, %v735_v48  ;;  %v1179_v47 = vld [vmem:[%s1497_s9] sm:$0xff] }
 0x572   : > { %v789_v52 = vpack.c.bf16 %v785_v49, %v785_v49 }
 0x574   : > { %v793_v55 = vunpack.c.l.b16 %v789_v52 }
 0x577   : > { %v786_v51 = vpop.f32.mrf.mxu2 }
 0x578   : > { %v787_v53 = vadd.f32 %v786_v51, %v740_v50 }
 0x57a   : > { %v790_v54 = vpack.c.bf16 %v787_v53, %v787_v53 }
 0x57c   : > { %v794_v56 = vunpack.c.l.b16 %v790_v54 }
 0x57e   : > { %v795_v57 = vpack.c.b16 %v794_v56, %v793_v55 }
 0x580   : > { %796 = vrot.lane.b32.xlu2 %v795_v57, %s1209_s26 }
 0x5da   : > { %v797_v58 = vpop.permute.xlu2 %796 }
 0x5db   : > { %v801_v59 = vsel %vm626_vm11, %v797_v58, 0  ;;  %v799_v60 = vsel %vm626_vm11, 0, %v797_v58 }
 0x5dc   : > { %812 = vrot.lane.b32.xlu1 %v801_v59, %s1207_s24  ;;  %804 = vrot.lane.b32.xlu2 %v799_v60, %s1208_s25 }
 0x5dd   : > { %810 = vrot.lane.b32.xlu0 %v799_v60, %s1207_s24 }
 0x5e4   : > { %822 = vperm.xlu1 %1196, %v818_v61   ;;  %827 = vperm.xlu2 %1197, %v819_v62   ;;  %v979_v62 = vld [vmem:[%s1500_s12] sm:$0xff] }
 0x5e5   : > { %806 = vrot.lane.b32.xlu0 %v801_v59, %s1208_s25 }
 0x636   : > { %v805_v2 = vpop.permute.xlu2 %804 }
 0x63e   : > { %v828_v12 = vpop.permute.xlu2 %827 }
 0x64e   : > { %v813_v63 = vpop.permute.xlu1 %812 }
 0x64f   : > { %v811_v0 = vpop.permute.xlu0 %810 }
 0x650   : > { %v814_v1 = vsel %vm541_vm3, %v811_v0, %v813_v63  ;;  %v980_v63 = vld [vmem:[%s1500_s12 + $0x8] sm:$0xff] }
 0x651   : > { %843 = vmatpush.bf16.msra.mxu3 %v814_v1 }
 0x656   : > { %v823_v7 = vpop.permute.xlu1 %822 }
 0x657   : > { %v807_v3 = vpop.permute.xlu0 %806 }
 0x658   : > { %v808_v4 = vsel %vm533_vm2, %v805_v2, %v807_v3 }
 0x659   : > { %844 = vmatpush.bf16.msra.mxu3 %v808_v4 }
 0x65d   : > { %1159 = vmatpush.bf16.msk.msra.mxu3 %vm1411_vm15, %v797_v58 }
 0x660   : > { %1160 = vmatmul.msk.bf16.vlgmr.msra.gmra.mxu3 %vm771_vm14, %v1178_v6 }
 0x6e3   : > { %v847_v8 = vpop.f32.mrf.mxu3 }
 0x6e4   : > { %v848_v9 = vadd.f32 %v847_v8, %v823_v7  ;;  %v1180_v7 = vld [vmem:[%s1499_s11] sm:$0xff] }
 0x6e6   : > { %vm852_vm1 = vcmp.ge.f32.partialorder %v848_v9, 0.0  ;;  %v854_v10 = vmul.f32 0.1, %v848_v9 }
 0x6e8   : > { %v856_v11 = vsel %vm852_vm1, %v848_v9, %v854_v10 }
 0x6e9   : > { %858 = vst [vmem:[%s506_s16] sm:$0xff] %v856_v11  ;;  %v860_v16 = vpack.c.bf16 %v856_v11, %v856_v11 }
 0x6eb   : > { %v849_v13 = vpop.f32.mrf.mxu3  ;;  %v864_v19 = vunpack.c.l.b16 %v860_v16 }
 0x6ec   : > { %v850_v14 = vadd.f32 %v849_v13, %v828_v12 }
 0x6ee   : > { %vm853_vm4 = vcmp.ge.f32.partialorder %v850_v14, 0.0  ;;  %v855_v15 = vmul.f32 0.1, %v850_v14 }
 0x6f0   : > { %v857_v17 = vsel %vm853_vm4, %v850_v14, %v855_v15 }
 0x6f1   : > { %859 = vst [vmem:[%s506_s16 + $0x8] sm:$0xff] %v857_v17  ;;  %v861_v18 = vpack.c.bf16 %v857_v17, %v857_v17 }
 0x6f3   : > { %v865_v20 = vunpack.c.l.b16 %v861_v18 }
 0x6f5   : > { %v866_v21 = vpack.c.b16 %v865_v20, %v864_v19 }
 0x6f7   : > { %867 = vrot.lane.b32.xlu0 %v866_v21, %s1206_s23 }
 0x769   : > { %v868_v22 = vpop.permute.xlu0 %867 }
 0x76a   : > { %v870_v23 = vsel %vm520_vm0, 0, %v868_v22  ;;  %v871_v24 = vsel %vm520_vm0, %v868_v22, 0  ;;  %vm932_vm0 = vcmask 785408  }
 0x76b   : > { %888 = vrot.lane.b32.xlu2 %v871_v24, %s1210_s27  ;;  %874 = vrot.lane.b32.xlu0 %v870_v23, %s1208_s25 }
 0x76c   : > { %886 = vrot.lane.b32.xlu1 %v870_v23, %s1210_s27  ;;  %s511_s27 = scalar_lea.vmem %s1503_s15, %s1175_s28 }
 0x773   : > { %884 = vrot.lane.b32.xlu2 %v870_v23, %s1209_s26  ;;  %879 = vrot.lane.b32.xlu0 %v870_v23, %s1207_s24 }
 0x774   : > { %876 = vrot.lane.b32.xlu1 %v871_v24, %s1208_s25 }
 0x77c   : > { %881 = vrot.lane.b32.xlu1 %v871_v24, %s1207_s24 }
 0x7c5   : > { %v889_v25 = vpop.permute.xlu2 %888 }
 0x7c6   : > { %922 = vrot.lane.b32.xlu0 %v889_v25, %s1208_s25 }
 0x7cd   : > { %v885_v26 = vpop.permute.xlu2 %884 }
 0x7ce   : > { %918 = vrot.lane.b32.xlu0 %v885_v26, %s1208_s25 }
 0x7d6   : > { %897 = vperm.xlu0 %1195, %v893_v27  }
 0x7dd   : > { %v875_v30 = vpop.permute.xlu0 %874 }
 0x7de   : > { %v887_v28 = vpop.permute.xlu1 %886 }
 0x7df   : > { %v890_v29 = vsel %vm559_vm7, %v887_v28, %v889_v25 }
 0x7e0   : > { %920 = vrot.lane.b32.xlu2 %v890_v29, %s1208_s25 }
 0x7e5   : > { %v880_v33 = vpop.permute.xlu0 %879 }
 0x7e6   : > { %v877_v31 = vpop.permute.xlu1 %876 }
 0x7e7   : > { %v878_v32 = vsel %vm533_vm2, %v875_v30, %v877_v31 }
 0x7e8   : > { %910 = vrot.lane.b32.xlu1 %v878_v32, %s1208_s25  ;;  %912 = vrot.lane.b32.xlu2 %v877_v31, %s1208_s25 }
 0x7ee   : > { %v882_v34 = vpop.permute.xlu1 %881 }
 0x7ef   : > { %v883_v35 = vsel %vm541_vm3, %v880_v33, %v882_v34 }
 0x7f0   : > { %914 = vrot.lane.b32.xlu1 %v883_v35, %s1208_s25  ;;  %916 = vrot.lane.b32.xlu2 %v882_v34, %s1208_s25 }
 0x7f8   : > { %902 = vperm.xlu1 %1196, %v894_v36  }
 0x838   : > { %v923_v37 = vpop.permute.xlu0 %922 }
 0x83a   : > { %v921_v38 = vpop.permute.xlu2 %920 }
 0x83b   : > { %v926_v39 = vsel %vm533_vm2, %v921_v38, %v923_v37 }
 0x83c   : > { %938 = vmatpush.bf16.msra.mxu0 %v926_v39 }
 0x840   : > { %v919_v43 = vpop.permute.xlu0 %918 }
 0x842   : > { %v913_v40 = vpop.permute.xlu2 %912 }
 0x848   : > { %v898_v49 = vpop.permute.xlu0 %897 }
 0x84a   : > { %v917_v44 = vpop.permute.xlu2 %916 }
 0x85a   : > { %v911_v41 = vpop.permute.xlu1 %910 }
 0x85b   : > { %v924_v42 = vsel %vm533_vm2, %v911_v41, %v913_v40 }
 0x85c   : > { %939 = vmatpush.bf16.msra.mxu0 %v924_v42 }
 0x860   : > { %940 = vmatpush.bf16.msra.mxu0 %v919_v43 }
 0x862   : > { %v915_v45 = vpop.permute.xlu1 %914 }
 0x863   : > { %v925_v46 = vsel %vm533_vm2, %v915_v45, %v917_v44 }
 0x864   : > { %941 = vmatpush.bf16.msra.mxu0 %v925_v46 }
 0x868   : > { %942 = vmatpush.bf16.msra.mxu0 %v924_v42 }
 0x86a   : > { %v903_v51 = vpop.permute.xlu1 %902 }
 0x86c   : > { %943 = vmatpush.bf16.msra.mxu0 %v878_v32 }
 0x86f   : > { %1165 = vmatmul.msk.bf16.vlgmr.msra.gmra.mxu0 %vm932_vm0, %v1179_v47 }
 0x8ec   : > { %v945_v48 = vpop.f32.mrf.mxu0 }
 0x8ed   : > { %v946_v50 = vadd.f32 %v945_v48, %v898_v49 }
 0x8ef   : > { %v950_v53 = vpack.c.bf16 %v946_v50, %v946_v50 }
 0x8f1   : > { %v954_v56 = vunpack.c.l.b16 %v950_v53 }
 0x8f4   : > { %v947_v52 = vpop.f32.mrf.mxu0 }
 0x8f5   : > { %v948_v54 = vadd.f32 %v947_v52, %v903_v51 }
 0x8f7   : > { %v951_v55 = vpack.c.bf16 %v948_v54, %v948_v54 }
 0x8f9   : > { %v955_v57 = vunpack.c.l.b16 %v951_v55 }
 0x8fb   : > { %v956_v58 = vpack.c.b16 %v955_v57, %v954_v56 }
 0x8fd   : > { %957 = vrot.lane.b32.xlu2 %v956_v58, %s1209_s26 }
 0x957   : > { %v958_v59 = vpop.permute.xlu2 %957 }
 0x958   : > { %v962_v60 = vsel %vm626_vm11, %v958_v59, 0  ;;  %v960_v61 = vsel %vm626_vm11, 0, %v958_v59 }
 0x959   : > { %973 = vrot.lane.b32.xlu1 %v962_v60, %s1207_s24  ;;  %965 = vrot.lane.b32.xlu2 %v960_v61, %s1208_s25 }
 0x95a   : > { %971 = vrot.lane.b32.xlu0 %v960_v61, %s1207_s24 }
 0x961   : > { %983 = vperm.xlu1 %1196, %v979_v62   ;;  %988 = vperm.xlu2 %1197, %v980_v63  }
 0x962   : > { %967 = vrot.lane.b32.xlu0 %v962_v60, %s1208_s25 }
 0x9b3   : > { %v966_v3 = vpop.permute.xlu2 %965 }
 0x9bb   : > { %v989_v13 = vpop.permute.xlu2 %988 }
 0x9cb   : > { %v974_v0 = vpop.permute.xlu1 %973 }
 0x9cc   : > { %v972_v1 = vpop.permute.xlu0 %971 }
 0x9cd   : > { %v975_v2 = vsel %vm541_vm3, %v972_v1, %v974_v0 }
 0x9ce   : > { %1004 = vmatpush.bf16.msrb.mxu1 %v975_v2 }
 0x9d3   : > { %v984_v8 = vpop.permute.xlu1 %983 }
 0x9d4   : > { %v968_v4 = vpop.permute.xlu0 %967 }
 0x9d5   : > { %v969_v6 = vsel %vm533_vm2, %v966_v3, %v968_v4 }
 0x9d6   : > { %1005 = vmatpush.bf16.msrb.mxu1 %v969_v6 }
 0x9da   : > { %1171 = vmatpush.bf16.msk.msrb.mxu1 %vm1411_vm15, %v958_v59 }
 0x9dd   : > { %1172 = vmatmul.msk.bf16.vlgmr.msrb.gmra.mxu1 %vm771_vm14, %v1180_v7 }
 0xa5a   : > { %v1008_v9 = vpop.f32.mrf.mxu1 }
 0xa5b   : > { %v1009_v10 = vadd.f32 %v1008_v9, %v984_v8 }
 0xa5d   : > { %vm1013_vm3 = vcmp.ge.f32.partialorder %v1009_v10, 0.0  ;;  %v1015_v11 = vmul.f32 0.1, %v1009_v10 }
 0xa5f   : > { %v1017_v12 = vsel %vm1013_vm3, %v1009_v10, %v1015_v11 }
 0xa60   : > { %1019 = vst [vmem:[%s511_s27] sm:$0xff] %v1017_v12 }
 0xa62   : > { %v1010_v14 = vpop.f32.mrf.mxu1 }
 0xa63   : > { %v1011_v15 = vadd.f32 %v1010_v14, %v989_v13 }
 0xa65   : > { %vm1014_vm2 = vcmp.ge.f32.partialorder %v1011_v15, 0.0  ;;  %v1016_v5 = vmul.f32 0.1, %v1011_v15 }
 0xa67   : > { %v1018_v16 = vsel %vm1014_vm2, %v1011_v15, %v1016_v5 }
 0xa68   : > { %1020 = vst [vmem:[%s511_s27 + $0x8] sm:$0xff] %v1018_v16 }
 0xa69 PF: > { %s26_s18 = sadd.s32 1, %s1204_s18  }
 0xa6a   : > { %p23_p4 = scmp.ge.s32.totalorder %s26_s18, 6  }
 0xa6c   :  { %25 = sbr.rel (!%p23_p4) target bundleno = 1 (0x1), region = 126 }

</bundles_post_ra>
